<compile_context>
chip_gen: v5e
topology: v5e:2x2
jax: 0.10.0
libtpu: 0.0.40
codegen_flags: <defaults>
</compile_context>

<pallas_src>
import math
import jax
import jax.numpy as jnp
from jax import lax
from jax.experimental import pallas as pl
from jax.experimental.pallas import tpu as pltpu  # noqa: F401  (TPU backend)

# ----------------------------- model dims -----------------------------------
H = 32            # hidden_size
HEADS = 4         # trans_head_num
D = H // HEADS    # per-head attn size
FF = 4 * H        # ff_size
NL = 2            # trans_layer_num_sub
MEM = 8           # global_memory_num
M = 2             # modalities: diagnoses, procedures
A = 3             # number of admissions for the example patient
L = 8             # codes per admission (fixed length for the synthetic kernel)
N = A * L         # codes per modality, flattened over admissions
MH = M * HEADS    # modality x head batch (8)
H2 = M * H        # packed activation width (64)
DIAG_COUNT = 20
PROC_COUNT = 16
EPS = 1e-5
SCALE = D ** (-0.5)
SQRT2 = math.sqrt(2.0)

# ---------------------- packed-slab static layout ----------------------------
# w_big (per layer, 64 rows x 512 lanes):  [ wqkv_bd(192) | wo_bd(64) | w1_bd(256) ]
OFF_QKV = 0
OFF_WO = 3 * H2          # 192
OFF_W1 = 4 * H2          # 256
WBIG_W = 4 * H2 + 2 * FF  # 512

# vec slab (17 rows x 256 lanes): 8 rows per layer + 1 GRU-bias row
VEC_ROWS_PER_LAYER = 8
VEC_W = 256
R_LN1G, R_LN1B, R_LN2G, R_LN2B, R_BQKV, R_BO, R_B1, R_B2 = range(8)
R_GRUB = NL * VEC_ROWS_PER_LAYER   # row 16: [bih(96) | bhh(96) | pad]

# misc slab (64 rows x 240 lanes):
#   [ memk_bd(16) | memo_bd(64) | gru wih/whh stacked(96) | memv_bd in rows 0:16 (64) ]
OFF_MEMK = 0
OFF_MEMO = 2 * MEM            # 16
OFF_GRUW = OFF_MEMO + H2      # 80
OFF_MEMV = OFF_GRUW + 3 * H   # 176
MISC_W = OFF_MEMV + H2        # 240


# ------------------------- single fused encoder kernel -----------------------
def encoder_kernel(x_ref, bias_ref, wbig_ref, w2_ref, vec_ref, misc_ref, out_ref):
    # x_ref:    (N, 2H)        code embeddings, lanes = [diagnoses(32) | procedures(32)]
    # bias_ref: (A*MH, L, L)   graph attention bias, batch index = a*MH + m*HEADS + h
    x = x_ref[...]                 # (24, 64)
    bias = bias_ref[...]           # (24, 8, 8)
    vec = vec_ref[...]             # (17, 256)
    misc = misc_ref[...]           # (64, 240)

    def layernorm_packed(t, g, b):
        # per-modality LayerNorm over each 32-lane half of the packed activation
        def norm(v):
            mu = jnp.mean(v, axis=-1, keepdims=True)
            var = jnp.mean((v - mu) ** 2, axis=-1, keepdims=True)
            return (v - mu) * lax.rsqrt(var + EPS)
        y = jnp.concatenate([norm(t[:, 0:H]), norm(t[:, H:2 * H])], axis=-1)
        return y * g + b

    def softmax_last(t):
        t = t - jnp.max(t, axis=-1, keepdims=True)
        e = jnp.exp(t)
        return e / jnp.sum(e, axis=-1, keepdims=True)

    def split_heads(t):
        # (N, 2H) with lanes ordered (modality, head, d)  ->  (A*MH, L, D)
        # composed of leading-dim reshapes + minor-dim transposes only
        t = t.reshape(A, L, MH * D)        # (3, 8, 64)
        t = jnp.swapaxes(t, 1, 2)          # (3, 64, 8)
        t = t.reshape(A * MH, D, L)        # (24, 8, 8)  batch = a*MH + m*HEADS + h
        return jnp.swapaxes(t, 1, 2)       # (24, L, D)

    def merge_heads(t):
        # (A*MH, L, D) -> (N, 2H) with lanes ordered (modality, head, d)
        t = jnp.swapaxes(t, 1, 2)          # (24, D, L)
        t = t.reshape(A, MH * D, L)        # (3, 64, 8)
        t = jnp.swapaxes(t, 1, 2)          # (3, 8, 64)
        return t.reshape(N, MH * D)        # (24, 64)

    # ---------------- transformer stacks (both modalities, block-diag fused) ---
    for l in range(NL):
        wbig_l = wbig_ref[l]                              # (64, 512)
        w2_l = w2_ref[l]                                  # (256, 64)
        wqkv = wbig_l[:, OFF_QKV:OFF_QKV + 3 * H2]        # (64, 192)
        wo = wbig_l[:, OFF_WO:OFF_WO + H2]                # (64, 64)
        w1 = wbig_l[:, OFF_W1:OFF_W1 + 2 * FF]            # (64, 256)

        r0 = l * VEC_ROWS_PER_LAYER
        ln1g = vec[r0 + R_LN1G:r0 + R_LN1G + 1, 0:H2]
        ln1b = vec[r0 + R_LN1B:r0 + R_LN1B + 1, 0:H2]
        ln2g = vec[r0 + R_LN2G:r0 + R_LN2G + 1, 0:H2]
        ln2b = vec[r0 + R_LN2B:r0 + R_LN2B + 1, 0:H2]
        bqkv = vec[r0 + R_BQKV:r0 + R_BQKV + 1, 0:3 * H2]
        bo = vec[r0 + R_BO:r0 + R_BO + 1, 0:H2]
        b1 = vec[r0 + R_B1:r0 + R_B1 + 1, 0:2 * FF]
        b2 = vec[r0 + R_B2:r0 + R_B2 + 1, 0:H2]

        # --- multi-head self-attention (pre-norm); one fused QKV matmul,
        #     all (modality, admission, head) pairs merged into a single batch ---
        y = layernorm_packed(x, ln1g, ln1b)
        qkv = jnp.dot(y, wqkv, preferred_element_type=jnp.float32) + bqkv   # (24, 192)
        q = split_heads(qkv[:, 0:H2] * SCALE)
        k = split_heads(qkv[:, H2:2 * H2])
        v = split_heads(qkv[:, 2 * H2:3 * H2])
        s = jnp.einsum('bqd,bkd->bqk', q, k,
                       preferred_element_type=jnp.float32) + bias           # (24, 8, 8)
        p = softmax_last(s)
        o = jnp.einsum('bqk,bkd->bqd', p, v,
                       preferred_element_type=jnp.float32)                  # (24, 8, 8)
        attn = merge_heads(o)                                               # (24, 64)
        x = x + jnp.dot(attn, wo, preferred_element_type=jnp.float32) + bo

        # --- feed-forward (pre-norm), exact GELU ---
        y = layernorm_packed(x, ln2g, ln2b)
        h1 = jnp.dot(y, w1, preferred_element_type=jnp.float32) + b1        # (24, 256)
        h1 = 0.5 * h1 * (1.0 + lax.erf(h1 / SQRT2))
        x = x + jnp.dot(h1, w2_l, preferred_element_type=jnp.float32) + b2

    # per-admission mean over the code dimension -> (A, 2H), both modalities packed
    seq = jnp.mean(x.reshape(A, L, H2), axis=1)

    # ---------------- GlobalMemory (both modalities, block-diag) + combine -----
    memk = misc[:, OFF_MEMK:OFF_MEMK + 2 * MEM]           # (64, 16)
    memo = misc[:, OFF_MEMO:OFF_MEMO + H2]                # (64, 64)
    wih = misc[0:H, OFF_GRUW:OFF_GRUW + 3 * H]            # (32, 96)
    whh = misc[H:2 * H, OFF_GRUW:OFF_GRUW + 3 * H]        # (32, 96)
    memv = misc[0:2 * MEM, OFF_MEMV:OFF_MEMV + H2]        # (16, 64)

    sm = jnp.dot(seq, memk, preferred_element_type=jnp.float32)             # (A, 16)
    pm = jnp.concatenate([softmax_last(sm[:, 0:MEM]),
                          softmax_last(sm[:, MEM:2 * MEM])], axis=-1)
    gm = jnp.dot(pm, memv, preferred_element_type=jnp.float32)              # (A, 64)
    gm = jnp.dot(gm, memo, preferred_element_type=jnp.float32)              # (A, 64)
    gm = jnp.maximum(gm + seq, 0.0)                                         # resid + relu
    seq_codes = (gm[:, 0:H] + gm[:, H:2 * H]) * 0.5                         # (A, 32)

    # ---------------- single-layer GRU over admissions (unrolled) --------------
    # input projection hoisted out of the serial recurrence
    bih = vec[R_GRUB:R_GRUB + 1, 0:3 * H]
    bhh = vec[R_GRUB:R_GRUB + 1, 3 * H:6 * H]
    gi_all = jnp.dot(seq_codes, wih, preferred_element_type=jnp.float32) + bih  # (A, 96)
    h_t = jnp.zeros((1, H), jnp.float32)
    outs = []
    for t in range(A):
        gi = gi_all[t:t + 1, :]
        gh = jnp.dot(h_t, whh, preferred_element_type=jnp.float32) + bhh
        r = jax.nn.sigmoid(gi[:, 0:H] + gh[:, 0:H])
        z = jax.nn.sigmoid(gi[:, H:2 * H] + gh[:, H:2 * H])
        n = jnp.tanh(gi[:, 2 * H:3 * H] + r * gh[:, 2 * H:3 * H])
        h_t = (1.0 - z) * n + z * h_t
        outs.append(h_t)
    out_ref[...] = jnp.concatenate(outs, axis=0)          # single (A, H) store


def run_encoder(x_packed, attn_bias, w_big, w_ff2, vec_slab, misc_slab):
    """Single fused, grid-less launch: whole arrays resident in VMEM."""
    return pl.pallas_call(
        encoder_kernel,
        out_shape=jax.ShapeDtypeStruct((A, H), jnp.float32),
    )(x_packed, attn_bias, w_big, w_ff2, vec_slab, misc_slab)


# ----------------------------- parameter setup -------------------------------
def _uni(key, shape, lo=-0.1, hi=0.1):
    return jax.random.uniform(key, shape, jnp.float32, lo, hi)


def _block_diag(a, b):
    ra, ca = a.shape
    rb, cb = b.shape
    top = jnp.concatenate([a, jnp.zeros((ra, cb), a.dtype)], axis=1)
    bot = jnp.concatenate([jnp.zeros((rb, ca), b.dtype), b], axis=1)
    return jnp.concatenate([top, bot], axis=0)


def _pad_row(v, width=VEC_W):
    v = jnp.asarray(v, jnp.float32).reshape(1, -1)
    return jnp.pad(v, ((0, 0), (0, width - v.shape[1])))


def make_packed_weights(key):
    """Host-side packing: block-diagonal modality merge + slab consolidation."""
    kit = iter(jax.random.split(key, 64))
    inv_h = 1.0 / math.sqrt(H)
    inv_ff = 1.0 / math.sqrt(FF)

    wbig_layers, w2_layers, vec_rows = [], [], []
    ones = jnp.ones((H2,), jnp.float32)
    zeros = jnp.zeros((H2,), jnp.float32)

    for _ in range(NL):
        # per-modality weights stored as (in, out) (i.e. already W^T of the torch layer)
        wq = [_uni(next(kit), (H, H)) for _ in range(M)]
        wk = [_uni(next(kit), (H, H)) for _ in range(M)]
        wv = [_uni(next(kit), (H, H)) for _ in range(M)]
        wom = [_uni(next(kit), (H, H)) for _ in range(M)]
        w1m = [_uni(next(kit), (H, FF)) for _ in range(M)]
        w2m = [_uni(next(kit), (FF, H)) for _ in range(M)]

        wqkv_bd = jnp.concatenate([_block_diag(wq[0], wq[1]),
                                   _block_diag(wk[0], wk[1]),
                                   _block_diag(wv[0], wv[1])], axis=1)     # (64, 192)
        wo_bd = _block_diag(wom[0], wom[1])                                # (64, 64)
        w1_bd = _block_diag(w1m[0], w1m[1])                                # (64, 256)
        w2_bd = _block_diag(w2m[0], w2m[1])                                # (256, 64)
        wbig_layers.append(jnp.concatenate([wqkv_bd, wo_bd, w1_bd], axis=1))  # (64, 512)
        w2_layers.append(w2_bd)

        # torch default Linear bias init: U(-1/sqrt(in), 1/sqrt(in))
        bq = [_uni(next(kit), (H,), -inv_h, inv_h) for _ in range(M)]
        bk = [_uni(next(kit), (H,), -inv_h, inv_h) for _ in range(M)]
        bv = [_uni(next(kit), (H,), -inv_h, inv_h) for _ in range(M)]
        bo = [_uni(next(kit), (H,), -inv_h, inv_h) for _ in range(M)]
        b1 = [_uni(next(kit), (FF,), -inv_h, inv_h) for _ in range(M)]
        b2 = [_uni(next(kit), (H,), -inv_ff, inv_ff) for _ in range(M)]

        vec_rows += [
            _pad_row(ones), _pad_row(zeros),                 # LN1 gamma / beta
            _pad_row(ones), _pad_row(zeros),                 # LN2 gamma / beta
            _pad_row(jnp.concatenate([bq[0], bq[1], bk[0], bk[1], bv[0], bv[1]])),
            _pad_row(jnp.concatenate([bo[0], bo[1]])),
            _pad_row(jnp.concatenate([b1[0], b1[1]])),
            _pad_row(jnp.concatenate([b2[0], b2[1]])),
        ]

    # GlobalMemory (value weight tied to key weight, as in the torch module)
    key_w = [_uni(next(kit), (MEM, H)) for _ in range(M)]    # linear_memory_key.weight
    out_w = [_uni(next(kit), (H, H)) for _ in range(M)]      # output_layer.weight
    memk_bd = _block_diag(key_w[0].T, key_w[1].T)            # (64, 16): q @ Wk^T
    memv_bd = _block_diag(key_w[0], key_w[1])                # (16, 64): p @ key_w
    memo_bd = _block_diag(out_w[0].T, out_w[1].T)            # (64, 64): v @ Wo^T

    # GRU weights, gate order (r, z, n)
    wih = _uni(next(kit), (H, 3 * H), -inv_h, inv_h)
    whh = _uni(next(kit), (H, 3 * H), -inv_h, inv_h)
    bih = _uni(next(kit), (3 * H,), -inv_h, inv_h)
    bhh = _uni(next(kit), (3 * H,), -inv_h, inv_h)

    vec_rows.append(_pad_row(jnp.concatenate([bih, bhh])))   # row 16
    vec_slab = jnp.concatenate(vec_rows, axis=0)             # (17, 256)

    gru_col = jnp.concatenate([wih, whh], axis=0)            # (64, 96)
    memv_col = jnp.concatenate(
        [memv_bd, jnp.zeros((H2 - 2 * MEM, H2), jnp.float32)], axis=0)     # (64, 64)
    misc_slab = jnp.concatenate([memk_bd, memo_bd, gru_col, memv_col], axis=1)  # (64, 240)

    w_big = jnp.stack(wbig_layers, axis=0)                   # (NL, 64, 512)
    w_ff2 = jnp.stack(w2_layers, axis=0)                     # (NL, 256, 64)
    return w_big, w_ff2, vec_slab, misc_slab


# --------------------------------- driver ------------------------------------
if __name__ == "__main__":
    root = jax.random.PRNGKey(0)
    keys = jax.random.split(root, 10)

    # embeddings (uniform(-0.1, 0.1) as in __init__)
    diag_emb = _uni(keys[0], (DIAG_COUNT, H))
    proc_emb = _uni(keys[1], (PROC_COUNT, H))
    # distance embeddings: nn.Embedding(1, HEADS)
    dist_emb_d = jax.random.normal(keys[2], (1, HEADS), jnp.float32)
    dist_emb_p = jax.random.normal(keys[3], (1, HEADS), jnp.float32)
    # synthetic weight graphs (stand-in for the dill-loaded graph file)
    weight_graph_d = jax.random.uniform(keys[4], (DIAG_COUNT, DIAG_COUNT), jnp.float32)
    weight_graph_p = jax.random.uniform(keys[5], (PROC_COUNT, PROC_COUNT), jnp.float32)

    # patient: A admissions, each with L diagnosis codes, L procedure codes, 5 meds
    diag_codes = jax.random.randint(keys[6], (A, L), 0, DIAG_COUNT)
    proc_codes = jax.random.randint(keys[7], (A, L), 0, PROC_COUNT)
    medications = [list(range(i, i + 5)) for i in range(A)]   # python lists (memory_values)

    # host-side glue (data-dependent gathers): embedding lookup + graph gather + bias.
    # edge_info is all zeros, so edge_embedding[h] == dist_emb[0, h] broadcast over (L, L).
    x_d = diag_emb[diag_codes].reshape(N, H)                  # (24, 32)
    x_p = proc_emb[proc_codes].reshape(N, H)
    x_packed = jnp.concatenate([x_d, x_p], axis=1)            # (24, 64) lanes [diag|proc]

    wsub_d = weight_graph_d[diag_codes[:, :, None], diag_codes[:, None, :]]   # (A, L, L)
    wsub_p = weight_graph_p[proc_codes[:, :, None], proc_codes[:, None, :]]
    bias_d = wsub_d[:, None, :, :] * dist_emb_d[0][None, :, None, None]       # (A, HEADS, L, L)
    bias_p = wsub_p[:, None, :, :] * dist_emb_p[0][None, :, None, None]
    attn_bias = jnp.stack([bias_d, bias_p], axis=1).reshape(A * MH, L, L)     # (24, 8, 8)

    w_big, w_ff2, vec_slab, misc_slab = make_packed_weights(keys[8])

    # single fused Pallas launch: transformer stacks + global memory + GRU
    queries = run_encoder(x_packed, attn_bias, w_big, w_ff2, vec_slab, misc_slab)  # (A, H)

    query = queries[-1:]                       # (1, H)
    if A > 1:
        memory_keys = queries[:-1]             # (A-1, H)
        memory_values = medications[:-1]
    else:
        memory_keys = None
        memory_values = None

    jax.block_until_ready(query)
    if memory_keys is not None:
        jax.block_until_ready(memory_keys)
    print("KERNEL_OK")
</pallas_src>

<mosaic_0001>
module attributes {stable_mosaic.version = 11 : i64} {
  func.func @encoder_kernel(%arg0: memref<24x64xf32, #tpu.memory_space<vmem>>, %arg1: memref<24x8x8xf32, #tpu.memory_space<vmem>>, %arg2: memref<2x64x512xf32, #tpu.memory_space<vmem>>, %arg3: memref<2x256x64xf32, #tpu.memory_space<vmem>>, %arg4: memref<17x256xf32, #tpu.memory_space<vmem>>, %arg5: memref<64x240xf32, #tpu.memory_space<vmem>>, %arg6: memref<3x32xf32, #tpu.memory_space<vmem>>) attributes {dimension_semantics = [], scalar_prefetch = 0 : i64, scratch_operands = 0 : i64, tpu.core_type = #tpu.core_type<tc>} {
    %c0 = arith.constant 0 : index
    %c0_0 = arith.constant 0 : index
    %0 = vector.load %arg0[%c0, %c0_0] : memref<24x64xf32, #tpu.memory_space<vmem>>, vector<24x64xf32>
    %c0_1 = arith.constant 0 : index
    %c0_2 = arith.constant 0 : index
    %c0_3 = arith.constant 0 : index
    %1 = vector.load %arg1[%c0_1, %c0_2, %c0_3] : memref<24x8x8xf32, #tpu.memory_space<vmem>>, vector<24x8x8xf32>
    %c0_4 = arith.constant 0 : index
    %c0_5 = arith.constant 0 : index
    %2 = vector.load %arg4[%c0_4, %c0_5] : memref<17x256xf32, #tpu.memory_space<vmem>>, vector<17x256xf32>
    %c0_6 = arith.constant 0 : index
    %c0_7 = arith.constant 0 : index
    %3 = vector.load %arg5[%c0_6, %c0_7] : memref<64x240xf32, #tpu.memory_space<vmem>>, vector<64x240xf32>
    %c0_8 = arith.constant 0 : index
    %c0_9 = arith.constant 0 : index
    %c0_10 = arith.constant 0 : index
    %4 = vector.load %arg2[%c0_8, %c0_9, %c0_10] : memref<2x64x512xf32, #tpu.memory_space<vmem>>, vector<1x64x512xf32>
    %5 = vector.shape_cast %4 : vector<1x64x512xf32> to vector<64x512xf32>
    %c0_11 = arith.constant 0 : index
    %c0_12 = arith.constant 0 : index
    %c0_13 = arith.constant 0 : index
    %6 = vector.load %arg3[%c0_11, %c0_12, %c0_13] : memref<2x256x64xf32, #tpu.memory_space<vmem>>, vector<1x256x64xf32>
    %7 = vector.shape_cast %6 : vector<1x256x64xf32> to vector<256x64xf32>
    %8 = vector.extract_strided_slice %5 {offsets = [0, 0], sizes = [64, 192], strides = [1, 1]} : vector<64x512xf32> to vector<64x192xf32>
    %9 = vector.extract_strided_slice %5 {offsets = [0, 192], sizes = [64, 64], strides = [1, 1]} : vector<64x512xf32> to vector<64x64xf32>
    %10 = vector.extract_strided_slice %5 {offsets = [0, 256], sizes = [64, 256], strides = [1, 1]} : vector<64x512xf32> to vector<64x256xf32>
    %11 = vector.extract_strided_slice %2 {offsets = [0, 0], sizes = [1, 64], strides = [1, 1]} : vector<17x256xf32> to vector<1x64xf32>
    %12 = vector.extract_strided_slice %2 {offsets = [1, 0], sizes = [1, 64], strides = [1, 1]} : vector<17x256xf32> to vector<1x64xf32>
    %13 = vector.extract_strided_slice %2 {offsets = [2, 0], sizes = [1, 64], strides = [1, 1]} : vector<17x256xf32> to vector<1x64xf32>
    %14 = vector.extract_strided_slice %2 {offsets = [3, 0], sizes = [1, 64], strides = [1, 1]} : vector<17x256xf32> to vector<1x64xf32>
    %15 = vector.extract_strided_slice %2 {offsets = [4, 0], sizes = [1, 192], strides = [1, 1]} : vector<17x256xf32> to vector<1x192xf32>
    %16 = vector.extract_strided_slice %2 {offsets = [5, 0], sizes = [1, 64], strides = [1, 1]} : vector<17x256xf32> to vector<1x64xf32>
    %17 = vector.extract_strided_slice %2 {offsets = [6, 0], sizes = [1, 256], strides = [1, 1]} : vector<17x256xf32> to vector<1x256xf32>
    %18 = vector.extract_strided_slice %2 {offsets = [7, 0], sizes = [1, 64], strides = [1, 1]} : vector<17x256xf32> to vector<1x64xf32>
    %19 = vector.extract_strided_slice %0 {offsets = [0, 0], sizes = [24, 32], strides = [1, 1]} : vector<24x64xf32> to vector<24x32xf32>
    %cst = arith.constant dense<0.000000e+00> : vector<24xf32>
    %20 = vector.multi_reduction <add>, %19, %cst [1] : vector<24x32xf32> to vector<24xf32>
    %21 = vector.shape_cast %20 : vector<24xf32> to vector<24x1xf32>
    %cst_14 = arith.constant 3.200000e+01 : f32
    %22 = vector.broadcast %cst_14 : f32 to vector<24x1xf32>
    %23 = arith.divf %21, %22 : vector<24x1xf32>
    %24 = vector.broadcast %23 : vector<24x1xf32> to vector<24x32xf32>
    %25 = arith.subf %19, %24 : vector<24x32xf32>
    %26 = arith.mulf %25, %25 : vector<24x32xf32>
    %cst_15 = arith.constant dense<0.000000e+00> : vector<24xf32>
    %27 = vector.multi_reduction <add>, %26, %cst_15 [1] : vector<24x32xf32> to vector<24xf32>
    %28 = vector.shape_cast %27 : vector<24xf32> to vector<24x1xf32>
    %cst_16 = arith.constant 3.200000e+01 : f32
    %29 = vector.broadcast %cst_16 : f32 to vector<24x1xf32>
    %30 = arith.divf %28, %29 : vector<24x1xf32>
    %31 = vector.broadcast %23 : vector<24x1xf32> to vector<24x32xf32>
    %32 = arith.subf %19, %31 : vector<24x32xf32>
    %cst_17 = arith.constant 9.99999974E-6 : f32
    %33 = vector.broadcast %cst_17 : f32 to vector<24x1xf32>
    %34 = arith.addf %30, %33 : vector<24x1xf32>
    %35 = math.rsqrt %34 : vector<24x1xf32>
    %36 = vector.broadcast %35 : vector<24x1xf32> to vector<24x32xf32>
    %37 = arith.mulf %32, %36 : vector<24x32xf32>
    %38 = vector.extract_strided_slice %0 {offsets = [0, 32], sizes = [24, 32], strides = [1, 1]} : vector<24x64xf32> to vector<24x32xf32>
    %cst_18 = arith.constant dense<0.000000e+00> : vector<24xf32>
    %39 = vector.multi_reduction <add>, %38, %cst_18 [1] : vector<24x32xf32> to vector<24xf32>
    %40 = vector.shape_cast %39 : vector<24xf32> to vector<24x1xf32>
    %cst_19 = arith.constant 3.200000e+01 : f32
    %41 = vector.broadcast %cst_19 : f32 to vector<24x1xf32>
    %42 = arith.divf %40, %41 : vector<24x1xf32>
    %43 = vector.broadcast %42 : vector<24x1xf32> to vector<24x32xf32>
    %44 = arith.subf %38, %43 : vector<24x32xf32>
    %45 = arith.mulf %44, %44 : vector<24x32xf32>
    %cst_20 = arith.constant dense<0.000000e+00> : vector<24xf32>
    %46 = vector.multi_reduction <add>, %45, %cst_20 [1] : vector<24x32xf32> to vector<24xf32>
    %47 = vector.shape_cast %46 : vector<24xf32> to vector<24x1xf32>
    %cst_21 = arith.constant 3.200000e+01 : f32
    %48 = vector.broadcast %cst_21 : f32 to vector<24x1xf32>
    %49 = arith.divf %47, %48 : vector<24x1xf32>
    %50 = vector.broadcast %42 : vector<24x1xf32> to vector<24x32xf32>
    %51 = arith.subf %38, %50 : vector<24x32xf32>
    %cst_22 = arith.constant 9.99999974E-6 : f32
    %52 = vector.broadcast %cst_22 : f32 to vector<24x1xf32>
    %53 = arith.addf %49, %52 : vector<24x1xf32>
    %54 = math.rsqrt %53 : vector<24x1xf32>
    %55 = vector.broadcast %54 : vector<24x1xf32> to vector<24x32xf32>
    %56 = arith.mulf %51, %55 : vector<24x32xf32>
    %57 = tpu.concatenate %37, %56 in 1 : vector<24x32xf32>, vector<24x32xf32> -> vector<24x64xf32>
    %58 = vector.broadcast %11 : vector<1x64xf32> to vector<24x64xf32>
    %59 = arith.mulf %57, %58 : vector<24x64xf32>
    %60 = vector.broadcast %12 : vector<1x64xf32> to vector<24x64xf32>
    %61 = arith.addf %59, %60 : vector<24x64xf32>
    %cst_23 = arith.constant dense<0.000000e+00> : vector<24x192xf32>
    %62 = tpu.matmul %61, %8, %cst_23 {dimension_numbers = #tpu.dot_dimension_numbers<[1], [0], [0], [1], [0, 0, 1, 1], [], []>} : vector<24x64xf32>, vector<64x192xf32>, vector<24x192xf32> -> vector<24x192xf32>
    %63 = vector.broadcast %15 : vector<1x192xf32> to vector<24x192xf32>
    %64 = arith.addf %62, %63 : vector<24x192xf32>
    %65 = vector.extract_strided_slice %64 {offsets = [0, 0], sizes = [24, 64], strides = [1, 1]} : vector<24x192xf32> to vector<24x64xf32>
    %cst_24 = arith.constant 0.353553385 : f32
    %66 = vector.broadcast %cst_24 : f32 to vector<24x64xf32>
    %67 = arith.mulf %65, %66 : vector<24x64xf32>
    %68 = vector.shape_cast %67 : vector<24x64xf32> to vector<3x8x64xf32>
    %69 = tpu.transpose %68, [0, 2, 1] : vector<3x8x64xf32> -> vector<3x64x8xf32>
    %70 = vector.shape_cast %69 : vector<3x64x8xf32> to vector<24x8x8xf32>
    %71 = tpu.transpose %70, [0, 2, 1] : vector<24x8x8xf32> -> vector<24x8x8xf32>
    %72 = vector.extract_strided_slice %64 {offsets = [0, 64], sizes = [24, 64], strides = [1, 1]} : vector<24x192xf32> to vector<24x64xf32>
    %73 = vector.shape_cast %72 : vector<24x64xf32> to vector<3x8x64xf32>
    %74 = tpu.transpose %73, [0, 2, 1] : vector<3x8x64xf32> -> vector<3x64x8xf32>
    %75 = vector.shape_cast %74 : vector<3x64x8xf32> to vector<24x8x8xf32>
    %76 = tpu.transpose %75, [0, 2, 1] : vector<24x8x8xf32> -> vector<24x8x8xf32>
    %77 = vector.extract_strided_slice %64 {offsets = [0, 128], sizes = [24, 64], strides = [1, 1]} : vector<24x192xf32> to vector<24x64xf32>
    %78 = vector.shape_cast %77 : vector<24x64xf32> to vector<3x8x64xf32>
    %79 = tpu.transpose %78, [0, 2, 1] : vector<3x8x64xf32> -> vector<3x64x8xf32>
    %80 = vector.shape_cast %79 : vector<3x64x8xf32> to vector<24x8x8xf32>
    %81 = tpu.transpose %80, [0, 2, 1] : vector<24x8x8xf32> -> vector<24x8x8xf32>
    "tpu.trace_start"() <{level = 10 : i32, message = "bqd,bkd->bqk"}> : () -> ()
    %cst_25 = arith.constant dense<0.000000e+00> : vector<24x8x8xf32>
    %82 = tpu.matmul %71, %76, %cst_25 {dimension_numbers = #tpu.dot_dimension_numbers<[2], [2], [1], [1], [0, 0, 0, 1, 1, 1], [0], [0]>} : vector<24x8x8xf32>, vector<24x8x8xf32>, vector<24x8x8xf32> -> vector<24x8x8xf32>
    "tpu.trace_stop"() : () -> ()
    %83 = arith.addf %82, %1 : vector<24x8x8xf32>
    %cst_26 = arith.constant dense<0xFF800000> : vector<24x8xf32>
    %84 = vector.multi_reduction <maximumf>, %83, %cst_26 [2] : vector<24x8x8xf32> to vector<24x8xf32>
    %85 = vector.shape_cast %84 : vector<24x8xf32> to vector<24x8x1xf32>
    %86 = vector.broadcast %85 : vector<24x8x1xf32> to vector<24x8x8xf32>
    %87 = arith.subf %83, %86 : vector<24x8x8xf32>
    %88 = math.exp %87 : vector<24x8x8xf32>
    %cst_27 = arith.constant dense<0.000000e+00> : vector<24x8xf32>
    %89 = vector.multi_reduction <add>, %88, %cst_27 [2] : vector<24x8x8xf32> to vector<24x8xf32>
    %90 = vector.shape_cast %89 : vector<24x8xf32> to vector<24x8x1xf32>
    %91 = vector.broadcast %90 : vector<24x8x1xf32> to vector<24x8x8xf32>
    %92 = arith.divf %88, %91 : vector<24x8x8xf32>
    "tpu.trace_start"() <{level = 10 : i32, message = "bqk,bkd->bqd"}> : () -> ()
    %cst_28 = arith.constant dense<0.000000e+00> : vector<24x8x8xf32>
    %93 = tpu.matmul %92, %81, %cst_28 {dimension_numbers = #tpu.dot_dimension_numbers<[2], [1], [1], [2], [0, 0, 0, 1, 1, 2], [0], [0]>} : vector<24x8x8xf32>, vector<24x8x8xf32>, vector<24x8x8xf32> -> vector<24x8x8xf32>
    "tpu.trace_stop"() : () -> ()
    %94 = tpu.transpose %93, [0, 2, 1] : vector<24x8x8xf32> -> vector<24x8x8xf32>
    %95 = vector.shape_cast %94 : vector<24x8x8xf32> to vector<3x64x8xf32>
    %96 = tpu.transpose %95, [0, 2, 1] : vector<3x64x8xf32> -> vector<3x8x64xf32>
    %97 = vector.shape_cast %96 : vector<3x8x64xf32> to vector<24x64xf32>
    %cst_29 = arith.constant dense<0.000000e+00> : vector<24x64xf32>
    %98 = tpu.matmul %97, %9, %cst_29 {dimension_numbers = #tpu.dot_dimension_numbers<[1], [0], [0], [1], [0, 0, 1, 1], [], []>} : vector<24x64xf32>, vector<64x64xf32>, vector<24x64xf32> -> vector<24x64xf32>
    %99 = arith.addf %0, %98 : vector<24x64xf32>
    %100 = vector.broadcast %16 : vector<1x64xf32> to vector<24x64xf32>
    %101 = arith.addf %99, %100 : vector<24x64xf32>
    %102 = vector.extract_strided_slice %101 {offsets = [0, 0], sizes = [24, 32], strides = [1, 1]} : vector<24x64xf32> to vector<24x32xf32>
    %cst_30 = arith.constant dense<0.000000e+00> : vector<24xf32>
    %103 = vector.multi_reduction <add>, %102, %cst_30 [1] : vector<24x32xf32> to vector<24xf32>
    %104 = vector.shape_cast %103 : vector<24xf32> to vector<24x1xf32>
    %cst_31 = arith.constant 3.200000e+01 : f32
    %105 = vector.broadcast %cst_31 : f32 to vector<24x1xf32>
    %106 = arith.divf %104, %105 : vector<24x1xf32>
    %107 = vector.broadcast %106 : vector<24x1xf32> to vector<24x32xf32>
    %108 = arith.subf %102, %107 : vector<24x32xf32>
    %109 = arith.mulf %108, %108 : vector<24x32xf32>
    %cst_32 = arith.constant dense<0.000000e+00> : vector<24xf32>
    %110 = vector.multi_reduction <add>, %109, %cst_32 [1] : vector<24x32xf32> to vector<24xf32>
    %111 = vector.shape_cast %110 : vector<24xf32> to vector<24x1xf32>
    %cst_33 = arith.constant 3.200000e+01 : f32
    %112 = vector.broadcast %cst_33 : f32 to vector<24x1xf32>
    %113 = arith.divf %111, %112 : vector<24x1xf32>
    %114 = vector.broadcast %106 : vector<24x1xf32> to vector<24x32xf32>
    %115 = arith.subf %102, %114 : vector<24x32xf32>
    %cst_34 = arith.constant 9.99999974E-6 : f32
    %116 = vector.broadcast %cst_34 : f32 to vector<24x1xf32>
    %117 = arith.addf %113, %116 : vector<24x1xf32>
    %118 = math.rsqrt %117 : vector<24x1xf32>
    %119 = vector.broadcast %118 : vector<24x1xf32> to vector<24x32xf32>
    %120 = arith.mulf %115, %119 : vector<24x32xf32>
    %121 = vector.extract_strided_slice %101 {offsets = [0, 32], sizes = [24, 32], strides = [1, 1]} : vector<24x64xf32> to vector<24x32xf32>
    %cst_35 = arith.constant dense<0.000000e+00> : vector<24xf32>
    %122 = vector.multi_reduction <add>, %121, %cst_35 [1] : vector<24x32xf32> to vector<24xf32>
    %123 = vector.shape_cast %122 : vector<24xf32> to vector<24x1xf32>
    %cst_36 = arith.constant 3.200000e+01 : f32
    %124 = vector.broadcast %cst_36 : f32 to vector<24x1xf32>
    %125 = arith.divf %123, %124 : vector<24x1xf32>
    %126 = vector.broadcast %125 : vector<24x1xf32> to vector<24x32xf32>
    %127 = arith.subf %121, %126 : vector<24x32xf32>
    %128 = arith.mulf %127, %127 : vector<24x32xf32>
    %cst_37 = arith.constant dense<0.000000e+00> : vector<24xf32>
    %129 = vector.multi_reduction <add>, %128, %cst_37 [1] : vector<24x32xf32> to vector<24xf32>
    %130 = vector.shape_cast %129 : vector<24xf32> to vector<24x1xf32>
    %cst_38 = arith.constant 3.200000e+01 : f32
    %131 = vector.broadcast %cst_38 : f32 to vector<24x1xf32>
    %132 = arith.divf %130, %131 : vector<24x1xf32>
    %133 = vector.broadcast %125 : vector<24x1xf32> to vector<24x32xf32>
    %134 = arith.subf %121, %133 : vector<24x32xf32>
    %cst_39 = arith.constant 9.99999974E-6 : f32
    %135 = vector.broadcast %cst_39 : f32 to vector<24x1xf32>
    %136 = arith.addf %132, %135 : vector<24x1xf32>
    %137 = math.rsqrt %136 : vector<24x1xf32>
    %138 = vector.broadcast %137 : vector<24x1xf32> to vector<24x32xf32>
    %139 = arith.mulf %134, %138 : vector<24x32xf32>
    %140 = tpu.concatenate %120, %139 in 1 : vector<24x32xf32>, vector<24x32xf32> -> vector<24x64xf32>
    %141 = vector.broadcast %13 : vector<1x64xf32> to vector<24x64xf32>
    %142 = arith.mulf %140, %141 : vector<24x64xf32>
    %143 = vector.broadcast %14 : vector<1x64xf32> to vector<24x64xf32>
    %144 = arith.addf %142, %143 : vector<24x64xf32>
    %cst_40 = arith.constant dense<0.000000e+00> : vector<24x256xf32>
    %145 = tpu.matmul %144, %10, %cst_40 {dimension_numbers = #tpu.dot_dimension_numbers<[1], [0], [0], [1], [0, 0, 1, 1], [], []>} : vector<24x64xf32>, vector<64x256xf32>, vector<24x256xf32> -> vector<24x256xf32>
    %146 = vector.broadcast %17 : vector<1x256xf32> to vector<24x256xf32>
    %147 = arith.addf %145, %146 : vector<24x256xf32>
    %cst_41 = arith.constant 5.000000e-01 : f32
    %148 = vector.broadcast %cst_41 : f32 to vector<24x256xf32>
    %149 = arith.mulf %148, %147 : vector<24x256xf32>
    %cst_42 = arith.constant 1.41421354 : f32
    %150 = vector.broadcast %cst_42 : f32 to vector<24x256xf32>
    %151 = arith.divf %147, %150 : vector<24x256xf32>
    %152 = math.erf %151 : vector<24x256xf32>
    %cst_43 = arith.constant 1.000000e+00 : f32
    %153 = vector.broadcast %cst_43 : f32 to vector<24x256xf32>
    %154 = arith.addf %153, %152 : vector<24x256xf32>
    %155 = arith.mulf %149, %154 : vector<24x256xf32>
    %cst_44 = arith.constant dense<0.000000e+00> : vector<24x64xf32>
    %156 = tpu.matmul %155, %7, %cst_44 {dimension_numbers = #tpu.dot_dimension_numbers<[1], [0], [0], [1], [0, 0, 1, 1], [], []>} : vector<24x256xf32>, vector<256x64xf32>, vector<24x64xf32> -> vector<24x64xf32>
    %157 = arith.addf %101, %156 : vector<24x64xf32>
    %158 = vector.broadcast %18 : vector<1x64xf32> to vector<24x64xf32>
    %159 = arith.addf %157, %158 : vector<24x64xf32>
    %c1 = arith.constant 1 : index
    %c0_45 = arith.constant 0 : index
    %c0_46 = arith.constant 0 : index
    %160 = vector.load %arg2[%c1, %c0_45, %c0_46] : memref<2x64x512xf32, #tpu.memory_space<vmem>>, vector<1x64x512xf32>
    %161 = vector.shape_cast %160 : vector<1x64x512xf32> to vector<64x512xf32>
    %c1_47 = arith.constant 1 : index
    %c0_48 = arith.constant 0 : index
    %c0_49 = arith.constant 0 : index
    %162 = vector.load %arg3[%c1_47, %c0_48, %c0_49] : memref<2x256x64xf32, #tpu.memory_space<vmem>>, vector<1x256x64xf32>
    %163 = vector.shape_cast %162 : vector<1x256x64xf32> to vector<256x64xf32>
    %164 = vector.extract_strided_slice %161 {offsets = [0, 0], sizes = [64, 192], strides = [1, 1]} : vector<64x512xf32> to vector<64x192xf32>
    %165 = vector.extract_strided_slice %161 {offsets = [0, 192], sizes = [64, 64], strides = [1, 1]} : vector<64x512xf32> to vector<64x64xf32>
    %166 = vector.extract_strided_slice %161 {offsets = [0, 256], sizes = [64, 256], strides = [1, 1]} : vector<64x512xf32> to vector<64x256xf32>
    %167 = vector.extract_strided_slice %2 {offsets = [8, 0], sizes = [1, 64], strides = [1, 1]} : vector<17x256xf32> to vector<1x64xf32>
    %168 = vector.extract_strided_slice %2 {offsets = [9, 0], sizes = [1, 64], strides = [1, 1]} : vector<17x256xf32> to vector<1x64xf32>
    %169 = vector.extract_strided_slice %2 {offsets = [10, 0], sizes = [1, 64], strides = [1, 1]} : vector<17x256xf32> to vector<1x64xf32>
    %170 = vector.extract_strided_slice %2 {offsets = [11, 0], sizes = [1, 64], strides = [1, 1]} : vector<17x256xf32> to vector<1x64xf32>
    %171 = vector.extract_strided_slice %2 {offsets = [12, 0], sizes = [1, 192], strides = [1, 1]} : vector<17x256xf32> to vector<1x192xf32>
    %172 = vector.extract_strided_slice %2 {offsets = [13, 0], sizes = [1, 64], strides = [1, 1]} : vector<17x256xf32> to vector<1x64xf32>
    %173 = vector.extract_strided_slice %2 {offsets = [14, 0], sizes = [1, 256], strides = [1, 1]} : vector<17x256xf32> to vector<1x256xf32>
    %174 = vector.extract_strided_slice %2 {offsets = [15, 0], sizes = [1, 64], strides = [1, 1]} : vector<17x256xf32> to vector<1x64xf32>
    %175 = vector.extract_strided_slice %159 {offsets = [0, 0], sizes = [24, 32], strides = [1, 1]} : vector<24x64xf32> to vector<24x32xf32>
    %cst_50 = arith.constant dense<0.000000e+00> : vector<24xf32>
    %176 = vector.multi_reduction <add>, %175, %cst_50 [1] : vector<24x32xf32> to vector<24xf32>
    %177 = vector.shape_cast %176 : vector<24xf32> to vector<24x1xf32>
    %cst_51 = arith.constant 3.200000e+01 : f32
    %178 = vector.broadcast %cst_51 : f32 to vector<24x1xf32>
    %179 = arith.divf %177, %178 : vector<24x1xf32>
    %180 = vector.broadcast %179 : vector<24x1xf32> to vector<24x32xf32>
    %181 = arith.subf %175, %180 : vector<24x32xf32>
    %182 = arith.mulf %181, %181 : vector<24x32xf32>
    %cst_52 = arith.constant dense<0.000000e+00> : vector<24xf32>
    %183 = vector.multi_reduction <add>, %182, %cst_52 [1] : vector<24x32xf32> to vector<24xf32>
    %184 = vector.shape_cast %183 : vector<24xf32> to vector<24x1xf32>
    %cst_53 = arith.constant 3.200000e+01 : f32
    %185 = vector.broadcast %cst_53 : f32 to vector<24x1xf32>
    %186 = arith.divf %184, %185 : vector<24x1xf32>
    %187 = vector.broadcast %179 : vector<24x1xf32> to vector<24x32xf32>
    %188 = arith.subf %175, %187 : vector<24x32xf32>
    %cst_54 = arith.constant 9.99999974E-6 : f32
    %189 = vector.broadcast %cst_54 : f32 to vector<24x1xf32>
    %190 = arith.addf %186, %189 : vector<24x1xf32>
    %191 = math.rsqrt %190 : vector<24x1xf32>
    %192 = vector.broadcast %191 : vector<24x1xf32> to vector<24x32xf32>
    %193 = arith.mulf %188, %192 : vector<24x32xf32>
    %194 = vector.extract_strided_slice %159 {offsets = [0, 32], sizes = [24, 32], strides = [1, 1]} : vector<24x64xf32> to vector<24x32xf32>
    %cst_55 = arith.constant dense<0.000000e+00> : vector<24xf32>
    %195 = vector.multi_reduction <add>, %194, %cst_55 [1] : vector<24x32xf32> to vector<24xf32>
    %196 = vector.shape_cast %195 : vector<24xf32> to vector<24x1xf32>
    %cst_56 = arith.constant 3.200000e+01 : f32
    %197 = vector.broadcast %cst_56 : f32 to vector<24x1xf32>
    %198 = arith.divf %196, %197 : vector<24x1xf32>
    %199 = vector.broadcast %198 : vector<24x1xf32> to vector<24x32xf32>
    %200 = arith.subf %194, %199 : vector<24x32xf32>
    %201 = arith.mulf %200, %200 : vector<24x32xf32>
    %cst_57 = arith.constant dense<0.000000e+00> : vector<24xf32>
    %202 = vector.multi_reduction <add>, %201, %cst_57 [1] : vector<24x32xf32> to vector<24xf32>
    %203 = vector.shape_cast %202 : vector<24xf32> to vector<24x1xf32>
    %cst_58 = arith.constant 3.200000e+01 : f32
    %204 = vector.broadcast %cst_58 : f32 to vector<24x1xf32>
    %205 = arith.divf %203, %204 : vector<24x1xf32>
    %206 = vector.broadcast %198 : vector<24x1xf32> to vector<24x32xf32>
    %207 = arith.subf %194, %206 : vector<24x32xf32>
    %cst_59 = arith.constant 9.99999974E-6 : f32
    %208 = vector.broadcast %cst_59 : f32 to vector<24x1xf32>
    %209 = arith.addf %205, %208 : vector<24x1xf32>
    %210 = math.rsqrt %209 : vector<24x1xf32>
    %211 = vector.broadcast %210 : vector<24x1xf32> to vector<24x32xf32>
    %212 = arith.mulf %207, %211 : vector<24x32xf32>
    %213 = tpu.concatenate %193, %212 in 1 : vector<24x32xf32>, vector<24x32xf32> -> vector<24x64xf32>
    %214 = vector.broadcast %167 : vector<1x64xf32> to vector<24x64xf32>
    %215 = arith.mulf %213, %214 : vector<24x64xf32>
    %216 = vector.broadcast %168 : vector<1x64xf32> to vector<24x64xf32>
    %217 = arith.addf %215, %216 : vector<24x64xf32>
    %cst_60 = arith.constant dense<0.000000e+00> : vector<24x192xf32>
    %218 = tpu.matmul %217, %164, %cst_60 {dimension_numbers = #tpu.dot_dimension_numbers<[1], [0], [0], [1], [0, 0, 1, 1], [], []>} : vector<24x64xf32>, vector<64x192xf32>, vector<24x192xf32> -> vector<24x192xf32>
    %219 = vector.broadcast %171 : vector<1x192xf32> to vector<24x192xf32>
    %220 = arith.addf %218, %219 : vector<24x192xf32>
    %221 = vector.extract_strided_slice %220 {offsets = [0, 0], sizes = [24, 64], strides = [1, 1]} : vector<24x192xf32> to vector<24x64xf32>
    %cst_61 = arith.constant 0.353553385 : f32
    %222 = vector.broadcast %cst_61 : f32 to vector<24x64xf32>
    %223 = arith.mulf %221, %222 : vector<24x64xf32>
    %224 = vector.shape_cast %223 : vector<24x64xf32> to vector<3x8x64xf32>
    %225 = tpu.transpose %224, [0, 2, 1] : vector<3x8x64xf32> -> vector<3x64x8xf32>
    %226 = vector.shape_cast %225 : vector<3x64x8xf32> to vector<24x8x8xf32>
    %227 = tpu.transpose %226, [0, 2, 1] : vector<24x8x8xf32> -> vector<24x8x8xf32>
    %228 = vector.extract_strided_slice %220 {offsets = [0, 64], sizes = [24, 64], strides = [1, 1]} : vector<24x192xf32> to vector<24x64xf32>
    %229 = vector.shape_cast %228 : vector<24x64xf32> to vector<3x8x64xf32>
    %230 = tpu.transpose %229, [0, 2, 1] : vector<3x8x64xf32> -> vector<3x64x8xf32>
    %231 = vector.shape_cast %230 : vector<3x64x8xf32> to vector<24x8x8xf32>
    %232 = tpu.transpose %231, [0, 2, 1] : vector<24x8x8xf32> -> vector<24x8x8xf32>
    %233 = vector.extract_strided_slice %220 {offsets = [0, 128], sizes = [24, 64], strides = [1, 1]} : vector<24x192xf32> to vector<24x64xf32>
    %234 = vector.shape_cast %233 : vector<24x64xf32> to vector<3x8x64xf32>
    %235 = tpu.transpose %234, [0, 2, 1] : vector<3x8x64xf32> -> vector<3x64x8xf32>
    %236 = vector.shape_cast %235 : vector<3x64x8xf32> to vector<24x8x8xf32>
    %237 = tpu.transpose %236, [0, 2, 1] : vector<24x8x8xf32> -> vector<24x8x8xf32>
    "tpu.trace_start"() <{level = 10 : i32, message = "bqd,bkd->bqk"}> : () -> ()
    %cst_62 = arith.constant dense<0.000000e+00> : vector<24x8x8xf32>
    %238 = tpu.matmul %227, %232, %cst_62 {dimension_numbers = #tpu.dot_dimension_numbers<[2], [2], [1], [1], [0, 0, 0, 1, 1, 1], [0], [0]>} : vector<24x8x8xf32>, vector<24x8x8xf32>, vector<24x8x8xf32> -> vector<24x8x8xf32>
    "tpu.trace_stop"() : () -> ()
    %239 = arith.addf %238, %1 : vector<24x8x8xf32>
    %cst_63 = arith.constant dense<0xFF800000> : vector<24x8xf32>
    %240 = vector.multi_reduction <maximumf>, %239, %cst_63 [2] : vector<24x8x8xf32> to vector<24x8xf32>
    %241 = vector.shape_cast %240 : vector<24x8xf32> to vector<24x8x1xf32>
    %242 = vector.broadcast %241 : vector<24x8x1xf32> to vector<24x8x8xf32>
    %243 = arith.subf %239, %242 : vector<24x8x8xf32>
    %244 = math.exp %243 : vector<24x8x8xf32>
    %cst_64 = arith.constant dense<0.000000e+00> : vector<24x8xf32>
    %245 = vector.multi_reduction <add>, %244, %cst_64 [2] : vector<24x8x8xf32> to vector<24x8xf32>
    %246 = vector.shape_cast %245 : vector<24x8xf32> to vector<24x8x1xf32>
    %247 = vector.broadcast %246 : vector<24x8x1xf32> to vector<24x8x8xf32>
    %248 = arith.divf %244, %247 : vector<24x8x8xf32>
    "tpu.trace_start"() <{level = 10 : i32, message = "bqk,bkd->bqd"}> : () -> ()
    %cst_65 = arith.constant dense<0.000000e+00> : vector<24x8x8xf32>
    %249 = tpu.matmul %248, %237, %cst_65 {dimension_numbers = #tpu.dot_dimension_numbers<[2], [1], [1], [2], [0, 0, 0, 1, 1, 2], [0], [0]>} : vector<24x8x8xf32>, vector<24x8x8xf32>, vector<24x8x8xf32> -> vector<24x8x8xf32>
    "tpu.trace_stop"() : () -> ()
    %250 = tpu.transpose %249, [0, 2, 1] : vector<24x8x8xf32> -> vector<24x8x8xf32>
    %251 = vector.shape_cast %250 : vector<24x8x8xf32> to vector<3x64x8xf32>
    %252 = tpu.transpose %251, [0, 2, 1] : vector<3x64x8xf32> -> vector<3x8x64xf32>
    %253 = vector.shape_cast %252 : vector<3x8x64xf32> to vector<24x64xf32>
    %cst_66 = arith.constant dense<0.000000e+00> : vector<24x64xf32>
    %254 = tpu.matmul %253, %165, %cst_66 {dimension_numbers = #tpu.dot_dimension_numbers<[1], [0], [0], [1], [0, 0, 1, 1], [], []>} : vector<24x64xf32>, vector<64x64xf32>, vector<24x64xf32> -> vector<24x64xf32>
    %255 = arith.addf %159, %254 : vector<24x64xf32>
    %256 = vector.broadcast %172 : vector<1x64xf32> to vector<24x64xf32>
    %257 = arith.addf %255, %256 : vector<24x64xf32>
    %258 = vector.extract_strided_slice %257 {offsets = [0, 0], sizes = [24, 32], strides = [1, 1]} : vector<24x64xf32> to vector<24x32xf32>
    %cst_67 = arith.constant dense<0.000000e+00> : vector<24xf32>
    %259 = vector.multi_reduction <add>, %258, %cst_67 [1] : vector<24x32xf32> to vector<24xf32>
    %260 = vector.shape_cast %259 : vector<24xf32> to vector<24x1xf32>
    %cst_68 = arith.constant 3.200000e+01 : f32
    %261 = vector.broadcast %cst_68 : f32 to vector<24x1xf32>
    %262 = arith.divf %260, %261 : vector<24x1xf32>
    %263 = vector.broadcast %262 : vector<24x1xf32> to vector<24x32xf32>
    %264 = arith.subf %258, %263 : vector<24x32xf32>
    %265 = arith.mulf %264, %264 : vector<24x32xf32>
    %cst_69 = arith.constant dense<0.000000e+00> : vector<24xf32>
    %266 = vector.multi_reduction <add>, %265, %cst_69 [1] : vector<24x32xf32> to vector<24xf32>
    %267 = vector.shape_cast %266 : vector<24xf32> to vector<24x1xf32>
    %cst_70 = arith.constant 3.200000e+01 : f32
    %268 = vector.broadcast %cst_70 : f32 to vector<24x1xf32>
    %269 = arith.divf %267, %268 : vector<24x1xf32>
    %270 = vector.broadcast %262 : vector<24x1xf32> to vector<24x32xf32>
    %271 = arith.subf %258, %270 : vector<24x32xf32>
    %cst_71 = arith.constant 9.99999974E-6 : f32
    %272 = vector.broadcast %cst_71 : f32 to vector<24x1xf32>
    %273 = arith.addf %269, %272 : vector<24x1xf32>
    %274 = math.rsqrt %273 : vector<24x1xf32>
    %275 = vector.broadcast %274 : vector<24x1xf32> to vector<24x32xf32>
    %276 = arith.mulf %271, %275 : vector<24x32xf32>
    %277 = vector.extract_strided_slice %257 {offsets = [0, 32], sizes = [24, 32], strides = [1, 1]} : vector<24x64xf32> to vector<24x32xf32>
    %cst_72 = arith.constant dense<0.000000e+00> : vector<24xf32>
    %278 = vector.multi_reduction <add>, %277, %cst_72 [1] : vector<24x32xf32> to vector<24xf32>
    %279 = vector.shape_cast %278 : vector<24xf32> to vector<24x1xf32>
    %cst_73 = arith.constant 3.200000e+01 : f32
    %280 = vector.broadcast %cst_73 : f32 to vector<24x1xf32>
    %281 = arith.divf %279, %280 : vector<24x1xf32>
    %282 = vector.broadcast %281 : vector<24x1xf32> to vector<24x32xf32>
    %283 = arith.subf %277, %282 : vector<24x32xf32>
    %284 = arith.mulf %283, %283 : vector<24x32xf32>
    %cst_74 = arith.constant dense<0.000000e+00> : vector<24xf32>
    %285 = vector.multi_reduction <add>, %284, %cst_74 [1] : vector<24x32xf32> to vector<24xf32>
    %286 = vector.shape_cast %285 : vector<24xf32> to vector<24x1xf32>
    %cst_75 = arith.constant 3.200000e+01 : f32
    %287 = vector.broadcast %cst_75 : f32 to vector<24x1xf32>
    %288 = arith.divf %286, %287 : vector<24x1xf32>
    %289 = vector.broadcast %281 : vector<24x1xf32> to vector<24x32xf32>
    %290 = arith.subf %277, %289 : vector<24x32xf32>
    %cst_76 = arith.constant 9.99999974E-6 : f32
    %291 = vector.broadcast %cst_76 : f32 to vector<24x1xf32>
    %292 = arith.addf %288, %291 : vector<24x1xf32>
    %293 = math.rsqrt %292 : vector<24x1xf32>
    %294 = vector.broadcast %293 : vector<24x1xf32> to vector<24x32xf32>
    %295 = arith.mulf %290, %294 : vector<24x32xf32>
    %296 = tpu.concatenate %276, %295 in 1 : vector<24x32xf32>, vector<24x32xf32> -> vector<24x64xf32>
    %297 = vector.broadcast %169 : vector<1x64xf32> to vector<24x64xf32>
    %298 = arith.mulf %296, %297 : vector<24x64xf32>
    %299 = vector.broadcast %170 : vector<1x64xf32> to vector<24x64xf32>
    %300 = arith.addf %298, %299 : vector<24x64xf32>
    %cst_77 = arith.constant dense<0.000000e+00> : vector<24x256xf32>
    %301 = tpu.matmul %300, %166, %cst_77 {dimension_numbers = #tpu.dot_dimension_numbers<[1], [0], [0], [1], [0, 0, 1, 1], [], []>} : vector<24x64xf32>, vector<64x256xf32>, vector<24x256xf32> -> vector<24x256xf32>
    %302 = vector.broadcast %173 : vector<1x256xf32> to vector<24x256xf32>
    %303 = arith.addf %301, %302 : vector<24x256xf32>
    %cst_78 = arith.constant 5.000000e-01 : f32
    %304 = vector.broadcast %cst_78 : f32 to vector<24x256xf32>
    %305 = arith.mulf %304, %303 : vector<24x256xf32>
    %cst_79 = arith.constant 1.41421354 : f32
    %306 = vector.broadcast %cst_79 : f32 to vector<24x256xf32>
    %307 = arith.divf %303, %306 : vector<24x256xf32>
    %308 = math.erf %307 : vector<24x256xf32>
    %cst_80 = arith.constant 1.000000e+00 : f32
    %309 = vector.broadcast %cst_80 : f32 to vector<24x256xf32>
    %310 = arith.addf %309, %308 : vector<24x256xf32>
    %311 = arith.mulf %305, %310 : vector<24x256xf32>
    %cst_81 = arith.constant dense<0.000000e+00> : vector<24x64xf32>
    %312 = tpu.matmul %311, %163, %cst_81 {dimension_numbers = #tpu.dot_dimension_numbers<[1], [0], [0], [1], [0, 0, 1, 1], [], []>} : vector<24x256xf32>, vector<256x64xf32>, vector<24x64xf32> -> vector<24x64xf32>
    %313 = arith.addf %257, %312 : vector<24x64xf32>
    %314 = vector.broadcast %174 : vector<1x64xf32> to vector<24x64xf32>
    %315 = arith.addf %313, %314 : vector<24x64xf32>
    %316 = vector.shape_cast %315 : vector<24x64xf32> to vector<3x8x64xf32>
    %cst_82 = arith.constant dense<0.000000e+00> : vector<3x64xf32>
    %317 = vector.multi_reduction <add>, %316, %cst_82 [1] : vector<3x8x64xf32> to vector<3x64xf32>
    %cst_83 = arith.constant 8.000000e+00 : f32
    %318 = vector.broadcast %cst_83 : f32 to vector<3x64xf32>
    %319 = arith.divf %317, %318 : vector<3x64xf32>
    %320 = vector.extract_strided_slice %3 {offsets = [0, 0], sizes = [64, 16], strides = [1, 1]} : vector<64x240xf32> to vector<64x16xf32>
    %321 = vector.extract_strided_slice %3 {offsets = [0, 16], sizes = [64, 64], strides = [1, 1]} : vector<64x240xf32> to vector<64x64xf32>
    %322 = vector.extract_strided_slice %3 {offsets = [0, 80], sizes = [32, 96], strides = [1, 1]} : vector<64x240xf32> to vector<32x96xf32>
    %323 = vector.extract_strided_slice %3 {offsets = [32, 80], sizes = [32, 96], strides = [1, 1]} : vector<64x240xf32> to vector<32x96xf32>
    %324 = vector.extract_strided_slice %3 {offsets = [0, 176], sizes = [16, 64], strides = [1, 1]} : vector<64x240xf32> to vector<16x64xf32>
    %cst_84 = arith.constant dense<0.000000e+00> : vector<3x16xf32>
    %325 = tpu.matmul %319, %320, %cst_84 {dimension_numbers = #tpu.dot_dimension_numbers<[1], [0], [0], [1], [0, 0, 1, 1], [], []>} : vector<3x64xf32>, vector<64x16xf32>, vector<3x16xf32> -> vector<3x16xf32>
    %326 = vector.extract_strided_slice %325 {offsets = [0, 0], sizes = [3, 8], strides = [1, 1]} : vector<3x16xf32> to vector<3x8xf32>
    %cst_85 = arith.constant dense<0xFF800000> : vector<3xf32>
    %327 = vector.multi_reduction <maximumf>, %326, %cst_85 [1] : vector<3x8xf32> to vector<3xf32>
    %328 = vector.shape_cast %327 : vector<3xf32> to vector<3x1xf32>
    %329 = vector.broadcast %328 : vector<3x1xf32> to vector<3x8xf32>
    %330 = arith.subf %326, %329 : vector<3x8xf32>
    %331 = math.exp %330 : vector<3x8xf32>
    %cst_86 = arith.constant dense<0.000000e+00> : vector<3xf32>
    %332 = vector.multi_reduction <add>, %331, %cst_86 [1] : vector<3x8xf32> to vector<3xf32>
    %333 = vector.shape_cast %332 : vector<3xf32> to vector<3x1xf32>
    %334 = vector.broadcast %333 : vector<3x1xf32> to vector<3x8xf32>
    %335 = arith.divf %331, %334 : vector<3x8xf32>
    %336 = vector.extract_strided_slice %325 {offsets = [0, 8], sizes = [3, 8], strides = [1, 1]} : vector<3x16xf32> to vector<3x8xf32>
    %cst_87 = arith.constant dense<0xFF800000> : vector<3xf32>
    %337 = vector.multi_reduction <maximumf>, %336, %cst_87 [1] : vector<3x8xf32> to vector<3xf32>
    %338 = vector.shape_cast %337 : vector<3xf32> to vector<3x1xf32>
    %339 = vector.broadcast %338 : vector<3x1xf32> to vector<3x8xf32>
    %340 = arith.subf %336, %339 : vector<3x8xf32>
    %341 = math.exp %340 : vector<3x8xf32>
    %cst_88 = arith.constant dense<0.000000e+00> : vector<3xf32>
    %342 = vector.multi_reduction <add>, %341, %cst_88 [1] : vector<3x8xf32> to vector<3xf32>
    %343 = vector.shape_cast %342 : vector<3xf32> to vector<3x1xf32>
    %344 = vector.broadcast %343 : vector<3x1xf32> to vector<3x8xf32>
    %345 = arith.divf %341, %344 : vector<3x8xf32>
    %346 = tpu.concatenate %335, %345 in 1 : vector<3x8xf32>, vector<3x8xf32> -> vector<3x16xf32>
    %cst_89 = arith.constant dense<0.000000e+00> : vector<3x64xf32>
    %347 = tpu.matmul %346, %324, %cst_89 {dimension_numbers = #tpu.dot_dimension_numbers<[1], [0], [0], [1], [0, 0, 1, 1], [], []>} : vector<3x16xf32>, vector<16x64xf32>, vector<3x64xf32> -> vector<3x64xf32>
    %cst_90 = arith.constant dense<0.000000e+00> : vector<3x64xf32>
    %348 = tpu.matmul %347, %321, %cst_90 {dimension_numbers = #tpu.dot_dimension_numbers<[1], [0], [0], [1], [0, 0, 1, 1], [], []>} : vector<3x64xf32>, vector<64x64xf32>, vector<3x64xf32> -> vector<3x64xf32>
    %349 = arith.addf %348, %319 : vector<3x64xf32>
    %cst_91 = arith.constant 0.000000e+00 : f32
    %350 = vector.broadcast %cst_91 : f32 to vector<3x64xf32>
    %351 = arith.maximumf %349, %350 : vector<3x64xf32>
    %352 = vector.extract_strided_slice %351 {offsets = [0, 0], sizes = [3, 32], strides = [1, 1]} : vector<3x64xf32> to vector<3x32xf32>
    %353 = vector.extract_strided_slice %351 {offsets = [0, 32], sizes = [3, 32], strides = [1, 1]} : vector<3x64xf32> to vector<3x32xf32>
    %354 = arith.addf %352, %353 : vector<3x32xf32>
    %cst_92 = arith.constant 5.000000e-01 : f32
    %355 = vector.broadcast %cst_92 : f32 to vector<3x32xf32>
    %356 = arith.mulf %354, %355 : vector<3x32xf32>
    %357 = vector.extract_strided_slice %2 {offsets = [16, 0], sizes = [1, 96], strides = [1, 1]} : vector<17x256xf32> to vector<1x96xf32>
    %358 = vector.extract_strided_slice %2 {offsets = [16, 96], sizes = [1, 96], strides = [1, 1]} : vector<17x256xf32> to vector<1x96xf32>
    %cst_93 = arith.constant dense<0.000000e+00> : vector<3x96xf32>
    %359 = tpu.matmul %356, %322, %cst_93 {dimension_numbers = #tpu.dot_dimension_numbers<[1], [0], [0], [1], [0, 0, 1, 1], [], []>} : vector<3x32xf32>, vector<32x96xf32>, vector<3x96xf32> -> vector<3x96xf32>
    %360 = vector.broadcast %357 : vector<1x96xf32> to vector<3x96xf32>
    %361 = arith.addf %359, %360 : vector<3x96xf32>
    %cst_94 = arith.constant 0.000000e+00 : f32
    %362 = vector.broadcast %cst_94 : f32 to vector<1x32xf32>
    %363 = vector.extract_strided_slice %361 {offsets = [0, 0], sizes = [1, 96], strides = [1, 1]} : vector<3x96xf32> to vector<1x96xf32>
    %cst_95 = arith.constant dense<0.000000e+00> : vector<1x96xf32>
    %364 = tpu.matmul %362, %323, %cst_95 {dimension_numbers = #tpu.dot_dimension_numbers<[1], [0], [0], [1], [0, 0, 1, 1], [], []>} : vector<1x32xf32>, vector<32x96xf32>, vector<1x96xf32> -> vector<1x96xf32>
    %365 = arith.addf %364, %358 : vector<1x96xf32>
    %366 = vector.extract_strided_slice %363 {offsets = [0, 0], sizes = [1, 32], strides = [1, 1]} : vector<1x96xf32> to vector<1x32xf32>
    %367 = vector.extract_strided_slice %365 {offsets = [0, 0], sizes = [1, 32], strides = [1, 1]} : vector<1x96xf32> to vector<1x32xf32>
    %368 = arith.addf %366, %367 : vector<1x32xf32>
    %369 = arith.negf %368 : vector<1x32xf32>
    %370 = math.exp %369 : vector<1x32xf32>
    %cst_96 = arith.constant 1.000000e+00 : f32
    %371 = vector.broadcast %cst_96 : f32 to vector<1x32xf32>
    %372 = arith.addf %371, %370 : vector<1x32xf32>
    %373 = arith.divf %371, %372 : vector<1x32xf32>
    %374 = vector.extract_strided_slice %363 {offsets = [0, 32], sizes = [1, 32], strides = [1, 1]} : vector<1x96xf32> to vector<1x32xf32>
    %375 = vector.extract_strided_slice %365 {offsets = [0, 32], sizes = [1, 32], strides = [1, 1]} : vector<1x96xf32> to vector<1x32xf32>
    %376 = arith.addf %374, %375 : vector<1x32xf32>
    %377 = arith.negf %376 : vector<1x32xf32>
    %378 = math.exp %377 : vector<1x32xf32>
    %cst_97 = arith.constant 1.000000e+00 : f32
    %379 = vector.broadcast %cst_97 : f32 to vector<1x32xf32>
    %380 = arith.addf %379, %378 : vector<1x32xf32>
    %381 = arith.divf %379, %380 : vector<1x32xf32>
    %382 = vector.extract_strided_slice %363 {offsets = [0, 64], sizes = [1, 32], strides = [1, 1]} : vector<1x96xf32> to vector<1x32xf32>
    %383 = vector.extract_strided_slice %365 {offsets = [0, 64], sizes = [1, 32], strides = [1, 1]} : vector<1x96xf32> to vector<1x32xf32>
    %384 = arith.mulf %373, %383 : vector<1x32xf32>
    %385 = arith.addf %382, %384 : vector<1x32xf32>
    %386 = math.tanh %385 : vector<1x32xf32>
    %cst_98 = arith.constant 1.000000e+00 : f32
    %387 = vector.broadcast %cst_98 : f32 to vector<1x32xf32>
    %388 = arith.subf %387, %381 : vector<1x32xf32>
    %389 = arith.mulf %388, %386 : vector<1x32xf32>
    %390 = arith.mulf %381, %362 : vector<1x32xf32>
    %391 = arith.addf %389, %390 : vector<1x32xf32>
    %392 = vector.extract_strided_slice %361 {offsets = [1, 0], sizes = [1, 96], strides = [1, 1]} : vector<3x96xf32> to vector<1x96xf32>
    %cst_99 = arith.constant dense<0.000000e+00> : vector<1x96xf32>
    %393 = tpu.matmul %391, %323, %cst_99 {dimension_numbers = #tpu.dot_dimension_numbers<[1], [0], [0], [1], [0, 0, 1, 1], [], []>} : vector<1x32xf32>, vector<32x96xf32>, vector<1x96xf32> -> vector<1x96xf32>
    %394 = arith.addf %393, %358 : vector<1x96xf32>
    %395 = vector.extract_strided_slice %392 {offsets = [0, 0], sizes = [1, 32], strides = [1, 1]} : vector<1x96xf32> to vector<1x32xf32>
    %396 = vector.extract_strided_slice %394 {offsets = [0, 0], sizes = [1, 32], strides = [1, 1]} : vector<1x96xf32> to vector<1x32xf32>
    %397 = arith.addf %395, %396 : vector<1x32xf32>
    %398 = arith.negf %397 : vector<1x32xf32>
    %399 = math.exp %398 : vector<1x32xf32>
    %cst_100 = arith.constant 1.000000e+00 : f32
    %400 = vector.broadcast %cst_100 : f32 to vector<1x32xf32>
    %401 = arith.addf %400, %399 : vector<1x32xf32>
    %402 = arith.divf %400, %401 : vector<1x32xf32>
    %403 = vector.extract_strided_slice %392 {offsets = [0, 32], sizes = [1, 32], strides = [1, 1]} : vector<1x96xf32> to vector<1x32xf32>
    %404 = vector.extract_strided_slice %394 {offsets = [0, 32], sizes = [1, 32], strides = [1, 1]} : vector<1x96xf32> to vector<1x32xf32>
    %405 = arith.addf %403, %404 : vector<1x32xf32>
    %406 = arith.negf %405 : vector<1x32xf32>
    %407 = math.exp %406 : vector<1x32xf32>
    %cst_101 = arith.constant 1.000000e+00 : f32
    %408 = vector.broadcast %cst_101 : f32 to vector<1x32xf32>
    %409 = arith.addf %408, %407 : vector<1x32xf32>
    %410 = arith.divf %408, %409 : vector<1x32xf32>
    %411 = vector.extract_strided_slice %392 {offsets = [0, 64], sizes = [1, 32], strides = [1, 1]} : vector<1x96xf32> to vector<1x32xf32>
    %412 = vector.extract_strided_slice %394 {offsets = [0, 64], sizes = [1, 32], strides = [1, 1]} : vector<1x96xf32> to vector<1x32xf32>
    %413 = arith.mulf %402, %412 : vector<1x32xf32>
    %414 = arith.addf %411, %413 : vector<1x32xf32>
    %415 = math.tanh %414 : vector<1x32xf32>
    %cst_102 = arith.constant 1.000000e+00 : f32
    %416 = vector.broadcast %cst_102 : f32 to vector<1x32xf32>
    %417 = arith.subf %416, %410 : vector<1x32xf32>
    %418 = arith.mulf %417, %415 : vector<1x32xf32>
    %419 = arith.mulf %410, %391 : vector<1x32xf32>
    %420 = arith.addf %418, %419 : vector<1x32xf32>
    %421 = vector.extract_strided_slice %361 {offsets = [2, 0], sizes = [1, 96], strides = [1, 1]} : vector<3x96xf32> to vector<1x96xf32>
    %cst_103 = arith.constant dense<0.000000e+00> : vector<1x96xf32>
    %422 = tpu.matmul %420, %323, %cst_103 {dimension_numbers = #tpu.dot_dimension_numbers<[1], [0], [0], [1], [0, 0, 1, 1], [], []>} : vector<1x32xf32>, vector<32x96xf32>, vector<1x96xf32> -> vector<1x96xf32>
    %423 = arith.addf %422, %358 : vector<1x96xf32>
    %424 = vector.extract_strided_slice %421 {offsets = [0, 0], sizes = [1, 32], strides = [1, 1]} : vector<1x96xf32> to vector<1x32xf32>
    %425 = vector.extract_strided_slice %423 {offsets = [0, 0], sizes = [1, 32], strides = [1, 1]} : vector<1x96xf32> to vector<1x32xf32>
    %426 = arith.addf %424, %425 : vector<1x32xf32>
    %427 = arith.negf %426 : vector<1x32xf32>
    %428 = math.exp %427 : vector<1x32xf32>
    %cst_104 = arith.constant 1.000000e+00 : f32
    %429 = vector.broadcast %cst_104 : f32 to vector<1x32xf32>
    %430 = arith.addf %429, %428 : vector<1x32xf32>
    %431 = arith.divf %429, %430 : vector<1x32xf32>
    %432 = vector.extract_strided_slice %421 {offsets = [0, 32], sizes = [1, 32], strides = [1, 1]} : vector<1x96xf32> to vector<1x32xf32>
    %433 = vector.extract_strided_slice %423 {offsets = [0, 32], sizes = [1, 32], strides = [1, 1]} : vector<1x96xf32> to vector<1x32xf32>
    %434 = arith.addf %432, %433 : vector<1x32xf32>
    %435 = arith.negf %434 : vector<1x32xf32>
    %436 = math.exp %435 : vector<1x32xf32>
    %cst_105 = arith.constant 1.000000e+00 : f32
    %437 = vector.broadcast %cst_105 : f32 to vector<1x32xf32>
    %438 = arith.addf %437, %436 : vector<1x32xf32>
    %439 = arith.divf %437, %438 : vector<1x32xf32>
    %440 = vector.extract_strided_slice %421 {offsets = [0, 64], sizes = [1, 32], strides = [1, 1]} : vector<1x96xf32> to vector<1x32xf32>
    %441 = vector.extract_strided_slice %423 {offsets = [0, 64], sizes = [1, 32], strides = [1, 1]} : vector<1x96xf32> to vector<1x32xf32>
    %442 = arith.mulf %431, %441 : vector<1x32xf32>
    %443 = arith.addf %440, %442 : vector<1x32xf32>
    %444 = math.tanh %443 : vector<1x32xf32>
    %cst_106 = arith.constant 1.000000e+00 : f32
    %445 = vector.broadcast %cst_106 : f32 to vector<1x32xf32>
    %446 = arith.subf %445, %439 : vector<1x32xf32>
    %447 = arith.mulf %446, %444 : vector<1x32xf32>
    %448 = arith.mulf %439, %420 : vector<1x32xf32>
    %449 = arith.addf %447, %448 : vector<1x32xf32>
    %450 = tpu.concatenate %391, %420, %449 in 0 : vector<1x32xf32>, vector<1x32xf32>, vector<1x32xf32> -> vector<3x32xf32>
    %c0_107 = arith.constant 0 : index
    %c0_108 = arith.constant 0 : index
    %451 = vector.load %arg6[%c0_107, %c0_108] : memref<3x32xf32, #tpu.memory_space<vmem>>, vector<3x32xf32>
    tpu.vector_store %arg6[%c0_107, %c0_108], %450 {strides = array<i32>} : memref<3x32xf32, #tpu.memory_space<vmem>>, vector<3x32xf32>,
    return
  }
}

</mosaic_0001>

<bundles_post_ra>
// kernel: tpu_custom_call.1
= control target key start
LH: loop header
LB: loop body
LE: loop exit
PB: predicated region body
PF: predicated region fallthrough
CT: control target
= control target key end

     0   :  { %vm137_vm0 = vcmask 261120   ;;  %s13579_s0 = inlined_call_operand.vmem [shape: f32[24,64], index: 0, kind: input, shape index: {}]   ;;  %s13580_s1 = inlined_call_operand.vmem [shape: f32[24,8,8], index: 1, kind: input, shape index: {}]   ;;  %s13581_s2 = inlined_call_operand.vmem [shape: f32[2,64,512], index: 2, kind: input, shape index: {}]   ;;  %s13582_s3 = inlined_call_operand.vmem [shape: f32[2,256,64], index: 3, kind: input, shape index: {}]   ;;  %s13583_s4 = inlined_call_operand.vmem [shape: f32[17,256], index: 4, kind: input, shape index: {}]   ;;  %s13584_s5 = inlined_call_operand.vmem [shape: f32[64,240], index: 5, kind: input, shape index: {}]   ;;  %s13585_s6 = inlined_call_operand.hbm [shape: f32[3,32], index: 6, kind: output, shape index: {}]  }
   0x1   :  { %v24_v0 = vld [vmem:[%s13579_s0] sm:$0xff] }
   0x2   :  { %11 = vsyncpa [#allocation3], 0  ;;  %s10657_s23 = smov 96   ;;  %v138_v1 = vsel %vm137_vm0, %v24_v0, 0.0  ;;  %v25_v2 = vld [vmem:[%s13579_s0 + $0x8] sm:$0xff]  ;;  %v26_v6 = vld [vmem:[%s13579_s0 + $0x10] sm:$0xff] }
   0x3   :  { %214 = vrot.lane.b32.xlu0 %v24_v0, %s10657_s23  ;;  %139 = vadd.xlane.f32.xlu2 %v138_v1  ;;  %v141_v3 = vsel %vm137_vm0, %v25_v2, 0.0  ;;  %v10658_v7 = vmov 32.0   ;;  %v144_v32 = vsel %vm137_vm0, %v26_v6, 0.0  ;;  %v101_v54 = vld [vmem:[%s13581_s2 + $0xe0] sm:$0xff]  ;;  %v10771_v55 = vld [vmem:[%s13581_s2 + $0xe8] sm:$0xff]  ;;  %vm314_vm8 = vcmask 523264  }
   0x4   :  { %10301 = vrcp.f32 %v10658_v7  ;;  %332 = vmatpush.msra.mxu0 %v101_v54  ;;  %358 = vmatpush.msra.mxu1 %v10771_v55  ;;  %v97_v57 = vld [vmem:[%s13581_s2 + $0xc0] sm:$0xff]  ;;  %v10781_v58 = vld [vmem:[%s13581_s2 + $0xc8] sm:$0xff]  ;;  %s10659_s17 = smov 64   ;;  %s10662_s29 = smov 120  }
   0x5   :  { %v93_v59 = vld [vmem:[%s13581_s2 + $0xa0] sm:$0xff]  ;;  %v10790_v60 = vld [vmem:[%s13581_s2 + $0xa8] sm:$0xff]  ;;  %s10663_s30 = smov 80   ;;  %s10665_s10 = smov 48  }
   0x6   :  { %333 = vmatpush.msra.mxu0 %v97_v57  ;;  %359 = vmatpush.msra.mxu1 %v10781_v58  ;;  %v89_v62 = vld [vmem:[%s13581_s2 + $0x80] sm:$0xff]  ;;  %v10799_v63 = vld [vmem:[%s13581_s2 + $0x88] sm:$0xff]  ;;  %s10666_s22 = smov 32   ;;  %s9821_s28 = sshll.u32 %s13585_s6, 4  ;;  %s9822_s28 = int_to_ptr.hbm [resolvable:$true] %s9821_s28 }
   0x7   :  { %v10808_v1 = vld [vmem:[%s13581_s2 + $0x68] sm:$0xff]  ;;  %v77_v7 = vld [vmem:[%s13581_s2 + $0x20] sm:$0xff] }
   0x8   :  { %334 = vmatpush.msra.mxu0 %v93_v59  ;;  %360 = vmatpush.msra.mxu1 %v10790_v60 }
   0xa   :  { %v10302_v8 = vpop.eup %10301  ;;  %335 = vmatpush.msra.mxu0 %v89_v62  ;;  %361 = vmatpush.msra.mxu1 %v10799_v63 }
   0xb   :  { %216 = vrot.lane.b32.xlu0 %v25_v2, %s10657_s23  ;;  %v148_v9 = vmul.f32 32.0, %v10302_v8  ;;  %vm152_vm1 = vweird.f32 %v10302_v8 }
   0xc   :  { %362 = vmatpush.msra.mxu1 %v10808_v1 }
   0xd   :  { %v149_v10 = vsub.f32 1.0, %v148_v9  ;;  %v10836_v9 = vld [vmem:[%s13581_s2 + $0x8] sm:$0xff] }
   0xf   :  { %v150_v11 = vmul.f32 %v10302_v8, %v149_v10 }
  0x11   :  { %v151_v12 = vadd.f32 %v10302_v8, %v150_v11  ;;  %v73_v11 = vld [vmem:[%s13581_s2] sm:$0xff] }
  0x13   :  { %v10719_v14 = vsel %vm152_vm1, %v10302_v8, %v151_v12  ;;  %v10831_v8 = vld [vmem:[%s13581_s2 + $0x28] sm:$0xff] }
  0x14   :  { %v10163_v10 = vpack.i.bf16 %v10836_v9, %v10831_v8 }
  0x35   :  { %142 = vadd.xlane.f32.xlu0 %v141_v3  ;;  %v10153_v3 = vpack.i.bf16 %v10799_v63, %v10790_v60 }
  0x75   :  { %v215_v4 = vpop.permute.xlu0 %214 }
  0x76   :  { %v223_v5 = vsel %vm137_vm0, %v215_v4, 0.0  ;;  %v140_v15 = vpop.xlane.xlu2 %139  ;;  %v81_v4 = vld [vmem:[%s13581_s2 + $0x40] sm:$0xff] }
  0x77   :  { %224 = vadd.xlane.f32.xlu1 %v223_v5  ;;  %v154_v16 = vmul.f32 %v10719_v14, %v140_v15  ;;  %v10821_v5 = vld [vmem:[%s13581_s2 + $0x48] sm:$0xff] }
  0x78   :  { %363 = vmatpush.msra.mxu1 %v10821_v5 }
  0x79   :  { %v10722_v17 = vsub.f32 %v24_v0, %v154_v16 }
  0x7a   :  { %364 = vmatpush.msra.mxu1 %v10831_v8 }
  0x7b   :  { %v160_v20 = vmul.f32 %v10722_v17, %v10722_v17 }
  0x7c   :  { %365 = vmatpush.msra.mxu1 %v10836_v9 }
  0x7d   :  { %v217_v13 = vpop.permute.xlu0 %216  ;;  %v163_v22 = vsel %vm137_vm0, %v160_v20, 0.0 }
  0x7e   :  { %v226_v29 = vsel %vm137_vm0, %v217_v13, 0.0 }
  0x7f   :  { %227 = vadd.xlane.f32.xlu2 %v226_v29 }
  0x90   :  { %218 = vrot.lane.b32.xlu1 %v26_v6, %s10657_s23 }
  0xa8   :  { %v143_v18 = vpop.xlane.xlu0 %142 }
  0xa9   :  { %v155_v19 = vmul.f32 %v10719_v14, %v143_v18 }
  0xab   :  { %v10727_v21 = vsub.f32 %v25_v2, %v155_v19 }
  0xad   :  { %v161_v23 = vmul.f32 %v10727_v21, %v10727_v21 }
  0xaf   :  { %v166_v24 = vsel %vm137_vm0, %v161_v23, 0.0 }
  0xba   :  { %164 = vadd.xlane.f32.xlu1 %v163_v22 }
  0xc2   :  { %167 = vadd.xlane.f32.xlu1 %v166_v24 }
  0xea   :  { %v225_v25 = vpop.xlane.xlu1 %224 }
  0xeb   :  { %v232_v26 = vmul.f32 %v225_v25, %v10719_v14 }
  0xed   :  { %v10734_v27 = vsub.f32 %v24_v0, %v232_v26  ;;  %v85_v0 = vld [vmem:[%s13581_s2 + $0x60] sm:$0xff] }
  0xee   :  { %336 = vmatpush.msra.mxu0 %v85_v0 }
  0xef   :  { %v238_v28 = vmul.f32 %v10734_v27, %v10734_v27 }
  0xf0   :  { %337 = vmatpush.msra.mxu0 %v81_v4 }
  0xf1   :  { %244 = vrot.lane.b32.xlu0 %v238_v28, %s10657_s23 }
  0xf2   :  { %v228_v33 = vpop.xlane.xlu2 %227  ;;  %338 = vmatpush.msra.mxu0 %v77_v7 }
  0xf3   :  { %v233_v44 = vmul.f32 %v228_v33, %v10719_v14 }
  0xf4   :  { %339 = vmatpush.msra.mxu0 %v73_v11 }
  0xf5   :  { %v10755_v45 = vsub.f32 %v25_v2, %v233_v44  ;;  %v10148_v2 = vpack.i.bf16 %v10781_v58, %v10771_v55 }
  0xf7   :  { %v239_v46 = vmul.f32 %v10755_v45, %v10755_v45 }
 0x102   :  { %v219_v30 = vpop.permute.xlu1 %218 }
 0x103   :  { %v229_v31 = vsel %vm137_vm0, %v219_v30, 0.0  ;;  %v10850_v30 = vld [vmem:[%s13583_s4] sm:$0xff] }
 0x104   :  { %230 = vadd.xlane.f32.xlu2 %v229_v31 }
 0x11b   :  { %145 = vadd.xlane.f32.xlu0 %v144_v32 }
 0x12d   :  { %v165_v53 = vpop.xlane.xlu1 %164 }
 0x12e   :  { %v172_v56 = vmul.f32 %v165_v53, %v10719_v14 }
 0x130   :  { %v175_v61 = vadd.f32 1e-05, %v172_v56 }
 0x132   :  { %10303 = vrsqrt.f32 %v175_v61  ;;  %vm184_vm2 = vweird.f32 %v175_v61 }
 0x138   :  { %v10304_v12 = vpop.eup %10303 }
 0x139   :  { %v179_v13 = vmul.f32 %v10304_v12, %v175_v61  ;;  %vm185_vm3 = vweird.f32 %v10304_v12 }
 0x13a   :  { %vm186_vm4 = vmor %vm184_vm2, %vm185_vm3 }
 0x13b   :  { %v180_v19 = vmul.f32 %v10304_v12, %v179_v13 }
 0x13d   :  { %v181_v20 = vmul.f32 0.5, %v180_v19 }
 0x13f   :  { %v182_v23 = vsub.f32 1.5, %v181_v20 }
 0x141   :  { %v183_v26 = vmul.f32 %v10304_v12, %v182_v23 }
 0x143   :  { %v187_v31 = vsel %vm186_vm4, %v10304_v12, %v183_v26 }
 0x163   :  { %v245_v38 = vpop.permute.xlu0 %244 }
 0x164   :  { %v253_v47 = vsel %vm137_vm0, %v245_v38, 0.0  ;;  %v10858_v38 = vperm.slane %v10850_v30, 1 }
 0x177   :  { %v231_v34 = vpop.xlane.xlu2 %230 }
 0x178   :  { %v234_v35 = vmul.f32 %v231_v34, %v10719_v14  ;;  %v10853_v34 = vperm.slane %v10850_v30, 0 }
 0x17a   :  { %v10743_v36 = vsub.f32 %v26_v6, %v234_v35  ;;  %v208_v35 = vmul.f32 %v187_v31, %v10722_v17 }
 0x17c   :  { %v240_v37 = vmul.f32 %v10743_v36, %v10743_v36 }
 0x17e   :  { %248 = vrot.lane.b32.xlu0 %v240_v37, %s10657_s23 }
 0x18e   :  { %v146_v39 = vpop.xlane.xlu0 %145 }
 0x18f   :  { %v156_v40 = vmul.f32 %v10719_v14, %v146_v39 }
 0x191   :  { %v10749_v41 = vsub.f32 %v26_v6, %v156_v40  ;;  %v10158_v6 = vpack.i.bf16 %v10821_v5, %v10808_v1 }
 0x193   :  { %v162_v42 = vmul.f32 %v10749_v41, %v10749_v41 }
 0x195   :  { %v169_v43 = vsel %vm137_vm0, %v162_v42, 0.0 }
 0x196   :  { %170 = vadd.xlane.f32.xlu2 %v169_v43  ;;  %v168_v43 = vpop.xlane.xlu1 %167 }
 0x197   :  { %v173_v44 = vmul.f32 %v168_v43, %v10719_v14 }
 0x199   :  { %v176_v17 = vadd.f32 1e-05, %v173_v44 }
 0x19b   :  { %vm194_vm9 = vweird.f32 %v176_v17 }
 0x1ae   :  { %246 = vrot.lane.b32.xlu2 %v239_v46, %s10657_s23 }
 0x1d7   :  { %254 = vadd.xlane.f32.xlu2 %v253_v47 }
 0x1f0   :  { %v249_v51 = vpop.permute.xlu0 %248 }
 0x1f1   :  { %v259_v52 = vsel %vm137_vm0, %v249_v51, 0.0 }
 0x209   :  { %v10761_v48 = vpop.xlane.xlu2 %170 }
 0x211   :  { %v247_v49 = vpop.permute.xlu2 %246 }
 0x212   :  { %v256_v50 = vsel %vm137_vm0, %v247_v49, 0.0 }
 0x213   :  { %257 = vadd.xlane.f32.xlu1 %v256_v50 }
 0x21b   :  { %260 = vadd.xlane.f32.xlu1 %v259_v52 }
 0x24a   :  { %v255_v15 = vpop.xlane.xlu2 %254 }
 0x24b   :  { %v262_v16 = vmul.f32 %v255_v15, %v10719_v14 }
 0x24d   :  { %v265_v18 = vadd.f32 1e-05, %v262_v16 }
 0x24f   :  { %10305 = vrsqrt.f32 %v265_v18  ;;  %vm274_vm6 = vweird.f32 %v265_v18 }
 0x250   :  { %10307 = vrsqrt.f32 %v176_v17 }
 0x255   :  { %v10306_v22 = vpop.eup %10305 }
 0x256   :  { %v269_v24 = vmul.f32 %v10306_v22, %v265_v18  ;;  %vm275_vm5 = vweird.f32 %v10306_v22  ;;  %v10308_v47 = vpop.eup %10307 }
 0x257   :  { %vm276_vm7 = vmor %vm274_vm6, %vm275_vm5  ;;  %v189_v49 = vmul.f32 %v10308_v47, %v176_v17  ;;  %vm195_vm10 = vweird.f32 %v10308_v47  ;;  %vm1447_vm6 = vcmask 64512  }
 0x258   :  { %v270_v25 = vmul.f32 %v10306_v22, %v269_v24  ;;  %vm196_vm11 = vmor %vm194_vm9, %vm195_vm10 }
 0x259   :  { %v190_v52 = vmul.f32 %v10308_v47, %v189_v49 }
 0x25a   :  { %v271_v28 = vmul.f32 0.5, %v270_v25 }
 0x25b   :  { %v191_v56 = vmul.f32 0.5, %v190_v52 }
 0x25c   :  { %v272_v29 = vsub.f32 1.5, %v271_v28 }
 0x25d   :  { %v192_v0 = vsub.f32 1.5, %v191_v56 }
 0x25e   :  { %v273_v32 = vmul.f32 %v10306_v22, %v272_v29 }
 0x25f   :  { %v193_v12 = vmul.f32 %v10308_v47, %v192_v0 }
 0x260   :  { %v277_v33 = vsel %vm276_vm7, %v10306_v22, %v273_v32 }
 0x261   :  { %v298_v37 = vmul.f32 %v277_v33, %v10734_v27  ;;  %v174_v27 = vmul.f32 %v10761_v48, %v10719_v14  ;;  %v197_v19 = vsel %vm196_vm11, %v10308_v47, %v193_v12 }
 0x262   :  { %v209_v26 = vmul.f32 %v197_v19, %v10727_v21 }
 0x263   :  { %v301_v39 = vsel %vm137_vm0, %v208_v35, %v298_v37  ;;  %v177_v46 = vadd.f32 1e-05, %v174_v27  ;;  %v52_v27 = vld [vmem:[%s13583_s4 + $0x8] sm:$0xff] }
 0x264   :  { %v305_v40 = vmul.f32 %v10853_v34, %v301_v39  ;;  %v10888_v47 = vperm.slane %v52_v27, 4 }
 0x265   :  { %10309 = vrsqrt.f32 %v177_v46  ;;  %vm204_vm3 = vweird.f32 %v177_v46 }
 0x266   :  { %v309_v42 = vadd.f32 %v10858_v38, %v305_v40 }
 0x268   :  { %9830 = vmatmul.msk.f32.vlgmr.msra.gmra.mxu0 %vm314_vm8, %v309_v42  ;;  %9833 = vmatmul.msk.f32.vlgmr.msra.gmra.mxu1 %vm314_vm8, %v309_v42 }
 0x26b   :  { %v10310_v54 = vpop.eup %10309 }
 0x26c   :  { %v199_v57 = vmul.f32 %v10310_v54, %v177_v46  ;;  %vm205_vm15 = vweird.f32 %v10310_v54  ;;  %v312_v46 = vperm.slane %v10850_v30, 4 }
 0x26d   :  { %vm206_vm4 = vmor %vm204_vm3, %vm205_vm15 }
 0x26e   :  { %v200_v48 = vmul.f32 %v10310_v54, %v199_v57 }
 0x270   :  { %v201_v13 = vmul.f32 0.5, %v200_v48 }
 0x272   :  { %v202_v20 = vsub.f32 1.5, %v201_v13 }
 0x274   :  { %v203_v29 = vmul.f32 %v10310_v54, %v202_v20 }
 0x276   :  { %v207_v37 = vsel %vm206_vm4, %v10310_v54, %v203_v29 }
 0x286   :  { %v258_v50 = vpop.xlane.xlu1 %257 }
 0x287   :  { %v263_v51 = vmul.f32 %v258_v50, %v10719_v14 }
 0x289   :  { %v266_v53 = vadd.f32 1e-05, %v263_v51 }
 0x28b   :  { %10311 = vrsqrt.f32 %v266_v53  ;;  %vm284_vm13 = vweird.f32 %v266_v53 }
 0x28e   :  { %v261_v59 = vpop.xlane.xlu1 %260 }
 0x28f   :  { %v264_v61 = vmul.f32 %v261_v59, %v10719_v14 }
 0x291   :  { %v10312_v62 = vpop.eup %10311  ;;  %v267_v4 = vadd.f32 1e-05, %v264_v61 }
 0x292   :  { %v279_v7 = vmul.f32 %v10312_v62, %v266_v53  ;;  %vm285_vm12 = vweird.f32 %v10312_v62 }
 0x293   :  { %10313 = vrsqrt.f32 %v267_v4  ;;  %vm286_vm14 = vmor %vm284_vm13, %vm285_vm12  ;;  %vm294_vm1 = vweird.f32 %v267_v4 }
 0x294   :  { %v280_v11 = vmul.f32 %v10312_v62, %v279_v7 }
 0x296   :  { %v281_v15 = vmul.f32 0.5, %v280_v11 }
 0x298   :  { %v282_v16 = vsub.f32 1.5, %v281_v15 }
 0x299   :  { %v10314_v18 = vpop.eup %10313 }
 0x29a   :  { %v283_v22 = vmul.f32 %v10312_v62, %v282_v16  ;;  %v289_v23 = vmul.f32 %v10314_v18, %v267_v4  ;;  %vm295_vm2 = vweird.f32 %v10314_v18 }
 0x29b   :  { %vm296_vm5 = vmor %vm294_vm1, %vm295_vm2 }
 0x29c   :  { %v287_v24 = vsel %vm286_vm14, %v10312_v62, %v283_v22  ;;  %v290_v25 = vmul.f32 %v10314_v18, %v289_v23 }
 0x29d   :  { %v299_v28 = vmul.f32 %v287_v24, %v10755_v45  ;;  %v210_v45 = vmul.f32 %v207_v37, %v10749_v41 }
 0x29e   :  { %v291_v31 = vmul.f32 0.5, %v290_v25 }
 0x29f   :  { %v302_v32 = vsel %vm137_vm0, %v209_v26, %v299_v28 }
 0x2a0   :  { %v292_v33 = vsub.f32 1.5, %v291_v31  ;;  %v306_v35 = vmul.f32 %v10853_v34, %v302_v32 }
 0x2a2   :  { %v293_v39 = vmul.f32 %v10314_v18, %v292_v33  ;;  %v310_v40 = vadd.f32 %v10858_v38, %v306_v35 }
 0x2a4   :  { %v297_v21 = vsel %vm296_vm5, %v10314_v18, %v293_v39  ;;  %9831 = vmatmul.msk.f32.gmra.mxu0 %vm314_vm8, %v310_v40  ;;  %9834 = vmatmul.msk.f32.gmra.mxu1 %vm314_vm8, %v310_v40 }
 0x2a5   :  { %v300_v42 = vmul.f32 %v297_v21, %v10743_v36 }
 0x2a7   :  { %v303_v43 = vsel %vm137_vm0, %v210_v45, %v300_v42 }
 0x2a8   :  { %v307_v44 = vmul.f32 %v10853_v34, %v303_v43 }
 0x2aa   :  { %v311_v17 = vadd.f32 %v10858_v38, %v307_v44 }
 0x2ac   :  { %9832 = vmatmul.msk.f32.gmra.mxu0 %vm314_vm8, %v311_v17  ;;  %9835 = vmatmul.msk.f32.gmra.mxu1 %vm314_vm8, %v311_v17 }
 0x2e5   :  { %v341_v41 = vpop.f32.mrf.mxu0  ;;  %v367_v36 = vpop.f32.mrf.mxu1 }
 0x2e6   :  { %v342_v49 = vadd.f32 %v341_v41, %v312_v46  ;;  %v368_v50 = vadd.f32 %v367_v36, %v10888_v47 }
 0x2e8   :  { %1351 = vxpose.xlu1.b32.start.end [1/1] (short) (narrow) %v368_v50, 64  ;;  %v376_v34 = vmul.f32 0.35355338, %v342_v49 }
 0x2ea   :  { %379 = vxpose.xlu2.b32.start.end [1/1] (short) (narrow) %v376_v34, 64 }
 0x321   :  { %v344_v38 = vpop.f32.mrf.mxu0 }
 0x322   :  { %v345_v51 = vadd.f32 %v344_v38, %v312_v46 }
 0x324   :  { %v10101_v52 = vpack.i.bf16 %v345_v51, %v342_v49  ;;  %v377_v53 = vmul.f32 0.35355338, %v345_v51 }
 0x326   :  { %10102 = vrot.lane.b32.xlu0 %v10101_v52, %s10659_s17 }
 0x328   :  { %411 = vxpose.xlu1.b32.start.end [1/1] (short) (narrow) %v377_v53, 64 }
 0x329   :  { %v347_v54 = vpop.f32.mrf.mxu0 }
 0x32a   :  { %v348_v30 = vadd.f32 %v347_v54, %v312_v46 }
 0x32c   :  { %v378_v56 = vmul.f32 0.35355338, %v348_v30 }
 0x32e   :  { %1250 = vrot.lane.b32.xlu0 %v348_v30, %s10659_s17  ;;  %443 = vxpose.xlu2.b32.start.end [1/1] (short) (narrow) %v378_v56, 64 }
 0x383   :  { %v395_v57 = vpop.trf.xlu2 }
 0x384   :  { %475 = vxpose.xlu0.b32.start.end [1/1] (short) (narrow) %v395_v57, 8 }
 0x38b   :  { %v396_v59 = vpop.trf.xlu2 }
 0x38c   :  { %v10893_v61 = vpop.trf.xlu1  ;;  %507 = vxpose.xlu0.b32.start.end [1/1] (short) (narrow) %v396_v59, 8 }
 0x393   :  { %v397_v62 = vpop.trf.xlu2 }
 0x394   :  { %v10895_v0 = vpop.trf.xlu1 }
 0x398   :  { %v10103_v31 = vpop.permute.xlu0 %10102 }
 0x39b   :  { %v398_v4 = vpop.trf.xlu2 }
 0x39c   :  { %v10897_v48 = vpop.trf.xlu1 }
 0x3a0   :  { %v1251_v43 = vpop.permute.xlu0 %1250 }
 0x3a3   :  { %v399_v7 = vpop.trf.xlu2 }
 0x3a4   :  { %v10899_v11 = vpop.trf.xlu1 }
 0x3ab   :  { %v400_v12 = vpop.trf.xlu2 }
 0x3ac   :  { %v10901_v13 = vpop.trf.xlu1 }
 0x3b3   :  { %v401_v15 = vpop.trf.xlu2 }
 0x3b4   :  { %v10903_v16 = vpop.trf.xlu1 }
 0x3bb   :  { %v402_v19 = vpop.trf.xlu2 }
 0x3bc   :  { %v10905_v18 = vpop.trf.xlu1 }
 0x3c4   :  { %v10907_v20 = vpop.trf.xlu1 }
 0x3c7   :  { %v459_v22 = vpop.trf.xlu2 }
 0x3c8   :  { %987 = vxpose.xlu0.b32.start.end [1/1] (short) (narrow) %v459_v22, 8 }
 0x3cc   :  { %v427_v23 = vpop.trf.xlu1 }
 0x3cd   :  { %731 = vxpose.xlu2.b32.start.end [1/1] (short) (narrow) %v427_v23, 8 }
 0x3cf   :  { %v460_v25 = vpop.trf.xlu2 }
 0x3d0   :  { %571 = vxpose.xlu0.b32.start.end [1/1] (short) (narrow) %v398_v4, 8 }
 0x3d4   :  { %v428_v24 = vpop.trf.xlu1 }
 0x3d5   :  { %539 = vxpose.xlu2.b32.start.end [1/1] (short) (narrow) %v397_v62, 8 }
 0x3d7   :  { %v461_v28 = vpop.trf.xlu2 }
 0x3d8   :  { %1019 = vxpose.xlu0.b32.start.end [1/1] (short) (narrow) %v460_v25, 8 }
 0x3dc   :  { %v429_v26 = vpop.trf.xlu1 }
 0x3dd   :  { %795 = vxpose.xlu1.b32.start.end [1/1] (short) (narrow) %v429_v26, 8  ;;  %763 = vxpose.xlu2.b32.start.end [1/1] (short) (narrow) %v428_v24, 8 }
 0x3df   :  { %v462_v35 = vpop.trf.xlu2 }
 0x3e0   :  { %1051 = vxpose.xlu0.b32.start.end [1/1] (short) (narrow) %v461_v28, 8 }
 0x3e4   :  { %v430_v29 = vpop.trf.xlu1 }
 0x3e5   :  { %827 = vxpose.xlu1.b32.start.end [1/1] (short) (narrow) %v430_v29, 8  ;;  %603 = vxpose.xlu2.b32.start.end [1/1] (short) (narrow) %v399_v7, 8 }
 0x3e7   :  { %v463_v40 = vpop.trf.xlu2 }
 0x3ec   :  { %v431_v32 = vpop.trf.xlu1 }
 0x3ed   :  { %635 = vxpose.xlu2.b32.start.end [1/1] (short) (narrow) %v400_v12, 8  ;;  %699 = vxpose.xlu1.b32.start.end [1/1] (short) (narrow) %v402_v19, 8 }
 0x3ef   :  { %v464_v21 = vpop.trf.xlu2 }
 0x3f4   :  { %v432_v33 = vpop.trf.xlu1 }
 0x3f5   :  { %859 = vxpose.xlu2.b32.start.end [1/1] (short) (narrow) %v431_v32, 8  ;;  %10107 = vxpose.xlu1.b32.start.end [1/1] (short) (narrow) %v10103_v31, 64 }
 0x3f6   :  { %891 = vxpose.xlu0.b32.start.end [1/1] (short) (narrow) %v432_v33, 8 }
 0x3f7   :  { %v465_v45 = vpop.trf.xlu2 }
 0x3fc   :  { %v433_v37 = vpop.trf.xlu1 }
 0x3fd   :  { %1083 = vxpose.xlu2.b32.start.end [1/1] (short) (narrow) %v462_v35, 8 }
 0x3fe   :  { %923 = vxpose.xlu0.b32.start.end [1/1] (short) (narrow) %v433_v37, 8 }
 0x3ff   :  { %v466_v42 = vpop.trf.xlu2 }
 0x404   :  { %v434_v39 = vpop.trf.xlu1 }
 0x405   :  { %667 = vxpose.xlu2.b32.start.end [1/1] (short) (narrow) %v401_v15, 8 }
 0x406   :  { %955 = vxpose.xlu0.b32.start.end [1/1] (short) (narrow) %v434_v39, 8 }
 0x40d   :  { %1115 = vxpose.xlu2.b32.start.end [1/1] (short) (narrow) %v463_v40, 8 }
 0x40e   :  { %1179 = vxpose.xlu0.b32.start.end [1/1] (short) (narrow) %v465_v45, 8 }
 0x415   :  { %1147 = vxpose.xlu2.b32.start.end [1/1] (short) (narrow) %v464_v21, 8 }
 0x41d   :  { %1211 = vxpose.xlu2.b32.start.end [1/1] (short) (narrow) %v466_v42, 8 }
 0x428   :  { %v491_v17 = vpop.trf.xlu0 }
 0x430   :  { %v523_v41 = vpop.trf.xlu0 }
 0x435   :  { %1319 = vxpose.xlu1.b32.start.end [1/1] (short) (narrow) %v1251_v43, 64 }
 0x466   :  { %v10909_v27 = vpop.trf.xlu2 }
 0x46c   :  { %v10911_v50 = vpop.trf.xlu0 }
 0x46e   :  { %v555_v36 = vpop.trf.xlu2 }
 0x474   :  { %v587_v54 = vpop.trf.xlu0 }
 0x476   :  { %v10913_v34 = vpop.trf.xlu2 }
 0x47c   :  { %v1035_v62 = vpop.trf.xlu0 }
 0x47e   :  { %v619_v30 = vpop.trf.xlu2 }
 0x481   :  { %v811_v44 = vpop.trf.xlu1 }
 0x484   :  { %v1067_v19 = vpop.trf.xlu0 }
 0x486   :  { %v651_v4 = vpop.trf.xlu2 }
 0x489   :  { %v843_v46 = vpop.trf.xlu1 }
 0x48e   :  { %v875_v22 = vpop.trf.xlu2 }
 0x491   :  { %v715_v49 = vpop.trf.xlu1 }
 0x496   :  { %v1099_v26 = vpop.trf.xlu2 }
 0x499   :  { %v10108_v38 = vpop.trf.xlu1 }
 0x49a   :  { %v10109_v51 = vunpack.i.l.bf16 %v10108_v38  ;;  %v907_v25 = vpop.trf.xlu0  ;;  %v10112_v39 = vunpack.i.h.bf16 %v10108_v38 }
 0x49c   :  { %1466 = vmatpush.msra.mxu2 %v10109_v51 }
 0x49d   :  { %9836 = vmatmul.msk.f32.vlgmr.msra.gmra.mxu2 %vm1447_vm6, %v491_v17 }
 0x49e   :  { %v683_v37 = vpop.trf.xlu2 }
 0x4a1   :  { %v10113_v52 = vpop.trf.xlu1 }
 0x4a2   :  { %v10114_v53 = vunpack.i.l.bf16 %v10113_v52  ;;  %v939_v33 = vpop.trf.xlu0 }
 0x4a4   :  { %1489 = vmatpush.msra.mxu3 %v10114_v53 }
 0x4a5   :  { %9837 = vmatmul.msk.f32.vlgmr.msra.gmra.mxu3 %vm1447_vm6, %v523_v41 }
 0x4a9   :  { %v10118_v56 = vpop.trf.xlu1 }
 0x4aa   :  { %v10119_v57 = vunpack.i.l.bf16 %v10118_v56  ;;  %v10122_v59 = vunpack.i.h.bf16 %v10118_v56  ;;  %v971_v43 = vpop.trf.xlu0 }
 0x4ac   :  { %1512 = vmatpush.msrb.mxu2 %v10119_v57  ;;  %1696 = vmatpush.msrb.mxu0 %v10122_v59  ;;  %v29_v57 = vld [vmem:[%s13580_s1 + $0x10] sm:$0xff] }
 0x4ad   :  { %9838 = vmatmul.msk.f32.vlgmr.msrb.gmra.mxu2 %vm1447_vm6, %v555_v36  ;;  %9846 = vmatmul.msk.f32.vlgmr.msrb.gmra.mxu0 %vm1447_vm6, %v811_v44  ;;  %v10117_v44 = vunpack.i.h.bf16 %v10113_v52 }
 0x4b1   :  { %v10123_v7 = vpop.trf.xlu1 }
 0x4b2   :  { %v10124_v12 = vunpack.i.l.bf16 %v10123_v7  ;;  %v10127_v15 = vunpack.i.h.bf16 %v10123_v7  ;;  %v1195_v51 = vpop.trf.xlu0 }
 0x4b4   :  { %1535 = vmatpush.msrb.mxu3 %v10124_v12  ;;  %1719 = vmatpush.msrb.mxu1 %v10127_v15 }
 0x4b5   :  { %9839 = vmatmul.msk.f32.vlgmr.msrb.gmra.mxu3 %vm1447_vm6, %v587_v54  ;;  %9847 = vmatmul.msk.f32.vlgmr.msrb.gmra.mxu1 %vm1447_vm6, %v843_v46 }
 0x4b9   :  { %v10128_v23 = vpop.trf.xlu1 }
 0x4ba   :  { %v10129_v24 = vunpack.i.l.bf16 %v10128_v23  ;;  %v10132_v40 = vunpack.i.h.bf16 %v10128_v23 }
 0x4bc   :  { %1558 = vmatpush.msra.mxu2 %v10129_v24  ;;  %v30_v24 = vld [vmem:[%s13580_s1 + $0x18] sm:$0xff] }
 0x4bd   :  { %9840 = vmatmul.msk.f32.vlgmr.msra.gmra.mxu2 %vm1447_vm6, %v619_v30 }
 0x4c1   :  { %v10133_v28 = vpop.trf.xlu1 }
 0x4c2   :  { %v10134_v29 = vunpack.i.l.bf16 %v10133_v28  ;;  %v10137_v17 = vunpack.i.h.bf16 %v10133_v28 }
 0x4c4   :  { %1581 = vmatpush.msra.mxu3 %v10134_v29 }
 0x4c5   :  { %9841 = vmatmul.msk.f32.vlgmr.msra.gmra.mxu3 %vm1447_vm6, %v651_v4 }
 0x4c9   :  { %v10138_v31 = vpop.trf.xlu1 }
 0x4ca   :  { %v10142_v32 = vunpack.i.h.bf16 %v10138_v31  ;;  %v10139_v35 = vunpack.i.l.bf16 %v10138_v31 }
 0x4cc   :  { %1788 = vmatpush.msra.mxu0 %v10142_v32  ;;  %1604 = vmatpush.msrb.mxu2 %v10139_v35  ;;  %v31_v32 = vld [vmem:[%s13580_s1 + $0x20] sm:$0xff] }
 0x4cd   :  { %9842 = vmatmul.msk.f32.vlgmr.msrb.gmra.mxu2 %vm1447_vm6, %v683_v37  ;;  %9850 = vmatmul.msk.f32.vlgmr.msra.gmra.mxu0 %vm1447_vm6, %v939_v33 }
 0x4ce   :  { %1650 = vmatpush.msra.mxu2 %v10112_v39  ;;  %v32_v39 = vld [vmem:[%s13580_s1 + $0x28] sm:$0xff] }
 0x4d0   :  { %1742 = vmatpush.msrb.mxu2 %v10132_v40 }
 0x4d1   :  { %v10143_v21 = vpop.trf.xlu1 }
 0x4d2   :  { %v10144_v45 = vunpack.i.l.bf16 %v10143_v21  ;;  %v10147_v42 = vunpack.i.h.bf16 %v10143_v21  ;;  %v41_v21 = vld [vmem:[%s13580_s1 + $0x70] sm:$0xff] }
 0x4d4   :  { %1627 = vmatpush.msrb.mxu3 %v10144_v45  ;;  %1811 = vmatpush.msra.mxu1 %v10147_v42 }
 0x4d5   :  { %9843 = vmatmul.msk.f32.vlgmr.msrb.gmra.mxu3 %vm1447_vm6, %v715_v49  ;;  %9844 = vmatmul.msk.f32.vlgmr.msra.gmra.mxu2 %vm1447_vm6, %v10909_v27  ;;  %v1131_v49 = vpop.trf.xlu2 }
 0x4d6   :  { %1673 = vmatpush.msra.mxu3 %v10117_v44  ;;  %9851 = vmatmul.msk.f32.vlgmr.msra.gmra.mxu1 %vm1447_vm6, %v971_v43 }
 0x4d8   :  { %1765 = vmatpush.msrb.mxu3 %v10137_v17 }
 0x4d9   :  { %v1335_v46 = vpop.trf.xlu1 }
 0x4da   :  { %1834 = vmatpush.msra.mxu2 %v1335_v46  ;;  %v33_v46 = vld [vmem:[%s13580_s1 + $0x30] sm:$0xff] }
 0x4dd   :  { %9845 = vmatmul.msk.f32.vlgmr.msra.gmra.mxu3 %vm1447_vm6, %v10913_v34  ;;  %9848 = vmatmul.msk.f32.vlgmr.msrb.gmra.mxu2 %vm1447_vm6, %v875_v22  ;;  %v1163_v38 = vpop.trf.xlu2 }
 0x4e1   :  { %v1336_v41 = vpop.trf.xlu1 }
 0x4e2   :  { %1857 = vmatpush.msra.mxu3 %v1336_v41 }
 0x4e5   :  { %9849 = vmatmul.msk.f32.vlgmr.msrb.gmra.mxu3 %vm1447_vm6, %v907_v25  ;;  %9852 = vmatmul.msk.f32.vlgmr.msra.gmra.mxu2 %vm1447_vm6, %v10911_v50 }
 0x4e9   :  { %v1337_v27 = vpop.trf.xlu1 }
 0x4ea   :  { %1880 = vmatpush.msrb.mxu0 %v1337_v27 }
 0x4eb   :  { %9854 = vmatmul.msk.f32.vlgmr.msrb.gmra.mxu0 %vm1447_vm6, %v1067_v19  ;;  %v37_v19 = vld [vmem:[%s13580_s1 + $0x50] sm:$0xff] }
 0x4ed   :  { %9853 = vmatmul.msk.f32.vlgmr.msra.gmra.mxu3 %vm1447_vm6, %v1035_v62  ;;  %v38_v62 = vld [vmem:[%s13580_s1 + $0x58] sm:$0xff] }
 0x4f1   :  { %v1338_v36 = vpop.trf.xlu1 }
 0x4f2   :  { %1903 = vmatpush.msrb.mxu1 %v1338_v36  ;;  %v42_v36 = vld [vmem:[%s13580_s1 + $0x78] sm:$0xff] }
 0x4f3   :  { %9855 = vmatmul.msk.f32.vlgmr.msrb.gmra.mxu1 %vm1447_vm6, %v1099_v26 }
 0x4f9   :  { %v1339_v34 = vpop.trf.xlu1 }
 0x4fa   :  { %1926 = vmatpush.msrb.mxu2 %v1339_v34 }
 0x4fb   :  { %9856 = vmatmul.msk.f32.vlgmr.msrb.gmra.mxu2 %vm1447_vm6, %v1131_v49 }
 0x4fc   :  { %9860 = vmatpush.xpose.msk.msra.mxu2 %vm1447_vm6, %v10893_v61  ;;  %v1227_v61 = vpop.trf.xlu2 }
 0x500   :  { %9868 = vmatpush.xpose.msk.msrb.mxu2 %vm1447_vm6, %v10901_v13 }
 0x501   :  { %v1340_v50 = vpop.trf.xlu1 }
 0x502   :  { %1949 = vmatpush.msrb.mxu3 %v1340_v50 }
 0x503   :  { %9857 = vmatmul.msk.f32.vlgmr.msrb.gmra.mxu3 %vm1447_vm6, %v1163_v38  ;;  %v35_v38 = vld [vmem:[%s13580_s1 + $0x40] sm:$0xff] }
 0x504   :  { %9862 = vmatpush.xpose.msk.msra.mxu3 %vm1447_vm6, %v10895_v0  ;;  %v27_v0 = vld [vmem:[%s13580_s1] sm:$0xff] }
 0x508   :  { %9870 = vmatpush.xpose.msk.msrb.mxu3 %vm1447_vm6, %v10903_v16  ;;  %v10961_v16 = vpop.f32.mrf.mxu1 }
 0x509   :  { %v1341_v52 = vpop.trf.xlu1 }
 0x50a   :  { %1972 = vmatpush.msra.mxu0 %v1341_v52 }
 0x50b   :  { %9858 = vmatmul.msk.f32.vlgmr.msra.gmra.mxu0 %vm1447_vm6, %v1195_v51 }
 0x50c   :  { %9864 = vmatpush.xpose.msk.msrb.mxu0 %vm1447_vm6, %v10897_v48 }
 0x510   :  { %9872 = vmatpush.xpose.msk.msra.mxu0 %vm1447_vm6, %v10905_v18 }
 0x511   :  { %v1342_v13 = vpop.trf.xlu1 }
 0x512   :  { %1995 = vmatpush.msra.mxu1 %v1342_v13 }
 0x513   :  { %9859 = vmatmul.msk.f32.vlgmr.msra.gmra.mxu1 %vm1447_vm6, %v1227_v61 }
 0x514   :  { %9866 = vmatpush.xpose.msk.msrb.mxu1 %vm1447_vm6, %v10899_v11  ;;  %v28_v11 = vld [vmem:[%s13580_s1 + $0x8] sm:$0xff] }
 0x518   :  { %9874 = vmatpush.xpose.msk.msra.mxu1 %vm1447_vm6, %v10907_v20  ;;  %v10972_v20 = vpop.f32.mrf.mxu1 }
 0x520   :  { %v1468_v48 = vpop.f32.mrf.mxu2 }
 0x521   :  { %v10963_v53 = vadd.f32 %v1468_v48, %v27_v0  ;;  %v34_v48 = vld [vmem:[%s13580_s1 + $0x38] sm:$0xff] }
 0x523   :  { %v2000_v18 = vsel %vm1447_vm6, %v10963_v53, -inf }
 0x524   :  { %2001 = vmax.xlane.f32.xlu0 %v2000_v18  ;;  %v36_v18 = vld [vmem:[%s13580_s1 + $0x48] sm:$0xff] }
 0x528   :  { %v1491_v54 = vpop.f32.mrf.mxu3 }
 0x529   :  { %v10970_v30 = vadd.f32 %v1491_v54, %v28_v11  ;;  %v39_v11 = vld [vmem:[%s13580_s1 + $0x60] sm:$0xff] }
 0x52a   :  { %v1698_v22 = vpop.f32.mrf.mxu0 }
 0x52b   :  { %v2003_v56 = vsel %vm1447_vm6, %v10970_v30, -inf  ;;  %v10996_v25 = vadd.f32 %v1698_v22, %v37_v19  ;;  %v40_v22 = vld [vmem:[%s13580_s1 + $0x68] sm:$0xff] }
 0x52c   :  { %2004 = vmax.xlane.f32.xlu2 %v2003_v56 }
 0x52d   :  { %v2030_v31 = vsel %vm1447_vm6, %v10996_v25, -inf }
 0x530   :  { %v1514_v59 = vpop.f32.mrf.mxu2 }
 0x531   :  { %v10982_v4 = vadd.f32 %v1514_v59, %v29_v57 }
 0x532   :  { %v1721_v7 = vpop.f32.mrf.mxu1 }
 0x533   :  { %v10984_v12 = vadd.f32 %v1721_v7, %v38_v62  ;;  %v2006_v15 = vsel %vm1447_vm6, %v10982_v4, -inf }
 0x534   :  { %2007 = vmax.xlane.f32.xlu2 %v2006_v15 }
 0x535   :  { %v2033_v23 = vsel %vm1447_vm6, %v10984_v12, -inf }
 0x536   :  { %2034 = vmax.xlane.f32.xlu0 %v2033_v23  ;;  %v45_v23 = vld [vmem:[%s13580_s1 + $0x90] sm:$0xff] }
 0x538   :  { %v1537_v26 = vpop.f32.mrf.mxu3 }
 0x539   :  { %v10998_v28 = vadd.f32 %v1537_v26, %v30_v24 }
 0x53b   :  { %v2009_v29 = vsel %vm1447_vm6, %v10998_v28, -inf }
 0x53c   :  { %2010 = vmax.xlane.f32.xlu1 %v2009_v29  ;;  %2031 = vmax.xlane.f32.xlu2 %v2030_v31 }
 0x540   :  { %v1560_v33 = vpop.f32.mrf.mxu2 }
 0x541   :  { %v11007_v35 = vadd.f32 %v1560_v33, %v31_v32 }
 0x543   :  { %v2012_v37 = vsel %vm1447_vm6, %v11007_v35, -inf }
 0x544   :  { %2013 = vmax.xlane.f32.xlu1 %v2012_v37  ;;  %v46_v37 = vld [vmem:[%s13580_s1 + $0x98] sm:$0xff] }
 0x548   :  { %v1583_v40 = vpop.f32.mrf.mxu3 }
 0x549   :  { %v11017_v45 = vadd.f32 %v1583_v40, %v32_v39 }
 0x54a   :  { %v1790_v42 = vpop.f32.mrf.mxu0 }
 0x54b   :  { %v11019_v43 = vadd.f32 %v1790_v42, %v41_v21  ;;  %v2015_v44 = vsel %vm1447_vm6, %v11017_v45, -inf  ;;  %v43_v42 = vld [vmem:[%s13580_s1 + $0x80] sm:$0xff] }
 0x54c   :  { %2016 = vmax.xlane.f32.xlu0 %v2015_v44 }
 0x54d   :  { %v2042_v17 = vsel %vm1447_vm6, %v11019_v43, -inf }
 0x54e   :  { %2043 = vmax.xlane.f32.xlu2 %v2042_v17 }
 0x550   :  { %v1606_v41 = vpop.f32.mrf.mxu2 }
 0x551   :  { %v11028_v27 = vadd.f32 %v1606_v41, %v33_v46  ;;  %v47_v41 = vld [vmem:[%s13580_s1 + $0xa0] sm:$0xff] }
 0x553   :  { %v2018_v49 = vsel %vm1447_vm6, %v11028_v27, -inf  ;;  %v1813_v34 = vpop.f32.mrf.mxu1 }
 0x554   :  { %2019 = vmax.xlane.f32.xlu1 %v2018_v49  ;;  %v11035_v50 = vadd.f32 %v1813_v34, %v42_v36 }
 0x556   :  { %v2045_v13 = vsel %vm1447_vm6, %v11035_v50, -inf }
 0x558   :  { %v1629_v51 = vpop.f32.mrf.mxu3  ;;  %v1652_v52 = vpop.f32.mrf.mxu2 }
 0x559   :  { %v11040_v61 = vadd.f32 %v1652_v52, %v35_v38  ;;  %v11055_v54 = vadd.f32 %v1629_v51, %v34_v48  ;;  %v49_v38 = vld [vmem:[%s13580_s1 + $0xb0] sm:$0xff]  ;;  %v44_v48 = vld [vmem:[%s13580_s1 + $0x88] sm:$0xff] }
 0x55b   :  { %v2024_v0 = vsel %vm1447_vm6, %v11040_v61, -inf  ;;  %v2021_v15 = vsel %vm1447_vm6, %v11055_v54, -inf }
 0x55c   :  { %2025 = vmax.xlane.f32.xlu0 %v2024_v0  ;;  %2046 = vmax.xlane.f32.xlu1 %v2045_v13 }
 0x560   :  { %v1675_v56 = vpop.f32.mrf.mxu3  ;;  %v1744_v57 = vpop.f32.mrf.mxu2 }
 0x561   :  { %v11057_v59 = vadd.f32 %v1675_v56, %v36_v18  ;;  %v11059_v62 = vadd.f32 %v1744_v57, %v39_v11  ;;  %v50_v18 = vld [vmem:[%s13580_s1 + $0xb8] sm:$0xff] }
 0x563   :  { %v2027_v7 = vsel %vm1447_vm6, %v11057_v59, -inf  ;;  %v2036_v19 = vsel %vm1447_vm6, %v11059_v62, -inf }
 0x564   :  { %2028 = vmax.xlane.f32.xlu2 %v2027_v7  ;;  %2022 = vmax.xlane.f32.xlu0 %v2021_v15  ;;  %v48_v7 = vld [vmem:[%s13580_s1 + $0xa8] sm:$0xff] }
 0x565   :  { %2037 = vmax.xlane.f32.xlu1 %v2036_v19 }
 0x568   :  { %v1767_v24 = vpop.f32.mrf.mxu3  ;;  %v1882_v29 = vpop.f32.mrf.mxu0 }
 0x569   :  { %v11073_v26 = vadd.f32 %v1767_v24, %v40_v22  ;;  %v11075_v31 = vadd.f32 %v1882_v29, %v45_v23  ;;  %v1836_v44 = vpop.f32.mrf.mxu2 }
 0x56a   :  { %v11091_v17 = vadd.f32 %v1836_v44, %v43_v42 }
 0x56b   :  { %v2039_v32 = vsel %vm1447_vm6, %v11073_v26, -inf  ;;  %v2054_v33 = vsel %vm1447_vm6, %v11075_v31, -inf }
 0x56c   :  { %2040 = vmax.xlane.f32.xlu2 %v2039_v32  ;;  %2055 = vmax.xlane.f32.xlu0 %v2054_v33  ;;  %v2048_v46 = vsel %vm1447_vm6, %v11091_v17, -inf }
 0x570   :  { %v1905_v39 = vpop.f32.mrf.mxu1  ;;  %v1859_v13 = vpop.f32.mrf.mxu3 }
 0x571   :  { %v11084_v40 = vadd.f32 %v1905_v39, %v46_v37  ;;  %v11115_v11 = vadd.f32 %v1859_v13, %v44_v48 }
 0x573   :  { %v2057_v21 = vsel %vm1447_vm6, %v11084_v40, -inf  ;;  %v2051_v19 = vsel %vm1447_vm6, %v11115_v11, -inf }
 0x574   :  { %2058 = vmax.xlane.f32.xlu1 %v2057_v21 }
 0x57c   :  { %2049 = vmax.xlane.f32.xlu1 %v2048_v46 }
 0x57e   :  { %v1928_v36 = vpop.f32.mrf.mxu2 }
 0x57f   :  { %v11098_v49 = vadd.f32 %v1928_v36, %v47_v41 }
 0x581   :  { %v2060_v34 = vsel %vm1447_vm6, %v11098_v49, -inf }
 0x582   :  { %2061 = vmax.xlane.f32.xlu2 %v2060_v34 }
 0x586   :  { %v1951_v15 = vpop.f32.mrf.mxu3 }
 0x587   :  { %v11126_v23 = vadd.f32 %v1951_v15, %v48_v7 }
 0x588   :  { %v1974_v51 = vpop.f32.mrf.mxu0 }
 0x589   :  { %v11105_v52 = vadd.f32 %v1974_v51, %v49_v38  ;;  %v2063_v32 = vsel %vm1447_vm6, %v11126_v23, -inf }
 0x58b   :  { %v2066_v0 = vsel %vm1447_vm6, %v11105_v52, -inf }
 0x58c   :  { %2067 = vmax.xlane.f32.xlu0 %v2066_v0 }
 0x590   :  { %v1997_v56 = vpop.f32.mrf.mxu1 }
 0x591   :  { %v11117_v57 = vadd.f32 %v1997_v56, %v50_v18 }
 0x593   :  { %v2069_v22 = vsel %vm1447_vm6, %v11117_v57, -inf }
 0x594   :  { %2052 = vmax.xlane.f32.xlu0 %v2051_v19  ;;  %2070 = vmax.xlane.f32.xlu1 %v2069_v22 }
 0x597   :  { %v2002_v24 = vpop.xlane.xlu0 %2001 }
 0x598   :  { %v2072_v29 = vsub.f32 %v10963_v53, %v2002_v24 }
 0x59a   :  { %v2096_v33 = vmul.f32 1.442695, %v2072_v29 }
 0x59c   :  { %10315 = vpow2.f32 %v2096_v33  ;;  %2064 = vmax.xlane.f32.xlu0 %v2063_v32 }
 0x59f   :  { %v2005_v37 = vpop.xlane.xlu2 %2004 }
 0x5a0   :  { %v2073_v39 = vsub.f32 %v10970_v30, %v2005_v37 }
 0x5a2   :  { %v11132_v21 = vpop.eup %10315  ;;  %v2098_v42 = vmul.f32 1.442695, %v2073_v39 }
 0x5a3   :  { %v2144_v44 = vsel %vm1447_vm6, %v11132_v21, 0.0 }
 0x5a4   :  { %10317 = vpow2.f32 %v2098_v42  ;;  %2145 = vadd.xlane.f32.xlu2 %v2144_v44 }
 0x5a7   :  { %v2008_v46 = vpop.xlane.xlu2 %2007 }
 0x5a8   :  { %v2074_v53 = vsub.f32 %v10982_v4, %v2008_v46 }
 0x5a9   :  { %v2035_v41 = vpop.xlane.xlu0 %2034 }
 0x5aa   :  { %v11137_v36 = vpop.eup %10317  ;;  %v2100_v34 = vmul.f32 1.442695, %v2074_v53  ;;  %v2083_v38 = vsub.f32 %v10984_v12, %v2035_v41 }
 0x5ab   :  { %v2147_v30 = vsel %vm1447_vm6, %v11137_v36, 0.0 }
 0x5ac   :  { %10319 = vpow2.f32 %v2100_v34  ;;  %v2118_v51 = vmul.f32 1.442695, %v2083_v38  ;;  %2148 = vadd.xlane.f32.xlu1 %v2147_v30 }
 0x5ae   :  { %10321 = vpow2.f32 %v2118_v51 }
 0x5af   :  { %v2011_v13 = vpop.xlane.xlu1 %2010  ;;  %v2032_v0 = vpop.xlane.xlu2 %2031 }
 0x5b0   :  { %v2075_v48 = vsub.f32 %v10998_v28, %v2011_v13  ;;  %v2082_v18 = vsub.f32 %v10996_v25, %v2032_v0 }
 0x5b2   :  { %v11144_v4 = vpop.eup %10319  ;;  %v2102_v56 = vmul.f32 1.442695, %v2075_v48  ;;  %v2116_v7 = vmul.f32 1.442695, %v2082_v18 }
 0x5b3   :  { %v2150_v12 = vsel %vm1447_vm6, %v11144_v4, 0.0 }
 0x5b4   :  { %v11148_v15 = vpop.eup %10321  ;;  %10323 = vpow2.f32 %v2102_v56  ;;  %2151 = vadd.xlane.f32.xlu2 %v2150_v12 }
 0x5b5   :  { %10325 = vpow2.f32 %v2116_v7  ;;  %v2177_v19 = vsel %vm1447_vm6, %v11148_v15, 0.0 }
 0x5b6   :  { %2178 = vadd.xlane.f32.xlu0 %v2177_v19 }
 0x5b7   :  { %v2014_v22 = vpop.xlane.xlu1 %2013 }
 0x5b8   :  { %v2076_v28 = vsub.f32 %v11007_v35, %v2014_v22 }
 0x5ba   :  { %v11153_v25 = vpop.eup %10323  ;;  %v2104_v24 = vmul.f32 1.442695, %v2076_v28 }
 0x5bb   :  { %v11155_v29 = vpop.eup %10325  ;;  %v2153_v32 = vsel %vm1447_vm6, %v11153_v25, 0.0 }
 0x5bc   :  { %10327 = vpow2.f32 %v2104_v24  ;;  %2154 = vadd.xlane.f32.xlu1 %v2153_v32  ;;  %v2174_v33 = vsel %vm1447_vm6, %v11155_v29, 0.0 }
 0x5bd   :  { %2175 = vadd.xlane.f32.xlu2 %v2174_v33 }
 0x5bf   :  { %v2017_v37 = vpop.xlane.xlu0 %2016 }
 0x5c0   :  { %v2077_v39 = vsub.f32 %v11017_v45, %v2017_v37 }
 0x5c1   :  { %v2044_v42 = vpop.xlane.xlu2 %2043 }
 0x5c2   :  { %v11162_v44 = vpop.eup %10327  ;;  %v2106_v35 = vmul.f32 1.442695, %v2077_v39  ;;  %v2086_v46 = vsub.f32 %v11019_v43, %v2044_v42 }
 0x5c3   :  { %v2156_v53 = vsel %vm1447_vm6, %v11162_v44, 0.0 }
 0x5c4   :  { %10329 = vpow2.f32 %v2106_v35  ;;  %v2124_v41 = vmul.f32 1.442695, %v2086_v46 }
 0x5c5   :  { %2157 = vadd.xlane.f32.xlu2 %v2156_v53 }
 0x5c6   :  { %10331 = vpow2.f32 %v2124_v41 }
 0x5c7   :  { %v2020_v34 = vpop.xlane.xlu1 %2019 }
 0x5c8   :  { %v2078_v38 = vsub.f32 %v11028_v27, %v2020_v34 }
 0x5ca   :  { %v11168_v30 = vpop.eup %10329  ;;  %v2108_v51 = vmul.f32 1.442695, %v2078_v38 }
 0x5cb   :  { %v2159_v45 = vsel %vm1447_vm6, %v11168_v30, 0.0 }
 0x5cc   :  { %10333 = vpow2.f32 %v2108_v51  ;;  %2160 = vadd.xlane.f32.xlu0 %v2159_v45  ;;  %v11172_v0 = vpop.eup %10331 }
 0x5cd   :  { %v2186_v19 = vsel %vm1447_vm6, %v11172_v0, 0.0 }
 0x5cf   :  { %v2026_v13 = vpop.xlane.xlu0 %2025  ;;  %v2047_v43 = vpop.xlane.xlu1 %2046 }
 0x5d0   :  { %v2080_v48 = vsub.f32 %v11040_v61, %v2026_v13  ;;  %v2087_v18 = vsub.f32 %v11035_v50, %v2047_v43 }
 0x5d2   :  { %v11176_v56 = vpop.eup %10333  ;;  %v2112_v27 = vmul.f32 1.442695, %v2080_v48  ;;  %v2126_v7 = vmul.f32 1.442695, %v2087_v18 }
 0x5d3   :  { %v2162_v12 = vsel %vm1447_vm6, %v11176_v56, 0.0 }
 0x5d4   :  { %10335 = vpow2.f32 %v2112_v27  ;;  %2163 = vadd.xlane.f32.xlu1 %v2162_v12  ;;  %2187 = vadd.xlane.f32.xlu0 %v2186_v19 }
 0x5d5   :  { %10337 = vpow2.f32 %v2126_v7 }
 0x5d7   :  { %v2023_v22 = vpop.xlane.xlu0 %2022  ;;  %v2029_v28 = vpop.xlane.xlu2 %2028 }
 0x5d8   :  { %v2079_v61 = vsub.f32 %v11055_v54, %v2023_v22  ;;  %v2038_v24 = vpop.xlane.xlu1 %2037  ;;  %v2081_v50 = vsub.f32 %v11057_v59, %v2029_v28 }
 0x5d9   :  { %v2084_v32 = vsub.f32 %v11059_v62, %v2038_v24 }
 0x5da   :  { %v11185_v33 = vpop.eup %10335  ;;  %v2110_v37 = vmul.f32 1.442695, %v2079_v61  ;;  %v2114_v39 = vmul.f32 1.442695, %v2081_v50 }
 0x5db   :  { %v11187_v42 = vpop.eup %10337  ;;  %v2120_v35 = vmul.f32 1.442695, %v2084_v32  ;;  %v2168_v46 = vsel %vm1447_vm6, %v11185_v33, 0.0 }
 0x5dc   :  { %10339 = vpow2.f32 %v2110_v37  ;;  %v2189_v53 = vsel %vm1447_vm6, %v11187_v42, 0.0  ;;  %2169 = vadd.xlane.f32.xlu0 %v2168_v46 }
 0x5dd   :  { %10341 = vpow2.f32 %v2120_v35  ;;  %2190 = vadd.xlane.f32.xlu2 %v2189_v53 }
 0x5de   :  { %10343 = vpow2.f32 %v2114_v39 }
 0x5df   :  { %v2041_v54 = vpop.xlane.xlu2 %2040  ;;  %v2056_v59 = vpop.xlane.xlu0 %2055 }
 0x5e0   :  { %v2085_v62 = vsub.f32 %v11073_v26, %v2041_v54  ;;  %v2090_v41 = vsub.f32 %v11075_v31, %v2056_v59 }
 0x5e2   :  { %v11195_v34 = vpop.eup %10339  ;;  %v2122_v38 = vmul.f32 1.442695, %v2085_v62  ;;  %v2132_v45 = vmul.f32 1.442695, %v2090_v41 }
 0x5e3   :  { %v11197_v51 = vpop.eup %10341  ;;  %v2165_v13 = vsel %vm1447_vm6, %v11195_v34, 0.0 }
 0x5e4   :  { %v11201_v43 = vpop.eup %10343  ;;  %10345 = vpow2.f32 %v2122_v38  ;;  %v2180_v48 = vsel %vm1447_vm6, %v11197_v51, 0.0  ;;  %2166 = vadd.xlane.f32.xlu0 %v2165_v13 }
 0x5e5   :  { %10347 = vpow2.f32 %v2132_v45  ;;  %2181 = vadd.xlane.f32.xlu1 %v2180_v48  ;;  %v2171_v26 = vsel %vm1447_vm6, %v11201_v43, 0.0  ;;  %v371_v45 = vadd.f32 %v10961_v16, %v10888_v47 }
 0x5e6   :  { %2172 = vadd.xlane.f32.xlu2 %v2171_v26 }
 0x5e7   :  { %v2059_v31 = vpop.xlane.xlu1 %2058 }
 0x5e8   :  { %v2091_v18 = vsub.f32 %v11084_v40, %v2059_v31 }
 0x5ea   :  { %v11208_v27 = vpop.eup %10345  ;;  %v2134_v7 = vmul.f32 1.442695, %v2091_v18 }
 0x5eb   :  { %v11210_v12 = vpop.eup %10347  ;;  %v2183_v19 = vsel %vm1447_vm6, %v11208_v27, 0.0 }
 0x5ec   :  { %10349 = vpow2.f32 %v2134_v7  ;;  %v2198_v22 = vsel %vm1447_vm6, %v11210_v12, 0.0 }
 0x5ed   :  { %2199 = vadd.xlane.f32.xlu0 %v2198_v22 }
 0x5ee   :  { %2184 = vadd.xlane.f32.xlu2 %v2183_v19 }
 0x5ef   :  { %v2050_v28 = vpop.xlane.xlu1 %2049 }
 0x5f0   :  { %v2088_v61 = vsub.f32 %v11091_v17, %v2050_v28 }
 0x5f2   :  { %v11217_v24 = vpop.eup %10349  ;;  %v2128_v40 = vmul.f32 1.442695, %v2088_v61 }
 0x5f3   :  { %v2201_v50 = vsel %vm1447_vm6, %v11217_v24, 0.0 }
 0x5f4   :  { %10351 = vpow2.f32 %v2128_v40 }
 0x5f5   :  { %2202 = vadd.xlane.f32.xlu0 %v2201_v50  ;;  %v11234_v54 = vpop.xlane.xlu2 %2061 }
 0x5fa   :  { %v11221_v32 = vpop.eup %10351 }
 0x5fb   :  { %v2192_v37 = vsel %vm1447_vm6, %v11221_v32, 0.0 }
 0x5fd   :  { %2193 = vadd.xlane.f32.xlu0 %v2192_v37 }
 0x5fe   :  { %10149 = vrot.lane.b32.xlu1 %v10148_v2, %s10659_s17 }
 0x5ff   :  { %v2068_v17 = vpop.xlane.xlu0 %2067 }
 0x600   :  { %v2094_v39 = vsub.f32 %v11105_v52, %v2068_v17 }
 0x602   :  { %v2140_v35 = vmul.f32 1.442695, %v2094_v39 }
 0x604   :  { %10353 = vpow2.f32 %v2140_v35 }
 0x607   :  { %v11236_v59 = vpop.xlane.xlu1 %2070  ;;  %v11244_v48 = vpop.xlane.xlu0 %2052 }
 0x60a   :  { %v11230_v46 = vpop.eup %10353 }
 0x60b   :  { %v2210_v53 = vsel %vm1447_vm6, %v11230_v46, 0.0 }
 0x60c   :  { %2211 = vadd.xlane.f32.xlu2 %v2210_v53 }
 0x60f   :  { %v11248_v37 = vpop.xlane.xlu0 %2064 }
 0x617   :  { %v2146_v62 = vpop.xlane.xlu2 %2145 }
 0x618   :  { %10355 = vrcp.f32 %v2146_v62  ;;  %v2227_v38 = vand.u32 2147483648, %v2146_v62  ;;  %v2225_v13 = vand.u32 2147483647, %v2146_v62  ;;  %vm2221_vm9 = vweird.f32 %v2146_v62 }
 0x61a   :  { %v2228_v7 = vor.u32 1.1754944e-38, %v2227_v38  ;;  %vm2226_vm11 = vcmp.eq.f32.partialorder %v2225_v13, 8.507059e+37 }
 0x61e   :  { %v10356_v41 = vpop.eup %10355 }
 0x61f   :  { %v2217_v55 = vmul.f32 %v10356_v41, %v2146_v62  ;;  %v2149_v58 = vpop.xlane.xlu1 %2148  ;;  %vm2222_vm7 = vweird.f32 %v10356_v41 }
 0x620   :  { %10357 = vrcp.f32 %v2149_v58  ;;  %vm2223_vm10 = vmor %vm2221_vm9, %vm2222_vm7  ;;  %v2242_v5 = vand.u32 2147483648, %v2149_v58  ;;  %vm2236_vm13 = vweird.f32 %v2149_v58  ;;  %v2240_v50 = vand.u32 2147483647, %v2149_v58 }
 0x621   :  { %v2218_v2 = vsub.f32 1.0, %v2217_v55 }
 0x622   :  { %v2243_v62 = vor.u32 1.1754944e-38, %v2242_v5  ;;  %vm2241_vm15 = vcmp.eq.f32.partialorder %v2240_v50, 8.507059e+37 }
 0x623   :  { %v2219_v52 = vmul.f32 %v10356_v41, %v2218_v2 }
 0x624   :  { %10159 = vrot.lane.b32.xlu2 %v10158_v6, %s10659_s17 }
 0x625   :  { %v2220_v26 = vadd.f32 %v10356_v41, %v2219_v52 }
 0x626   :  { %v10358_v31 = vpop.eup %10357  ;;  %1383 = vxpose.xlu0.b32.start.end [1/1] (short) (narrow) %v371_v45, 64 }
 0x627   :  { %v2224_v18 = vsel %vm2223_vm10, %v10356_v41, %v2220_v26  ;;  %v2232_v19 = vmul.f32 %v10358_v31, %v2149_v58  ;;  %v2152_v22 = vpop.xlane.xlu2 %2151  ;;  %vm2237_vm12 = vweird.f32 %v10358_v31 }
 0x628   :  { %10359 = vrcp.f32 %v2152_v22  ;;  %v2229_v28 = vsel %vm2226_vm11, %v2228_v7, %v2224_v18  ;;  %vm2238_vm14 = vmor %vm2236_vm13, %vm2237_vm12  ;;  %v2255_v2 = vand.u32 2147483647, %v2152_v22  ;;  %vm2251_vm2 = vweird.f32 %v2152_v22 }
 0x629   :  { %v2233_v16 = vsub.f32 1.0, %v2232_v19  ;;  %v2230_v40 = vmul.f32 %v11132_v21, %v2229_v28  ;;  %v2257_v21 = vand.u32 2147483648, %v2152_v22 }
 0x62a   :  { %vm2256_vm4 = vcmp.eq.f32.partialorder %v2255_v2, 8.507059e+37 }
 0x62b   :  { %v2234_v61 = vmul.f32 %v10358_v31, %v2233_v16  ;;  %9861 = vmatmul.msk.f32.vlgmr.msra.gmra.mxu2 %vm1447_vm6, %v2230_v40  ;;  %v2258_v13 = vor.u32 1.1754944e-38, %v2257_v21 }
 0x62d   :  { %v2235_v1 = vadd.f32 %v10358_v31, %v2234_v61 }
 0x62e   :  { %v10360_v6 = vpop.eup %10359 }
 0x62f   :  { %v2247_v17 = vmul.f32 %v10360_v6, %v2152_v22  ;;  %v2155_v39 = vpop.xlane.xlu1 %2154  ;;  %v2239_v35 = vsel %vm2238_vm14, %v10358_v31, %v2235_v1  ;;  %vm2252_vm1 = vweird.f32 %v10360_v6  ;;  %v11254_v31 = vpop.xlane.xlu0 %2178 }
 0x630   :  { %10361 = vrcp.f32 %v2155_v39  ;;  %v11250_v53 = vpop.xlane.xlu2 %2175  ;;  %v2244_v52 = vsel %vm2241_vm15, %v2243_v62, %v2239_v35  ;;  %vm2253_vm3 = vmor %vm2251_vm2, %vm2252_vm1  ;;  %v2272_v61 = vand.u32 2147483648, %v2155_v39  ;;  %v2270_v40 = vand.u32 2147483647, %v2155_v39 }
 0x631   :  { %v2248_v41 = vsub.f32 1.0, %v2247_v17  ;;  %v2245_v38 = vmul.f32 %v11137_v36, %v2244_v52  ;;  %v2095_v36 = vsub.f32 %v11117_v57, %v11236_v59  ;;  %vm2266_vm7 = vweird.f32 %v2155_v39 }
 0x632   :  { %v2273_v17 = vor.u32 1.1754944e-38, %v2272_v61  ;;  %vm2271_vm10 = vcmp.eq.f32.partialorder %v2270_v40, 8.507059e+37  ;;  %v2089_v59 = vsub.f32 %v11115_v11, %v11244_v48 }
 0x633   :  { %v2249_v55 = vmul.f32 %v10360_v6, %v2248_v41  ;;  %9863 = vmatmul.msk.f32.vlgmr.msra.gmra.mxu3 %vm1447_vm6, %v2245_v38 }
 0x634   :  { %v2130_v38 = vmul.f32 1.442695, %v2089_v59 }
 0x635   :  { %v2250_v58 = vadd.f32 %v10360_v6, %v2249_v55 }
 0x636   :  { %v10362_v45 = vpop.eup %10361 }
 0x637   :  { %v2254_v26 = vsel %vm2253_vm3, %v10360_v6, %v2250_v58  ;;  %v2262_v18 = vmul.f32 %v10362_v45, %v2155_v39  ;;  %vm2267_vm5 = vweird.f32 %v10362_v45  ;;  %v2142_v6 = vmul.f32 1.442695, %v2095_v36 }
 0x638   :  { %v2158_v7 = vpop.xlane.xlu2 %2157  ;;  %v2259_v19 = vsel %vm2256_vm4, %v2258_v13, %v2254_v26  ;;  %vm2268_vm9 = vmor %vm2266_vm7, %vm2267_vm5 }
 0x639   :  { %v2263_v16 = vsub.f32 1.0, %v2262_v18  ;;  %10363 = vrcp.f32 %v2158_v7  ;;  %v2260_v28 = vmul.f32 %v11144_v4, %v2259_v19  ;;  %v2287_v39 = vand.u32 2147483648, %v2158_v7 }
 0x63a   :  { %v2285_v55 = vand.u32 2147483647, %v2158_v7  ;;  %vm2281_vm12 = vweird.f32 %v2158_v7  ;;  %v2092_v19 = vsub.f32 %v11098_v49, %v11234_v54 }
 0x63b   :  { %v2264_v22 = vmul.f32 %v10362_v45, %v2263_v16  ;;  %9865 = vmatmul.msk.f32.vlgmr.msrb.gmra.mxu0 %vm1447_vm6, %v2260_v28  ;;  %v2288_v26 = vor.u32 1.1754944e-38, %v2287_v39 }
 0x63c   :  { %vm2286_vm14 = vcmp.eq.f32.partialorder %v2285_v55, 8.507059e+37 }
 0x63d   :  { %v2265_v1 = vadd.f32 %v10362_v45, %v2264_v22 }
 0x63f   :  { %v10364_v5 = vpop.eup %10363  ;;  %v2269_v50 = vsel %vm2268_vm9, %v10362_v45, %v2265_v1  ;;  %v2161_v35 = vpop.xlane.xlu0 %2160  ;;  %v2136_v1 = vmul.f32 1.442695, %v2092_v19 }
 0x640   :  { %v2277_v62 = vmul.f32 %v10364_v5, %v2158_v7  ;;  %10365 = vrcp.f32 %v2161_v35  ;;  %v2274_v4 = vsel %vm2271_vm10, %v2273_v17, %v2269_v50  ;;  %vm2282_vm11 = vweird.f32 %v10364_v5 }
 0x641   :  { %v2275_v57 = vmul.f32 %v11153_v25, %v2274_v4  ;;  %10367 = vpow2.f32 %v2142_v6  ;;  %vm2283_vm13 = vmor %vm2281_vm12, %vm2282_vm11  ;;  %v2302_v22 = vand.u32 2147483648, %v2161_v35  ;;  %vm2296_vm1 = vweird.f32 %v2161_v35 }
 0x642   :  { %v2278_v41 = vsub.f32 1.0, %v2277_v62  ;;  %v2300_v40 = vand.u32 2147483647, %v2161_v35  ;;  %v2093_v17 = vsub.f32 %v11126_v23, %v11248_v37 }
 0x643   :  { %9867 = vmatmul.msk.f32.vlgmr.msrb.gmra.mxu1 %vm1447_vm6, %v2275_v57 }
 0x644   :  { %v2279_v21 = vmul.f32 %v10364_v5, %v2278_v41  ;;  %vm2301_vm3 = vcmp.eq.f32.partialorder %v2300_v40, 8.507059e+37  ;;  %v2138_v57 = vmul.f32 1.442695, %v2093_v17 }
 0x646   :  { %v10366_v2 = vpop.eup %10365  ;;  %v2280_v52 = vadd.f32 %v10364_v5, %v2279_v21 }
 0x647   :  { %v2292_v58 = vmul.f32 %v10366_v2, %v2161_v35  ;;  %v2164_v45 = vpop.xlane.xlu1 %2163  ;;  %v11264_v13 = vpop.xlane.xlu0 %2187  ;;  %vm2297_vm15 = vweird.f32 %v10366_v2 }
 0x648   :  { %v2284_v25 = vsel %vm2283_vm13, %v10364_v5, %v2280_v52  ;;  %10369 = vrcp.f32 %v2164_v45  ;;  %v11266_v11 = vpop.eup %10367  ;;  %vm2298_vm2 = vmor %vm2296_vm1, %vm2297_vm15  ;;  %v2317_v39 = vand.u32 2147483648, %v2164_v45  ;;  %vm2311_vm5 = vweird.f32 %v2164_v45 }
 0x649   :  { %v2293_v48 = vsub.f32 1.0, %v2292_v58  ;;  %v2289_v18 = vsel %vm2286_vm14, %v2288_v26, %v2284_v25  ;;  %10371 = vpow2.f32 %v2130_v38  ;;  %v2213_v28 = vsel %vm1447_vm6, %v11266_v11, 0.0 }
 0x64a   :  { %v2290_v7 = vmul.f32 %v11162_v44, %v2289_v18  ;;  %v2303_v44 = vor.u32 1.1754944e-38, %v2302_v22  ;;  %10373 = vpow2.f32 %v2136_v1  ;;  %v2315_v23 = vand.u32 2147483647, %v2164_v45 }
 0x64b   :  { %v2294_v16 = vmul.f32 %v10366_v2, %v2293_v48 }
 0x64c   :  { %9869 = vmatmul.msk.f32.vlgmr.msrb.gmra.mxu2 %vm1447_vm6, %v2290_v7  ;;  %vm2316_vm9 = vcmp.eq.f32.partialorder %v2315_v23, 8.507059e+37 }
 0x64d   :  { %v2295_v36 = vadd.f32 %v10366_v2, %v2294_v16  ;;  %2214 = vadd.xlane.f32.xlu2 %v2213_v28 }
 0x64e   :  { %v10370_v61 = vpop.eup %10369 }
 0x64f   :  { %v2307_v5 = vmul.f32 %v10370_v61, %v2164_v45  ;;  %v11274_v49 = vpop.xlane.xlu0 %2169  ;;  %v2299_v54 = vsel %vm2298_vm2, %v10366_v2, %v2295_v36  ;;  %v11276_v6 = vpop.eup %10371  ;;  %vm2312_vm4 = vweird.f32 %v10370_v61 }
 0x650   :  { %v2304_v4 = vsel %vm2301_vm3, %v2303_v44, %v2299_v54  ;;  %v2195_v35 = vsel %vm1447_vm6, %v11276_v6, 0.0  ;;  %v11284_v55 = vpop.eup %10373  ;;  %vm2313_vm7 = vmor %vm2311_vm5, %vm2312_vm4  ;;  %v11298_v40 = vpop.xlane.xlu2 %2190  ;;  %vm2341_vm15 = vweird.f32 %v11274_v49 }
 0x651   :  { %v2308_v50 = vsub.f32 1.0, %v2307_v5  ;;  %v2305_v41 = vmul.f32 %v11168_v30, %v2304_v4  ;;  %v2318_v30 = vor.u32 1.1754944e-38, %v2317_v39  ;;  %v2204_v2 = vsel %vm1447_vm6, %v11284_v55, 0.0 }
 0x653   :  { %v2309_v62 = vmul.f32 %v10370_v61, %v2308_v50  ;;  %9871 = vmatmul.msk.f32.vlgmr.msrb.gmra.mxu3 %vm1447_vm6, %v2305_v41 }
 0x655   :  { %2196 = vadd.xlane.f32.xlu2 %v2195_v35  ;;  %v2310_v59 = vadd.f32 %v10370_v61, %v2309_v62 }
 0x657   :  { %v2167_v21 = vpop.xlane.xlu0 %2166  ;;  %v2314_v37 = vsel %vm2313_vm7, %v10370_v61, %v2310_v59  ;;  %v2347_v59 = vand.u32 2147483648, %v11274_v49 }
 0x658   :  { %10375 = vrcp.f32 %v2167_v21  ;;  %v2319_v38 = vsel %vm2316_vm9, %v2318_v30, %v2314_v37  ;;  %v2332_v18 = vand.u32 2147483648, %v2167_v21  ;;  %v2330_v45 = vand.u32 2147483647, %v2167_v21 }
 0x659   :  { %10377 = vpow2.f32 %v2138_v57  ;;  %v2320_v48 = vmul.f32 %v11176_v56, %v2319_v38  ;;  %vm2326_vm11 = vweird.f32 %v2167_v21  ;;  %v374_v56 = vadd.f32 %v10972_v20, %v10888_v47  ;;  %v2173_v5 = vpop.xlane.xlu2 %2172 }
 0x65a   :  { %v2333_v28 = vor.u32 1.1754944e-38, %v2332_v18  ;;  %vm2331_vm13 = vcmp.eq.f32.partialorder %v2330_v45, 8.507059e+37  ;;  %10379 = vrcp.f32 %v11274_v49  ;;  %v2348_v30 = vor.u32 1.1754944e-38, %v2347_v59 }
 0x65b   :  { %9873 = vmatmul.msk.f32.vlgmr.msra.gmra.mxu0 %vm1447_vm6, %v2320_v48  ;;  %10381 = vrcp.f32 %v2173_v5  ;;  %vm2356_vm4 = vweird.f32 %v2173_v5 }
 0x65c   :  { %10383 = vrcp.f32 %v11250_v53 }
 0x65d   :  { %2205 = vadd.xlane.f32.xlu2 %v2204_v2  ;;  %10385 = vrcp.f32 %v11254_v31 }
 0x65e   :  { %v10376_v52 = vpop.eup %10375 }
 0x65f   :  { %v2322_v58 = vmul.f32 %v10376_v52, %v2167_v21  ;;  %v11288_v25 = vpop.eup %10377  ;;  %vm2327_vm10 = vweird.f32 %v10376_v52  ;;  %v2345_v21 = vand.u32 2147483647, %v11274_v49 }
 0x660   :  { %v2207_v16 = vsel %vm1447_vm6, %v11288_v25, 0.0  ;;  %vm2328_vm12 = vmor %vm2326_vm11, %vm2327_vm10  ;;  %v11301_v1 = vpop.xlane.xlu0 %2199  ;;  %v10380_v54 = vpop.eup %10379  ;;  %vm2371_vm10 = vweird.f32 %v11250_v53 }
 0x661   :  { %v2323_v26 = vsub.f32 1.0, %v2322_v58  ;;  %v2337_v44 = vmul.f32 %v10380_v54, %v11274_v49  ;;  %v10382_v17 = vpop.eup %10381  ;;  %vm2342_vm14 = vweird.f32 %v10380_v54  ;;  %vm2346_vm2 = vcmp.eq.f32.partialorder %v2345_v21, 8.507059e+37  ;;  %v11316_v58 = vpop.xlane.xlu1 %2181 }
 0x662   :  { %v2352_v47 = vmul.f32 %v10382_v17, %v2173_v5  ;;  %v10384_v57 = vpop.eup %10383  ;;  %vm2343_vm1 = vmor %vm2341_vm15, %vm2342_vm14  ;;  %vm2357_vm3 = vweird.f32 %v10382_v17  ;;  %v2362_v49 = vand.u32 2147483648, %v2173_v5  ;;  %10387 = vrcp.f32 %v11316_v58 }
 0x663   :  { %v2324_v19 = vmul.f32 %v10376_v52, %v2323_v26  ;;  %v2367_v39 = vmul.f32 %v10384_v57, %v11250_v53  ;;  %v11318_v18 = vpop.eup %10385  ;;  %vm2358_vm5 = vmor %vm2356_vm4, %vm2357_vm3  ;;  %vm2372_vm9 = vweird.f32 %v10384_v57  ;;  %vm2386_vm14 = vweird.f32 %v11254_v31 }
 0x664   :  { %v2353_v41 = vsub.f32 1.0, %v2352_v47  ;;  %vm2373_vm11 = vmor %vm2371_vm10, %vm2372_vm9  ;;  %vm2401_vm3 = vweird.f32 %v11316_v58 }
 0x665   :  { %v2325_v7 = vadd.f32 %v10376_v52, %v2324_v19  ;;  %2208 = vadd.xlane.f32.xlu2 %v2207_v16  ;;  %v2368_v38 = vsub.f32 1.0, %v2367_v39  ;;  %v2360_v19 = vand.u32 2147483647, %v2173_v5 }
 0x666   :  { %v2354_v37 = vmul.f32 %v10382_v17, %v2353_v41  ;;  %v2392_v41 = vand.u32 2147483648, %v11254_v31 }
 0x667   :  { %v2329_v36 = vsel %vm2328_vm12, %v10376_v52, %v2325_v7  ;;  %v2382_v7 = vmul.f32 %v11318_v18, %v11254_v31  ;;  %vm2361_vm7 = vcmp.eq.f32.partialorder %v2360_v19, 8.507059e+37 }
 0x668   :  { %v2334_v22 = vsel %vm2331_vm13, %v2333_v28, %v2329_v36  ;;  %v11304_v50 = vpop.xlane.xlu0 %2202  ;;  %v2355_v26 = vadd.f32 %v10382_v17, %v2354_v37  ;;  %v2369_v28 = vmul.f32 %v10384_v57, %v2368_v38  ;;  %v10388_v5 = vpop.eup %10387  ;;  %vm2387_vm13 = vweird.f32 %v11318_v18 }
 0x669   :  { %v2335_v61 = vmul.f32 %v11195_v34, %v2334_v22  ;;  %v2338_v34 = vsub.f32 1.0, %v2337_v44  ;;  %v2363_v22 = vor.u32 1.1754944e-38, %v2362_v49  ;;  %v2383_v60 = vsub.f32 1.0, %v2382_v7  ;;  %vm2388_vm15 = vmor %vm2386_vm14, %vm2387_vm13 }
 0x66a   :  { %v2359_v36 = vsel %vm2358_vm5, %v10382_v17, %v2355_v26  ;;  %v2370_v63 = vadd.f32 %v10384_v57, %v2369_v28  ;;  %v2375_v44 = vand.u32 2147483647, %v11250_v53  ;;  %v2393_v37 = vor.u32 1.1754944e-38, %v2392_v41 }
 0x66b   :  { %9875 = vmatmul.msk.f32.vlgmr.msra.gmra.mxu1 %vm1447_vm6, %v2335_v61  ;;  %v2339_v62 = vmul.f32 %v10380_v54, %v2338_v34  ;;  %vm2431_vm13 = vweird.f32 %v11264_v13 }
 0x66c   :  { %v2374_v47 = vsel %vm2373_vm11, %v10384_v57, %v2370_v63  ;;  %vm2376_vm12 = vcmp.eq.f32.partialorder %v2375_v44, 8.507059e+37  ;;  %v2390_v57 = vand.u32 2147483647, %v11254_v31 }
 0x66d   :  { %v2340_v4 = vadd.f32 %v10380_v54, %v2339_v62  ;;  %v2384_v62 = vmul.f32 %v11318_v18, %v2383_v60 }
 0x66f   :  { %v2344_v23 = vsel %vm2343_vm1, %v10380_v54, %v2340_v4  ;;  %v2377_v54 = vand.u32 2147483648, %v11250_v53  ;;  %v2385_v8 = vadd.f32 %v11318_v18, %v2384_v62  ;;  %vm2391_vm1 = vcmp.eq.f32.partialorder %v2390_v57, 8.507059e+37 }
 0x670   :  { %v11307_v35 = vpop.xlane.xlu0 %2193  ;;  %v2349_v52 = vsel %vm2346_vm2, %v2348_v30, %v2344_v23  ;;  %vm2402_vm2 = vweird.f32 %v10388_v5 }
 0x671   :  { %v2350_v45 = vmul.f32 %v11185_v33, %v2349_v52  ;;  %v2378_v53 = vor.u32 1.1754944e-38, %v2377_v54  ;;  %v2389_v21 = vsel %vm2388_vm15, %v11318_v18, %v2385_v8  ;;  %v2405_v18 = vand.u32 2147483647, %v11316_v58  ;;  %vm2403_vm4 = vmor %vm2401_vm3, %vm2402_vm2 }
 0x672   :  { %v2394_v52 = vsel %vm2391_vm1, %v2393_v37, %v2389_v21  ;;  %vm2446_vm2 = vweird.f32 %v11298_v40 }
 0x673   :  { %v2379_v4 = vsel %vm2376_vm12, %v2378_v53, %v2374_v47  ;;  %v2395_v49 = vmul.f32 %v11148_v15, %v2394_v52  ;;  %vm2406_vm5 = vcmp.eq.f32.partialorder %v2405_v18, 8.507059e+37 }
 0x674   :  { %v2380_v59 = vmul.f32 %v11155_v29, %v2379_v4 }
 0x68e   :  { %1415 = vxpose.xlu2.b32.start.end [1/1] (short) (narrow) %v374_v56, 64  ;;  %v2364_v56 = vsel %vm2361_vm7, %v2363_v22, %v2359_v36 }
 0x68f   :  { %v2365_v34 = vmul.f32 %v11201_v43, %v2364_v56 }
 0x6ae   :  { %v11314_v2 = vpop.f32.mrf.mxu2 }
 0x6b6   :  { %v2625_v16 = vpop.f32.mrf.mxu3 }
 0x6b8   :  { %v2651_v17 = vpop.f32.mrf.mxu0 }
 0x6c0   :  { %v2677_v20 = vpop.f32.mrf.mxu1 }
 0x6c1   :  { %3296 = vxpose.xlu1.b32.start.end [1/1] (short) (narrow) %v2677_v20, 8  ;;  %v2397_v20 = vmul.f32 %v10388_v5, %v11316_v58 }
 0x6c3   :  { %v2398_v9 = vsub.f32 1.0, %v2397_v20 }
 0x6c5   :  { %v2399_v39 = vmul.f32 %v10388_v5, %v2398_v9 }
 0x6c7   :  { %v2400_v38 = vadd.f32 %v10388_v5, %v2399_v39 }
 0x6ca   :  { %v1399_v48 = vpop.trf.xlu0 }
 0x6cb   :  { %9876 = vmatpush.xpose.msk.msra.mxu2 %vm1447_vm6, %v1399_v48  ;;  %v2407_v48 = vand.u32 2147483648, %v11316_v58 }
 0x6cc   :  { %10154 = vrot.lane.b32.xlu0 %v10153_v3, %s10659_s17  ;;  %v11330_v3 = vpop.xlane.xlu2 %2184 }
 0x6cd   :  { %10389 = vrcp.f32 %v11330_v3  ;;  %v2408_v7 = vor.u32 1.1754944e-38, %v2407_v48  ;;  %v2422_v15 = vand.u32 2147483648, %v11330_v3  ;;  %vm2416_vm9 = vweird.f32 %v11330_v3 }
 0x6ce   :  { %9877 = vmatmul.msk.f32.vlgmr.msra.gmra.mxu2 %vm1447_vm6, %v2350_v45  ;;  %3232 = vxpose.xlu2.b32.start.end [1/1] (short) (narrow) %v2625_v16, 8  ;;  %10391 = vrcp.f32 %v11264_v13  ;;  %v2404_v45 = vsel %vm2403_vm4, %v10388_v5, %v2400_v38  ;;  %v2420_v60 = vand.u32 2147483647, %v11330_v3 }
 0x6cf   :  { %v2703_v61 = vpop.f32.mrf.mxu2  ;;  %10393 = vrcp.f32 %v11298_v40  ;;  %v2409_v36 = vsel %vm2406_vm5, %v2408_v7, %v2404_v45  ;;  %v2423_v44 = vor.u32 1.1754944e-38, %v2422_v15  ;;  %v2465_v7 = vand.u32 2147483647, %v11307_v35 }
 0x6d0   :  { %3328 = vxpose.xlu1.b32.start.end [1/1] (short) (narrow) %v2703_v61, 8  ;;  %v2410_v63 = vmul.f32 %v11197_v51, %v2409_v36  ;;  %vm2421_vm11 = vcmp.eq.f32.partialorder %v2420_v60, 8.507059e+37  ;;  %v2435_v51 = vand.u32 2147483647, %v11264_v13  ;;  %10395 = vrcp.f32 %v11307_v35 }
 0x6d2   :  { %v1400_v33 = vpop.trf.xlu0  ;;  %vm2436_vm15 = vcmp.eq.f32.partialorder %v2435_v51, 8.507059e+37 }
 0x6d3   :  { %9878 = vmatpush.xpose.msk.msra.mxu3 %vm1447_vm6, %v1400_v33  ;;  %v10390_v43 = vpop.eup %10389 }
 0x6d4   :  { %10164 = vrot.lane.b32.xlu0 %v10163_v10, %s10659_s17  ;;  %v2412_v23 = vmul.f32 %v10390_v43, %v11330_v3  ;;  %v10392_v29 = vpop.eup %10391  ;;  %vm2417_vm7 = vweird.f32 %v10390_v43  ;;  %v2437_v3 = vand.u32 2147483648, %v11264_v13 }
 0x6d5   :  { %v2427_v19 = vmul.f32 %v10392_v29, %v11264_v13  ;;  %v10394_v58 = vpop.eup %10393  ;;  %vm2418_vm10 = vmor %vm2416_vm9, %vm2417_vm7  ;;  %vm2432_vm12 = vweird.f32 %v10392_v29  ;;  %vm2461_vm7 = vweird.f32 %v11307_v35 }
 0x6d6   :  { %9879 = vmatmul.msk.f32.vlgmr.msra.gmra.mxu3 %vm1447_vm6, %v2365_v34  ;;  %3264 = vxpose.xlu2.b32.start.end [1/1] (short) (narrow) %v2651_v17, 8  ;;  %v2413_v31 = vsub.f32 1.0, %v2412_v23  ;;  %v2442_v5 = vmul.f32 %v10394_v58, %v11298_v40  ;;  %v11371_v34 = vpop.xlane.xlu2 %2211  ;;  %vm2433_vm14 = vmor %vm2431_vm13, %vm2432_vm12  ;;  %v2438_v9 = vor.u32 1.1754944e-38, %v2437_v3  ;;  %vm2447_vm1 = vweird.f32 %v10394_v58 }
 0x6d7   :  { %v2428_v22 = vsub.f32 1.0, %v2427_v19  ;;  %vm2448_vm3 = vmor %vm2446_vm2, %vm2447_vm1  ;;  %vm2491_vm1 = vweird.f32 %v11301_v1 }
 0x6d8   :  { %v2755_v30 = vpop.f32.mrf.mxu0  ;;  %v2414_v16 = vmul.f32 %v10390_v43, %v2413_v31  ;;  %v2443_v47 = vsub.f32 1.0, %v2442_v5 }
 0x6d9   :  { %v2429_v33 = vmul.f32 %v10392_v29, %v2428_v22 }
 0x6da   :  { %v1401_v10 = vpop.trf.xlu0  ;;  %v2415_v61 = vadd.f32 %v10390_v43, %v2414_v16  ;;  %v2444_v8 = vmul.f32 %v10394_v58, %v2443_v47  ;;  %v2467_v16 = vand.u32 2147483648, %v11307_v35 }
 0x6db   :  { %9880 = vmatpush.xpose.msk.msrb.mxu0 %vm1447_vm6, %v1401_v10  ;;  %v2430_v62 = vadd.f32 %v10392_v29, %v2429_v33 }
 0x6dc   :  { %v2419_v54 = vsel %vm2418_vm10, %v10390_v43, %v2415_v61  ;;  %v2445_v41 = vadd.f32 %v10394_v58, %v2444_v8  ;;  %v2468_v61 = vor.u32 1.1754944e-38, %v2467_v16  ;;  %vm2466_vm10 = vcmp.eq.f32.partialorder %v2465_v7, 8.507059e+37 }
 0x6dd   :  { %v2424_v17 = vsel %vm2421_vm11, %v2423_v44, %v2419_v54  ;;  %v2434_v4 = vsel %vm2433_vm14, %v10392_v29, %v2430_v62 }
 0x6de   :  { %9881 = vmatmul.msk.f32.vlgmr.msrb.gmra.mxu0 %vm1447_vm6, %v2380_v59  ;;  %3392 = vxpose.xlu2.b32.start.end [1/1] (short) (narrow) %v2755_v30, 8  ;;  %v2425_v53 = vmul.f32 %v11208_v27, %v2424_v17  ;;  %v2439_v10 = vsel %vm2436_vm15, %v2438_v9, %v2434_v4  ;;  %v11380_v43 = vpop.permute.xlu2 %10159  ;;  %v2452_v59 = vand.u32 2147483648, %v11298_v40  ;;  %v2450_v27 = vand.u32 2147483647, %v11298_v40  ;;  %v10396_v40 = vpop.eup %10395 }
 0x6df   :  { %v2440_v13 = vmul.f32 %v11172_v0, %v2439_v10  ;;  %v2449_v21 = vsel %vm2448_vm3, %v10394_v58, %v2445_v41  ;;  %v2457_v38 = vmul.f32 %v10396_v40, %v11307_v35  ;;  %vm2462_vm5 = vweird.f32 %v10396_v40 }
 0x6e0   :  { %v2453_v39 = vor.u32 1.1754944e-38, %v2452_v59  ;;  %vm2451_vm4 = vcmp.eq.f32.partialorder %v2450_v27, 8.507059e+37  ;;  %vm2463_vm9 = vmor %vm2461_vm7, %vm2462_vm5  ;;  %v2497_v4 = vand.u32 2147483648, %v11301_v1  ;;  %vm2506_vm5 = vweird.f32 %v11304_v50 }
 0x6e2   :  { %v1402_v26 = vpop.trf.xlu0  ;;  %v2454_v23 = vsel %vm2451_vm4, %v2453_v39, %v2449_v21 }
 0x6e3   :  { %9882 = vmatpush.xpose.msk.msrb.mxu1 %vm1447_vm6, %v1402_v26  ;;  %v2455_v52 = vmul.f32 %v11187_v42, %v2454_v23  ;;  %v2458_v26 = vsub.f32 1.0, %v2457_v38 }
 0x6e5   :  { %v2459_v48 = vmul.f32 %v10396_v40, %v2458_v26 }
 0x6e6   :  { %9883 = vmatmul.msk.f32.vlgmr.msrb.gmra.mxu1 %vm1447_vm6, %v2395_v49  ;;  %v11388_v37 = vpop.xlane.xlu2 %2214 }
 0x6e7   :  { %v2460_v49 = vadd.f32 %v10396_v40, %v2459_v48 }
 0x6e8   :  { %v2781_v28 = vpop.f32.mrf.mxu1 }
 0x6e9   :  { %3424 = vxpose.xlu1.b32.start.end [1/1] (short) (narrow) %v2781_v28, 8  ;;  %v2464_v36 = vsel %vm2463_vm9, %v10396_v40, %v2460_v49  ;;  %v10150_v49 = vpop.permute.xlu1 %10149 }
 0x6ea   :  { %v1403_v56 = vpop.trf.xlu0 }
 0x6eb   :  { %9884 = vmatpush.xpose.msk.msrb.mxu2 %vm1447_vm6, %v1403_v56  ;;  %v2469_v56 = vsel %vm2466_vm10, %v2468_v61, %v2464_v36 }
 0x6ec   :  { %v2470_v5 = vmul.f32 %v11221_v32, %v2469_v56  ;;  %v2495_v32 = vand.u32 2147483647, %v11301_v1 }
 0x6ee   :  { %9885 = vmatmul.msk.f32.vlgmr.msrb.gmra.mxu2 %vm1447_vm6, %v2410_v63  ;;  %v2197_v0 = vpop.xlane.xlu2 %2196  ;;  %vm2496_vm3 = vcmp.eq.f32.partialorder %v2495_v32, 8.507059e+37 }
 0x6ef   :  { %10397 = vrcp.f32 %v2197_v0  ;;  %v2482_v33 = vand.u32 2147483648, %v2197_v0  ;;  %vm2476_vm12 = vweird.f32 %v2197_v0  ;;  %v2480_v35 = vand.u32 2147483647, %v2197_v0 }
 0x6f0   :  { %10399 = vrcp.f32 %v11301_v1 }
 0x6f1   :  { %10401 = vrcp.f32 %v11304_v50  ;;  %v2483_v62 = vor.u32 1.1754944e-38, %v2482_v33  ;;  %vm2481_vm14 = vcmp.eq.f32.partialorder %v2480_v35, 8.507059e+37 }
 0x6f2   :  { %v1404_v20 = vpop.trf.xlu0 }
 0x6f3   :  { %9886 = vmatpush.xpose.msk.msrb.mxu3 %vm1447_vm6, %v1404_v20 }
 0x6f5   :  { %v10398_v29 = vpop.eup %10397 }
 0x6f6   :  { %3200 = vxpose.xlu0.b32.start.end [1/1] (short) (narrow) %v11314_v2, 8  ;;  %9887 = vmatmul.msk.f32.vlgmr.msrb.gmra.mxu3 %vm1447_vm6, %v2425_v53  ;;  %v2729_v2 = vpop.f32.mrf.mxu3  ;;  %v11395_v31 = vpop.xlane.xlu2 %2205  ;;  %v2472_v18 = vmul.f32 %v10398_v29, %v2197_v0  ;;  %vm2477_vm11 = vweird.f32 %v10398_v29 }
 0x6f7   :  { %v10400_v45 = vpop.eup %10399  ;;  %vm2478_vm13 = vmor %vm2476_vm12, %vm2477_vm11  ;;  %10403 = vrcp.f32 %v11395_v31  ;;  %vm2521_vm11 = vweird.f32 %v11395_v31 }
 0x6f8   :  { %v2473_v42 = vsub.f32 1.0, %v2472_v18  ;;  %v2487_v28 = vmul.f32 %v10400_v45, %v11301_v1  ;;  %v10402_v63 = vpop.eup %10401  ;;  %vm2492_vm15 = vweird.f32 %v10400_v45  ;;  %v2512_v1 = vand.u32 2147483648, %v11304_v50 }
 0x6f9   :  { %v2502_v44 = vmul.f32 %v10402_v63, %v11304_v50  ;;  %vm2493_vm2 = vmor %vm2491_vm1, %vm2492_vm15  ;;  %vm2507_vm4 = vweird.f32 %v10402_v63 }
 0x6fa   :  { %v1405_v57 = vpop.trf.xlu0  ;;  %v2474_v22 = vmul.f32 %v10398_v29, %v2473_v42  ;;  %v2488_v58 = vsub.f32 1.0, %v2487_v28  ;;  %vm2508_vm7 = vmor %vm2506_vm5, %vm2507_vm4  ;;  %v2513_v0 = vor.u32 1.1754944e-38, %v2512_v1  ;;  %v10151_v28 = vunpack.i.l.bf16 %v10150_v49 }
 0x6fb   :  { %9888 = vmatpush.xpose.msk.msra.mxu0 %vm1447_vm6, %v1405_v57  ;;  %v2503_v3 = vsub.f32 1.0, %v2502_v44  ;;  %v2498_v57 = vor.u32 1.1754944e-38, %v2497_v4  ;;  %vm2551_vm4 = vweird.f32 %v11371_v34  ;;  %v10162_v4 = vunpack.i.h.bf16 %v11380_v43 }
 0x6fc   :  { %v2475_v15 = vadd.f32 %v10398_v29, %v2474_v22  ;;  %v2489_v54 = vmul.f32 %v10400_v45, %v2488_v58 }
 0x6fd   :  { %v10404_v53 = vpop.eup %10403  ;;  %v2504_v10 = vmul.f32 %v10402_v63, %v2503_v3  ;;  %v10161_v3 = vunpack.i.l.bf16 %v11380_v43 }
 0x6fe   :  { %3360 = vxpose.xlu0.b32.start.end [1/1] (short) (narrow) %v2729_v2, 8  ;;  %9889 = vmatmul.msk.f32.vlgmr.msra.gmra.mxu0 %vm1447_vm6, %v2440_v13  ;;  %v11398_v19 = vpop.xlane.xlu2 %2208  ;;  %v2479_v17 = vsel %vm2478_vm13, %v10398_v29, %v2475_v15  ;;  %v2490_v20 = vadd.f32 %v10400_v45, %v2489_v54  ;;  %v2517_v41 = vmul.f32 %v10404_v53, %v11395_v31  ;;  %vm2522_vm10 = vweird.f32 %v10404_v53 }
 0x6ff   :  { %v2484_v47 = vsel %vm2481_vm14, %v2483_v62, %v2479_v17  ;;  %10405 = vrcp.f32 %v11398_v19  ;;  %v2505_v27 = vadd.f32 %v10402_v63, %v2504_v10  ;;  %vm2523_vm12 = vmor %vm2521_vm11, %vm2522_vm10  ;;  %v2542_v58 = vand.u32 2147483648, %v11398_v19 }
 0x700   :  { %v2485_v8 = vmul.f32 %v11276_v6, %v2484_v47  ;;  %v2494_v9 = vsel %vm2493_vm2, %v10400_v45, %v2490_v20  ;;  %v2518_v13 = vsub.f32 1.0, %v2517_v41  ;;  %v2510_v6 = vand.u32 2147483647, %v11304_v50 }
 0x701   :  { %v2499_v59 = vsel %vm2496_vm3, %v2498_v57, %v2494_v9  ;;  %10407 = vrcp.f32 %v11371_v34  ;;  %v2509_v23 = vsel %vm2508_vm7, %v10402_v63, %v2505_v27  ;;  %v2525_v50 = vand.u32 2147483647, %v11395_v31 }
 0x702   :  { %v1406_v30 = vpop.trf.xlu0  ;;  %v2500_v39 = vmul.f32 %v11210_v12, %v2499_v59  ;;  %vm2511_vm9 = vcmp.eq.f32.partialorder %v2510_v6, 8.507059e+37  ;;  %v2527_v12 = vand.u32 2147483648, %v11395_v31  ;;  %10409 = vrcp.f32 %v11388_v37 }
 0x703   :  { %9890 = vmatpush.xpose.msk.msra.mxu1 %vm1447_vm6, %v1406_v30  ;;  %v2519_v30 = vmul.f32 %v10404_v53, %v2518_v13  ;;  %v2514_v40 = vsel %vm2511_vm9, %v2513_v0, %v2509_v23  ;;  %vm2526_vm13 = vcmp.eq.f32.partialorder %v2525_v50, 8.507059e+37  ;;  %v10152_v15 = vunpack.i.h.bf16 %v10150_v49 }
 0x704   :  { %v2515_v18 = vmul.f32 %v11217_v24, %v2514_v40  ;;  %v2528_v7 = vor.u32 1.1754944e-38, %v2527_v12  ;;  %vm2536_vm15 = vweird.f32 %v11398_v19  ;;  %v2543_v44 = vor.u32 1.1754944e-38, %v2542_v58 }
 0x705   :  { %v10406_v21 = vpop.eup %10405  ;;  %v2520_v38 = vadd.f32 %v10404_v53, %v2519_v30  ;;  %v2557_v20 = vand.u32 2147483648, %v11371_v34  ;;  %vm2566_vm10 = vweird.f32 %v11388_v37 }
 0x706   :  { %9891 = vmatmul.msk.f32.vlgmr.msra.gmra.mxu1 %vm1447_vm6, %v2455_v52  ;;  %v2532_v52 = vmul.f32 %v10406_v21, %v11398_v19  ;;  %vm2537_vm14 = vweird.f32 %v10406_v21 }
 0x707   :  { %v11426_v48 = vpop.eup %10407  ;;  %v2524_v45 = vsel %vm2523_vm12, %v10404_v53, %v2520_v38  ;;  %vm2538_vm1 = vmor %vm2536_vm15, %vm2537_vm14  ;;  %v2558_v9 = vor.u32 1.1754944e-38, %v2557_v20 }
 0x708   :  { %v2533_v26 = vsub.f32 1.0, %v2532_v52  ;;  %v2547_v42 = vmul.f32 %v11426_v48, %v11371_v34  ;;  %v2529_v36 = vsel %vm2526_vm13, %v2528_v7, %v2524_v45  ;;  %v10410_v56 = vpop.eup %10409  ;;  %vm2552_vm3 = vweird.f32 %v11426_v48 }
 0x709   :  { %v2530_v63 = vmul.f32 %v11284_v55, %v2529_v36  ;;  %vm2553_vm5 = vmor %vm2551_vm4, %vm2552_vm3  ;;  %vm2567_vm9 = vweird.f32 %v10410_v56 }
 0x70a   :  { %v2534_v16 = vmul.f32 %v10406_v21, %v2533_v26  ;;  %v2548_v22 = vsub.f32 1.0, %v2547_v42  ;;  %vm2568_vm11 = vmor %vm2566_vm10, %vm2567_vm9 }
 0x70c   :  { %v2535_v61 = vadd.f32 %v10406_v21, %v2534_v16  ;;  %v2549_v35 = vmul.f32 %v11426_v48, %v2548_v22 }
 0x70e   :  { %v2539_v54 = vsel %vm2538_vm1, %v10406_v21, %v2535_v61 }
 0x727   :  { %v1431_v60 = vpop.trf.xlu2 }
 0x728   :  { %9892 = vmatpush.xpose.msk.msra.mxu2 %vm1447_vm6, %v1431_v60  ;;  %v2540_v60 = vand.u32 2147483647, %v11398_v19  ;;  %v2550_v19 = vadd.f32 %v11426_v48, %v2549_v35 }
 0x72a   :  { %vm2541_vm2 = vcmp.eq.f32.partialorder %v2540_v60, 8.507059e+37  ;;  %v2554_v32 = vsel %vm2553_vm5, %v11426_v48, %v2550_v19 }
 0x72b   :  { %9893 = vmatmul.msk.f32.vlgmr.msra.gmra.mxu2 %vm1447_vm6, %v2470_v5  ;;  %v2562_v5 = vmul.f32 %v10410_v56, %v11388_v37  ;;  %v2544_v62 = vsel %vm2541_vm2, %v2543_v44, %v2539_v54 }
 0x72c   :  { %v2545_v53 = vmul.f32 %v11288_v25, %v2544_v62  ;;  %v2570_v25 = vand.u32 2147483647, %v11388_v37 }
 0x72d   :  { %v2563_v55 = vsub.f32 1.0, %v2562_v5 }
 0x72e   :  { %vm2571_vm12 = vcmp.eq.f32.partialorder %v2570_v25, 8.507059e+37  ;;  %v10599_v25 = vld [vmem:[%s13579_s0 + $0x8] sm:$0xff] }
 0x72f   :  { %v1432_v51 = vpop.trf.xlu2 }
 0x730   :  { %9894 = vmatpush.xpose.msk.msra.mxu3 %vm1447_vm6, %v1432_v51  ;;  %v2555_v51 = vand.u32 2147483647, %v11371_v34  ;;  %v2572_v34 = vand.u32 2147483648, %v11388_v37 }
 0x732   :  { %vm2556_vm7 = vcmp.eq.f32.partialorder %v2555_v51, 8.507059e+37  ;;  %v2573_v13 = vor.u32 1.1754944e-38, %v2572_v34 }
 0x733   :  { %9895 = vmatmul.msk.f32.vlgmr.msra.gmra.mxu3 %vm1447_vm6, %v2485_v8  ;;  %v2564_v8 = vmul.f32 %v10410_v56, %v2563_v55  ;;  %v2559_v10 = vsel %vm2556_vm7, %v2558_v9, %v2554_v32 }
 0x734   :  { %v2560_v43 = vmul.f32 %v11230_v46, %v2559_v10 }
 0x735   :  { %v2565_v41 = vadd.f32 %v10410_v56, %v2564_v8 }
 0x737   :  { %v1433_v2 = vpop.trf.xlu2  ;;  %v2569_v59 = vsel %vm2568_vm11, %v10410_v56, %v2565_v41 }
 0x738   :  { %9896 = vmatpush.xpose.msk.msrb.mxu0 %vm1447_vm6, %v1433_v2  ;;  %v2574_v2 = vsel %vm2571_vm12, %v2573_v13, %v2569_v59  ;;  %v10600_v13 = vld [vmem:[%s13579_s0 + $0x10] sm:$0xff] }
 0x739   :  { %v2575_v1 = vmul.f32 %v11266_v11, %v2574_v2 }
 0x73b   :  { %9897 = vmatmul.msk.f32.vlgmr.msrb.gmra.mxu0 %vm1447_vm6, %v2500_v39 }
 0x73e   :  { %v10155_v24 = vpop.permute.xlu0 %10154 }
 0x73f   :  { %v1434_v29 = vpop.trf.xlu2  ;;  %v10156_v33 = vunpack.i.l.bf16 %v10155_v24  ;;  %v10157_v17 = vunpack.i.h.bf16 %v10155_v24 }
 0x740   :  { %9898 = vmatpush.xpose.msk.msrb.mxu1 %vm1447_vm6, %v1434_v29 }
 0x743   :  { %9899 = vmatmul.msk.f32.vlgmr.msrb.gmra.mxu1 %vm1447_vm6, %v2515_v18 }
 0x746   :  { %v10165_v46 = vpop.permute.xlu0 %10164 }
 0x747   :  { %v1435_v31 = vpop.trf.xlu2  ;;  %v10167_v37 = vunpack.i.h.bf16 %v10165_v46  ;;  %v10166_v23 = vunpack.i.l.bf16 %v10165_v46 }
 0x748   :  { %9900 = vmatpush.xpose.msk.msrb.mxu2 %vm1447_vm6, %v1435_v31 }
 0x74b   :  { %9901 = vmatmul.msk.f32.vlgmr.msrb.gmra.mxu2 %vm1447_vm6, %v2530_v63 }
 0x74c   :  { %4113 = vmatpush.msra.mxu2 %v10151_v28 }
 0x74e   :  { %4114 = vmatpush.msra.mxu2 %v10152_v15 }
 0x74f   :  { %v1436_v47 = vpop.trf.xlu2 }
 0x750   :  { %4115 = vmatpush.msra.mxu2 %v10156_v33  ;;  %9902 = vmatpush.xpose.msk.msrb.mxu3 %vm1447_vm6, %v1436_v47 }
 0x751   :  { %v2807_v6 = vpop.f32.mrf.mxu2 }
 0x752   :  { %4116 = vmatpush.msra.mxu2 %v10157_v17 }
 0x753   :  { %9903 = vmatmul.msk.f32.vlgmr.msrb.gmra.mxu3 %vm1447_vm6, %v2545_v53 }
 0x754   :  { %4117 = vmatpush.msra.mxu2 %v10161_v3  ;;  %v11470_v3 = vld [vmem:[%s13583_s4] sm:$0xff] }
 0x755   :  { %v4134_v51 = vperm.slane %v11470_v3, 5 }
 0x756   :  { %4118 = vmatpush.msra.mxu2 %v10162_v4  ;;  %v10598_v4 = vld [vmem:[%s13579_s0] sm:$0xff]  ;;  %s10664_s0 = smov 112  }
 0x757   :  { %v1437_v57 = vpop.trf.xlu2 }
 0x758   :  { %9904 = vmatpush.xpose.msk.msra.mxu0 %vm1447_vm6, %v1437_v57  ;;  %4119 = vmatpush.msra.mxu2 %v10166_v23 }
 0x759   :  { %v2833_v30 = vpop.f32.mrf.mxu3 }
 0x75a   :  { %4120 = vmatpush.msra.mxu2 %v10167_v37 }
 0x75b   :  { %v2859_v27 = vpop.f32.mrf.mxu0  ;;  %9905 = vmatmul.msk.f32.vlgmr.msra.gmra.mxu0 %vm1447_vm6, %v2560_v43 }
 0x75c   :  { %3520 = vxpose.xlu1.b32.start.end [1/1] (short) (narrow) %v2859_v27, 8 }
 0x75f   :  { %v1438_v21 = vpop.trf.xlu2 }
 0x760   :  { %9906 = vmatpush.xpose.msk.msra.mxu1 %vm1447_vm6, %v1438_v21 }
 0x763   :  { %v2885_v39 = vpop.f32.mrf.mxu1  ;;  %9907 = vmatmul.msk.f32.vlgmr.msra.gmra.mxu1 %vm1447_vm6, %v2575_v1 }
 0x764   :  { %3552 = vxpose.xlu0.b32.start.end [1/1] (short) (narrow) %v2885_v39, 8  ;;  %3456 = vxpose.xlu1.b32.start.end [1/1] (short) (narrow) %v2807_v6, 8 }
 0x765   :  { %v3312_v12 = vpop.trf.xlu1 }
 0x767   :  { %v3248_v26 = vpop.trf.xlu2 }
 0x76f   :  { %v3280_v29 = vpop.trf.xlu2 }
 0x771   :  { %v2911_v11 = vpop.f32.mrf.mxu2 }
 0x774   :  { %v3344_v49 = vpop.trf.xlu1 }
 0x777   :  { %v3408_v16 = vpop.trf.xlu2 }
 0x779   :  { %v2937_v52 = vpop.f32.mrf.mxu3 }
 0x77a   :  { %3616 = vxpose.xlu0.b32.start.end [1/1] (short) (narrow) %v2937_v52, 8 }
 0x77b   :  { %v2963_v0 = vpop.f32.mrf.mxu0 }
 0x77c   :  { %3648 = vxpose.xlu1.b32.start.end [1/1] (short) (narrow) %v2963_v0, 8 }
 0x783   :  { %v2989_v40 = vpop.f32.mrf.mxu1 }
 0x784   :  { %3680 = vxpose.xlu2.b32.start.end [1/1] (short) (narrow) %v2989_v40, 8  ;;  %3488 = vxpose.xlu1.b32.start.end [1/1] (short) (narrow) %v2833_v30, 8 }
 0x78c   :  { %3584 = vxpose.xlu1.b32.start.end [1/1] (short) (narrow) %v2911_v11, 8 }
 0x78d   :  { %v3440_v28 = vpop.trf.xlu1 }
 0x79a   :  { %v3216_v38 = vpop.trf.xlu0 }
 0x79b   :  { %3968 = vxpose.xlu1.b32.start [1/8] (short) (narrow) %v3216_v38, 8 }
 0x7a2   :  { %v3376_v45 = vpop.trf.xlu0 }
 0x7a3   :  { %3969 = vxpose.xlu1.b32.cont [2/8] (short) (narrow) %v3248_v26, 8 }
 0x7ab   :  { %3970 = vxpose.xlu1.b32.cont [3/8] (short) (narrow) %v3280_v29, 8 }
 0x7ae   :  { %v3015_v48 = vpop.f32.mrf.mxu2 }
 0x7af   :  { %3712 = vxpose.xlu0.b32.start.end [1/1] (short) (narrow) %v3015_v48, 8 }
 0x7b3   :  { %3971 = vxpose.xlu1.b32.cont [4/8] (short) (narrow) %v3312_v12, 8 }
 0x7b6   :  { %v3041_v50 = vpop.f32.mrf.mxu3 }
 0x7b7   :  { %3744 = vxpose.xlu0.b32.start.end [1/1] (short) (narrow) %v3041_v50, 8 }
 0x7b8   :  { %v3067_v18 = vpop.f32.mrf.mxu0 }
 0x7b9   :  { %3776 = vxpose.xlu2.b32.start.end [1/1] (short) (narrow) %v3067_v18, 8 }
 0x7bb   :  { %3972 = vxpose.xlu1.b32.cont [5/8] (short) (narrow) %v3344_v49, 8 }
 0x7c0   :  { %v3093_v42 = vpop.f32.mrf.mxu1 }
 0x7c1   :  { %3808 = vxpose.xlu0.b32.start.end [1/1] (short) (narrow) %v3093_v42, 8 }
 0x7c3   :  { %3973 = vxpose.xlu1.b32.cont [6/8] (short) (narrow) %v3376_v45, 8 }
 0x7cb   :  { %3974 = vxpose.xlu1.b32.cont [7/8] (short) (narrow) %v3408_v16, 8 }
 0x7ce   :  { %v3119_v7 = vpop.f32.mrf.mxu2 }
 0x7cf   :  { %3840 = vxpose.xlu2.b32.start.end [1/1] (short) (narrow) %v3119_v7, 8 }
 0x7d3   :  { %3975 = vxpose.xlu1.b32.end [8/8] (short) (narrow) %v3440_v28, 8 }
 0x7d6   :  { %v3145_v36 = vpop.f32.mrf.mxu3 }
 0x7d7   :  { %3872 = vxpose.xlu0.b32.start.end [1/1] (short) (narrow) %v3145_v36, 8 }
 0x7d8   :  { %v3171_v22 = vpop.f32.mrf.mxu0 }
 0x7df   :  { %3904 = vxpose.xlu0.b32.start.end [1/1] (short) (narrow) %v3171_v22, 8 }
 0x7e0   :  { %v3197_v61 = vpop.f32.mrf.mxu1 }
 0x7e7   :  { %3936 = vxpose.xlu0.b32.start.end [1/1] (short) (narrow) %v3197_v61, 8 }
 0x800   :  { %v3536_v31 = vpop.trf.xlu1 }
 0x808   :  { %v3472_v24 = vpop.trf.xlu1  ;;  %v3568_v60 = vpop.trf.xlu0 }
 0x809   :  { %4000 = vxpose.xlu2.b32.start [1/8] (short) (narrow) %v3472_v24, 8 }
 0x81d   :  { %v3696_v5 = vpop.trf.xlu2 }
 0x81e   :  { %v3632_v33 = vpop.trf.xlu0 }
 0x820   :  { %v3664_v56 = vpop.trf.xlu1 }
 0x828   :  { %v3504_v58 = vpop.trf.xlu1 }
 0x829   :  { %4001 = vxpose.xlu2.b32.cont [2/8] (short) (narrow) %v3504_v58, 8 }
 0x830   :  { %v3600_v15 = vpop.trf.xlu1 }
 0x831   :  { %4002 = vxpose.xlu2.b32.cont [3/8] (short) (narrow) %v3536_v31, 8 }
 0x839   :  { %4003 = vxpose.xlu2.b32.cont [4/8] (short) (narrow) %v3568_v60, 8 }
 0x83f   :  { %v3984_v63 = vpop.trf.xlu1 }
 0x840   :  { %9908 = vmatmul.msk.f32.vlgmr.msra.gmra.mxu2 %vm314_vm8, %v3984_v63 }
 0x841   :  { %4004 = vxpose.xlu2.b32.cont [5/8] (short) (narrow) %v3600_v15, 8 }
 0x849   :  { %4005 = vxpose.xlu2.b32.cont [6/8] (short) (narrow) %v3632_v33, 8 }
 0x851   :  { %4006 = vxpose.xlu2.b32.cont [7/8] (short) (narrow) %v3664_v56, 8 }
 0x852   :  { %v3792_v44 = vpop.trf.xlu2 }
 0x853   :  { %v3728_v35 = vpop.trf.xlu0 }
 0x854   :  { %4032 = vxpose.xlu0.b32.start [1/8] (short) (narrow) %v3728_v35, 8 }
 0x859   :  { %4007 = vxpose.xlu2.b32.end [8/8] (short) (narrow) %v3696_v5, 8 }
 0x85b   :  { %v3760_v54 = vpop.trf.xlu0 }
 0x85c   :  { %4033 = vxpose.xlu0.b32.cont [2/8] (short) (narrow) %v3760_v54, 8 }
 0x864   :  { %4034 = vxpose.xlu0.b32.cont [3/8] (short) (narrow) %v3792_v44, 8 }
 0x865   :  { %v3824_v17 = vpop.trf.xlu0 }
 0x868   :  { %v3856_v62 = vpop.trf.xlu2 }
 0x86c   :  { %4035 = vxpose.xlu0.b32.cont [4/8] (short) (narrow) %v3824_v17, 8 }
 0x874   :  { %4036 = vxpose.xlu0.b32.cont [5/8] (short) (narrow) %v3856_v62, 8 }
 0x87b   :  { %v3888_v19 = vpop.trf.xlu0 }
 0x87c   :  { %4037 = vxpose.xlu0.b32.cont [6/8] (short) (narrow) %v3888_v19, 8 }
 0x883   :  { %v3920_v55 = vpop.trf.xlu0 }
 0x884   :  { %4038 = vxpose.xlu0.b32.cont [7/8] (short) (narrow) %v3920_v55, 8 }
 0x88b   :  { %v3952_v47 = vpop.trf.xlu0 }
 0x88c   :  { %4039 = vxpose.xlu0.b32.end [8/8] (short) (narrow) %v3952_v47, 8 }
 0x8ba   :  { %v4016_v20 = vpop.trf.xlu2 }
 0x8bb   :  { %9909 = vmatmul.msk.f32.gmra.mxu2 %vm314_vm8, %v4016_v20 }
 0x8c3   :  { %v4122_v53 = vpop.f32.mrf.mxu2 }
 0x8c4   :  { %v4131_v32 = vadd.f32 %v10598_v4, %v4122_v53  ;;  %v103_v4 = vld [vmem:[%s13581_s2 + $0xf0] sm:$0xff] }
 0x8c5   :  { %4324 = vmatpush.msra.mxu3 %v103_v4 }
 0x8c6   :  { %v11476_v8 = vadd.f32 %v4134_v51, %v4131_v32  ;;  %v104_v32 = vld [vmem:[%s13581_s2 + $0xf8] sm:$0xff] }
 0x8c7   :  { %4350 = vmatpush.msrb.mxu0 %v104_v32  ;;  %v4301_v32 = vperm.slane %v11470_v3, 3 }
 0x8c8   :  { %4207 = vrot.lane.b32.xlu1 %v11476_v8, %s10657_s23  ;;  %v4138_v9 = vsel %vm137_vm0, %v11476_v8, 0.0 }
 0x8f2   :  { %4139 = vadd.xlane.f32.xlu1 %v4138_v9 }
 0x8f8   :  { %v4048_v10 = vpop.trf.xlu0 }
 0x8f9   :  { %9910 = vmatmul.msk.f32.gmra.mxu2 %vm314_vm8, %v4048_v10  ;;  %v99_v10 = vld [vmem:[%s13581_s2 + $0xd0] sm:$0xff] }
 0x8fa   :  { %4325 = vmatpush.msra.mxu3 %v99_v10 }
 0x93a   :  { %v4208_v41 = vpop.permute.xlu1 %4207 }
 0x93b   :  { %v4216_v57 = vsel %vm137_vm0, %v4208_v41, 0.0  ;;  %v100_v41 = vld [vmem:[%s13581_s2 + $0xd8] sm:$0xff] }
 0x93c   :  { %4217 = vadd.xlane.f32.xlu1 %v4216_v57  ;;  %v95_v57 = vld [vmem:[%s13581_s2 + $0xb0] sm:$0xff]  ;;  %4351 = vmatpush.msrb.mxu0 %v100_v41 }
 0x93d   :  { %4326 = vmatpush.msra.mxu3 %v95_v57 }
 0x93e   :  { %v4125_v34 = vpop.f32.mrf.mxu2 }
 0x93f   :  { %v4132_v43 = vadd.f32 %v10599_v25, %v4125_v34  ;;  %v96_v34 = vld [vmem:[%s13581_s2 + $0xb8] sm:$0xff]  ;;  %v91_v25 = vld [vmem:[%s13581_s2 + $0x90] sm:$0xff] }
 0x940   :  { %4352 = vmatpush.msrb.mxu0 %v96_v34  ;;  %4327 = vmatpush.msra.mxu3 %v91_v25 }
 0x941   :  { %v11487_v59 = vadd.f32 %v4134_v51, %v4132_v43  ;;  %v92_v43 = vld [vmem:[%s13581_s2 + $0x98] sm:$0xff] }
 0x942   :  { %4353 = vmatpush.msrb.mxu0 %v92_v43 }
 0x943   :  { %4209 = vrot.lane.b32.xlu2 %v11487_v59, %s10657_s23  ;;  %v4141_v23 = vsel %vm137_vm0, %v11487_v59, 0.0 }
 0x965   :  { %v4140_v39 = vpop.xlane.xlu1 %4139 }
 0x966   :  { %v4147_v46 = vmul.f32 %v4140_v39, %v10719_v14 }
 0x968   :  { %v11501_v37 = vsub.f32 %v11476_v8, %v4147_v46 }
 0x96a   :  { %v4153_v30 = vmul.f32 %v11501_v37, %v11501_v37 }
 0x96c   :  { %v4156_v52 = vsel %vm137_vm0, %v4153_v30, 0.0  ;;  %v79_v30 = vld [vmem:[%s13581_s2 + $0x30] sm:$0xff] }
 0x97c   :  { %v4128_v27 = vpop.f32.mrf.mxu2 }
 0x97d   :  { %v4133_v2 = vadd.f32 %v10600_v13, %v4128_v27  ;;  %v87_v13 = vld [vmem:[%s13581_s2 + $0x70] sm:$0xff] }
 0x97e   :  { %4328 = vmatpush.msra.mxu3 %v87_v13 }
 0x97f   :  { %v11494_v21 = vadd.f32 %v4134_v51, %v4133_v2  ;;  %v88_v2 = vld [vmem:[%s13581_s2 + $0x78] sm:$0xff] }
 0x980   :  { %4354 = vmatpush.msrb.mxu0 %v88_v2 }
 0x981   :  { %4211 = vrot.lane.b32.xlu0 %v11494_v21, %s10657_s23  ;;  %v4144_v28 = vsel %vm137_vm0, %v11494_v21, 0.0 }
 0x99d   :  { %v4210_v1 = vpop.permute.xlu2 %4209 }
 0x99e   :  { %v4219_v6 = vsel %vm137_vm0, %v4210_v1, 0.0  ;;  %v83_v1 = vld [vmem:[%s13581_s2 + $0x50] sm:$0xff] }
 0x99f   :  { %4220 = vadd.xlane.f32.xlu2 %v4219_v6  ;;  %v84_v6 = vld [vmem:[%s13581_s2 + $0x58] sm:$0xff]  ;;  %4329 = vmatpush.msra.mxu3 %v83_v1 }
 0x9a0   :  { %4355 = vmatpush.msrb.mxu0 %v84_v6 }
 0x9a1   :  { %4330 = vmatpush.msra.mxu3 %v79_v30 }
 0x9ab   :  { %4142 = vadd.xlane.f32.xlu0 %v4141_v23 }
 0x9af   :  { %v4218_v11 = vpop.xlane.xlu1 %4217 }
 0x9b0   :  { %v4225_v38 = vmul.f32 %v4218_v11, %v10719_v14 }
 0x9b2   :  { %v11511_v26 = vsub.f32 %v11476_v8, %v4225_v38 }
 0x9b3   :  { %4157 = vadd.xlane.f32.xlu0 %v4156_v52  ;;  %v80_v52 = vld [vmem:[%s13581_s2 + $0x38] sm:$0xff] }
 0x9b4   :  { %v4231_v29 = vmul.f32 %v11511_v26, %v11511_v26  ;;  %4356 = vmatpush.msrb.mxu0 %v80_v52 }
 0x9f3   :  { %v4212_v0 = vpop.permute.xlu0 %4211 }
 0x9f4   :  { %v4222_v40 = vsel %vm137_vm0, %v4212_v0, 0.0 }
 0x9f5   :  { %4223 = vadd.xlane.f32.xlu1 %v4222_v40 }
 0xa0e   :  { %4237 = vrot.lane.b32.xlu1 %v4231_v29, %s10657_s23 }
 0xa12   :  { %v4221_v48 = vpop.xlane.xlu2 %4220 }
 0xa13   :  { %v4226_v12 = vmul.f32 %v4221_v48, %v10719_v14 }
 0xa15   :  { %v11518_v50 = vsub.f32 %v11487_v59, %v4226_v12  ;;  %v75_v12 = vld [vmem:[%s13581_s2 + $0x10] sm:$0xff] }
 0xa16   :  { %4331 = vmatpush.msra.mxu3 %v75_v12 }
 0xa17   :  { %v4232_v18 = vmul.f32 %v11518_v50, %v11518_v50 }
 0xa19   :  { %4239 = vrot.lane.b32.xlu2 %v4232_v18, %s10657_s23  ;;  %v76_v18 = vld [vmem:[%s13581_s2 + $0x18] sm:$0xff] }
 0xa1a   :  { %4357 = vmatpush.msrb.mxu0 %v76_v18 }
 0xa1e   :  { %v4143_v49 = vpop.xlane.xlu0 %4142 }
 0xa1f   :  { %v4148_v42 = vmul.f32 %v4143_v49, %v10719_v14 }
 0xa21   :  { %v11525_v45 = vsub.f32 %v11487_v59, %v4148_v42 }
 0xa23   :  { %v4154_v16 = vmul.f32 %v11525_v45, %v11525_v45 }
 0xa25   :  { %v4159_v7 = vsel %vm137_vm0, %v4154_v16, 0.0 }
 0xa26   :  { %4160 = vadd.xlane.f32.xlu0 %v4159_v7  ;;  %v4158_v17 = vpop.xlane.xlu0 %4157 }
 0xa27   :  { %v4165_v19 = vmul.f32 %v4158_v17, %v10719_v14 }
 0xa29   :  { %v11551_v20 = vadd.f32 1e-05, %v4165_v19 }
 0xa2b   :  { %10411 = vrsqrt.f32 %v11551_v20  ;;  %vm4177_vm14 = vweird.f32 %v11551_v20 }
 0xa31   :  { %v10412_v27 = vpop.eup %10411 }
 0xa32   :  { %v4172_v46 = vmul.f32 %v10412_v27, %v11551_v20  ;;  %vm4178_vm13 = vweird.f32 %v10412_v27  ;;  %v4297_v20 = vperm.slane %v11470_v3, 2 }
 0xa33   :  { %vm4179_vm1 = vmor %vm4177_vm14, %vm4178_vm13 }
 0xa34   :  { %v4173_v38 = vmul.f32 %v10412_v27, %v4172_v46 }
 0xa36   :  { %v4174_v42 = vmul.f32 0.5, %v4173_v38 }
 0xa38   :  { %4145 = vadd.xlane.f32.xlu1 %v4144_v28 }
 0xa68   :  { %v4224_v36 = vpop.xlane.xlu1 %4223 }
 0xa69   :  { %v4227_v22 = vmul.f32 %v4224_v36, %v10719_v14  ;;  %v4175_v36 = vsub.f32 1.5, %v4174_v42  ;;  %v10660_v42 = vmov 1.4142135  }
 0xa6b   :  { %v11534_v61 = vsub.f32 %v11494_v21, %v4227_v22 }
 0xa6d   :  { %v4233_v31 = vmul.f32 %v11534_v61, %v11534_v61 }
 0xa6f   :  { %4241 = vrot.lane.b32.xlu2 %v4233_v31, %s10657_s23 }
 0xa73   :  { %v4240_v24 = vpop.permute.xlu2 %4239 }
 0xa74   :  { %v4249_v56 = vsel %vm137_vm0, %v4240_v24, 0.0 }
 0xa75   :  { %4250 = vadd.xlane.f32.xlu0 %v4249_v56 }
 0xa80   :  { %v4238_v58 = vpop.permute.xlu1 %4237 }
 0xa81   :  { %v4246_v15 = vsel %vm137_vm0, %v4238_v58, 0.0  ;;  %v4176_v58 = vmul.f32 %v10412_v27, %v4175_v36 }
 0xa98   :  { %4247 = vadd.xlane.f32.xlu2 %v4246_v15 }
 0xa99   :  { %v4161_v62 = vpop.xlane.xlu0 %4160 }
 0xa9a   :  { %v4166_v51 = vmul.f32 %v4161_v62, %v10719_v14 }
 0xa9c   :  { %v11563_v9 = vadd.f32 1e-05, %v4166_v51 }
 0xa9e   :  { %vm4187_vm10 = vweird.f32 %v11563_v9 }
 0xaab   :  { %v4146_v60 = vpop.xlane.xlu1 %4145 }
 0xaac   :  { %v4149_v63 = vmul.f32 %v4146_v60, %v10719_v14 }
 0xaae   :  { %v11543_v33 = vsub.f32 %v11494_v21, %v4149_v63 }
 0xab0   :  { %v4155_v35 = vmul.f32 %v11543_v33, %v11543_v33 }
 0xab2   :  { %v4162_v5 = vsel %vm137_vm0, %v4155_v35, 0.0 }
 0xab3   :  { %4163 = vadd.xlane.f32.xlu1 %v4162_v5  ;;  %v4180_v5 = vsel %vm4179_vm1, %v10412_v27, %v4176_v58  ;;  %v135_v58 = vld [vmem:[%s13582_s3 + $0xf0] sm:$0xff] }
 0xab4   :  { %v4201_v19 = vmul.f32 %v4180_v5, %v11501_v37  ;;  %v120_v5 = vld [vmem:[%s13582_s3 + $0x78] sm:$0xff] }
 0xab5   :  { %4639 = vmatpush.msrb.mxu1 %v120_v5 }
 0xac9   :  { %v4242_v54 = vpop.permute.xlu2 %4241 }
 0xaca   :  { %v4252_v44 = vsel %vm137_vm0, %v4242_v54, 0.0 }
 0xacb   :  { %4253 = vadd.xlane.f32.xlu0 %v4252_v44 }
 0xae8   :  { %v4251_v55 = vpop.xlane.xlu0 %4250 }
 0xae9   :  { %v4256_v47 = vmul.f32 %v4251_v55, %v10719_v14 }
 0xaeb   :  { %v11554_v53 = vadd.f32 1e-05, %v4256_v47 }
 0xaed   :  { %10413 = vrsqrt.f32 %v11554_v53  ;;  %vm4277_vm3 = vweird.f32 %v11554_v53 }
 0xaee   :  { %10415 = vrsqrt.f32 %v11563_v9 }
 0xaf3   :  { %v10414_v39 = vpop.eup %10413 }
 0xaf4   :  { %v10416_v0 = vpop.eup %10415  ;;  %v4272_v11 = vmul.f32 %v10414_v39, %v11554_v53  ;;  %vm4278_vm15 = vweird.f32 %v10414_v39 }
 0xaf5   :  { %v4182_v48 = vmul.f32 %v10416_v0, %v11563_v9  ;;  %vm4188_vm4 = vweird.f32 %v10416_v0  ;;  %vm4279_vm5 = vmor %vm4277_vm3, %vm4278_vm15 }
 0xaf6   :  { %v4273_v49 = vmul.f32 %v10414_v39, %v4272_v11  ;;  %vm4189_vm11 = vmor %vm4187_vm10, %vm4188_vm4 }
 0xaf7   :  { %v4183_v16 = vmul.f32 %v10416_v0, %v4182_v48 }
 0xaf8   :  { %v4274_v7 = vmul.f32 0.5, %v4273_v49 }
 0xaf9   :  { %v4184_v22 = vmul.f32 0.5, %v4183_v16 }
 0xafa   :  { %v4275_v24 = vsub.f32 1.5, %v4274_v7 }
 0xafb   :  { %v4185_v15 = vsub.f32 1.5, %v4184_v22 }
 0xafc   :  { %v4276_v63 = vmul.f32 %v10414_v39, %v4275_v24 }
 0xafd   :  { %v4186_v54 = vmul.f32 %v10416_v0, %v4185_v15 }
 0xafe   :  { %v4280_v17 = vsel %vm4279_vm5, %v10414_v39, %v4276_v63 }
 0xaff   :  { %v4190_v47 = vsel %vm4189_vm11, %v10416_v0, %v4186_v54  ;;  %v4292_v51 = vmul.f32 %v4280_v17, %v11518_v50  ;;  %v133_v54 = vld [vmem:[%s13582_s3 + $0xe0] sm:$0xff] }
 0xb00   :  { %v4202_v10 = vmul.f32 %v4190_v47, %v11525_v45 }
 0xb02   :  { %v4295_v41 = vsel %vm137_vm0, %v4202_v10, %v4292_v51  ;;  %v131_v51 = vld [vmem:[%s13582_s3 + $0xd0] sm:$0xff] }
 0xb0b   :  { %v4248_v23 = vpop.xlane.xlu2 %4247 }
 0xb0c   :  { %v4255_v40 = vmul.f32 %v4248_v23, %v10719_v14 }
 0xb0e   :  { %v4258_v29 = vadd.f32 1e-05, %v4255_v40 }
 0xb10   :  { %10417 = vrsqrt.f32 %v4258_v29  ;;  %vm4267_vm7 = vweird.f32 %v4258_v29 }
 0xb16   :  { %v10418_v28 = vpop.eup %10417 }
 0xb17   :  { %v4262_v31 = vmul.f32 %v10418_v28, %v4258_v29  ;;  %vm4268_vm2 = vweird.f32 %v10418_v28 }
 0xb18   :  { %vm4269_vm9 = vmor %vm4267_vm7, %vm4268_vm2 }
 0xb19   :  { %v4263_v56 = vmul.f32 %v10418_v28, %v4262_v31  ;;  %v136_v31 = vld [vmem:[%s13582_s3 + $0xf8] sm:$0xff] }
 0xb1a   :  { %4665 = vmatpush.msrb.mxu2 %v136_v31 }
 0xb1b   :  { %v4264_v60 = vmul.f32 0.5, %v4263_v56 }
 0xb1c   :  { %4666 = vmatpush.msrb.mxu2 %v135_v58  ;;  %v125_v58 = vld [vmem:[%s13582_s3 + $0xa0] sm:$0xff] }
 0xb1d   :  { %v4265_v35 = vsub.f32 1.5, %v4264_v60  ;;  %v134_v60 = vld [vmem:[%s13582_s3 + $0xe8] sm:$0xff] }
 0xb1e   :  { %4667 = vmatpush.msrb.mxu2 %v134_v60 }
 0xb1f   :  { %v4266_v44 = vmul.f32 %v10418_v28, %v4265_v35  ;;  %v11659_v35 = vperm.slane %v11470_v3, 6  ;;  %v119_v3 = vld [vmem:[%s13582_s3 + $0x70] sm:$0xff] }
 0xb20   :  { %4668 = vmatpush.msrb.mxu2 %v133_v54  ;;  %4640 = vmatpush.msrb.mxu1 %v119_v3 }
 0xb21   :  { %v4270_v62 = vsel %vm4269_vm9, %v10418_v28, %v4266_v44 }
 0xb22   :  { %v4291_v55 = vmul.f32 %v4270_v62, %v11511_v26  ;;  %v4299_v26 = vmul.f32 %v4297_v20, %v4295_v41  ;;  %v132_v62 = vld [vmem:[%s13582_s3 + $0xd8] sm:$0xff]  ;;  %v130_v41 = vld [vmem:[%s13582_s3 + $0xc8] sm:$0xff] }
 0xb23   :  { %4669 = vmatpush.msrb.mxu2 %v132_v62  ;;  %v111_v62 = vld [vmem:[%s13582_s3 + $0x30] sm:$0xff] }
 0xb24   :  { %v4294_v53 = vsel %vm137_vm0, %v4201_v19, %v4291_v55  ;;  %v4303_v34 = vadd.f32 %v4301_v32, %v4299_v26 }
 0xb25   :  { %v4298_v4 = vmul.f32 %v4297_v20, %v4294_v53  ;;  %4670 = vmatpush.msrb.mxu2 %v131_v51 }
 0xb26   :  { %v4164_v37 = vpop.xlane.xlu1 %4163 }
 0xb27   :  { %v4302_v9 = vadd.f32 %v4301_v32, %v4298_v4  ;;  %v4167_v57 = vmul.f32 %v4164_v37, %v10719_v14  ;;  %4671 = vmatpush.msrb.mxu2 %v130_v41  ;;  %v110_v41 = vld [vmem:[%s13582_s3 + $0x28] sm:$0xff] }
 0xb29   :  { %9911 = vmatmul.msk.f32.vlgmr.msra.gmra.mxu3 %vm314_vm8, %v4302_v9  ;;  %9914 = vmatmul.msk.f32.vlgmr.msrb.gmra.mxu0 %vm314_vm8, %v4302_v9  ;;  %v4170_v50 = vadd.f32 1e-05, %v4167_v57  ;;  %v117_v9 = vld [vmem:[%s13582_s3 + $0x60] sm:$0xff] }
 0xb2b   :  { %10419 = vrsqrt.f32 %v4170_v50  ;;  %vm4197_vm13 = vweird.f32 %v4170_v50 }
 0xb31   :  { %9912 = vmatmul.msk.f32.gmra.mxu3 %vm314_vm8, %v4303_v34  ;;  %9915 = vmatmul.msk.f32.gmra.mxu0 %vm314_vm8, %v4303_v34  ;;  %v10420_v25 = vpop.eup %10419 }
 0xb32   :  { %v4192_v45 = vmul.f32 %v10420_v25, %v4170_v50  ;;  %vm4198_vm12 = vweird.f32 %v10420_v25  ;;  %v116_v50 = vld [vmem:[%s13582_s3 + $0x58] sm:$0xff] }
 0xb33   :  { %vm4199_vm15 = vmor %vm4197_vm13, %vm4198_vm12 }
 0xb34   :  { %v4193_v2 = vmul.f32 %v10420_v25, %v4192_v45 }
 0xb36   :  { %v4194_v1 = vmul.f32 0.5, %v4193_v2 }
 0xb38   :  { %v4195_v39 = vsub.f32 1.5, %v4194_v1  ;;  %v115_v1 = vld [vmem:[%s13582_s3 + $0x50] sm:$0xff] }
 0xb3a   :  { %v4196_v30 = vmul.f32 %v10420_v25, %v4195_v39 }
 0xb3c   :  { %v4200_v40 = vsel %vm4199_vm15, %v10420_v25, %v4196_v30  ;;  %v129_v25 = vld [vmem:[%s13582_s3 + $0xc0] sm:$0xff] }
 0xb3d   :  { %v4203_v29 = vmul.f32 %v4200_v40, %v11543_v33  ;;  %v10601_v33 = vld [vmem:[%s13583_s4 + $0x8] sm:$0xff]  ;;  %4672 = vmatpush.msrb.mxu2 %v129_v25 }
 0xb3e   :  { %v4254_v43 = vpop.xlane.xlu0 %4253  ;;  %v114_v40 = vld [vmem:[%s13582_s3 + $0x48] sm:$0xff] }
 0xb3f   :  { %v4257_v27 = vmul.f32 %v4254_v43, %v10719_v14 }
 0xb41   :  { %v4260_v13 = vadd.f32 1e-05, %v4257_v27 }
 0xb43   :  { %10421 = vrsqrt.f32 %v4260_v13  ;;  %vm4287_vm1 = vweird.f32 %v4260_v13 }
 0xb44   :  { %10423 = vrcp.f32 %v10660_v42  ;;  %v126_v42 = vld [vmem:[%s13582_s3 + $0xa8] sm:$0xff] }
 0xb49   :  { %v10422_v6 = vpop.eup %10421 }
 0xb4a   :  { %v4282_v46 = vmul.f32 %v10422_v6, %v4260_v13  ;;  %vm4288_vm14 = vweird.f32 %v10422_v6  ;;  %v10424_v16 = vpop.eup %10423 }
 0xb4b   :  { %vm4289_vm2 = vmor %vm4287_vm1, %vm4288_vm14  ;;  %v4375_v7 = vmul.f32 1.4142135, %v10424_v16  ;;  %vm4379_vm3 = vweird.f32 %v10424_v16 }
 0xb4c   :  { %v4283_v23 = vmul.f32 %v10422_v6, %v4282_v46 }
 0xb4d   :  { %v4376_v28 = vsub.f32 1.0, %v4375_v7 }
 0xb4e   :  { %v4284_v52 = vmul.f32 0.5, %v4283_v23 }
 0xb4f   :  { %v4377_v36 = vmul.f32 %v10424_v16, %v4376_v28 }
 0xb50   :  { %v4285_v0 = vsub.f32 1.5, %v4284_v52 }
 0xb51   :  { %v4378_v22 = vadd.f32 %v10424_v16, %v4377_v36 }
 0xb52   :  { %v4286_v11 = vmul.f32 %v10422_v6, %v4285_v0 }
 0xb53   :  { %v11643_v56 = vsel %vm4379_vm3, %v10424_v16, %v4378_v22 }
 0xb54   :  { %v4290_v38 = vsel %vm4289_vm2, %v10422_v6, %v4286_v11  ;;  %v128_v6 = vld [vmem:[%s13582_s3 + $0xb8] sm:$0xff]  ;;  %v127_v11 = vld [vmem:[%s13582_s3 + $0xb0] sm:$0xff] }
 0xb55   :  { %v4293_v48 = vmul.f32 %v4290_v38, %v11534_v61  ;;  %v11638_v61 = vperm.slane %v10601_v33, 6  ;;  %4673 = vmatpush.msrb.mxu2 %v128_v6 }
 0xb57   :  { %v4296_v12 = vsel %vm137_vm0, %v4203_v29, %v4293_v48  ;;  %4674 = vmatpush.msrb.mxu2 %v127_v11 }
 0xb58   :  { %v4300_v18 = vmul.f32 %v4297_v20, %v4296_v12  ;;  %v118_v20 = vld [vmem:[%s13582_s3 + $0x68] sm:$0xff] }
 0xb59   :  { %4641 = vmatpush.msrb.mxu1 %v118_v20  ;;  %4675 = vmatpush.msrb.mxu2 %v126_v42 }
 0xb5a   :  { %v4304_v49 = vadd.f32 %v4301_v32, %v4300_v18 }
 0xb5b   :  { %4642 = vmatpush.msrb.mxu1 %v117_v9  ;;  %4676 = vmatpush.msrb.mxu2 %v125_v58 }
 0xb5c   :  { %9913 = vmatmul.msk.f32.gmra.mxu3 %vm314_vm8, %v4304_v49  ;;  %9916 = vmatmul.msk.f32.gmra.mxu0 %vm314_vm8, %v4304_v49  ;;  %v113_v49 = vld [vmem:[%s13582_s3 + $0x40] sm:$0xff] }
 0xb5d   :  { %4643 = vmatpush.msrb.mxu1 %v116_v50 }
 0xb5f   :  { %4644 = vmatpush.msrb.mxu1 %v115_v1 }
 0xb61   :  { %4645 = vmatpush.msrb.mxu1 %v114_v40 }
 0xb63   :  { %4646 = vmatpush.msrb.mxu1 %v113_v49 }
 0xba6   :  { %v4359_v24 = vpop.f32.mrf.mxu0 }
 0xba7   :  { %v11649_v15 = vadd.f32 %v4359_v24, %v11638_v61  ;;  %v112_v24 = vld [vmem:[%s13582_s3 + $0x38] sm:$0xff] }
 0xba8   :  { %4647 = vmatpush.msrb.mxu1 %v112_v24  ;;  %v105_v24 = vld [vmem:[%s13582_s3] sm:$0xff] }
 0xba9   :  { %v11656_v63 = vmul.f32 %v11643_v56, %v11649_v15 }
 0xbaa   :  { %4648 = vmatpush.msrb.mxu1 %v111_v62 }
 0xbab   :  { %v4427_v44 = vmul.f32 %v11656_v63, %v11656_v63 }
 0xbac   :  { %v4333_v17 = vpop.f32.mrf.mxu3  ;;  %4649 = vmatpush.msrb.mxu1 %v110_v41 }
 0xbad   :  { %v11675_v19 = vmin.f32 %v4427_v44, 16.0  ;;  %v11678_v55 = vadd.f32 %v4333_v17, %v11659_v35 }
 0xbae   :  { %v4362_v47 = vpop.f32.mrf.mxu0 }
 0xbaf   :  { %v4429_v53 = vmul.f32 2.1237322e-06, %v11675_v19  ;;  %v4440_v4 = vmul.f32 3.8918573e-05, %v11675_v19  ;;  %v11690_v32 = vmul.f32 %v11643_v56, %v11678_v55  ;;  %v11693_v10 = vadd.f32 %v4362_v47, %v11638_v61  ;;  %v124_v47 = vld [vmem:[%s13582_s3 + $0x98] sm:$0xff] }
 0xbb0   :  { %4677 = vmatpush.msrb.mxu2 %v124_v47 }
 0xbb1   :  { %v4430_v37 = vadd.f32 0.00028619796, %v4429_v53  ;;  %v4441_v26 = vadd.f32 0.001143296, %v4440_v4  ;;  %v4387_v57 = vmul.f32 %v11690_v32, %v11690_v32  ;;  %v11705_v34 = vmul.f32 %v11643_v56, %v11693_v10 }
 0xbb3   :  { %v4431_v45 = vmul.f32 %v4430_v37, %v11675_v19  ;;  %v4442_v43 = vmul.f32 %v4441_v26, %v11675_v19  ;;  %v11715_v27 = vmin.f32 %v4387_v57, 16.0  ;;  %v4507_v13 = vmul.f32 %v11705_v34, %v11705_v34  ;;  %v123_v37 = vld [vmem:[%s13582_s3 + $0x90] sm:$0xff] }
 0xbb4   :  { %v4336_v2 = vpop.f32.mrf.mxu3  ;;  %4678 = vmatpush.msrb.mxu2 %v123_v37 }
 0xbb5   :  { %v4432_v39 = vadd.f32 0.0036580483, %v4431_v45  ;;  %v4443_v46 = vadd.f32 0.014752088, %v4442_v43  ;;  %v4389_v23 = vmul.f32 2.1237322e-06, %v11715_v27  ;;  %v11727_v30 = vadd.f32 %v4336_v2, %v11659_v35 }
 0xbb6   :  { %v4400_v52 = vmul.f32 3.8918573e-05, %v11715_v27  ;;  %v11730_v0 = vmin.f32 %v4507_v13, 16.0  ;;  %v109_v43 = vld [vmem:[%s13582_s3 + $0x20] sm:$0xff]  ;;  %v122_v13 = vld [vmem:[%s13582_s3 + $0x88] sm:$0xff] }
 0xbb7   :  { %v4444_v38 = vmul.f32 %v4443_v46, %v11675_v19  ;;  %v4390_v29 = vadd.f32 0.00028619796, %v4389_v23  ;;  %v11742_v18 = vmul.f32 %v11643_v56, %v11727_v30  ;;  %v4433_v16 = vmul.f32 %v4432_v39, %v11675_v19  ;;  %4650 = vmatpush.msrb.mxu1 %v109_v43  ;;  %4679 = vmatpush.msrb.mxu2 %v122_v13  ;;  %v108_v23 = vld [vmem:[%s13582_s3 + $0x18] sm:$0xff] }
 0xbb8   :  { %v4401_v48 = vadd.f32 0.001143296, %v4400_v52  ;;  %v4509_v12 = vmul.f32 2.1237322e-06, %v11730_v0  ;;  %v4520_v36 = vmul.f32 3.8918573e-05, %v11730_v0 }
 0xbb9   :  { %v4445_v7 = vadd.f32 0.112945676, %v4444_v38  ;;  %v4391_v28 = vmul.f32 %v4390_v29, %v11715_v27  ;;  %v4467_v31 = vmul.f32 %v11742_v18, %v11742_v18  ;;  %v4434_v20 = vadd.f32 0.05243302, %v4433_v16  ;;  %v121_v52 = vld [vmem:[%s13582_s3 + $0x80] sm:$0xff]  ;;  %4651 = vmatpush.msrb.mxu1 %v108_v23 }
 0xbba   :  { %v4402_v22 = vmul.f32 %v4401_v48, %v11715_v27  ;;  %v4510_v33 = vadd.f32 0.00028619796, %v4509_v12  ;;  %v4521_v54 = vadd.f32 0.001143296, %v4520_v36  ;;  %4680 = vmatpush.msrb.mxu2 %v121_v52  ;;  %v107_v48 = vld [vmem:[%s13582_s3 + $0x10] sm:$0xff] }
 0xbbb   :  { %v4446_v60 = vmul.f32 %v4445_v7, %v11675_v19  ;;  %v4392_v5 = vadd.f32 0.0036580483, %v4391_v28  ;;  %v11764_v3 = vmin.f32 %v4467_v31, 16.0  ;;  %v4435_v2 = vmul.f32 %v4434_v20, %v11675_v19  ;;  %4652 = vmatpush.msrb.mxu1 %v107_v48  ;;  %v106_v7 = vld [vmem:[%s13582_s3 + $0x8] sm:$0xff] }
 0xbbc   :  { %v4403_v44 = vadd.f32 0.014752088, %v4402_v22  ;;  %v4511_v17 = vmul.f32 %v4510_v33, %v11730_v0  ;;  %v4522_v4 = vmul.f32 %v4521_v54, %v11730_v0 }
 0xbbd   :  { %v4447_v51 = vadd.f32 0.4994258, %v4446_v60  ;;  %v4393_v53 = vmul.f32 %v4392_v5, %v11715_v27  ;;  %v4469_v45 = vmul.f32 2.1237322e-06, %v11764_v3  ;;  %v4480_v11 = vmul.f32 3.8918573e-05, %v11764_v3  ;;  %4653 = vmatpush.msrb.mxu1 %v106_v7 }
 0xbbe   :  { %v4404_v9 = vmul.f32 %v4403_v44, %v11715_v27  ;;  %v4512_v57 = vadd.f32 0.0036580483, %v4511_v17  ;;  %v4523_v50 = vadd.f32 0.014752088, %v4522_v4  ;;  %v4436_v12 = vadd.f32 0.18741608, %v4435_v2 }
 0xbbf   :  { %v4448_v26 = vmul.f32 %v4447_v51, %v11675_v19  ;;  %v4394_v6 = vadd.f32 0.05243302, %v4393_v53  ;;  %v4470_v29 = vadd.f32 0.00028619796, %v4469_v45  ;;  %v4481_v22 = vadd.f32 0.001143296, %v4480_v11  ;;  %4654 = vmatpush.msrb.mxu1 %v105_v24 }
 0xbc0   :  { %v4405_v25 = vadd.f32 0.112945676, %v4404_v9  ;;  %v4524_v39 = vmul.f32 %v4523_v50, %v11730_v0  ;;  %v4513_v40 = vmul.f32 %v4512_v57, %v11730_v0  ;;  %v4437_v60 = vmul.f32 %v4436_v12, %v11675_v19 }
 0xbc1   :  { %v4449_v1 = vadd.f32 1.0, %v4448_v26  ;;  %v4395_v49 = vmul.f32 %v4394_v6, %v11715_v27  ;;  %v4471_v31 = vmul.f32 %v4470_v29, %v11764_v3  ;;  %v4482_v44 = vmul.f32 %v4481_v22, %v11764_v3 }
 0xbc2   :  { %v4406_v46 = vmul.f32 %v4405_v25, %v11715_v27  ;;  %v4525_v42 = vadd.f32 0.112945676, %v4524_v39  ;;  %v4514_v28 = vadd.f32 0.05243302, %v4513_v40  ;;  %v4438_v4 = vadd.f32 1.1283791, %v4437_v60 }
 0xbc3   :  { %10425 = vrcp.f32 %v4449_v1  ;;  %v4396_v5 = vadd.f32 0.18741608, %v4395_v49  ;;  %v4472_v20 = vadd.f32 0.0036580483, %v4471_v31  ;;  %v4483_v53 = vadd.f32 0.014752088, %v4482_v44 }
 0xbc4   :  { %v4407_v38 = vadd.f32 0.4994258, %v4406_v46  ;;  %v4526_v36 = vmul.f32 %v4525_v42, %v11730_v0  ;;  %v4515_v62 = vmul.f32 %v4514_v28, %v11730_v0  ;;  %v4459_v9 = vand.u32 2147483647, %v4449_v1 }
 0xbc5   :  { %v4461_v41 = vand.u32 2147483648, %v4449_v1  ;;  %v4397_v19 = vmul.f32 %v4396_v5, %v11715_v27  ;;  %v4484_v57 = vmul.f32 %v4483_v53, %v11764_v3  ;;  %vm4455_vm5 = vweird.f32 %v4449_v1 }
 0xbc6   :  { %v4408_v16 = vmul.f32 %v4407_v38, %v11715_v27  ;;  %v4527_v54 = vadd.f32 0.4994258, %v4526_v36  ;;  %v4516_v50 = vadd.f32 0.18741608, %v4515_v62  ;;  %v4473_v43 = vmul.f32 %v4472_v20, %v11764_v3 }
 0xbc7   :  { %v4439_v13 = vmul.f32 %v4438_v4, %v11656_v63  ;;  %v4462_v2 = vor.u32 1.1754944e-38, %v4461_v41  ;;  %vm4460_vm9 = vcmp.eq.f32.partialorder %v4459_v9, 8.507059e+37  ;;  %v4398_v39 = vadd.f32 1.1283791, %v4397_v19 }
 0xbc8   :  { %v11809_v33 = vadd.f32 1.0, %v4408_v16  ;;  %v4528_v51 = vmul.f32 %v4527_v54, %v11730_v0  ;;  %v4485_v46 = vadd.f32 0.112945676, %v4484_v57  ;;  %v4517_v40 = vmul.f32 %v4516_v50, %v11730_v0 }
 0xbc9   :  { %v10426_v58 = vpop.eup %10425  ;;  %v4474_v38 = vadd.f32 0.05243302, %v4473_v43  ;;  %v4369_v49 = vmul.f32 0.5, %v11649_v15  ;;  %v4399_v16 = vmul.f32 %v4398_v39, %v11690_v32 }
 0xbca   :  { %v4451_v17 = vmul.f32 %v10426_v58, %v4449_v1  ;;  %10427 = vrcp.f32 %v11809_v33  ;;  %vm4456_vm4 = vweird.f32 %v10426_v58  ;;  %v11821_v26 = vadd.f32 1.0, %v4528_v51 }
 0xbcb   :  { %vm4457_vm7 = vmor %vm4455_vm5, %vm4456_vm4  ;;  %v4421_v1 = vand.u32 2147483648, %v11809_v33  ;;  %v4486_v29 = vmul.f32 %v4485_v46, %v11764_v3  ;;  %v4419_v63 = vand.u32 2147483647, %v11809_v33  ;;  %vm4415_vm11 = vweird.f32 %v11809_v33 }
 0xbcc   :  { %v4452_v47 = vsub.f32 1.0, %v4451_v17  ;;  %10429 = vrcp.f32 %v11821_v26  ;;  %v4518_v0 = vadd.f32 1.1283791, %v4517_v40  ;;  %v4475_v24 = vmul.f32 %v4474_v38, %v11764_v3 }
 0xbcd   :  { %v4487_v7 = vadd.f32 0.4994258, %v4486_v29  ;;  %v4422_v31 = vor.u32 1.1754944e-38, %v4421_v1  ;;  %vm4420_vm13 = vcmp.eq.f32.partialorder %v4419_v63, 8.507059e+37  ;;  %v4541_v32 = vand.u32 2147483648, %v11821_v26 }
 0xbce   :  { %v4453_v37 = vmul.f32 %v10426_v58, %v4452_v47  ;;  %v4539_v20 = vand.u32 2147483647, %v11821_v26  ;;  %v4476_v4 = vadd.f32 0.18741608, %v4475_v24  ;;  %vm4535_vm15 = vweird.f32 %v11821_v26 }
 0xbcf   :  { %v4542_v19 = vor.u32 1.1754944e-38, %v4541_v32  ;;  %v4519_v57 = vmul.f32 %v4518_v0, %v11705_v34 }
 0xbd0   :  { %v10428_v25 = vpop.eup %10427  ;;  %v4454_v45 = vadd.f32 %v10426_v58, %v4453_v37  ;;  %vm4540_vm2 = vcmp.eq.f32.partialorder %v4539_v20, 8.507059e+37 }
 0xbd1   :  { %v4411_v27 = vmul.f32 %v10428_v25, %v11809_v33  ;;  %vm4416_vm10 = vweird.f32 %v10428_v25 }
 0xbd2   :  { %v4458_v6 = vsel %vm4457_vm7, %v10426_v58, %v4454_v45  ;;  %v10430_v12 = vpop.eup %10429  ;;  %vm4417_vm12 = vmor %vm4415_vm11, %vm4416_vm10  ;;  %v4488_v58 = vmul.f32 %v4487_v7, %v11764_v3 }
 0xbd3   :  { %v4463_v23 = vsel %vm4460_vm9, %v4462_v2, %v4458_v6  ;;  %v4412_v52 = vsub.f32 1.0, %v4411_v27  ;;  %v4531_v36 = vmul.f32 %v10430_v12, %v11821_v26  ;;  %vm4536_vm14 = vweird.f32 %v10430_v12 }
 0xbd4   :  { %v4464_v11 = vmul.f32 %v4463_v23, %v4439_v13  ;;  %v11842_v17 = vadd.f32 1.0, %v4488_v58  ;;  %vm4537_vm1 = vmor %vm4535_vm15, %vm4536_vm14 }
 0xbd5   :  { %v4413_v48 = vmul.f32 %v10428_v25, %v4412_v52  ;;  %v4532_v5 = vsub.f32 1.0, %v4531_v36 }
 0xbd6   :  { %v9918_v42 = vclamps-f32 %v4464_v11, 1.0  ;;  %10431 = vrcp.f32 %v11842_v17  ;;  %v4501_v63 = vand.u32 2147483648, %v11842_v17  ;;  %vm4495_vm4 = vweird.f32 %v11842_v17 }
 0xbd7   :  { %v4414_v28 = vadd.f32 %v10428_v25, %v4413_v48  ;;  %v4533_v47 = vmul.f32 %v10430_v12, %v4532_v5 }
 0xbd8   :  { %v4628_v22 = vadd.f32 1.0, %v9918_v42 }
 0xbd9   :  { %v4418_v60 = vsel %vm4417_vm12, %v10428_v25, %v4414_v28  ;;  %v4365_v15 = vpop.f32.mrf.mxu0  ;;  %v4534_v9 = vadd.f32 %v10430_v12, %v4533_v47 }
 0xbda   :  { %v4634_v54 = vmul.f32 %v4628_v22, %v4369_v49  ;;  %v4423_v44 = vsel %vm4420_vm13, %v4422_v31, %v4418_v60  ;;  %v11840_v33 = vadd.f32 %v4365_v15, %v11638_v61  ;;  %v4368_v61 = vmul.f32 0.5, %v11678_v55 }
 0xbdb   :  { %v4424_v62 = vmul.f32 %v4423_v44, %v4399_v16  ;;  %v4538_v25 = vsel %vm4537_vm1, %v10430_v12, %v4534_v9  ;;  %v4477_v55 = vmul.f32 %v4476_v4, %v11764_v3  ;;  %v4371_v3 = vmul.f32 0.5, %v11693_v10 }
 0xbdc   :  { %v11847_v51 = vmul.f32 %v11643_v56, %v11840_v33  ;;  %4681 = vmatmul.f32.vlgmr.msrb.gmra.mxu2 %v4634_v54  ;;  %v4543_v13 = vsel %vm4540_vm2, %v4542_v19, %v4538_v25  ;;  %v10432_v27 = vpop.eup %10431  ;;  %v4499_v16 = vand.u32 2147483647, %v11842_v17  ;;  %v4502_v31 = vor.u32 1.1754944e-38, %v4501_v63 }
 0xbdd   :  { %v9917_v53 = vclamps-f32 %v4424_v62, 1.0  ;;  %v4544_v2 = vmul.f32 %v4543_v13, %v4519_v57  ;;  %v4491_v23 = vmul.f32 %v10432_v27, %v11842_v17  ;;  %v4478_v11 = vadd.f32 1.1283791, %v4477_v55 }
 0xbde   :  { %v4587_v41 = vmul.f32 %v11847_v51, %v11847_v51  ;;  %vm4496_vm3 = vweird.f32 %v10432_v27  ;;  %vm4500_vm7 = vcmp.eq.f32.partialorder %v4499_v16, 8.507059e+37 }
 0xbdf   :  { %v4627_v37 = vadd.f32 1.0, %v9917_v53  ;;  %v4339_v50 = vpop.f32.mrf.mxu3  ;;  %v9920_v46 = vclamps-f32 %v4544_v2, 1.0  ;;  %v4492_v38 = vsub.f32 1.0, %v4491_v23  ;;  %vm4497_vm5 = vmor %vm4495_vm4, %vm4496_vm3  ;;  %v4479_v58 = vmul.f32 %v4478_v11, %v11742_v18 }
 0xbe0   :  { %v11855_v45 = vmin.f32 %v4587_v41, 16.0  ;;  %v11858_v43 = vadd.f32 %v4339_v50, %v11659_v35  ;;  %v4370_v18 = vmul.f32 0.5, %v11727_v30 }
 0xbe1   :  { %v4633_v26 = vmul.f32 %v4627_v37, %v4368_v61  ;;  %v4630_v1 = vadd.f32 1.0, %v9920_v46  ;;  %v4493_v42 = vmul.f32 %v10432_v27, %v4492_v38 }
 0xbe2   :  { %v4589_v6 = vmul.f32 2.1237322e-06, %v11855_v45  ;;  %v11864_v39 = vmul.f32 %v11643_v56, %v11858_v43  ;;  %v4600_v34 = vmul.f32 3.8918573e-05, %v11855_v45 }
 0xbe3   :  { %4655 = vmatmul.f32.vlgmr.msrb.gmra.mxu1 %v4633_v26  ;;  %v4636_v49 = vmul.f32 %v4630_v1, %v4371_v3  ;;  %v4494_v0 = vadd.f32 %v10432_v27, %v4493_v42 }
 0xbe4   :  { %v4590_v35 = vadd.f32 0.00028619796, %v4589_v6  ;;  %v4547_v52 = vmul.f32 %v11864_v39, %v11864_v39  ;;  %v4601_v40 = vadd.f32 0.001143296, %v4600_v34 }
 0xbe5   :  { %4684 = vmatmul.f32.gmra.mxu2 %v4636_v49  ;;  %v4498_v60 = vsel %vm4497_vm5, %v10432_v27, %v4494_v0 }
 0xbe6   :  { %v4591_v29 = vmul.f32 %v4590_v35, %v11855_v45  ;;  %v11872_v48 = vmin.f32 %v4547_v52, 16.0  ;;  %v4602_v12 = vmul.f32 %v4601_v40, %v11855_v45  ;;  %v4503_v32 = vsel %vm4500_vm7, %v4502_v31, %v4498_v60 }
 0xbe7   :  { %v4504_v62 = vmul.f32 %v4503_v32, %v4479_v58 }
 0xbe8   :  { %v4549_v7 = vmul.f32 2.1237322e-06, %v11872_v48  ;;  %v4603_v28 = vadd.f32 0.014752088, %v4602_v12  ;;  %v4592_v10 = vadd.f32 0.0036580483, %v4591_v29 }
 0xbe9   :  { %v4560_v36 = vmul.f32 3.8918573e-05, %v11872_v48  ;;  %v9919_v20 = vclamps-f32 %v4504_v62, 1.0 }
 0xbea   :  { %v4550_v22 = vadd.f32 0.00028619796, %v4549_v7  ;;  %v4604_v24 = vmul.f32 %v4603_v28, %v11855_v45  ;;  %v4593_v44 = vmul.f32 %v4592_v10, %v11855_v45 }
 0xbeb   :  { %v4561_v15 = vadd.f32 0.001143296, %v4560_v36  ;;  %v4629_v41 = vadd.f32 1.0, %v9919_v20 }
 0xbec   :  { %v4551_v5 = vmul.f32 %v4550_v22, %v11872_v48  ;;  %v4605_v54 = vadd.f32 0.112945676, %v4604_v24  ;;  %v4594_v61 = vadd.f32 0.05243302, %v4593_v44 }
 0xbed   :  { %v4562_v17 = vmul.f32 %v4561_v15, %v11872_v48  ;;  %v4635_v57 = vmul.f32 %v4629_v41, %v4370_v18  ;;  %v10602_v18 = vld [vmem:[%s13583_s4] sm:$0xff] }
 0xbee   :  { %v4606_v47 = vmul.f32 %v4605_v54, %v11855_v45  ;;  %v4552_v4 = vadd.f32 0.0036580483, %v4551_v5  ;;  %v4595_v26 = vmul.f32 %v4594_v61, %v11855_v45 }
 0xbef   :  { %v4563_v53 = vadd.f32 0.014752088, %v4562_v17  ;;  %4658 = vmatmul.f32.gmra.mxu1 %v4635_v57 }
 0xbf0   :  { %v4607_v9 = vadd.f32 0.4994258, %v4606_v47  ;;  %v4553_v25 = vmul.f32 %v4552_v4, %v11872_v48  ;;  %v4596_v30 = vadd.f32 0.18741608, %v4595_v26  ;;  %v4372_v47 = vmul.f32 0.5, %v11858_v43 }
 0xbf1   :  { %v4564_v19 = vmul.f32 %v4563_v53, %v11872_v48 }
 0xbf2   :  { %v4608_v37 = vmul.f32 %v4607_v9, %v11855_v45  ;;  %v4554_v27 = vadd.f32 0.05243302, %v4553_v25  ;;  %v4597_v35 = vmul.f32 %v4596_v30, %v11855_v45 }
 0xbf3   :  { %v4565_v50 = vadd.f32 0.112945676, %v4564_v19 }
 0xbf4   :  { %v4609_v13 = vadd.f32 1.0, %v4608_v37  ;;  %v4555_v23 = vmul.f32 %v4554_v27, %v11872_v48  ;;  %v4598_v1 = vadd.f32 1.1283791, %v4597_v35 }
 0xbf5   :  { %v4566_v55 = vmul.f32 %v4565_v50, %v11872_v48 }
 0xbf6   :  { %10433 = vrcp.f32 %v4609_v13  ;;  %v4556_v3 = vadd.f32 0.18741608, %v4555_v23  ;;  %v4621_v11 = vand.u32 2147483648, %v4609_v13  ;;  %v4619_v29 = vand.u32 2147483647, %v4609_v13 }
 0xbf7   :  { %v4567_v2 = vadd.f32 0.4994258, %v4566_v55  ;;  %vm4615_vm10 = vweird.f32 %v4609_v13  ;;  %v4599_v7 = vmul.f32 %v4598_v1, %v11847_v51 }
 0xbf8   :  { %v4557_v49 = vmul.f32 %v4556_v3, %v11872_v48  ;;  %v4622_v42 = vor.u32 1.1754944e-38, %v4621_v11  ;;  %vm4620_vm12 = vcmp.eq.f32.partialorder %v4619_v29, 8.507059e+37 }
 0xbf9   :  { %v4568_v6 = vmul.f32 %v4567_v2, %v11872_v48  ;;  %v4373_v48 = vmul.f32 0.5, %v11840_v33 }
 0xbfa   :  { %v4558_v22 = vadd.f32 1.1283791, %v4557_v49 }
 0xbfb   :  { %v4569_v34 = vadd.f32 1.0, %v4568_v6 }
 0xbfc   :  { %v10434_v46 = vpop.eup %10433  ;;  %v4559_v51 = vmul.f32 %v4558_v22, %v11864_v39  ;;  %v4694_v39 = vperm.slane %v10602_v18, 7 }
 0xbfd   :  { %v4611_v52 = vmul.f32 %v10434_v46, %v4609_v13  ;;  %10435 = vrcp.f32 %v4569_v34  ;;  %vm4616_vm9 = vweird.f32 %v10434_v46  ;;  %v4581_v36 = vand.u32 2147483648, %v4569_v34 }
 0xbfe   :  { %vm4617_vm11 = vmor %vm4615_vm10, %vm4616_vm9  ;;  %v4579_v24 = vand.u32 2147483647, %v4569_v34  ;;  %vm4575_vm14 = vweird.f32 %v4569_v34 }
 0xbff   :  { %v4612_v40 = vsub.f32 1.0, %v4611_v52  ;;  %v4582_v5 = vor.u32 1.1754944e-38, %v4581_v36 }
 0xc00   :  { %vm4580_vm1 = vcmp.eq.f32.partialorder %v4579_v24, 8.507059e+37 }
 0xc01   :  { %v4613_v38 = vmul.f32 %v10434_v46, %v4612_v40 }
 0xc03   :  { %v10436_v63 = vpop.eup %10435  ;;  %v4614_v12 = vadd.f32 %v10434_v46, %v4613_v38 }
 0xc04   :  { %v4571_v16 = vmul.f32 %v10436_v63, %v4569_v34  ;;  %vm4576_vm13 = vweird.f32 %v10436_v63 }
 0xc05   :  { %v4618_v45 = vsel %vm4617_vm11, %v10434_v46, %v4614_v12  ;;  %vm4577_vm15 = vmor %vm4575_vm14, %vm4576_vm13 }
 0xc06   :  { %v4623_v28 = vsel %vm4620_vm12, %v4622_v42, %v4618_v45  ;;  %v4572_v10 = vsub.f32 1.0, %v4571_v16 }
 0xc07   :  { %v4624_v0 = vmul.f32 %v4623_v28, %v4599_v7 }
 0xc08   :  { %v4573_v31 = vmul.f32 %v10436_v63, %v4572_v10 }
 0xc09   :  { %v9922_v58 = vclamps-f32 %v4624_v0, 1.0 }
 0xc0a   :  { %v4574_v60 = vadd.f32 %v10436_v63, %v4573_v31 }
 0xc0b   :  { %v4632_v15 = vadd.f32 1.0, %v9922_v58 }
 0xc0c   :  { %v4578_v32 = vsel %vm4577_vm15, %v10436_v63, %v4574_v60 }
 0xc0d   :  { %v4638_v54 = vmul.f32 %v4632_v15, %v4373_v48  ;;  %v4583_v44 = vsel %vm4580_vm1, %v4582_v5, %v4578_v32 }
 0xc0e   :  { %v4584_v62 = vmul.f32 %v4583_v44, %v4559_v51 }
 0xc0f   :  { %4687 = vmatmul.f32.gmra.mxu2 %v4638_v54 }
 0xc10   :  { %v9921_v17 = vclamps-f32 %v4584_v62, 1.0 }
 0xc12   :  { %v4631_v20 = vadd.f32 1.0, %v9921_v17 }
 0xc14   :  { %v4637_v53 = vmul.f32 %v4631_v20, %v4372_v47 }
 0xc16   :  { %4661 = vmatmul.f32.gmra.mxu1 %v4637_v53 }
 0xc5f   :  { %v4682_v4 = vpop.f32.mrf.mxu2 }
 0xc60   :  { %v4656_v9 = vpop.f32.mrf.mxu1 }
 0xc61   :  { %v4683_v33 = vadd.f32 %v4682_v4, %v4656_v9 }
 0xc63   :  { %v4691_v61 = vadd.f32 %v4683_v33, %v11476_v8 }
 0xc65   :  { %v11904_v41 = vadd.f32 %v4694_v39, %v4691_v61  ;;  %v11987_v61 = vld [vmem:[%s13581_s2 + $0x1e8] sm:$0xff] }
 0xc66   :  { %4976 = vmatpush.msra.mxu0 %v11987_v61 }
 0xc67   :  { %4833 = vrot.lane.b32.xlu1 %v11904_v41, %s10657_s23  ;;  %v4764_v43 = vsel %vm137_vm0, %v11904_v41, 0.0 }
 0xc68   :  { %4765 = vadd.xlane.f32.xlu0 %v4764_v43  ;;  %v4685_v19 = vpop.f32.mrf.mxu2  ;;  %v9947_v43 = vld [vmem:[%s13581_s2 + $0x1c0] sm:$0xff] }
 0xc6c   :  { %v4659_v37 = vpop.f32.mrf.mxu1 }
 0xc6d   :  { %v4686_v57 = vadd.f32 %v4685_v19, %v4659_v37  ;;  %v11996_v19 = vld [vmem:[%s13581_s2 + $0x1c8] sm:$0xff] }
 0xc6e   :  { %v12001_v37 = vld [vmem:[%s13581_s2 + $0x1a8] sm:$0xff]  ;;  %4977 = vmatpush.msra.mxu0 %v11996_v19 }
 0xc6f   :  { %v4692_v50 = vadd.f32 %v4686_v57, %v11487_v59  ;;  %v9943_v57 = vld [vmem:[%s13581_s2 + $0x1a0] sm:$0xff] }
 0xc70   :  { %4978 = vmatpush.msra.mxu0 %v12001_v37 }
 0xc71   :  { %v11911_v25 = vadd.f32 %v4694_v39, %v4692_v50  ;;  %v10220_v50 = vpack.i.bf16 %v12001_v37, %v11996_v19 }
 0xc73   :  { %v4767_v27 = vsel %vm137_vm0, %v11911_v25, 0.0 }
 0xc7c   :  { %4835 = vrot.lane.b32.xlu0 %v11911_v25, %s10657_s23 }
 0xc92   :  { %v4688_v8 = vpop.f32.mrf.mxu2 }
 0xc93   :  { %v4662_v13 = vpop.f32.mrf.mxu1 }
 0xc94   :  { %v4689_v26 = vadd.f32 %v4688_v8, %v4662_v13  ;;  %v12012_v8 = vld [vmem:[%s13581_s2 + $0x188] sm:$0xff] }
 0xc95   :  { %v12017_v13 = vld [vmem:[%s13581_s2 + $0x168] sm:$0xff]  ;;  %4979 = vmatpush.msra.mxu0 %v12012_v8 }
 0xc96   :  { %v4693_v55 = vadd.f32 %v4689_v26, %v11494_v21  ;;  %v9939_v26 = vld [vmem:[%s13581_s2 + $0x180] sm:$0xff] }
 0xc97   :  { %4980 = vmatpush.msra.mxu0 %v12017_v13 }
 0xc98   :  { %v11916_v2 = vadd.f32 %v4694_v39, %v4693_v55  ;;  %v9951_v39 = vld [vmem:[%s13581_s2 + $0x1e0] sm:$0xff]  ;;  %v10225_v55 = vpack.i.bf16 %v12017_v13, %v12012_v8 }
 0xc99   :  { %4950 = vmatpush.msrb.mxu3 %v9951_v39 }
 0xc9a   :  { %4837 = vrot.lane.b32.xlu2 %v11916_v2, %s10657_s23  ;;  %v4770_v59 = vsel %vm137_vm0, %v11916_v2, 0.0 }
 0xc9b   :  { %4951 = vmatpush.msrb.mxu3 %v9947_v43  ;;  %v53_v43 = vld [vmem:[%s13583_s4 + $0x10] sm:$0xff] }
 0xc9d   :  { %4952 = vmatpush.msrb.mxu3 %v9943_v57 }
 0xc9f   :  { %4953 = vmatpush.msrb.mxu3 %v9939_v26 }
 0xca6   :  { %4768 = vadd.xlane.f32.xlu0 %v4767_v27  ;;  %v12028_v27 = vld [vmem:[%s13581_s2 + $0x148] sm:$0xff] }
 0xca7   :  { %4981 = vmatpush.msra.mxu0 %v12028_v27 }
 0xcae   :  { %4771 = vadd.xlane.f32.xlu0 %v4770_v59  ;;  %v12033_v59 = vld [vmem:[%s13581_s2 + $0x128] sm:$0xff] }
 0xcaf   :  { %4982 = vmatpush.msra.mxu0 %v12033_v59 }
 0xcd9   :  { %v4834_v30 = vpop.permute.xlu1 %4833 }
 0xcda   :  { %v4842_v6 = vsel %vm137_vm0, %v4834_v30, 0.0 }
 0xcdb   :  { %v4766_v34 = vpop.xlane.xlu0 %4765  ;;  %4843 = vadd.xlane.f32.xlu0 %v4842_v6  ;;  %v10230_v6 = vpack.i.bf16 %v12033_v59, %v12028_v27 }
 0xcdc   :  { %v4773_v21 = vmul.f32 %v4766_v34, %v10719_v14 }
 0xcde   :  { %v11927_v46 = vsub.f32 %v11904_v41, %v4773_v21  ;;  %v9935_v21 = vld [vmem:[%s13581_s2 + $0x160] sm:$0xff] }
 0xcdf   :  { %4954 = vmatpush.msrb.mxu3 %v9935_v21 }
 0xce0   :  { %v4779_v23 = vmul.f32 %v11927_v46, %v11927_v46 }
 0xce2   :  { %v4782_v35 = vsel %vm137_vm0, %v4779_v23, 0.0 }
 0xce3   :  { %4783 = vadd.xlane.f32.xlu1 %v4782_v35 }
 0xcee   :  { %v4836_v52 = vpop.permute.xlu0 %4835 }
 0xcef   :  { %v4845_v40 = vsel %vm137_vm0, %v4836_v52, 0.0  ;;  %v9931_v52 = vld [vmem:[%s13581_s2 + $0x140] sm:$0xff] }
 0xcf0   :  { %4846 = vadd.xlane.f32.xlu1 %v4845_v40  ;;  %4955 = vmatpush.msrb.mxu3 %v9931_v52 }
 0xcf4   :  { %v4838_v3 = vpop.permute.xlu2 %4837 }
 0xcf5   :  { %v4848_v11 = vsel %vm137_vm0, %v4838_v3, 0.0 }
 0xcf6   :  { %4849 = vadd.xlane.f32.xlu2 %v4848_v11 }
 0xd19   :  { %v4769_v1 = vpop.xlane.xlu0 %4768 }
 0xd1a   :  { %v4774_v38 = vmul.f32 %v4769_v1, %v10719_v14 }
 0xd1c   :  { %v11936_v29 = vsub.f32 %v11911_v25, %v4774_v38  ;;  %v9927_v38 = vld [vmem:[%s13581_s2 + $0x120] sm:$0xff] }
 0xd1d   :  { %4956 = vmatpush.msrb.mxu3 %v9927_v38 }
 0xd1e   :  { %v4780_v63 = vmul.f32 %v11936_v29, %v11936_v29 }
 0xd20   :  { %v4785_v12 = vsel %vm137_vm0, %v4780_v63, 0.0 }
 0xd21   :  { %v4772_v49 = vpop.xlane.xlu0 %4771  ;;  %4786 = vadd.xlane.f32.xlu0 %v4785_v12 }
 0xd22   :  { %v4775_v42 = vmul.f32 %v4772_v49, %v10719_v14 }
 0xd24   :  { %v11943_v16 = vsub.f32 %v11916_v2, %v4775_v42 }
 0xd26   :  { %v4781_v7 = vmul.f32 %v11943_v16, %v11943_v16 }
 0xd28   :  { %v4788_v45 = vsel %vm137_vm0, %v4781_v7, 0.0  ;;  %v9923_v7 = vld [vmem:[%s13581_s2 + $0x100] sm:$0xff] }
 0xd29   :  { %4789 = vadd.xlane.f32.xlu1 %v4788_v45  ;;  %v9924_v45 = vld [vmem:[%s13581_s2 + $0x108] sm:$0xff]  ;;  %4957 = vmatpush.msrb.mxu3 %v9923_v7 }
 0xd2a   :  { %4983 = vmatpush.msra.mxu0 %v9924_v45 }
 0xd4e   :  { %v4844_v28 = vpop.xlane.xlu0 %4843 }
 0xd4f   :  { %v4851_v10 = vmul.f32 %v4844_v28, %v10719_v14 }
 0xd51   :  { %v11950_v0 = vsub.f32 %v11904_v41, %v4851_v10 }
 0xd53   :  { %v4857_v36 = vmul.f32 %v11950_v0, %v11950_v0 }
 0xd55   :  { %4863 = vrot.lane.b32.xlu1 %v4857_v36, %s10657_s23 }
 0xd56   :  { %v4784_v22 = vpop.xlane.xlu1 %4783 }
 0xd57   :  { %v4791_v4 = vmul.f32 %v4784_v22, %v10719_v14 }
 0xd59   :  { %v11975_v9 = vadd.f32 1e-05, %v4791_v4 }
 0xd5b   :  { %10437 = vrsqrt.f32 %v11975_v9  ;;  %vm4803_vm3 = vweird.f32 %v11975_v9 }
 0xd61   :  { %v12035_v30 = vpop.eup %10437 }
 0xd62   :  { %v4798_v35 = vmul.f32 %v12035_v30, %v11975_v9  ;;  %vm4804_vm2 = vweird.f32 %v12035_v30 }
 0xd63   :  { %v4847_v31 = vpop.xlane.xlu1 %4846  ;;  %vm12074_vm5 = vmor %vm4803_vm3, %vm4804_vm2 }
 0xd64   :  { %v4852_v24 = vmul.f32 %v4847_v31, %v10719_v14  ;;  %v4799_v63 = vmul.f32 %v12035_v30, %v4798_v35  ;;  %v4923_v35 = vperm.slane %v53_v43, 0 }
 0xd66   :  { %v11957_v58 = vsub.f32 %v11911_v25, %v4852_v24  ;;  %v4800_v42 = vmul.f32 0.5, %v4799_v63 }
 0xd68   :  { %v4858_v60 = vmul.f32 %v11957_v58, %v11957_v58  ;;  %v4801_v24 = vsub.f32 1.5, %v4800_v42 }
 0xd69   :  { %v4850_v48 = vpop.xlane.xlu2 %4849 }
 0xd6a   :  { %v4853_v15 = vmul.f32 %v4850_v48, %v10719_v14  ;;  %4865 = vrot.lane.b32.xlu2 %v4858_v60, %s10657_s23 }
 0xd6c   :  { %v11964_v5 = vsub.f32 %v11916_v2, %v4853_v15 }
 0xd6e   :  { %v4859_v51 = vmul.f32 %v11964_v5, %v11964_v5 }
 0xd70   :  { %4867 = vrot.lane.b32.xlu0 %v4859_v51, %s10657_s23 }
 0xd94   :  { %v4787_v47 = vpop.xlane.xlu0 %4786 }
 0xd95   :  { %v4792_v33 = vmul.f32 %v4787_v47, %v10719_v14 }
 0xd97   :  { %v11979_v18 = vadd.f32 1e-05, %v4792_v33 }
 0xd99   :  { %10439 = vrsqrt.f32 %v11979_v18  ;;  %vm4813_vm14 = vweird.f32 %v11979_v18 }
 0xd9c   :  { %v11969_v32 = vpop.xlane.xlu1 %4789 }
 0xd9d   :  { %v4793_v22 = vmul.f32 %v11969_v32, %v10719_v14 }
 0xd9f   :  { %v12051_v11 = vpop.eup %10439 }
 0xda0   :  { %v4808_v49 = vmul.f32 %v12051_v11, %v11979_v18  ;;  %vm4814_vm10 = vweird.f32 %v12051_v11 }
 0xda1   :  { %vm4815_vm15 = vmor %vm4813_vm14, %vm4814_vm10 }
 0xda2   :  { %v4809_v10 = vmul.f32 %v12051_v11, %v4808_v49 }
 0xda4   :  { %v4810_v48 = vmul.f32 0.5, %v4809_v10 }
 0xda6   :  { %v4811_v47 = vsub.f32 1.5, %v4810_v48 }
 0xda8   :  { %v4812_v39 = vmul.f32 %v12051_v11, %v4811_v47 }
 0xdc4   :  { %v4866_v54 = vpop.permute.xlu2 %4865 }
 0xdc5   :  { %v4875_v44 = vsel %vm137_vm0, %v4866_v54, 0.0  ;;  %v4796_v54 = vadd.f32 1e-05, %v4793_v22 }
 0xdc6   :  { %4876 = vadd.xlane.f32.xlu1 %v4875_v44 }
 0xdc7   :  { %v4864_v62 = vpop.permute.xlu1 %4863  ;;  %vm4823_vm2 = vweird.f32 %v4796_v54 }
 0xdc8   :  { %v4872_v17 = vsel %vm137_vm0, %v4864_v62, 0.0  ;;  %v4802_v62 = vmul.f32 %v12035_v30, %v4801_v24 }
 0xdc9   :  { %4873 = vadd.xlane.f32.xlu2 %v4872_v17 }
 0xdca   :  { %v4806_v33 = vsel %vm12074_vm5, %v12035_v30, %v4802_v62 }
 0xde2   :  { %v4868_v20 = vpop.permute.xlu0 %4867 }
 0xde3   :  { %v4878_v53 = vsel %vm137_vm0, %v4868_v20, 0.0 }
 0xde4   :  { %4879 = vadd.xlane.f32.xlu2 %v4878_v53 }
 0xe39   :  { %v4877_v34 = vpop.xlane.xlu1 %4876 }
 0xe3a   :  { %v4882_v23 = vmul.f32 %v4877_v34, %v10719_v14  ;;  %v4827_v34 = vmul.f32 %v4806_v33, %v11927_v46 }
 0xe3c   :  { %v4885_v40 = vadd.f32 1e-05, %v4882_v23  ;;  %v4874_v3 = vpop.xlane.xlu2 %4873  ;;  %v4816_v23 = vsel %vm4815_vm15, %v12051_v11, %v4812_v39 }
 0xe3d   :  { %v4881_v1 = vmul.f32 %v4874_v3, %v10719_v14  ;;  %v4828_v38 = vmul.f32 %v4816_v23, %v11936_v29 }
 0xe3e   :  { %10441 = vrsqrt.f32 %v4885_v40  ;;  %vm4903_vm9 = vweird.f32 %v4885_v40 }
 0xe3f   :  { %v4884_v12 = vadd.f32 1e-05, %v4881_v1  ;;  %v4927_v1 = vperm.slane %v53_v43, 1 }
 0xe41   :  { %10443 = vrsqrt.f32 %v4884_v12  ;;  %vm4893_vm12 = vweird.f32 %v4884_v12 }
 0xe42   :  { %10445 = vrsqrt.f32 %v4796_v54 }
 0xe44   :  { %v10442_v28 = vpop.eup %10441 }
 0xe45   :  { %v4898_v36 = vmul.f32 %v10442_v28, %v4885_v40  ;;  %vm4904_vm4 = vweird.f32 %v10442_v28 }
 0xe46   :  { %vm4905_vm11 = vmor %vm4903_vm9, %vm4904_vm4 }
 0xe47   :  { %v10444_v31 = vpop.eup %10443  ;;  %v4899_v60 = vmul.f32 %v10442_v28, %v4898_v36 }
 0xe48   :  { %v4888_v15 = vmul.f32 %v10444_v31, %v4884_v12  ;;  %vm4894_vm7 = vweird.f32 %v10444_v31  ;;  %v10446_v21 = vpop.eup %10445 }
 0xe49   :  { %v4900_v51 = vmul.f32 0.5, %v4899_v60  ;;  %vm4895_vm13 = vmor %vm4893_vm12, %vm4894_vm7  ;;  %v4818_v18 = vmul.f32 %v10446_v21, %v4796_v54  ;;  %vm4824_vm1 = vweird.f32 %v10446_v21  ;;  %v4931_v54 = vperm.slane %v53_v43, 4 }
 0xe4a   :  { %v4889_v44 = vmul.f32 %v10444_v31, %v4888_v15  ;;  %vm4825_vm4 = vmor %vm4823_vm2, %vm4824_vm1 }
 0xe4b   :  { %v4901_v17 = vsub.f32 1.5, %v4900_v51  ;;  %v4819_v11 = vmul.f32 %v10446_v21, %v4818_v18 }
 0xe4c   :  { %v4890_v20 = vmul.f32 0.5, %v4889_v44 }
 0xe4d   :  { %v4902_v53 = vmul.f32 %v10442_v28, %v4901_v17  ;;  %v4820_v42 = vmul.f32 0.5, %v4819_v11 }
 0xe4e   :  { %v4891_v4 = vsub.f32 1.5, %v4890_v20 }
 0xe4f   :  { %v4906_v57 = vsel %vm4905_vm11, %v10442_v28, %v4902_v53  ;;  %v4821_v29 = vsub.f32 1.5, %v4820_v42 }
 0xe50   :  { %v4892_v9 = vmul.f32 %v10444_v31, %v4891_v4  ;;  %v4918_v52 = vmul.f32 %v4906_v57, %v11957_v58 }
 0xe51   :  { %v4822_v36 = vmul.f32 %v10446_v21, %v4821_v29 }
 0xe52   :  { %v4896_v26 = vsel %vm4895_vm13, %v10444_v31, %v4892_v9  ;;  %v4921_v49 = vsel %vm137_vm0, %v4828_v38, %v4918_v52 }
 0xe53   :  { %v4917_v30 = vmul.f32 %v4896_v26, %v11950_v0  ;;  %v4925_v58 = vmul.f32 %v4923_v35, %v4921_v49  ;;  %v4826_v24 = vsel %vm4825_vm4, %v10446_v21, %v4822_v36 }
 0xe54   :  { %v4829_v15 = vmul.f32 %v4826_v24, %v11943_v16 }
 0xe55   :  { %v4920_v40 = vsel %vm137_vm0, %v4827_v34, %v4917_v30  ;;  %v4929_v7 = vadd.f32 %v4927_v1, %v4925_v58 }
 0xe56   :  { %v4924_v3 = vmul.f32 %v4923_v35, %v4920_v40 }
 0xe57   :  { %v4880_v63 = vpop.xlane.xlu2 %4879 }
 0xe58   :  { %v4883_v12 = vmul.f32 %v4880_v63, %v10719_v14  ;;  %v4928_v46 = vadd.f32 %v4927_v1, %v4924_v3 }
 0xe5a   :  { %v4886_v0 = vadd.f32 1e-05, %v4883_v12  ;;  %9987 = vmatmul.msk.f32.vlgmr.msrb.gmra.mxu3 %vm314_vm8, %v4928_v46  ;;  %9990 = vmatmul.msk.f32.vlgmr.msra.gmra.mxu0 %vm314_vm8, %v4928_v46 }
 0xe5c   :  { %10447 = vrsqrt.f32 %v4886_v0  ;;  %vm4913_vm5 = vweird.f32 %v4886_v0 }
 0xe62   :  { %v10448_v45 = vpop.eup %10447  ;;  %9988 = vmatmul.msk.f32.gmra.mxu3 %vm314_vm8, %v4929_v7  ;;  %9991 = vmatmul.msk.f32.gmra.mxu0 %vm314_vm8, %v4929_v7 }
 0xe63   :  { %v4908_v28 = vmul.f32 %v10448_v45, %v4886_v0  ;;  %vm4914_vm3 = vweird.f32 %v10448_v45 }
 0xe64   :  { %vm4915_vm7 = vmor %vm4913_vm5, %vm4914_vm3 }
 0xe65   :  { %v4909_v10 = vmul.f32 %v10448_v45, %v4908_v28 }
 0xe67   :  { %v4910_v22 = vmul.f32 0.5, %v4909_v10 }
 0xe69   :  { %v4911_v31 = vsub.f32 1.5, %v4910_v22 }
 0xe6b   :  { %v4912_v60 = vmul.f32 %v10448_v45, %v4911_v31 }
 0xe6d   :  { %v4916_v48 = vsel %vm4915_vm7, %v10448_v45, %v4912_v60 }
 0xe6e   :  { %v4919_v51 = vmul.f32 %v4916_v48, %v11964_v5 }
 0xe70   :  { %v4922_v44 = vsel %vm137_vm0, %v4829_v15, %v4919_v51 }
 0xe71   :  { %v4926_v62 = vmul.f32 %v4923_v35, %v4922_v44 }
 0xe73   :  { %v4930_v17 = vadd.f32 %v4927_v1, %v4926_v62 }
 0xe75   :  { %9989 = vmatmul.msk.f32.gmra.mxu3 %vm314_vm8, %v4930_v17  ;;  %9992 = vmatmul.msk.f32.gmra.mxu0 %vm314_vm8, %v4930_v17 }
 0xedd   :  { %v4959_v47 = vpop.f32.mrf.mxu3 }
 0xede   :  { %v4960_v20 = vadd.f32 %v4959_v47, %v4931_v54 }
 0xee0   :  { %v4994_v32 = vmul.f32 0.35355338, %v4960_v20 }
 0xee2   :  { %4997 = vxpose.xlu0.b32.start.end [1/1] (short) (narrow) %v4994_v32, 64 }
 0xee5   :  { %v4962_v53 = vpop.f32.mrf.mxu3 }
 0xee6   :  { %v4963_v4 = vadd.f32 %v4962_v53, %v4931_v54 }
 0xee8   :  { %v10168_v33 = vpack.i.bf16 %v4963_v4, %v4960_v20  ;;  %v4995_v5 = vmul.f32 0.35355338, %v4963_v4 }
 0xeea   :  { %10169 = vrot.lane.b32.xlu1 %v10168_v33, %s10659_s17 }
 0xef8   :  { %v4965_v39 = vpop.f32.mrf.mxu3 }
 0xef9   :  { %v4966_v57 = vadd.f32 %v4965_v39, %v4931_v54 }
 0xefb   :  { %v4996_v26 = vmul.f32 0.35355338, %v4966_v57  ;;  %v10173_v38 = vpack.i.bf16 %v11987_v61, %v4966_v57 }
 0xf5c   :  { %v10170_v45 = vpop.permute.xlu1 %10169 }
 0xf86   :  { %v5013_v16 = vpop.trf.xlu0 }
 0xf87   :  { %5093 = vxpose.xlu2.b32.start.end [1/1] (short) (narrow) %v5013_v16, 8 }
 0xf8e   :  { %v5014_v9 = vpop.trf.xlu0 }
 0xf8f   :  { %5125 = vxpose.xlu0.b32.start.end [1/1] (short) (narrow) %v5014_v9, 8  ;;  %5029 = vxpose.xlu2.b32.start.end [1/1] (short) (narrow) %v4995_v5, 64 }
 0xf96   :  { %v5015_v43 = vpop.trf.xlu0 }
 0xf97   :  { %5061 = vxpose.xlu0.b32.start.end [1/1] (short) (narrow) %v4996_v26, 64 }
 0xf9e   :  { %v5016_v34 = vpop.trf.xlu0 }
 0xf9f   :  { %5189 = vxpose.xlu1.b32.start.end [1/1] (short) (narrow) %v5016_v34, 8 }
 0xfa6   :  { %v5017_v30 = vpop.trf.xlu0 }
 0xfa7   :  { %5221 = vxpose.xlu1.b32.start.end [1/1] (short) (narrow) %v5017_v30, 8 }
 0xfae   :  { %v5018_v21 = vpop.trf.xlu0 }
 0xfb6   :  { %v5019_v23 = vpop.trf.xlu0 }
 0xfb7   :  { %5285 = vxpose.xlu1.b32.start.end [1/1] (short) (narrow) %v5019_v23, 8 }
 0xfbe   :  { %v5020_v35 = vpop.trf.xlu0 }
 0xfbf   :  { %5317 = vxpose.xlu1.b32.start.end [1/1] (short) (narrow) %v5020_v35, 8 }
 0xfcf   :  { %5157 = vxpose.xlu2.b32.start.end [1/1] (short) (narrow) %v5015_v43, 8 }
 0xfd7   :  { %5253 = vxpose.xlu0.b32.start.end [1/1] (short) (narrow) %v5018_v21, 8 }
0x1020   :  { %v5109_v52 = vpop.trf.xlu2 }
0x1028   :  { %v5045_v40 = vpop.trf.xlu2 }
0x1029   :  { %5349 = vxpose.xlu0.b32.start.end [1/1] (short) (narrow) %v5045_v40, 8 }
0x1030   :  { %v5046_v3 = vpop.trf.xlu2 }
0x1033   :  { %v5141_v1 = vpop.trf.xlu0 }
0x1038   :  { %10174 = vrot.lane.b32.xlu2 %v10173_v38, %s10659_s17  ;;  %v5047_v18 = vpop.trf.xlu2 }
0x103b   :  { %v5077_v63 = vpop.trf.xlu0 }
0x103c   :  { %5605 = vxpose.xlu1.b32.start.end [1/1] (short) (narrow) %v5077_v63, 8 }
0x1040   :  { %v5048_v12 = vpop.trf.xlu2 }
0x1043   :  { %v5078_v46 = vpop.trf.xlu0  ;;  %v5205_v31 = vpop.trf.xlu1 }
0x1044   :  { %5637 = vxpose.xlu1.b32.start.end [1/1] (short) (narrow) %v5078_v46, 8 }
0x1048   :  { %v5049_v49 = vpop.trf.xlu2 }
0x104b   :  { %v5079_v0 = vpop.trf.xlu0  ;;  %v5237_v24 = vpop.trf.xlu1 }
0x104c   :  { %5669 = vxpose.xlu0.b32.start.end [1/1] (short) (narrow) %v5079_v0, 8  ;;  %5445 = vxpose.xlu1.b32.start.end [1/1] (short) (narrow) %v5048_v12, 8 }
0x1050   :  { %v5050_v11 = vpop.trf.xlu2 }
0x1053   :  { %v5080_v58 = vpop.trf.xlu0 }
0x1054   :  { %5701 = vxpose.xlu1.b32.start.end [1/1] (short) (narrow) %v5080_v58, 8 }
0x1058   :  { %v5051_v42 = vpop.trf.xlu2 }
0x1059   :  { %5541 = vxpose.xlu0.b32.start.end [1/1] (short) (narrow) %v5051_v42, 8 }
0x105b   :  { %v5081_v7 = vpop.trf.xlu0  ;;  %v5301_v60 = vpop.trf.xlu1 }
0x105c   :  { %5733 = vxpose.xlu1.b32.start.end [1/1] (short) (narrow) %v5081_v7, 8 }
0x105e   :  { %5381 = vxpose.xlu2.b32.start.end [1/1] (short) (narrow) %v5046_v3, 8 }
0x1060   :  { %v5052_v61 = vpop.trf.xlu2 }
0x1061   :  { %5573 = vxpose.xlu0.b32.start.end [1/1] (short) (narrow) %v5052_v61, 8 }
0x1063   :  { %v5082_v29 = vpop.trf.xlu0  ;;  %v12110_v15 = vpop.trf.xlu1 }
0x1064   :  { %5765 = vxpose.xlu1.b32.start.end [1/1] (short) (narrow) %v5082_v29, 8 }
0x1066   :  { %5413 = vxpose.xlu2.b32.start.end [1/1] (short) (narrow) %v5047_v18, 8 }
0x1068   :  { %v5173_v10 = vpop.trf.xlu2 }
0x106b   :  { %v5083_v28 = vpop.trf.xlu0 }
0x106c   :  { %10179 = vxpose.xlu1.b32.start.end [1/1] (short) (narrow) %v10170_v45, 64  ;;  %5797 = vxpose.xlu0.b32.start.end [1/1] (short) (narrow) %v5083_v28, 8 }
0x106e   :  { %5477 = vxpose.xlu2.b32.start.end [1/1] (short) (narrow) %v5049_v49, 8 }
0x1073   :  { %v5084_v48 = vpop.trf.xlu0 }
0x1076   :  { %5509 = vxpose.xlu2.b32.start.end [1/1] (short) (narrow) %v5050_v11, 8 }
0x107b   :  { %v5269_v30 = vpop.trf.xlu0 }
0x1092   :  { %v12107_v36 = vpop.permute.xlu2 %10174 }
0x1093   :  { %v10176_v22 = vunpack.i.l.bf16 %v12107_v36 }
0x1095   :  { %5937 = vxpose.xlu2.b32.start.end [1/1] (short) (narrow) %v10176_v22, 64 }
0x10ac   :  { %5829 = vxpose.xlu1.b32.start.end [1/1] (short) (narrow) %v5084_v48, 8 }
0x10e0   :  { %v12112_v51 = vpop.trf.xlu1 }
0x10e8   :  { %v12114_v44 = vpop.trf.xlu1 }
0x10f0   :  { %v12116_v62 = vpop.trf.xlu1 }
0x10f7   :  { %v5397_v47 = vpop.trf.xlu2 }
0x10f8   :  { %v12118_v17 = vpop.trf.xlu1 }
0x10ff   :  { %v5429_v53 = vpop.trf.xlu2 }
0x1100   :  { %v12120_v54 = vpop.trf.xlu1 }
0x1107   :  { %v5493_v5 = vpop.trf.xlu2 }
0x1108   :  { %v12122_v20 = vpop.trf.xlu1 }
0x110f   :  { %v5525_v57 = vpop.trf.xlu2 }
0x1110   :  { %v10180_v32 = vpop.trf.xlu1 }
0x1111   :  { %v10181_v4 = vunpack.i.l.bf16 %v10180_v32  ;;  %v10184_v35 = vunpack.i.h.bf16 %v10180_v32 }
0x1113   :  { %6083 = vmatpush.msra.mxu1 %v10181_v4 }
0x1114   :  { %9993 = vmatmul.msk.f32.vlgmr.msra.gmra.mxu1 %vm1447_vm6, %v5109_v52 }
0x1118   :  { %v10185_v33 = vpop.trf.xlu1 }
0x1119   :  { %v10186_v16 = vunpack.i.l.bf16 %v10185_v33  ;;  %v10189_v18 = vunpack.i.h.bf16 %v10185_v33 }
0x111b   :  { %6106 = vmatpush.msra.mxu3 %v10186_v16 }
0x111c   :  { %9994 = vmatmul.msk.f32.vlgmr.msra.gmra.mxu3 %vm1447_vm6, %v5141_v1  ;;  %v5365_v1 = vpop.trf.xlu0 }
0x1120   :  { %v10190_v39 = vpop.trf.xlu1 }
0x1121   :  { %v10191_v9 = vunpack.i.l.bf16 %v10190_v39  ;;  %v10194_v11 = vunpack.i.h.bf16 %v10190_v39 }
0x1123   :  { %6129 = vmatpush.msrb.mxu0 %v10191_v9 }
0x1124   :  { %9995 = vmatmul.msk.f32.vlgmr.msrb.gmra.mxu0 %vm1447_vm6, %v5173_v10  ;;  %v5685_v58 = vpop.trf.xlu0 }
0x1128   :  { %v10195_v26 = vpop.trf.xlu1 }
0x1129   :  { %v10196_v43 = vunpack.i.l.bf16 %v10195_v26  ;;  %v10199_v29 = vunpack.i.h.bf16 %v10195_v26 }
0x112b   :  { %6152 = vmatpush.msrb.mxu1 %v10196_v43 }
0x112c   :  { %9996 = vmatmul.msk.f32.vlgmr.msrb.gmra.mxu1 %vm1447_vm6, %v5205_v31  ;;  %v5557_v10 = vpop.trf.xlu0 }
0x112e   :  { %v5953_v34 = vpop.trf.xlu2 }
0x1130   :  { %v10200_v21 = vpop.trf.xlu1 }
0x1131   :  { %v10201_v23 = vunpack.i.l.bf16 %v10200_v21  ;;  %v10204_v52 = vunpack.i.h.bf16 %v10200_v21  ;;  %v10607_v21 = vld [vmem:[%s13580_s1 + $0x20] sm:$0xff] }
0x1133   :  { %6175 = vmatpush.msra.mxu2 %v10201_v23 }
0x1134   :  { %9997 = vmatmul.msk.f32.vlgmr.msra.gmra.mxu2 %vm1447_vm6, %v5237_v24  ;;  %v5589_v31 = vpop.trf.xlu0 }
0x1135   :  { %6267 = vmatpush.msrb.mxu2 %v10184_v35 }
0x1136   :  { %v5954_v40 = vpop.trf.xlu2 }
0x1137   :  { %6359 = vmatpush.msra.mxu2 %v10204_v52 }
0x1138   :  { %v10205_v3 = vpop.trf.xlu1 }
0x1139   :  { %v10206_v38 = vunpack.i.l.bf16 %v10205_v3  ;;  %v10209_v63 = vunpack.i.h.bf16 %v10205_v3 }
0x113b   :  { %6198 = vmatpush.msrb.mxu3 %v10206_v38 }
0x113c   :  { %9998 = vmatmul.msk.f32.vlgmr.msrb.gmra.mxu3 %vm1447_vm6, %v5269_v30  ;;  %10001 = vmatmul.msk.f32.vlgmr.msrb.gmra.mxu2 %vm1447_vm6, %v5365_v1 }
0x113d   :  { %6290 = vmatpush.msra.mxu3 %v10189_v18  ;;  %6451 = vmatpush.msrb.mxu2 %v5953_v34  ;;  %v10609_v18 = vld [vmem:[%s13580_s1 + $0x30] sm:$0xff] }
0x113e   :  { %v5955_v12 = vpop.trf.xlu2 }
0x113f   :  { %6382 = vmatpush.msrb.mxu3 %v10209_v63 }
0x1140   :  { %v10210_v46 = vpop.trf.xlu1 }
0x1141   :  { %v10211_v49 = vunpack.i.l.bf16 %v10210_v46  ;;  %v10214_v0 = vunpack.i.h.bf16 %v10210_v46 }
0x1143   :  { %6221 = vmatpush.msra.mxu0 %v10211_v49  ;;  %v10610_v49 = vld [vmem:[%s13580_s1 + $0x48] sm:$0xff] }
0x1144   :  { %9999 = vmatmul.msk.f32.vlgmr.msra.gmra.mxu0 %vm1447_vm6, %v5301_v60  ;;  %10002 = vmatmul.msk.f32.vlgmr.msra.gmra.mxu3 %vm1447_vm6, %v5397_v47  ;;  %v5813_v60 = vpop.trf.xlu0 }
0x1145   :  { %6313 = vmatpush.msrb.mxu0 %v10194_v11  ;;  %10005 = vmatmul.msk.f32.vlgmr.msra.gmra.mxu2 %vm1447_vm6, %v5493_v5  ;;  %v10605_v5 = vld [vmem:[%s13580_s1 + $0x10] sm:$0xff] }
0x1146   :  { %v5956_v42 = vpop.trf.xlu2  ;;  %6474 = vmatpush.msra.mxu3 %v5954_v40  ;;  %v10608_v40 = vld [vmem:[%s13580_s1 + $0x28] sm:$0xff] }
0x1147   :  { %6405 = vmatpush.msra.mxu0 %v10214_v0 }
0x1148   :  { %v10215_v7 = vpop.trf.xlu1 }
0x1149   :  { %v10216_v61 = vunpack.i.l.bf16 %v10215_v7  ;;  %v10219_v45 = vunpack.i.h.bf16 %v10215_v7 }
0x114b   :  { %6244 = vmatpush.msra.mxu1 %v10216_v61 }
0x114c   :  { %10000 = vmatmul.msk.f32.vlgmr.msra.gmra.mxu1 %vm1447_vm6, %v12110_v15  ;;  %10003 = vmatmul.msk.f32.vlgmr.msrb.gmra.mxu0 %vm1447_vm6, %v5429_v53  ;;  %v10604_v53 = vld [vmem:[%s13580_s1 + $0x8] sm:$0xff] }
0x114d   :  { %6336 = vmatpush.msrb.mxu1 %v10199_v29  ;;  %10006 = vmatmul.msk.f32.vlgmr.msrb.gmra.mxu3 %vm1447_vm6, %v5525_v57  ;;  %v10606_v57 = vld [vmem:[%s13580_s1 + $0x18] sm:$0xff]  ;;  %v10612_v29 = vld [vmem:[%s13580_s1 + $0x40] sm:$0xff] }
0x114e   :  { %10009 = vmatmul.msk.f32.vlgmr.msrb.gmra.mxu2 %vm1447_vm6, %v12112_v51  ;;  %v5957_v28 = vpop.trf.xlu2  ;;  %6497 = vmatpush.msrb.mxu0 %v5955_v12  ;;  %v12155_v51 = vpop.f32.mrf.mxu0 }
0x114f   :  { %6428 = vmatpush.msra.mxu1 %v10219_v45  ;;  %6543 = vmatpush.msra.mxu2 %v5957_v28 }
0x1150   :  { %v5845_v15 = vpop.trf.xlu1 }
0x1154   :  { %10004 = vmatmul.msk.f32.vlgmr.msrb.gmra.mxu1 %vm1447_vm6, %v12116_v62  ;;  %10007 = vmatmul.msk.f32.vlgmr.msra.gmra.mxu0 %vm1447_vm6, %v5557_v10  ;;  %v10603_v62 = vld [vmem:[%s13580_s1] sm:$0xff] }
0x1155   :  { %10010 = vmatmul.msk.f32.vlgmr.msra.gmra.mxu3 %vm1447_vm6, %v12114_v44  ;;  %6520 = vmatpush.msrb.mxu1 %v5956_v42 }
0x1156   :  { %10013 = vmatmul.msk.f32.vlgmr.msra.gmra.mxu2 %vm1447_vm6, %v12120_v54  ;;  %v5958_v22 = vpop.trf.xlu2  ;;  %v12162_v47 = vpop.f32.mrf.mxu0 }
0x1157   :  { %6566 = vmatpush.msrb.mxu3 %v5958_v22  ;;  %v10613_v22 = vld [vmem:[%s13580_s1 + $0x50] sm:$0xff] }
0x115c   :  { %10008 = vmatmul.msk.f32.vlgmr.msra.gmra.mxu1 %vm1447_vm6, %v5589_v31  ;;  %10011 = vmatmul.msk.f32.vlgmr.msrb.gmra.mxu0 %vm1447_vm6, %v5685_v58  ;;  %v10611_v58 = vld [vmem:[%s13580_s1 + $0x38] sm:$0xff] }
0x115d   :  { %10014 = vmatmul.msk.f32.vlgmr.msrb.gmra.mxu3 %vm1447_vm6, %v12122_v20 }
0x115e   :  { %v5959_v24 = vpop.trf.xlu2  ;;  %v12166_v20 = vpop.f32.mrf.mxu0 }
0x115f   :  { %6589 = vmatpush.msra.mxu0 %v5959_v24 }
0x1164   :  { %10012 = vmatmul.msk.f32.vlgmr.msrb.gmra.mxu1 %vm1447_vm6, %v12118_v17  ;;  %10015 = vmatmul.msk.f32.vlgmr.msra.gmra.mxu0 %vm1447_vm6, %v5813_v60 }
0x1166   :  { %v5960_v48 = vpop.trf.xlu2 }
0x1167   :  { %6612 = vmatpush.msra.mxu1 %v5960_v48 }
0x116c   :  { %10016 = vmatmul.msk.f32.vlgmr.msra.gmra.mxu1 %vm1447_vm6, %v5845_v15 }
0x1191   :  { %v6085_v44 = vpop.f32.mrf.mxu1 }
0x1192   :  { %v12160_v54 = vadd.f32 %v10603_v62, %v6085_v44  ;;  %v10614_v44 = vld [vmem:[%s13580_s1 + $0x58] sm:$0xff] }
0x1194   :  { %v6617_v17 = vsel %vm1447_vm6, %v12160_v54, -inf }
0x1195   :  { %6618 = vmax.xlane.f32.xlu0 %v6617_v17 }
0x119f   :  { %v6108_v32 = vpop.f32.mrf.mxu3 }
0x11a0   :  { %v12171_v4 = vadd.f32 %v10604_v53, %v6108_v32  ;;  %v10615_v32 = vld [vmem:[%s13580_s1 + $0x68] sm:$0xff] }
0x11a1   :  { %v6131_v16 = vpop.f32.mrf.mxu0 }
0x11a2   :  { %v6620_v33 = vsel %vm1447_vm6, %v12171_v4, -inf  ;;  %v12178_v39 = vadd.f32 %v10605_v5, %v6131_v16  ;;  %v10616_v5 = vld [vmem:[%s13580_s1 + $0x60] sm:$0xff] }
0x11a3   :  { %6621 = vmax.xlane.f32.xlu1 %v6620_v33 }
0x11a4   :  { %v6623_v43 = vsel %vm1447_vm6, %v12178_v39, -inf }
0x11a9   :  { %v6154_v9 = vpop.f32.mrf.mxu1 }
0x11aa   :  { %v12183_v26 = vadd.f32 %v10606_v57, %v6154_v9 }
0x11ab   :  { %6624 = vmax.xlane.f32.xlu1 %v6623_v43 }
0x11ac   :  { %v6626_v34 = vsel %vm1447_vm6, %v12183_v26, -inf }
0x11ad   :  { %6627 = vmax.xlane.f32.xlu0 %v6626_v34  ;;  %v10617_v34 = vld [vmem:[%s13580_s1 + $0x88] sm:$0xff] }
0x11b7   :  { %v6177_v30 = vpop.f32.mrf.mxu2 }
0x11b8   :  { %v12192_v23 = vadd.f32 %v10607_v21, %v6177_v30 }
0x11ba   :  { %v6629_v35 = vsel %vm1447_vm6, %v12192_v23, -inf }
0x11bb   :  { %6630 = vmax.xlane.f32.xlu2 %v6629_v35 }
0x11bf   :  { %v6200_v52 = vpop.f32.mrf.mxu3  ;;  %v6269_v12 = vpop.f32.mrf.mxu2 }
0x11c0   :  { %v12199_v3 = vadd.f32 %v10608_v40, %v6200_v52  ;;  %v12225_v28 = vadd.f32 %v10612_v29, %v6269_v12 }
0x11c1   :  { %v6223_v1 = vpop.f32.mrf.mxu0 }
0x11c2   :  { %v6632_v38 = vsel %vm1447_vm6, %v12199_v3, -inf  ;;  %v12206_v63 = vadd.f32 %v10609_v18, %v6223_v1  ;;  %v6641_v60 = vsel %vm1447_vm6, %v12225_v28, -inf  ;;  %v10618_v1 = vld [vmem:[%s13580_s1 + $0x80] sm:$0xff]  ;;  %v10619_v18 = vld [vmem:[%s13580_s1 + $0x70] sm:$0xff] }
0x11c3   :  { %6633 = vmax.xlane.f32.xlu1 %v6632_v38 }
0x11c4   :  { %v6635_v7 = vsel %vm1447_vm6, %v12206_v63, -inf }
0x11c7   :  { %v6292_v46 = vpop.f32.mrf.mxu3 }
0x11c8   :  { %v12211_v0 = vadd.f32 %v10610_v49, %v6292_v46  ;;  %v6361_v48 = vpop.f32.mrf.mxu2  ;;  %v10620_v46 = vld [vmem:[%s13580_s1 + $0x90] sm:$0xff] }
0x11c9   :  { %v6246_v11 = vpop.f32.mrf.mxu1  ;;  %v6315_v45 = vpop.f32.mrf.mxu0  ;;  %v12253_v9 = vadd.f32 %v10616_v5, %v6361_v48  ;;  %v10623_v48 = vld [vmem:[%s13580_s1 + $0xa8] sm:$0xff]  ;;  %v10624_v5 = vld [vmem:[%s13580_s1 + $0x98] sm:$0xff] }
0x11ca   :  { %v12216_v42 = vadd.f32 %v10611_v58, %v6246_v11  ;;  %v6644_v61 = vsel %vm1447_vm6, %v12211_v0, -inf  ;;  %v12232_v31 = vadd.f32 %v10613_v22, %v6315_v45 }
0x11cb   :  { %6636 = vmax.xlane.f32.xlu1 %v6635_v7  ;;  %6645 = vmax.xlane.f32.xlu0 %v6644_v61  ;;  %v6653_v35 = vsel %vm1447_vm6, %v12253_v9, -inf  ;;  %v10621_v61 = vld [vmem:[%s13580_s1 + $0x78] sm:$0xff] }
0x11cc   :  { %v6638_v10 = vsel %vm1447_vm6, %v12216_v42, -inf  ;;  %v6647_v16 = vsel %vm1447_vm6, %v12232_v31, -inf }
0x11cd   :  { %6639 = vmax.xlane.f32.xlu2 %v6638_v10 }
0x11d0   :  { %v6384_v24 = vpop.f32.mrf.mxu3 }
0x11d1   :  { %v6338_v15 = vpop.f32.mrf.mxu1  ;;  %v6407_v17 = vpop.f32.mrf.mxu0  ;;  %v12244_v53 = vadd.f32 %v10615_v32, %v6384_v24  ;;  %v10622_v24 = vld [vmem:[%s13580_s1 + $0xa0] sm:$0xff] }
0x11d2   :  { %v12239_v62 = vadd.f32 %v10614_v44, %v6338_v15  ;;  %v6453_v21 = vpop.f32.mrf.mxu2  ;;  %v12274_v12 = vadd.f32 %v10619_v18, %v6407_v17 }
0x11d3   :  { %6642 = vmax.xlane.f32.xlu1 %v6641_v60  ;;  %v6656_v43 = vsel %vm1447_vm6, %v12244_v53, -inf  ;;  %v12269_v38 = vadd.f32 %v10618_v1, %v6453_v21 }
0x11d4   :  { %v6650_v33 = vsel %vm1447_vm6, %v12239_v62, -inf  ;;  %v6659_v7 = vsel %vm1447_vm6, %v12274_v12, -inf }
0x11d5   :  { %6651 = vmax.xlane.f32.xlu0 %v6650_v33  ;;  %6648 = vmax.xlane.f32.xlu2 %v6647_v16  ;;  %v6665_v58 = vsel %vm1447_vm6, %v12269_v38, -inf }
0x11d8   :  { %v6476_v57 = vpop.f32.mrf.mxu3 }
0x11d9   :  { %v12260_v30 = vadd.f32 %v10617_v34, %v6476_v57  ;;  %v6499_v40 = vpop.f32.mrf.mxu0  ;;  %v6430_v11 = vpop.f32.mrf.mxu1 }
0x11da   :  { %v12279_v49 = vadd.f32 %v10620_v46, %v6499_v40  ;;  %v12288_v45 = vadd.f32 %v10621_v61, %v6430_v11  ;;  %v6545_v10 = vpop.f32.mrf.mxu2 }
0x11db   :  { %6657 = vmax.xlane.f32.xlu1 %v6656_v43  ;;  %v6668_v52 = vsel %vm1447_vm6, %v12260_v30, -inf  ;;  %v12295_v60 = vadd.f32 %v10622_v24, %v6545_v10  ;;  %v10625_v43 = vld [vmem:[%s13580_s1 + $0xb0] sm:$0xff] }
0x11dc   :  { %v6671_v29 = vsel %vm1447_vm6, %v12279_v49, -inf  ;;  %v6662_v44 = vsel %vm1447_vm6, %v12288_v45, -inf }
0x11dd   :  { %6654 = vmax.xlane.f32.xlu0 %v6653_v35  ;;  %6669 = vmax.xlane.f32.xlu2 %v6668_v52  ;;  %v6677_v33 = vsel %vm1447_vm6, %v12295_v60, -inf }
0x11e0   :  { %v6568_v22 = vpop.f32.mrf.mxu3 }
0x11e1   :  { %v12300_v15 = vadd.f32 %v10623_v48, %v6568_v22  ;;  %v6522_v17 = vpop.f32.mrf.mxu1  ;;  %v6591_v32 = vpop.f32.mrf.mxu0 }
0x11e2   :  { %v12311_v57 = vadd.f32 %v10624_v5, %v6522_v17  ;;  %v12316_v34 = vadd.f32 %v10625_v43, %v6591_v32 }
0x11e3   :  { %6666 = vmax.xlane.f32.xlu1 %v6665_v58  ;;  %v6680_v16 = vsel %vm1447_vm6, %v12300_v15, -inf }
0x11e4   :  { %v6674_v21 = vsel %vm1447_vm6, %v12311_v57, -inf  ;;  %v6683_v35 = vsel %vm1447_vm6, %v12316_v34, -inf }
0x11e5   :  { %6660 = vmax.xlane.f32.xlu0 %v6659_v7  ;;  %6672 = vmax.xlane.f32.xlu2 %v6671_v29  ;;  %v10626_v7 = vld [vmem:[%s13580_s1 + $0xb8] sm:$0xff] }
0x11e9   :  { %v6614_v46 = vpop.f32.mrf.mxu1 }
0x11ea   :  { %v12330_v61 = vadd.f32 %v10626_v7, %v6614_v46 }
0x11eb   :  { %6663 = vmax.xlane.f32.xlu1 %v6662_v44 }
0x11ed   :  { %6678 = vmax.xlane.f32.xlu0 %v6677_v33  ;;  %6681 = vmax.xlane.f32.xlu2 %v6680_v16 }
0x11f3   :  { %6675 = vmax.xlane.f32.xlu1 %v6674_v21 }
0x11f5   :  { %6684 = vmax.xlane.f32.xlu2 %v6683_v35 }
0x1208   :  { %v6619_v52 = vpop.xlane.xlu0 %6618 }
0x1209   :  { %v6689_v40 = vsub.f32 %v12160_v54, %v6619_v52  ;;  %v6686_v54 = vsel %vm1447_vm6, %v12330_v61, -inf }
0x120b   :  { %v6713_v1 = vmul.f32 1.442695, %v6689_v40 }
0x120d   :  { %10449 = vpow2.f32 %v6713_v1 }
0x1213   :  { %v12323_v18 = vpop.eup %10449 }
0x1214   :  { %v6761_v11 = vsel %vm1447_vm6, %v12323_v18, 0.0 }
0x1215   :  { %6762 = vadd.xlane.f32.xlu0 %v6761_v11 }
0x1216   :  { %v6622_v58 = vpop.xlane.xlu1 %6621 }
0x1217   :  { %v6690_v29 = vsub.f32 %v12171_v4, %v6622_v58 }
0x1219   :  { %v6715_v10 = vmul.f32 1.442695, %v6690_v29 }
0x121b   :  { %10451 = vpow2.f32 %v6715_v10 }
0x121d   :  { %6687 = vmax.xlane.f32.xlu0 %v6686_v54 }
0x121e   :  { %v6625_v22 = vpop.xlane.xlu1 %6624 }
0x121f   :  { %v6691_v24 = vsub.f32 %v12178_v39, %v6625_v22 }
0x1220   :  { %v6628_v48 = vpop.xlane.xlu0 %6627 }
0x1221   :  { %v12336_v44 = vpop.eup %10451  ;;  %v6717_v17 = vmul.f32 1.442695, %v6691_v24  ;;  %v6692_v32 = vsub.f32 %v12183_v26, %v6628_v48 }
0x1222   :  { %v6764_v33 = vsel %vm1447_vm6, %v12336_v44, 0.0 }
0x1223   :  { %10453 = vpow2.f32 %v6717_v17  ;;  %v6719_v4 = vmul.f32 1.442695, %v6692_v32  ;;  %6765 = vadd.xlane.f32.xlu1 %v6764_v33 }
0x1225   :  { %10455 = vpow2.f32 %v6719_v4 }
0x1229   :  { %v12341_v16 = vpop.eup %10453 }
0x122a   :  { %v6767_v5 = vsel %vm1447_vm6, %v12341_v16, 0.0 }
0x122b   :  { %v12345_v43 = vpop.eup %10455  ;;  %6768 = vadd.xlane.f32.xlu0 %v6767_v5 }
0x122c   :  { %v6770_v39 = vsel %vm1447_vm6, %v12345_v43, 0.0 }
0x122d   :  { %6771 = vadd.xlane.f32.xlu1 %v6770_v39 }
0x122e   :  { %v6631_v26 = vpop.xlane.xlu2 %6630 }
0x122f   :  { %v6693_v21 = vsub.f32 %v12192_v23, %v6631_v26 }
0x1231   :  { %v6721_v35 = vmul.f32 1.442695, %v6693_v21 }
0x1233   :  { %10457 = vpow2.f32 %v6721_v35 }
0x1236   :  { %v6634_v52 = vpop.xlane.xlu1 %6633 }
0x1237   :  { %v6694_v40 = vsub.f32 %v12199_v3, %v6634_v52 }
0x1239   :  { %v12351_v1 = vpop.eup %10457  ;;  %v6723_v46 = vmul.f32 1.442695, %v6694_v40 }
0x123a   :  { %v6773_v11 = vsel %vm1447_vm6, %v12351_v1, 0.0 }
0x123b   :  { %10459 = vpow2.f32 %v6723_v46  ;;  %6774 = vadd.xlane.f32.xlu1 %v6773_v11 }
0x123e   :  { %v6637_v58 = vpop.xlane.xlu1 %6636  ;;  %v6646_v7 = vpop.xlane.xlu0 %6645 }
0x123f   :  { %v6695_v29 = vsub.f32 %v12206_v63, %v6637_v58  ;;  %v6698_v10 = vsub.f32 %v12211_v0, %v6646_v7 }
0x1240   :  { %v6640_v23 = vpop.xlane.xlu2 %6639 }
0x1241   :  { %v12357_v54 = vpop.eup %10459  ;;  %v6725_v22 = vmul.f32 1.442695, %v6695_v29  ;;  %v6731_v24 = vmul.f32 1.442695, %v6698_v10  ;;  %v6696_v3 = vsub.f32 %v12216_v42, %v6640_v23 }
0x1242   :  { %v6776_v48 = vsel %vm1447_vm6, %v12357_v54, 0.0 }
0x1243   :  { %10461 = vpow2.f32 %v6725_v22  ;;  %v6727_v17 = vmul.f32 1.442695, %v6696_v3  ;;  %6777 = vadd.xlane.f32.xlu2 %v6776_v48 }
0x1244   :  { %10463 = vpow2.f32 %v6731_v24 }
0x1245   :  { %10465 = vpow2.f32 %v6727_v17 }
0x1246   :  { %v6643_v32 = vpop.xlane.xlu1 %6642 }
0x1247   :  { %v6697_v63 = vsub.f32 %v12225_v28, %v6643_v32 }
0x1248   :  { %v6652_v33 = vpop.xlane.xlu0 %6651  ;;  %v6649_v0 = vpop.xlane.xlu2 %6648 }
0x1249   :  { %v12363_v4 = vpop.eup %10461  ;;  %v6729_v5 = vmul.f32 1.442695, %v6697_v63  ;;  %v6700_v39 = vsub.f32 %v12239_v62, %v6652_v33  ;;  %v6699_v42 = vsub.f32 %v12232_v31, %v6649_v0 }
0x124a   :  { %v12366_v26 = vpop.eup %10463  ;;  %v6779_v21 = vsel %vm1447_vm6, %v12363_v4, 0.0 }
0x124b   :  { %v12371_v35 = vpop.eup %10465  ;;  %10467 = vpow2.f32 %v6729_v5  ;;  %v6735_v52 = vmul.f32 1.442695, %v6700_v39  ;;  %v6788_v28 = vsel %vm1447_vm6, %v12366_v26, 0.0  ;;  %6780 = vadd.xlane.f32.xlu1 %v6779_v21  ;;  %v6733_v62 = vmul.f32 1.442695, %v6699_v42 }
0x124c   :  { %6789 = vadd.xlane.f32.xlu0 %v6788_v28  ;;  %v6782_v40 = vsel %vm1447_vm6, %v12371_v35, 0.0 }
0x124d   :  { %10469 = vpow2.f32 %v6735_v52  ;;  %6783 = vadd.xlane.f32.xlu2 %v6782_v40 }
0x124e   :  { %v6658_v46 = vpop.xlane.xlu1 %6657  ;;  %10471 = vpow2.f32 %v6733_v62 }
0x124f   :  { %v6702_v31 = vsub.f32 %v12244_v53, %v6658_v46 }
0x1250   :  { %v6655_v11 = vpop.xlane.xlu0 %6654  ;;  %v6670_v58 = vpop.xlane.xlu2 %6669 }
0x1251   :  { %v12378_v7 = vpop.eup %10467  ;;  %v6739_v29 = vmul.f32 1.442695, %v6702_v31  ;;  %v6701_v10 = vsub.f32 %v12253_v9, %v6655_v11  ;;  %v6706_v23 = vsub.f32 %v12260_v30, %v6670_v58 }
0x1252   :  { %v6785_v53 = vsel %vm1447_vm6, %v12378_v7, 0.0 }
0x1253   :  { %v12382_v22 = vpop.eup %10469  ;;  %10473 = vpow2.f32 %v6739_v29  ;;  %v6737_v24 = vmul.f32 1.442695, %v6701_v10  ;;  %v6747_v48 = vmul.f32 1.442695, %v6706_v23 }
0x1254   :  { %v6794_v3 = vsel %vm1447_vm6, %v12382_v22, 0.0  ;;  %v12389_v32 = vpop.eup %10471 }
0x1255   :  { %10475 = vpow2.f32 %v6737_v24  ;;  %6795 = vadd.xlane.f32.xlu0 %v6794_v3  ;;  %6786 = vadd.xlane.f32.xlu2 %v6785_v53  ;;  %v6791_v21 = vsel %vm1447_vm6, %v12389_v32, 0.0 }
0x1256   :  { %v6667_v17 = vpop.xlane.xlu1 %6666  ;;  %10477 = vpow2.f32 %v6747_v48 }
0x1257   :  { %v6705_v9 = vsub.f32 %v12269_v38, %v6667_v17 }
0x1258   :  { %v6661_v30 = vpop.xlane.xlu0 %6660  ;;  %v6673_v42 = vpop.xlane.xlu2 %6672 }
0x1259   :  { %v12391_v63 = vpop.eup %10473  ;;  %v6745_v33 = vmul.f32 1.442695, %v6705_v9  ;;  %v6703_v0 = vsub.f32 %v12274_v12, %v6661_v30  ;;  %v6707_v46 = vsub.f32 %v12279_v49, %v6673_v42 }
0x125a   :  { %v6800_v5 = vsel %vm1447_vm6, %v12391_v63, 0.0 }
0x125b   :  { %v12396_v39 = vpop.eup %10475  ;;  %10479 = vpow2.f32 %v6745_v33  ;;  %6801 = vadd.xlane.f32.xlu1 %v6800_v5  ;;  %v6741_v52 = vmul.f32 1.442695, %v6703_v0  ;;  %v6749_v23 = vmul.f32 1.442695, %v6707_v46  ;;  %v54_v46 = vld [vmem:[%s13583_s4 + $0x18] sm:$0xff] }
0x125c   :  { %v6797_v38 = vsel %vm1447_vm6, %v12396_v39, 0.0  ;;  %v12402_v12 = vpop.eup %10477 }
0x125d   :  { %6798 = vadd.xlane.f32.xlu0 %v6797_v38  ;;  %6792 = vadd.xlane.f32.xlu2 %v6791_v21  ;;  %10481 = vpow2.f32 %v6741_v52  ;;  %v6812_v10 = vsel %vm1447_vm6, %v12402_v12, 0.0 }
0x125e   :  { %v6664_v28 = vpop.xlane.xlu1 %6663 }
0x125f   :  { %v6704_v58 = vsub.f32 %v12288_v45, %v6664_v28 }
0x1260   :  { %v6679_v40 = vpop.xlane.xlu0 %6678  ;;  %v6682_v24 = vpop.xlane.xlu2 %6681 }
0x1261   :  { %v12404_v62 = vpop.eup %10479  ;;  %v6709_v31 = vsub.f32 %v12295_v60, %v6679_v40  ;;  %v6743_v49 = vmul.f32 1.442695, %v6704_v58  ;;  %v6710_v17 = vsub.f32 %v12300_v15, %v6682_v24 }
0x1262   :  { %v6809_v11 = vsel %vm1447_vm6, %v12404_v62, 0.0 }
0x1263   :  { %v6753_v29 = vmul.f32 1.442695, %v6709_v31  ;;  %6810 = vadd.xlane.f32.xlu1 %v6809_v11  ;;  %v12413_v53 = vpop.eup %10481  ;;  %v6755_v5 = vmul.f32 1.442695, %v6710_v17  ;;  %v4932_v31 = vperm.slane %v54_v46, 4 }
0x1264   :  { %v6803_v48 = vsel %vm1447_vm6, %v12413_v53, 0.0 }
0x1265   :  { %10483 = vpow2.f32 %v6753_v29  ;;  %6813 = vadd.xlane.f32.xlu2 %v6812_v10  ;;  %v4986_v58 = vadd.f32 %v12155_v51, %v4932_v31  ;;  %v10627_v51 = vld [vmem:[%s13581_s2 + $0x108] sm:$0xff]  ;;  %v4989_v19 = vadd.f32 %v12162_v47, %v4932_v31  ;;  %v4992_v37 = vadd.f32 %v12166_v20, %v4932_v31 }
0x1266   :  { %v6676_v3 = vpop.xlane.xlu1 %6675  ;;  %10485 = vpow2.f32 %v6749_v23 }
0x1267   :  { %v6708_v60 = vsub.f32 %v12311_v57, %v6676_v3  ;;  %10487 = vpow2.f32 %v6743_v49 }
0x1268   :  { %v6685_v33 = vpop.xlane.xlu2 %6684 }
0x1269   :  { %v6751_v30 = vmul.f32 1.442695, %v6708_v60  ;;  %v6711_v15 = vsub.f32 %v12316_v34, %v6685_v33 }
0x126b   :  { %v12418_v45 = vpop.eup %10483  ;;  %6804 = vadd.xlane.f32.xlu1 %v6803_v48  ;;  %10489 = vpow2.f32 %v6751_v30  ;;  %v6757_v21 = vmul.f32 1.442695, %v6711_v15 }
0x126c   :  { %v6821_v9 = vsel %vm1447_vm6, %v12418_v45, 0.0  ;;  %v12423_v0 = vpop.eup %10485  ;;  %10491 = vpow2.f32 %v6755_v5 }
0x126d   :  { %6822 = vadd.xlane.f32.xlu2 %v6821_v9  ;;  %v12425_v42 = vpop.eup %10487  ;;  %v6815_v57 = vsel %vm1447_vm6, %v12423_v0, 0.0  ;;  %10493 = vpow2.f32 %v6757_v21 }
0x126e   :  { %v6806_v38 = vsel %vm1447_vm6, %v12425_v42, 0.0 }
0x1271   :  { %10231 = vrot.lane.b32.xlu0 %v10230_v6, %s10659_s17  ;;  %v12436_v52 = vpop.eup %10489 }
0x1272   :  { %v12438_v28 = vpop.eup %10491  ;;  %v6818_v27 = vsel %vm1447_vm6, %v12436_v52, 0.0 }
0x1273   :  { %6816 = vadd.xlane.f32.xlu1 %v6815_v57  ;;  %v6824_v59 = vsel %vm1447_vm6, %v12438_v28, 0.0  ;;  %v12444_v6 = vpop.eup %10493 }
0x1274   :  { %v6827_v34 = vsel %vm1447_vm6, %v12444_v6, 0.0 }
0x1275   :  { %6807 = vadd.xlane.f32.xlu2 %v6806_v38 }
0x127b   :  { %6819 = vadd.xlane.f32.xlu1 %v6818_v27 }
0x127d   :  { %6825 = vadd.xlane.f32.xlu2 %v6824_v59 }
0x1285   :  { %6828 = vadd.xlane.f32.xlu2 %v6827_v34 }
0x1288   :  { %v6763_v40 = vpop.xlane.xlu0 %6762 }
0x1289   :  { %v6844_v38 = vand.u32 2147483648, %v6763_v40  ;;  %vm6838_vm10 = vweird.f32 %v6763_v40  ;;  %v6842_v21 = vand.u32 2147483647, %v6763_v40 }
0x128b   :  { %v6845_v46 = vor.u32 1.1754944e-38, %v6844_v38  ;;  %vm6843_vm12 = vcmp.eq.f32.partialorder %v6842_v21, 8.507059e+37 }
0x1290   :  { %v6688_v11 = vpop.xlane.xlu0 %6687 }
0x1291   :  { %v6712_v29 = vsub.f32 %v12330_v61, %v6688_v11 }
0x1293   :  { %v6759_v10 = vmul.f32 1.442695, %v6712_v29  ;;  %5969 = vxpose.xlu0.b32.start.end [1/1] (short) (narrow) %v4986_v58, 64 }
0x1294   :  { %10221 = vrot.lane.b32.xlu1 %v10220_v50, %s10659_s17 }
0x1295   :  { %10495 = vpow2.f32 %v6759_v10 }
0x1296   :  { %v6766_v61 = vpop.xlane.xlu1 %6765  ;;  %10497 = vrcp.f32 %v6763_v40 }
0x1297   :  { %10499 = vrcp.f32 %v6766_v61  ;;  %vm6853_vm14 = vweird.f32 %v6766_v61 }
0x129b   :  { %v12457_v23 = vpop.eup %10495 }
0x129c   :  { %v6830_v24 = vsel %vm1447_vm6, %v12457_v23, 0.0 }
0x129d   :  { %6831 = vadd.xlane.f32.xlu2 %v6830_v24 }
0x129e   :  { %v12471_v50 = vpop.xlane.xlu0 %6768 }
0x129f   :  { %10501 = vrcp.f32 %v12471_v50  ;;  %v6874_v21 = vand.u32 2147483648, %v12471_v50  ;;  %vm6868_vm3 = vweird.f32 %v12471_v50 }
0x12a0   :  { %v12475_v8 = vpop.xlane.xlu1 %6771 }
0x12a1   :  { %10503 = vrcp.f32 %v12475_v8 }
0x12ae   :  { %v12479_v60 = vpop.xlane.xlu1 %6774 }
0x12af   :  { %10505 = vrcp.f32 %v12479_v60 }
0x12b5   :  { %10226 = vrot.lane.b32.xlu2 %v10225_v55, %s10659_s17  ;;  %v10498_v55 = vpop.eup %10497 }
0x12b6   :  { %v6834_v49 = vmul.f32 %v10498_v55, %v6763_v40  ;;  %v10500_v20 = vpop.eup %10499  ;;  %vm6839_vm9 = vweird.f32 %v10498_v55 }
0x12b7   :  { %v6849_v9 = vmul.f32 %v10500_v20, %v6766_v61  ;;  %v10502_v57 = vpop.eup %10501  ;;  %vm6840_vm11 = vmor %vm6838_vm10, %vm6839_vm9  ;;  %vm6854_vm13 = vweird.f32 %v10500_v20  ;;  %vm6883_vm9 = vweird.f32 %v12475_v8 }
0x12b8   :  { %v6835_v47 = vsub.f32 1.0, %v6834_v49  ;;  %v6864_v34 = vmul.f32 %v10502_v57, %v12471_v50  ;;  %v10504_v24 = vpop.eup %10503  ;;  %vm6855_vm15 = vmor %vm6853_vm14, %vm6854_vm13  ;;  %vm6869_vm2 = vweird.f32 %v10502_v57  ;;  %vm6898_vm13 = vweird.f32 %v12479_v60 }
0x12b9   :  { %v6850_v5 = vsub.f32 1.0, %v6849_v9  ;;  %v6879_v49 = vmul.f32 %v10504_v24, %v12475_v8  ;;  %v10506_v38 = vpop.eup %10505  ;;  %vm6870_vm4 = vmor %vm6868_vm3, %vm6869_vm2  ;;  %vm6884_vm7 = vweird.f32 %v10504_v24 }
0x12ba   :  { %v6836_v17 = vmul.f32 %v10498_v55, %v6835_v47  ;;  %v6865_v29 = vsub.f32 1.0, %v6864_v34  ;;  %v12496_v47 = vpop.xlane.xlu2 %6777  ;;  %vm6885_vm10 = vmor %vm6883_vm9, %vm6884_vm7 }
0x12bb   :  { %v6851_v59 = vmul.f32 %v10500_v20, %v6850_v5  ;;  %v6880_v5 = vsub.f32 1.0, %v6879_v49  ;;  %10507 = vrcp.f32 %v12496_v47  ;;  %vm6913_vm2 = vweird.f32 %v12496_v47 }
0x12bc   :  { %v6837_v33 = vadd.f32 %v10498_v55, %v6836_v17 }
0x12bd   :  { %8689 = vrot.lane.b32.xlu2 %v10627_v51, %s10659_s17  ;;  %v6852_v58 = vadd.f32 %v10500_v20, %v6851_v59  ;;  %v6859_v51 = vand.u32 2147483648, %v6766_v61  ;;  %v6881_v34 = vmul.f32 %v10504_v24, %v6880_v5 }
0x12be   :  { %v12484_v30 = vpop.xlane.xlu1 %6780  ;;  %v6841_v27 = vsel %vm6840_vm11, %v10498_v55, %v6837_v33  ;;  %v6866_v55 = vmul.f32 %v10502_v57, %v6865_v29 }
0x12bf   :  { %v12473_v3 = vpop.xlane.xlu0 %6789  ;;  %v6846_v11 = vsel %vm6843_vm12, %v6845_v46, %v6841_v27  ;;  %v6860_v17 = vor.u32 1.1754944e-38, %v6859_v51  ;;  %v6872_v27 = vand.u32 2147483647, %v12471_v50  ;;  %v6894_v46 = vmul.f32 %v10506_v38, %v12479_v60 }
0x12c0   :  { %v6847_v40 = vmul.f32 %v12323_v18, %v6846_v11  ;;  %v6867_v33 = vadd.f32 %v10502_v57, %v6866_v55  ;;  %v6889_v50 = vand.u32 2147483648, %v12475_v8  ;;  %10509 = vrcp.f32 %v12484_v30 }
0x12c1   :  { %vm6873_vm5 = vcmp.eq.f32.partialorder %v6872_v27, 8.507059e+37  ;;  %vm6899_vm12 = vweird.f32 %v10506_v38  ;;  %vm6928_vm7 = vweird.f32 %v12484_v30 }
0x12c2   :  { %v6871_v59 = vsel %vm6870_vm4, %v10502_v57, %v6867_v33  ;;  %v12508_v11 = vpop.xlane.xlu2 %6783  ;;  %vm6900_vm14 = vmor %vm6898_vm13, %vm6899_vm12 }
0x12c8   :  { %v12477_v13 = vpop.xlane.xlu0 %6795 }
0x12c9   :  { %6001 = vxpose.xlu1.b32.start.end [1/1] (short) (narrow) %v4989_v19, 64  ;;  %v6857_v19 = vand.u32 2147483647, %v6766_v61 }
0x12ca   :  { %v12524_v33 = vpop.xlane.xlu2 %6786 }
0x12cb   :  { %vm6858_vm1 = vcmp.eq.f32.partialorder %v6857_v19, 8.507059e+37  ;;  %v6887_v19 = vand.u32 2147483647, %v12475_v8  ;;  %10511 = vrcp.f32 %v12524_v33  ;;  %vm6958_vm13 = vweird.f32 %v12524_v33 }
0x12cc   :  { %10513 = vrcp.f32 %v12508_v11 }
0x12cd   :  { %vm6888_vm11 = vcmp.eq.f32.partialorder %v6887_v19, 8.507059e+37  ;;  %10515 = vrcp.f32 %v12473_v3 }
0x12ce   :  { %v12490_v31 = vpop.xlane.xlu1 %6801 }
0x12d0   :  { %v12481_v48 = vpop.xlane.xlu0 %6798 }
0x12d3   :  { %6033 = vxpose.xlu0.b32.start.end [1/1] (short) (narrow) %v4992_v37, 64  ;;  %v6856_v37 = vsel %vm6855_vm15, %v10500_v20, %v6852_v58  ;;  %v6875_v58 = vor.u32 1.1754944e-38, %v6874_v21 }
0x12d4   :  { %v6861_v9 = vsel %vm6858_vm1, %v6860_v17, %v6856_v37 }
0x12d5   :  { %v6862_v20 = vmul.f32 %v12336_v44, %v6861_v9  ;;  %v6876_v29 = vsel %vm6873_vm5, %v6875_v58, %v6871_v59  ;;  %v6895_v44 = vsub.f32 1.0, %v6894_v46  ;;  %v6890_v9 = vor.u32 1.1754944e-38, %v6889_v50 }
0x12d6   :  { %v12499_v18 = vpop.xlane.xlu1 %6810  ;;  %v6877_v57 = vmul.f32 %v12341_v16, %v6876_v29 }
0x12d7   :  { %v6896_v49 = vmul.f32 %v10506_v38, %v6895_v44 }
0x12d9   :  { %v6897_v5 = vadd.f32 %v10506_v38, %v6896_v49 }
0x12db   :  { %v6901_v59 = vsel %vm6900_vm14, %v10506_v38, %v6897_v5  ;;  %v12545_v38 = vpop.xlane.xlu2 %6792  ;;  %vm6943_vm14 = vweird.f32 %v12508_v11 }
0x12dc   :  { %10517 = vrcp.f32 %v12545_v38 }
0x12dd   :  { %10519 = vrcp.f32 %v12477_v13 }
0x12de   :  { %v12518_v37 = vpop.xlane.xlu1 %6804  ;;  %10521 = vrcp.f32 %v12481_v48 }
0x12df   :  { %10523 = vrcp.f32 %v12490_v31 }
0x12e0   :  { %10525 = vrcp.f32 %v12499_v18 }
0x12e3   :  { %v12486_v15 = vpop.permute.xlu0 %10231 }
0x12e6   :  { %v12538_v58 = vpop.xlane.xlu1 %6816 }
0x1337   :  { %v5985_v10 = vpop.trf.xlu0 }
0x1338   :  { %10017 = vmatpush.xpose.msk.msrb.mxu2 %vm1447_vm6, %v5985_v10  ;;  %v6882_v10 = vadd.f32 %v10504_v24, %v6881_v34 }
0x133a   :  { %v6886_v55 = vsel %vm6885_vm10, %v10504_v24, %v6882_v10  ;;  %v6902_v24 = vand.u32 2147483647, %v12479_v60 }
0x133b   :  { %10018 = vmatmul.msk.f32.vlgmr.msrb.gmra.mxu2 %vm1447_vm6, %v6847_v40  ;;  %v12511_v40 = vpop.eup %10507  ;;  %v6891_v16 = vsel %vm6888_vm11, %v6890_v9, %v6886_v55  ;;  %v6917_v55 = vand.u32 2147483647, %v12496_v47 }
0x133c   :  { %v6909_v17 = vmul.f32 %v12511_v40, %v12496_v47  ;;  %v12526_v21 = vpop.eup %10509  ;;  %v6892_v27 = vmul.f32 %v12345_v43, %v6891_v16  ;;  %vm6903_vm15 = vcmp.eq.f32.partialorder %v6902_v24, 8.507059e+37  ;;  %vm6914_vm1 = vweird.f32 %v12511_v40 }
0x133d   :  { %v6924_v46 = vmul.f32 %v12526_v21, %v12484_v30  ;;  %v12541_v10 = vpop.eup %10511  ;;  %vm6915_vm3 = vmor %vm6913_vm2, %vm6914_vm1  ;;  %vm6918_vm4 = vcmp.eq.f32.partialorder %v6917_v55, 8.507059e+37  ;;  %vm6929_vm5 = vweird.f32 %v12526_v21 }
0x133e   :  { %v6910_v8 = vsub.f32 1.0, %v6909_v17  ;;  %v12547_v50 = vpop.eup %10513  ;;  %v6954_v49 = vmul.f32 %v12541_v10, %v12524_v33  ;;  %vm6930_vm9 = vmor %vm6928_vm7, %vm6929_vm5  ;;  %vm6959_vm11 = vweird.f32 %v12541_v10  ;;  %vm6973_vm5 = vweird.f32 %v12473_v3 }
0x133f   :  { %v5986_v61 = vpop.trf.xlu0  ;;  %v6925_v44 = vsub.f32 1.0, %v6924_v46  ;;  %v6939_v16 = vmul.f32 %v12547_v50, %v12508_v11  ;;  %v6932_v46 = vand.u32 2147483647, %v12484_v30  ;;  %vm6944_vm12 = vweird.f32 %v12547_v50 }
0x1340   :  { %10019 = vmatpush.xpose.msk.msra.mxu3 %vm1447_vm6, %v5986_v61  ;;  %v6911_v34 = vmul.f32 %v12511_v40, %v6910_v8  ;;  %v12562_v8 = vpop.xlane.xlu1 %6819  ;;  %vm12605_vm1 = vmor %vm6943_vm14, %vm6944_vm12 }
0x1341   :  { %v6926_v9 = vmul.f32 %v12526_v21, %v6925_v44  ;;  %vm6933_vm10 = vcmp.eq.f32.partialorder %v6932_v46, 8.507059e+37 }
0x1342   :  { %v6912_v43 = vadd.f32 %v12511_v40, %v6911_v34 }
0x1343   :  { %10020 = vmatmul.msk.f32.vlgmr.msra.gmra.mxu3 %vm1447_vm6, %v6862_v20  ;;  %v6904_v20 = vand.u32 2147483648, %v12479_v60 }
0x1344   :  { %v6916_v17 = vsel %vm6915_vm3, %v12511_v40, %v6912_v43  ;;  %v6940_v40 = vsub.f32 1.0, %v6939_v16  ;;  %v6947_v16 = vand.u32 2147483647, %v12508_v11 }
0x1345   :  { %v6905_v29 = vor.u32 1.1754944e-38, %v6904_v20  ;;  %v6927_v20 = vadd.f32 %v12526_v21, %v6926_v9 }
0x1346   :  { %v6941_v44 = vmul.f32 %v12547_v50, %v6940_v40 }
0x1347   :  { %v5987_v51 = vpop.trf.xlu0  ;;  %v6906_v60 = vsel %vm6903_vm15, %v6905_v29, %v6901_v59  ;;  %v6931_v43 = vsel %vm6930_vm9, %v12526_v21, %v6927_v20  ;;  %v6964_v21 = vand.u32 2147483648, %v12524_v33  ;;  %vm6960_vm15 = vmor %vm6958_vm13, %vm6959_vm11  ;;  %vm6988_vm11 = vweird.f32 %v12545_v38 }
0x1348   :  { %10021 = vmatpush.xpose.msk.msrb.mxu0 %vm1447_vm6, %v5987_v51  ;;  %v6907_v19 = vmul.f32 %v12351_v1, %v6906_v60  ;;  %v6955_v1 = vsub.f32 1.0, %v6954_v49  ;;  %v12577_v60 = vpop.xlane.xlu2 %6813  ;;  %v6942_v49 = vadd.f32 %v12547_v50, %v6941_v44 }
0x1349   :  { %10527 = vrcp.f32 %v12577_v60 }
0x134a   :  { %v6956_v29 = vmul.f32 %v12541_v10, %v6955_v1  ;;  %10529 = vrcp.f32 %v12518_v37 }
0x134b   :  { %10022 = vmatmul.msk.f32.vlgmr.msrb.gmra.mxu0 %vm1447_vm6, %v6877_v57  ;;  %v6919_v57 = vand.u32 2147483648, %v12496_v47 }
0x134d   :  { %v6920_v5 = vor.u32 1.1754944e-38, %v6919_v57 }
0x134f   :  { %v5988_v61 = vpop.trf.xlu0  ;;  %v6921_v47 = vsel %vm6918_vm4, %v6920_v5, %v6916_v17  ;;  %v6962_v17 = vand.u32 2147483647, %v12524_v33  ;;  %v6949_v5 = vand.u32 2147483648, %v12508_v11  ;;  %v6946_v11 = vsel %vm12605_vm1, %v12547_v50, %v6942_v49 }
0x1350   :  { %10023 = vmatpush.xpose.msk.msrb.mxu1 %vm1447_vm6, %v5988_v61  ;;  %v12564_v61 = vpop.eup %10515  ;;  %v6922_v59 = vmul.f32 %v12357_v54, %v6921_v47  ;;  %v6957_v54 = vadd.f32 %v12541_v10, %v6956_v29  ;;  %vm6948_vm4 = vcmp.eq.f32.partialorder %v6947_v16, 8.507059e+37  ;;  %v6977_v50 = vand.u32 2147483647, %v12473_v3 }
0x1351   :  { %v6969_v34 = vmul.f32 %v12564_v61, %v12473_v3  ;;  %vm6963_vm2 = vcmp.eq.f32.partialorder %v6962_v17, 8.507059e+37  ;;  %vm6974_vm3 = vweird.f32 %v12564_v61 }
0x1352   :  { %v6961_v20 = vsel %vm6960_vm15, %v12541_v10, %v6957_v54  ;;  %vm6975_vm7 = vmor %vm6973_vm5, %vm6974_vm3  ;;  %vm6978_vm9 = vcmp.eq.f32.partialorder %v6977_v50, 8.507059e+37  ;;  %vm7003_vm15 = vweird.f32 %v12477_v13  ;;  %vm7018_vm3 = vweird.f32 %v12481_v48 }
0x1353   :  { %10024 = vmatmul.msk.f32.vlgmr.msrb.gmra.mxu1 %vm1447_vm6, %v6892_v27  ;;  %v6934_v27 = vand.u32 2147483648, %v12484_v30  ;;  %v6970_v57 = vsub.f32 1.0, %v6969_v34  ;;  %v12586_v30 = vpop.eup %10517 }
0x1354   :  { %v6984_v40 = vmul.f32 %v12586_v30, %v12545_v38 }
0x1355   :  { %v6971_v1 = vmul.f32 %v12564_v61, %v6970_v57 }
0x1356   :  { %v6985_v46 = vsub.f32 1.0, %v6984_v40 }
0x1357   :  { %v5989_v51 = vpop.trf.xlu0  ;;  %v6972_v34 = vadd.f32 %v12564_v61, %v6971_v1 }
0x1358   :  { %10025 = vmatpush.xpose.msk.msra.mxu2 %vm1447_vm6, %v5989_v51  ;;  %v6935_v51 = vor.u32 1.1754944e-38, %v6934_v27  ;;  %v12612_v27 = vpop.xlane.xlu2 %6822  ;;  %v6986_v49 = vmul.f32 %v12586_v30, %v6985_v46  ;;  %v7009_v46 = vand.u32 2147483648, %v12477_v13 }
0x1359   :  { %10531 = vrcp.f32 %v12612_v27 }
0x135a   :  { %v6936_v55 = vsel %vm6933_vm10, %v6935_v51, %v6931_v43  ;;  %v6979_v43 = vand.u32 2147483648, %v12473_v3  ;;  %vm6989_vm10 = vweird.f32 %v12586_v30  ;;  %10533 = vrcp.f32 %v12538_v58 }
0x135b   :  { %10026 = vmatmul.msk.f32.vlgmr.msra.gmra.mxu2 %vm1447_vm6, %v6907_v19  ;;  %v12584_v19 = vpop.permute.xlu1 %10221  ;;  %v6937_v47 = vmul.f32 %v12363_v4, %v6936_v55  ;;  %v6950_v4 = vor.u32 1.1754944e-38, %v6949_v5  ;;  %v6976_v55 = vsel %vm6975_vm7, %v12564_v61, %v6972_v34  ;;  %v6994_v5 = vand.u32 2147483648, %v12545_v38  ;;  %vm6990_vm12 = vmor %vm6988_vm11, %vm6989_vm10 }
0x135c   :  { %v6980_v3 = vor.u32 1.1754944e-38, %v6979_v43  ;;  %vm7033_vm7 = vweird.f32 %v12490_v31 }
0x135d   :  { %v6951_v44 = vsel %vm6948_vm4, %v6950_v4, %v6946_v11  ;;  %v6995_v4 = vor.u32 1.1754944e-38, %v6994_v5 }
0x135f   :  { %v5990_v24 = vpop.trf.xlu0 }
0x1360   :  { %10027 = vmatpush.xpose.msk.msrb.mxu3 %vm1447_vm6, %v5990_v24  ;;  %v6965_v24 = vor.u32 1.1754944e-38, %v6964_v21  ;;  %v6952_v21 = vmul.f32 %v12371_v35, %v6951_v44  ;;  %v12636_v16 = vpop.xlane.xlu2 %6807 }
0x1361   :  { %10535 = vrcp.f32 %v12636_v16 }
0x1362   :  { %v6966_v10 = vsel %vm6963_vm2, %v6965_v24, %v6961_v20 }
0x1363   :  { %10028 = vmatmul.msk.f32.vlgmr.msrb.gmra.mxu3 %vm1447_vm6, %v6922_v59  ;;  %v12615_v59 = vpop.eup %10519  ;;  %v6967_v51 = vmul.f32 %v12378_v7, %v6966_v10  ;;  %v6981_v7 = vsel %vm6978_vm9, %v6980_v3, %v6976_v55 }
0x1364   :  { %v6999_v54 = vmul.f32 %v12615_v59, %v12477_v13  ;;  %v12638_v35 = vpop.eup %10521  ;;  %v6982_v1 = vmul.f32 %v12366_v26, %v6981_v7  ;;  %vm7004_vm14 = vweird.f32 %v12615_v59 }
0x1365   :  { %v12648_v40 = vpop.eup %10523  ;;  %v7014_v24 = vmul.f32 %v12638_v35, %v12481_v48  ;;  %vm7005_vm1 = vmor %vm7003_vm15, %vm7004_vm14  ;;  %vm7019_vm4 = vweird.f32 %v12638_v35  ;;  %vm7078_vm14 = vweird.f32 %v12499_v18 }
0x1366   :  { %v7000_v17 = vsub.f32 1.0, %v6999_v54  ;;  %v7029_v26 = vmul.f32 %v12648_v40, %v12490_v31  ;;  %vm7034_vm5 = vweird.f32 %v12648_v40  ;;  %vm12709_vm9 = vmor %vm7018_vm3, %vm7019_vm4 }
0x1367   :  { %v5991_v9 = vpop.trf.xlu0  ;;  %vm12726_vm10 = vmor %vm7033_vm7, %vm7034_vm5  ;;  %vm7048_vm5 = vweird.f32 %v12518_v37 }
0x1368   :  { %10029 = vmatpush.xpose.msk.msra.mxu0 %vm1447_vm6, %v5991_v9  ;;  %v6987_v9 = vadd.f32 %v12586_v30, %v6986_v49  ;;  %v7001_v33 = vmul.f32 %v12615_v59, %v7000_v17  ;;  %v7030_v44 = vsub.f32 1.0, %v7029_v26  ;;  %v7037_v17 = vand.u32 2147483647, %v12490_v31 }
0x1369   :  { %v10177_v26 = vunpack.i.h.bf16 %v12107_v36  ;;  %v10224_v36 = vunpack.i.h.bf16 %v12584_v19 }
0x136a   :  { %v6991_v11 = vsel %vm6990_vm12, %v12586_v30, %v6987_v9  ;;  %v7002_v10 = vadd.f32 %v12615_v59, %v7001_v33  ;;  %v7007_v30 = vand.u32 2147483647, %v12477_v13  ;;  %v7010_v13 = vor.u32 1.1754944e-38, %v7009_v46 }
0x136b   :  { %10030 = vmatmul.msk.f32.vlgmr.msra.gmra.mxu0 %vm1447_vm6, %v6937_v47  ;;  %v6992_v47 = vand.u32 2147483647, %v12545_v38  ;;  %v12657_v38 = vpop.eup %10525  ;;  %v7031_v49 = vmul.f32 %v12648_v40, %v7030_v44  ;;  %vm12730_vm11 = vcmp.eq.f32.partialorder %v7037_v17, 8.507059e+37  ;;  %v7054_v44 = vand.u32 2147483648, %v12518_v37 }
0x136c   :  { %v7006_v55 = vsel %vm7005_vm1, %v12615_v59, %v7002_v10  ;;  %vm7008_vm2 = vcmp.eq.f32.partialorder %v7007_v30, 8.507059e+37  ;;  %v12679_v7 = vpop.eup %10527  ;;  %v7039_v10 = vand.u32 2147483648, %v12490_v31  ;;  %v7084_v30 = vand.u32 2147483648, %v12499_v18 }
0x136d   :  { %v6017_v29 = vpop.trf.xlu1  ;;  %vm6993_vm13 = vcmp.eq.f32.partialorder %v6992_v47, 8.507059e+37  ;;  %v12682_v9 = vpop.eup %10529  ;;  %v7024_v47 = vand.u32 2147483648, %v12481_v48  ;;  %vm7093_vm1 = vweird.f32 %v12577_v60  ;;  %vm7094_vm4 = vweird.f32 %v12679_v7 }
0x136e   :  { %10033 = vmatpush.xpose.msk.msrb.mxu2 %vm1447_vm6, %v6017_v29  ;;  %v6996_v34 = vsel %vm6993_vm13, %v6995_v4, %v6991_v11  ;;  %v7015_v29 = vsub.f32 1.0, %v7014_v24  ;;  %v12693_v33 = vpop.eup %10531  ;;  %v7032_v24 = vadd.f32 %v12648_v40, %v7031_v49  ;;  %v7089_v4 = vmul.f32 %v12679_v7, %v12577_v60 }
0x136f   :  { %v5992_v57 = vpop.trf.xlu0  ;;  %v6997_v50 = vmul.f32 %v12389_v32, %v6996_v34  ;;  %v7011_v32 = vsel %vm7008_vm2, %v7010_v13, %v7006_v55  ;;  %v7044_v46 = vmul.f32 %v12682_v9, %v12518_v37  ;;  %vm7079_vm13 = vweird.f32 %v12657_v38 }
0x1370   :  { %10031 = vmatpush.xpose.msk.msra.mxu1 %vm1447_vm6, %v5992_v57  ;;  %v12670_v57 = vpop.xlane.xlu2 %6825  ;;  %v7090_v13 = vsub.f32 1.0, %v7089_v4  ;;  %vm12754_vm2 = vmor %vm7078_vm14, %vm7079_vm13  ;;  %vm7139_vm13 = vweird.f32 %v12693_v33 }
0x1371   :  { %10034 = vmatmul.msk.f32.vlgmr.msrb.gmra.mxu2 %vm1447_vm6, %v6967_v51  ;;  %v7074_v51 = vmul.f32 %v12657_v38, %v12499_v18  ;;  %10537 = vrcp.f32 %v12670_v57 }
0x1372   :  { %10539 = vrcp.f32 %v12562_v8 }
0x1373   :  { %10032 = vmatmul.msk.f32.vlgmr.msra.gmra.mxu1 %vm1447_vm6, %v6952_v21  ;;  %v7016_v21 = vmul.f32 %v12638_v35, %v7015_v29  ;;  %v7075_v3 = vsub.f32 1.0, %v7074_v51  ;;  %v7036_v51 = vsel %vm12726_vm10, %v12648_v40, %v7032_v24  ;;  %v7099_v40 = vand.u32 2147483648, %v12577_v60 }
0x1374   :  { %v7052_v24 = vand.u32 2147483647, %v12518_v37  ;;  %vm7138_vm10 = vweird.f32 %v12612_v27 }
0x1375   :  { %v6018_v61 = vpop.trf.xlu1  ;;  %v7017_v59 = vadd.f32 %v12638_v35, %v7016_v21  ;;  %v7076_v11 = vmul.f32 %v12657_v38, %v7075_v3  ;;  %v12741_v21 = vpop.eup %10533  ;;  %v7045_v3 = vsub.f32 1.0, %v7044_v46  ;;  %v7091_v46 = vmul.f32 %v12679_v7, %v7090_v13 }
0x1376   :  { %10035 = vmatpush.xpose.msk.msra.mxu3 %vm1447_vm6, %v6018_v61  ;;  %v7022_v61 = vand.u32 2147483647, %v12481_v48  ;;  %v12744_v17 = vpop.eup %10535  ;;  %v7100_v48 = vor.u32 1.1754944e-38, %v7099_v40  ;;  %vm12798_vm7 = vcmp.eq.f32.partialorder %v7052_v24, 8.507059e+37 }
0x1377   :  { %v12646_v20 = vpop.trf.xlu0  ;;  %v7021_v29 = vsel %vm12709_vm9, %v12638_v35, %v7017_v59  ;;  %v7025_v35 = vor.u32 1.1754944e-38, %v7024_v47  ;;  %v7077_v55 = vadd.f32 %v12657_v38, %v7076_v11  ;;  %v12761_v4 = vpop.eup %10537  ;;  %vm7049_vm9 = vweird.f32 %v12682_v9 }
0x1378   :  { %v12721_v31 = vpop.xlane.xlu2 %6828  ;;  %vm7023_vm12 = vcmp.eq.f32.partialorder %v7022_v61, 8.507059e+37  ;;  %v7085_v61 = vor.u32 1.1754944e-38, %v7084_v30  ;;  %v7104_v30 = vmul.f32 %v12741_v21, %v12538_v58  ;;  %v7149_v13 = vmul.f32 %v12761_v4, %v12670_v57  ;;  %v12804_v40 = vpop.eup %10539  ;;  %vm12830_vm14 = vmor %vm7048_vm5, %vm7049_vm9 }
0x1379   :  { %10036 = vmatmul.msk.f32.vlgmr.msra.gmra.mxu3 %vm1447_vm6, %v6982_v1  ;;  %v7012_v1 = vmul.f32 %v12382_v22, %v7011_v32  ;;  %v7040_v32 = vor.u32 1.1754944e-38, %v7039_v10  ;;  %v7026_v49 = vsel %vm7023_vm12, %v7025_v35, %v7021_v29  ;;  %v7081_v34 = vsel %vm12754_vm2, %v12657_v38, %v7077_v55  ;;  %vm12816_vm12 = vmor %vm7093_vm1, %vm7094_vm4 }
0x137a   :  { %v7027_v10 = vmul.f32 %v12396_v39, %v7026_v49  ;;  %v7059_v39 = vmul.f32 %v12744_v17, %v12636_v16  ;;  %10541 = vrcp.f32 %v12721_v31  ;;  %v7142_v35 = vand.u32 2147483647, %v12612_v27  ;;  %vm12850_vm1 = vmor %vm7138_vm10, %vm7139_vm13 }
0x137b   :  { %v7105_v59 = vsub.f32 1.0, %v7104_v30  ;;  %v7114_v30 = vand.u32 2147483648, %v12538_v58  ;;  %vm7063_vm2 = vweird.f32 %v12636_v16  ;;  %vm7109_vm4 = vweird.f32 %v12741_v21 }
0x137c   :  { %vm7064_vm9 = vweird.f32 %v12744_v17  ;;  %vm7154_vm10 = vweird.f32 %v12761_v4 }
0x137d   :  { %v6019_v43 = vpop.trf.xlu1  ;;  %v7106_v37 = vmul.f32 %v12741_v21, %v7105_v59 }
0x137e   :  { %10037 = vmatpush.xpose.msk.msrb.mxu0 %vm1447_vm6, %v6019_v43  ;;  %v7082_v43 = vand.u32 2147483647, %v12499_v18  ;;  %v7097_v18 = vand.u32 2147483647, %v12577_v60 }
0x137f   :  { %v12672_v54 = vpop.trf.xlu0 }
0x1380   :  { %vm12746_vm15 = vcmp.eq.f32.partialorder %v7082_v43, 8.507059e+37  ;;  %v7046_v43 = vmul.f32 %v12682_v9, %v7045_v3  ;;  %vm12787_vm3 = vcmp.eq.f32.partialorder %v7097_v18, 8.507059e+37  ;;  %v12812_v24 = vpop.eup %10541 }
0x1381   :  { %10038 = vmatmul.msk.f32.vlgmr.msrb.gmra.mxu0 %vm1447_vm6, %v6997_v50  ;;  %v7134_v50 = vmul.f32 %v12693_v33, %v12612_v27 }
0x1382   :  { %v7047_v3 = vadd.f32 %v12682_v9, %v7046_v43  ;;  %v7112_v43 = vand.u32 2147483647, %v12538_v58 }
0x1383   :  { %v7135_v11 = vsub.f32 1.0, %v7134_v50  ;;  %v12782_v50 = vpop.xlane.xlu2 %6831 }
0x1384   :  { %10543 = vrcp.f32 %v12782_v50  ;;  %vm12875_vm5 = vcmp.eq.f32.partialorder %v7112_v43, 8.507059e+37 }
0x1385   :  { %v6020_v5 = vpop.trf.xlu1  ;;  %v7136_v55 = vmul.f32 %v12693_v33, %v7135_v11 }
0x1386   :  { %10039 = vmatpush.xpose.msk.msrb.mxu1 %vm1447_vm6, %v6020_v5 }
0x1387   :  { %v12700_v22 = vpop.trf.xlu0 }
0x1389   :  { %10040 = vmatmul.msk.f32.vlgmr.msrb.gmra.mxu1 %vm1447_vm6, %v7012_v1  ;;  %v7041_v1 = vsel %vm12730_vm11, %v7040_v32, %v7036_v51  ;;  %v7092_v32 = vadd.f32 %v12679_v7, %v7091_v46  ;;  %vm12808_vm11 = vcmp.eq.f32.partialorder %v7142_v35, 8.507059e+37  ;;  %v7115_v51 = vor.u32 1.1754944e-38, %v7114_v30 }
0x138a   :  { %v7042_v38 = vmul.f32 %v12391_v63, %v7041_v1  ;;  %v7144_v63 = vand.u32 2147483648, %v12612_v27  ;;  %v7055_v1 = vor.u32 1.1754944e-38, %v7054_v44 }
0x138b   :  { %v7096_v46 = vsel %vm12816_vm12, %v12679_v7, %v7092_v32  ;;  %v7051_v7 = vsel %vm12830_vm14, %v12682_v9, %v7047_v3  ;;  %v7119_v9 = vmul.f32 %v12804_v40, %v12562_v8  ;;  %v10223_v32 = vunpack.i.l.bf16 %v12584_v19 }
0x138c   :  { %v7101_v3 = vsel %vm12787_vm3, %v7100_v48, %v7096_v46  ;;  %vm7153_vm12 = vweird.f32 %v12670_v57  ;;  %vm7124_vm14 = vweird.f32 %v12804_v40 }
0x138d   :  { %v6021_v5 = vpop.trf.xlu1  ;;  %v7120_v49 = vsub.f32 1.0, %v7119_v9  ;;  %v7102_v11 = vmul.f32 %v12402_v12, %v7101_v3  ;;  %vm12928_vm13 = vmor %vm7153_vm12, %vm7154_vm10  ;;  %v7127_v3 = vand.u32 2147483647, %v12562_v8 }
0x138e   :  { %10041 = vmatpush.xpose.msk.msra.mxu2 %vm1447_vm6, %v6021_v5 }
0x138f   :  { %v12769_v29 = vpop.trf.xlu0 }
0x1391   :  { %10042 = vmatmul.msk.f32.vlgmr.msra.gmra.mxu2 %vm1447_vm6, %v7027_v10  ;;  %v7137_v10 = vadd.f32 %v12693_v33, %v7136_v55  ;;  %v10227_v55 = vpop.permute.xlu2 %10226 }
0x1392   :  { %10049 = vmatpush.xpose.msk.msrb.mxu2 %vm1447_vm6, %v12646_v20  ;;  %v7086_v20 = vsel %vm12746_vm15, %v7085_v61, %v7081_v34  ;;  %v7060_v61 = vsub.f32 1.0, %v7059_v39  ;;  %v7150_v34 = vsub.f32 1.0, %v7149_v13  ;;  %vm7108_vm15 = vweird.f32 %v12538_v58 }
0x1393   :  { %v7087_v5 = vmul.f32 %v12404_v62, %v7086_v20  ;;  %v7145_v62 = vor.u32 1.1754944e-38, %v7144_v63  ;;  %v7164_v20 = vmul.f32 %v12812_v24, %v12721_v31  ;;  %v7141_v27 = vsel %vm12850_vm1, %v12693_v33, %v7137_v10  ;;  %vm12892_vm3 = vmor %vm7108_vm15, %vm7109_vm4 }
0x1394   :  { %v7061_v44 = vmul.f32 %v12744_v17, %v7060_v61  ;;  %v7069_v63 = vand.u32 2147483648, %v12636_v16  ;;  %v7151_v13 = vmul.f32 %v12761_v4, %v7150_v34  ;;  %v7107_v33 = vadd.f32 %v12741_v21, %v7106_v37 }
0x1395   :  { %v6022_v18 = vpop.trf.xlu1  ;;  %v7146_v48 = vsel %vm12808_vm11, %v7145_v62, %v7141_v27  ;;  %vm12908_vm11 = vmor %vm7063_vm2, %vm7064_vm9  ;;  %v7157_v62 = vand.u32 2147483647, %v12670_v57  ;;  %v7159_v34 = vand.u32 2147483648, %v12670_v57  ;;  %v10229_v46 = vunpack.i.h.bf16 %v10227_v55 }
0x1396   :  { %10043 = vmatpush.xpose.msk.msrb.mxu3 %vm1447_vm6, %v6022_v18  ;;  %v7062_v61 = vadd.f32 %v12744_v17, %v7061_v44  ;;  %v12885_v18 = vpop.eup %10543  ;;  %v7152_v47 = vadd.f32 %v12761_v4, %v7151_v13  ;;  %v7147_v43 = vmul.f32 %v12418_v45, %v7146_v48  ;;  %v7070_v30 = vor.u32 1.1754944e-38, %v7069_v63 }
0x1397   :  { %v6053_v39 = vpop.trf.xlu0  ;;  %v10234_v57 = vunpack.i.h.bf16 %v12486_v15  ;;  %vm7158_vm15 = vcmp.eq.f32.partialorder %v7157_v62, 8.507059e+37  ;;  %v7160_v37 = vor.u32 1.1754944e-38, %v7159_v34  ;;  %vm7168_vm1 = vweird.f32 %v12721_v31 }
0x1398   :  { %10057 = vmatpush.xpose.msk.msra.mxu2 %vm1447_vm6, %v6053_v39  ;;  %v7121_v39 = vmul.f32 %v12804_v40, %v7120_v49  ;;  %vm7169_vm2 = vweird.f32 %v12812_v24  ;;  %v7129_v63 = vand.u32 2147483648, %v12562_v8  ;;  %vm7184_vm10 = vweird.f32 %v12885_v18 }
0x1399   :  { %10044 = vmatmul.msk.f32.vlgmr.msrb.gmra.mxu3 %vm1447_vm6, %v7042_v38  ;;  %10050 = vmatmul.msk.f32.vlgmr.msrb.gmra.mxu2 %vm1447_vm6, %v7087_v5  ;;  %v7056_v38 = vsel %vm12798_vm7, %v7055_v1, %v7051_v7  ;;  %v7165_v5 = vsub.f32 1.0, %v7164_v20  ;;  %v7156_v7 = vsel %vm12928_vm13, %v12761_v4, %v7152_v47  ;;  %vm12955_vm4 = vmor %vm7168_vm1, %vm7169_vm2  ;;  %v7187_v48 = vand.u32 2147483647, %v12782_v50 }
0x139a   :  { %10051 = vmatpush.xpose.msk.msra.mxu3 %vm1447_vm6, %v12672_v54  ;;  %v7067_v54 = vand.u32 2147483647, %v12636_v16  ;;  %v7057_v12 = vmul.f32 %v12413_v53, %v7056_v38  ;;  %v7111_v53 = vsel %vm12892_vm3, %v12741_v21, %v7107_v33  ;;  %v7066_v16 = vsel %vm12908_vm11, %v12744_v17, %v7062_v61 }
0x139b   :  { %v7179_v21 = vmul.f32 %v12885_v18, %v12782_v50  ;;  %v10233_v17 = vunpack.i.l.bf16 %v12486_v15  ;;  %v7116_v44 = vsel %vm12875_vm5, %v7115_v51, %v7111_v53  ;;  %v7172_v15 = vand.u32 2147483647, %v12721_v31  ;;  %v8690_v53 = vpop.permute.xlu2 %8689 }
0x139c   :  { %8730 = vmatpush.msrb.mxu2 %v10177_v26  ;;  %v10228_v26 = vunpack.i.l.bf16 %v10227_v55  ;;  %vm12896_vm7 = vcmp.eq.f32.partialorder %v7067_v54, 8.507059e+37  ;;  %v7174_v54 = vand.u32 2147483648, %v12721_v31  ;;  %v7122_v4 = vadd.f32 %v12804_v40, %v7121_v39 }
0x139d   :  { %v6023_v1 = vpop.trf.xlu1  ;;  %v7071_v35 = vsel %vm12896_vm7, %v7070_v30, %v7066_v16  ;;  %v7161_v9 = vsel %vm7158_vm15, %v7160_v37, %v7156_v7  ;;  %v7180_v55 = vsub.f32 1.0, %v7179_v21  ;;  %vm7123_vm5 = vweird.f32 %v12562_v8 }
0x139e   :  { %8731 = vmatpush.msrb.mxu2 %v10223_v32  ;;  %10045 = vmatpush.xpose.msk.msra.mxu0 %vm1447_vm6, %v6023_v1  ;;  %v7117_v32 = vmul.f32 %v12423_v0, %v7116_v44  ;;  %v7072_v31 = vmul.f32 %v12425_v42, %v7071_v35  ;;  %vm7125_vm9 = vmor %vm7123_vm5, %vm7124_vm14  ;;  %v7162_v59 = vmul.f32 %v12438_v28, %v7161_v9  ;;  %v7175_v33 = vor.u32 1.1754944e-38, %v7174_v54 }
0x139f   :  { %v6054_v60 = vpop.trf.xlu0  ;;  %v7126_v0 = vsel %vm7125_vm9, %v12804_v40, %v7122_v4  ;;  %vm7173_vm3 = vcmp.eq.f32.partialorder %v7172_v15, 8.507059e+37  ;;  %v7181_v8 = vmul.f32 %v12885_v18, %v7180_v55  ;;  %vm7128_vm7 = vcmp.eq.f32.partialorder %v7127_v3, 8.507059e+37 }
0x13a0   :  { %8732 = vmatpush.msrb.mxu2 %v10224_v36  ;;  %10059 = vmatpush.xpose.msk.msrb.mxu3 %vm1447_vm6, %v6054_v60  ;;  %v7189_v40 = vand.u32 2147483648, %v12782_v50  ;;  %vm7183_vm11 = vweird.f32 %v12782_v50  ;;  %vm7188_vm13 = vcmp.eq.f32.partialorder %v7187_v48, 8.507059e+37 }
0x13a1   :  { %10046 = vmatmul.msk.f32.vlgmr.msra.gmra.mxu0 %vm1447_vm6, %v7057_v12  ;;  %10052 = vmatmul.msk.f32.vlgmr.msra.gmra.mxu3 %vm1447_vm6, %v7102_v11  ;;  %v7182_v36 = vadd.f32 %v12885_v18, %v7181_v8  ;;  %vm7185_vm12 = vmor %vm7183_vm11, %vm7184_vm10 }
0x13a2   :  { %10053 = vmatpush.xpose.msk.msrb.mxu0 %vm1447_vm6, %v12700_v22  ;;  %8733 = vmatpush.msrb.mxu2 %v10228_v26  ;;  %v7166_v22 = vmul.f32 %v12812_v24, %v7165_v5  ;;  %v7190_v5 = vor.u32 1.1754944e-38, %v7189_v40 }
0x13a3   :  { %10058 = vmatmul.msk.f32.vlgmr.msra.gmra.mxu2 %vm1447_vm6, %v7147_v43  ;;  %v7186_v49 = vsel %vm7185_vm12, %v12885_v18, %v7182_v36 }
0x13a4   :  { %8734 = vmatpush.msrb.mxu2 %v10229_v46  ;;  %v7167_v20 = vadd.f32 %v12812_v24, %v7166_v22  ;;  %v7191_v1 = vsel %vm7188_vm13, %v7190_v5, %v7186_v49 }
0x13a5   :  { %v6024_v27 = vpop.trf.xlu1 }
0x13a6   :  { %8735 = vmatpush.msrb.mxu2 %v10233_v17  ;;  %10047 = vmatpush.xpose.msk.msra.mxu1 %vm1447_vm6, %v6024_v27  ;;  %v7171_v42 = vsel %vm12955_vm4, %v12812_v24, %v7167_v20 }
0x13a7   :  { %v6055_v38 = vpop.trf.xlu0  ;;  %v7176_v61 = vsel %vm7173_vm3, %v7175_v33, %v7171_v42 }
0x13a8   :  { %8736 = vmatpush.msrb.mxu2 %v10234_v57  ;;  %10061 = vmatpush.xpose.msk.msra.mxu0 %vm1447_vm6, %v6055_v38  ;;  %v7177_v26 = vmul.f32 %v12444_v6, %v7176_v61 }
0x13a9   :  { %10048 = vmatmul.msk.f32.vlgmr.msra.gmra.mxu1 %vm1447_vm6, %v7072_v31  ;;  %10054 = vmatmul.msk.f32.vlgmr.msrb.gmra.mxu0 %vm1447_vm6, %v7117_v32 }
0x13aa   :  { %10055 = vmatpush.xpose.msk.msrb.mxu1 %vm1447_vm6, %v12769_v29  ;;  %v7130_v29 = vor.u32 1.1754944e-38, %v7129_v63  ;;  %10060 = vmatmul.msk.f32.vlgmr.msrb.gmra.mxu3 %vm1447_vm6, %v7162_v59 }
0x13ab   :  { %8737 = vmatpush.msrb.mxu2 %v8690_v53 }
0x13ac   :  { %v7131_v28 = vsel %vm7128_vm7, %v7130_v29, %v7126_v0 }
0x13ad   :  { %v7132_v24 = vmul.f32 %v12436_v52, %v7131_v28  ;;  %v7192_v52 = vmul.f32 %v12457_v23, %v7191_v1 }
0x13af   :  { %v6056_v51 = vpop.trf.xlu0 }
0x13b0   :  { %10063 = vmatpush.xpose.msk.msra.mxu1 %vm1447_vm6, %v6056_v51 }
0x13b1   :  { %10056 = vmatmul.msk.f32.vlgmr.msrb.gmra.mxu1 %vm1447_vm6, %v7132_v24  ;;  %10062 = vmatmul.msk.f32.vlgmr.msra.gmra.mxu0 %vm1447_vm6, %v7177_v26  ;;  %v12997_v26 = vld [vmem:[%s13583_s4 + $0x10] sm:$0xff] }
0x13b2   :  { %v8751_v48 = vperm.slane %v12997_v26, 5 }
0x13b9   :  { %10064 = vmatmul.msk.f32.vlgmr.msra.gmra.mxu1 %vm1447_vm6, %v7192_v52 }
0x13be   :  { %v7216_v6 = vpop.f32.mrf.mxu2 }
0x13bf   :  { %7817 = vxpose.xlu2.b32.start.end [1/1] (short) (narrow) %v7216_v6, 8 }
0x13c6   :  { %v7242_v50 = vpop.f32.mrf.mxu3 }
0x13c7   :  { %7849 = vxpose.xlu2.b32.start.end [1/1] (short) (narrow) %v7242_v50, 8 }
0x13c8   :  { %v7268_v11 = vpop.f32.mrf.mxu0 }
0x13c9   :  { %7881 = vxpose.xlu0.b32.start.end [1/1] (short) (narrow) %v7268_v11, 8 }
0x13d0   :  { %v7294_v10 = vpop.f32.mrf.mxu1 }
0x13d1   :  { %7913 = vxpose.xlu0.b32.start.end [1/1] (short) (narrow) %v7294_v10, 8 }
0x13de   :  { %v7320_v18 = vpop.f32.mrf.mxu2 }
0x13df   :  { %7945 = vxpose.xlu1.b32.start.end [1/1] (short) (narrow) %v7320_v18, 8 }
0x13e6   :  { %v7346_v47 = vpop.f32.mrf.mxu3 }
0x13e8   :  { %v7372_v19 = vpop.f32.mrf.mxu0 }
0x13e9   :  { %8009 = vxpose.xlu1.b32.start.end [1/1] (short) (narrow) %v7372_v19, 8 }
0x13f0   :  { %v7398_v12 = vpop.f32.mrf.mxu1 }
0x13f1   :  { %7977 = vxpose.xlu1.b32.start.end [1/1] (short) (narrow) %v7346_v47, 8  ;;  %8041 = vxpose.xlu0.b32.start.end [1/1] (short) (narrow) %v7398_v12, 8 }
0x13f4   :  { %v7424_v58 = vpop.f32.mrf.mxu2 }
0x13f9   :  { %8073 = vxpose.xlu0.b32.start.end [1/1] (short) (narrow) %v7424_v58, 8 }
0x13fc   :  { %v7450_v23 = vpop.f32.mrf.mxu3 }
0x13fd   :  { %8105 = vxpose.xlu2.b32.start.end [1/1] (short) (narrow) %v7450_v23, 8 }
0x13fe   :  { %v7476_v62 = vpop.f32.mrf.mxu0 }
0x13ff   :  { %8137 = vxpose.xlu1.b32.start.end [1/1] (short) (narrow) %v7476_v62, 8 }
0x1406   :  { %v7502_v34 = vpop.f32.mrf.mxu1 }
0x1407   :  { %8169 = vxpose.xlu1.b32.start.end [1/1] (short) (narrow) %v7502_v34, 8 }
0x1414   :  { %v7528_v46 = vpop.f32.mrf.mxu2 }
0x1415   :  { %8201 = vxpose.xlu1.b32.start.end [1/1] (short) (narrow) %v7528_v46, 8 }
0x141c   :  { %v7632_v60 = vpop.f32.mrf.mxu2  ;;  %v7554_v16 = vpop.f32.mrf.mxu3 }
0x141d   :  { %8329 = vxpose.xlu0.b32.start.end [1/1] (short) (narrow) %v7632_v60, 8 }
0x141e   :  { %v7580_v43 = vpop.f32.mrf.mxu0 }
0x141f   :  { %8265 = vxpose.xlu2.b32.start.end [1/1] (short) (narrow) %v7580_v43, 8 }
0x1424   :  { %v7658_v45 = vpop.f32.mrf.mxu3 }
0x1425   :  { %8233 = vxpose.xlu0.b32.start.end [1/1] (short) (narrow) %v7554_v16, 8 }
0x1426   :  { %v7684_v30 = vpop.f32.mrf.mxu0  ;;  %v7606_v39 = vpop.f32.mrf.mxu1 }
0x1427   :  { %8393 = vxpose.xlu1.b32.start.end [1/1] (short) (narrow) %v7684_v30, 8  ;;  %v7736_v22 = vpop.f32.mrf.mxu2 }
0x142d   :  { %8457 = vxpose.xlu0.b32.start.end [1/1] (short) (narrow) %v7736_v22, 8  ;;  %v7762_v57 = vpop.f32.mrf.mxu3 }
0x142e   :  { %v7710_v21 = vpop.f32.mrf.mxu1  ;;  %v7788_v7 = vpop.f32.mrf.mxu0 }
0x142f   :  { %8297 = vxpose.xlu1.b32.start.end [1/1] (short) (narrow) %v7606_v39, 8 }
0x1435   :  { %8489 = vxpose.xlu0.b32.start.end [1/1] (short) (narrow) %v7762_v57, 8 }
0x1436   :  { %v7814_v17 = vpop.f32.mrf.mxu1 }
0x1437   :  { %8361 = vxpose.xlu1.b32.start.end [1/1] (short) (narrow) %v7658_v45, 8 }
0x143d   :  { %8553 = vxpose.xlu0.b32.start.end [1/1] (short) (narrow) %v7814_v17, 8 }
0x143f   :  { %8425 = vxpose.xlu1.b32.start.end [1/1] (short) (narrow) %v7710_v21, 8 }
0x1447   :  { %8521 = vxpose.xlu1.b32.start.end [1/1] (short) (narrow) %v7788_v7, 8 }
0x1458   :  { %v7833_v37 = vpop.trf.xlu2 }
0x1459   :  { %8585 = vxpose.xlu1.b32.start [1/8] (short) (narrow) %v7833_v37, 8 }
0x1460   :  { %v7865_v44 = vpop.trf.xlu2 }
0x1461   :  { %8586 = vxpose.xlu1.b32.cont [2/8] (short) (narrow) %v7865_v44, 8 }
0x146d   :  { %v7897_v35 = vpop.trf.xlu0 }
0x146e   :  { %8587 = vxpose.xlu1.b32.cont [3/8] (short) (narrow) %v7897_v35, 8 }
0x1475   :  { %v7929_v15 = vpop.trf.xlu0 }
0x1476   :  { %8588 = vxpose.xlu1.b32.cont [4/8] (short) (narrow) %v7929_v15, 8 }
0x1483   :  { %v7961_v54 = vpop.trf.xlu1 }
0x1484   :  { %8589 = vxpose.xlu1.b32.cont [5/8] (short) (narrow) %v7961_v54, 8 }
0x148d   :  { %v8025_v4 = vpop.trf.xlu1 }
0x1495   :  { %v7993_v9 = vpop.trf.xlu1  ;;  %v8057_v20 = vpop.trf.xlu0 }
0x1496   :  { %8590 = vxpose.xlu1.b32.cont [6/8] (short) (narrow) %v7993_v9, 8  ;;  %v8121_v27 = vpop.trf.xlu2 }
0x149d   :  { %v8089_v55 = vpop.trf.xlu0 }
0x149e   :  { %8591 = vxpose.xlu1.b32.cont [7/8] (short) (narrow) %v8025_v4, 8  ;;  %8617 = vxpose.xlu0.b32.start [1/8] (short) (narrow) %v8089_v55, 8 }
0x14a3   :  { %v8153_v63 = vpop.trf.xlu1 }
0x14a6   :  { %8592 = vxpose.xlu1.b32.end [8/8] (short) (narrow) %v8057_v20, 8  ;;  %8618 = vxpose.xlu0.b32.cont [2/8] (short) (narrow) %v8121_v27, 8 }
0x14ab   :  { %v8185_v13 = vpop.trf.xlu1 }
0x14ae   :  { %8619 = vxpose.xlu0.b32.cont [3/8] (short) (narrow) %v8153_v63, 8 }
0x14b6   :  { %8620 = vxpose.xlu0.b32.cont [4/8] (short) (narrow) %v8185_v13, 8 }
0x14b8   :  { %v8281_v59 = vpop.trf.xlu2 }
0x14b9   :  { %v8217_v32 = vpop.trf.xlu1 }
0x14be   :  { %8621 = vxpose.xlu0.b32.cont [5/8] (short) (narrow) %v8217_v32, 8 }
0x14c1   :  { %v8345_v31 = vpop.trf.xlu0 }
0x14c2   :  { %8649 = vxpose.xlu2.b32.start [1/8] (short) (narrow) %v8345_v31, 8 }
0x14c9   :  { %v8249_v3 = vpop.trf.xlu0 }
0x14ca   :  { %8622 = vxpose.xlu0.b32.cont [6/8] (short) (narrow) %v8249_v3, 8 }
0x14cb   :  { %v8409_v38 = vpop.trf.xlu1 }
0x14d1   :  { %v8473_v8 = vpop.trf.xlu0 }
0x14d2   :  { %8623 = vxpose.xlu0.b32.cont [7/8] (short) (narrow) %v8281_v59, 8 }
0x14d3   :  { %v8313_v33 = vpop.trf.xlu1 }
0x14d9   :  { %v8505_v29 = vpop.trf.xlu0 }
0x14da   :  { %8624 = vxpose.xlu0.b32.end [8/8] (short) (narrow) %v8313_v33, 8 }
0x14db   :  { %v8377_v0 = vpop.trf.xlu1 }
0x14dc   :  { %8650 = vxpose.xlu2.b32.cont [2/8] (short) (narrow) %v8377_v0, 8 }
0x14e1   :  { %v8569_v61 = vpop.trf.xlu0 }
0x14e3   :  { %v8441_v42 = vpop.trf.xlu1 }
0x14e4   :  { %8651 = vxpose.xlu2.b32.cont [3/8] (short) (narrow) %v8409_v38, 8 }
0x14eb   :  { %v8537_v28 = vpop.trf.xlu1 }
0x14ec   :  { %8652 = vxpose.xlu2.b32.cont [4/8] (short) (narrow) %v8441_v42, 8 }
0x14f4   :  { %8653 = vxpose.xlu2.b32.cont [5/8] (short) (narrow) %v8473_v8, 8 }
0x14fc   :  { %8654 = vxpose.xlu2.b32.cont [6/8] (short) (narrow) %v8505_v29, 8 }
0x1504   :  { %8655 = vxpose.xlu2.b32.cont [7/8] (short) (narrow) %v8537_v28, 8  ;;  %v9953_v28 = vld [vmem:[%s13581_s2 + $0x1f0] sm:$0xff] }
0x1505   :  { %8941 = vmatpush.msra.mxu3 %v9953_v28 }
0x150c   :  { %8656 = vxpose.xlu2.b32.end [8/8] (short) (narrow) %v8569_v61, 8  ;;  %v9954_v61 = vld [vmem:[%s13581_s2 + $0x1f8] sm:$0xff] }
0x150d   :  { %8967 = vmatpush.msrb.mxu0 %v9954_v61 }
0x1512   :  { %v8601_v36 = vpop.trf.xlu1 }
0x1513   :  { %10065 = vmatmul.msk.f32.vlgmr.msrb.gmra.mxu2 %vm314_vm8, %v8601_v36  ;;  %v9949_v36 = vld [vmem:[%s13581_s2 + $0x1d0] sm:$0xff] }
0x1514   :  { %8942 = vmatpush.msra.mxu3 %v9949_v36 }
0x1546   :  { %v8633_v40 = vpop.trf.xlu0 }
0x1547   :  { %10066 = vmatmul.msk.f32.gmra.mxu2 %vm314_vm8, %v8633_v40  ;;  %v9950_v40 = vld [vmem:[%s13581_s2 + $0x1d8] sm:$0xff] }
0x1548   :  { %8968 = vmatpush.msrb.mxu0 %v9950_v40 }
0x156d   :  { %v8665_v24 = vpop.trf.xlu2 }
0x156e   :  { %10067 = vmatmul.msk.f32.gmra.mxu2 %vm314_vm8, %v8665_v24 }
0x1596   :  { %v8739_v51 = vpop.f32.mrf.mxu2 }
0x1597   :  { %v8748_v49 = vadd.f32 %v8739_v51, %v11904_v41  ;;  %v9946_v51 = vld [vmem:[%s13581_s2 + $0x1b8] sm:$0xff] }
0x1598   :  { %8969 = vmatpush.msrb.mxu0 %v9946_v51 }
0x1599   :  { %v13001_v5 = vadd.f32 %v8751_v48, %v8748_v49  ;;  %v9941_v49 = vld [vmem:[%s13581_s2 + $0x190] sm:$0xff] }
0x159b   :  { %8824 = vrot.lane.b32.xlu1 %v13001_v5, %s10657_s23 }
0x15ca   :  { %v8742_v1 = vpop.f32.mrf.mxu2 }
0x15cb   :  { %v8749_v52 = vadd.f32 %v8742_v1, %v11911_v25  ;;  %v8755_v25 = vsel %vm137_vm0, %v13001_v5, 0.0  ;;  %v9942_v1 = vld [vmem:[%s13581_s2 + $0x198] sm:$0xff] }
0x15cc   :  { %8970 = vmatpush.msrb.mxu0 %v9942_v1 }
0x15cd   :  { %v13006_v6 = vadd.f32 %v8751_v48, %v8749_v52  ;;  %v9937_v52 = vld [vmem:[%s13581_s2 + $0x170] sm:$0xff] }
0x15cf   :  { %8826 = vrot.lane.b32.xlu0 %v13006_v6, %s10657_s23 }
0x15f1   :  { %v8745_v50 = vpop.f32.mrf.mxu2 }
0x15f2   :  { %v8750_v11 = vadd.f32 %v8745_v50, %v11916_v2  ;;  %v8758_v2 = vsel %vm137_vm0, %v13006_v6, 0.0 }
0x15f4   :  { %v13011_v10 = vadd.f32 %v8751_v48, %v8750_v11  ;;  %v9945_v48 = vld [vmem:[%s13581_s2 + $0x1b0] sm:$0xff] }
0x15f5   :  { %8943 = vmatpush.msra.mxu3 %v9945_v48 }
0x15f6   :  { %8828 = vrot.lane.b32.xlu2 %v13011_v10, %s10657_s23  ;;  %v8761_v23 = vsel %vm137_vm0, %v13011_v10, 0.0 }
0x15f7   :  { %8944 = vmatpush.msra.mxu3 %v9941_v49 }
0x15f9   :  { %8945 = vmatpush.msra.mxu3 %v9937_v52 }
0x160d   :  { %v8825_v41 = vpop.permute.xlu1 %8824 }
0x160e   :  { %v8833_v18 = vsel %vm137_vm0, %v8825_v41, 0.0  ;;  %v9938_v41 = vld [vmem:[%s13581_s2 + $0x178] sm:$0xff] }
0x160f   :  { %8834 = vadd.xlane.f32.xlu1 %v8833_v18  ;;  %8971 = vmatpush.msrb.mxu0 %v9938_v41 }
0x1617   :  { %8756 = vadd.xlane.f32.xlu1 %v8755_v25  ;;  %v9933_v25 = vld [vmem:[%s13581_s2 + $0x150] sm:$0xff] }
0x1618   :  { %8946 = vmatpush.msra.mxu3 %v9933_v25 }
0x1641   :  { %v8827_v19 = vpop.permute.xlu0 %8826 }
0x1642   :  { %v8836_v47 = vsel %vm137_vm0, %v8827_v19, 0.0  ;;  %v9934_v19 = vld [vmem:[%s13581_s2 + $0x158] sm:$0xff] }
0x1643   :  { %8837 = vadd.xlane.f32.xlu0 %v8836_v47  ;;  %8972 = vmatpush.msrb.mxu0 %v9934_v19 }
0x164b   :  { %8759 = vadd.xlane.f32.xlu0 %v8758_v2  ;;  %v9929_v2 = vld [vmem:[%s13581_s2 + $0x130] sm:$0xff] }
0x164c   :  { %8947 = vmatpush.msra.mxu3 %v9929_v2 }
0x1650   :  { %v8829_v12 = vpop.permute.xlu2 %8828 }
0x1651   :  { %v8839_v58 = vsel %vm137_vm0, %v8829_v12, 0.0  ;;  %v9930_v12 = vld [vmem:[%s13581_s2 + $0x138] sm:$0xff] }
0x1652   :  { %8840 = vadd.xlane.f32.xlu2 %v8839_v58  ;;  %8973 = vmatpush.msrb.mxu0 %v9930_v12 }
0x165a   :  { %8762 = vadd.xlane.f32.xlu2 %v8761_v23  ;;  %v9925_v23 = vld [vmem:[%s13581_s2 + $0x110] sm:$0xff] }
0x165b   :  { %8948 = vmatpush.msra.mxu3 %v9925_v23 }
0x1682   :  { %v8835_v62 = vpop.xlane.xlu1 %8834 }
0x1683   :  { %v8842_v34 = vmul.f32 %v8835_v62, %v10719_v14  ;;  %v9926_v62 = vld [vmem:[%s13581_s2 + $0x118] sm:$0xff] }
0x1684   :  { %8974 = vmatpush.msrb.mxu0 %v9926_v62 }
0x1685   :  { %v13026_v46 = vsub.f32 %v13001_v5, %v8842_v34 }
0x1687   :  { %v8848_v60 = vmul.f32 %v13026_v46, %v13026_v46 }
0x1689   :  { %8854 = vrot.lane.b32.xlu1 %v8848_v60, %s10657_s23 }
0x168a   :  { %v8757_v35 = vpop.xlane.xlu1 %8756 }
0x168b   :  { %v8764_v15 = vmul.f32 %v8757_v35, %v10719_v14 }
0x168d   :  { %v13054_v54 = vsub.f32 %v13001_v5, %v8764_v15 }
0x168f   :  { %v8770_v4 = vmul.f32 %v13054_v54, %v13054_v54 }
0x1691   :  { %v8773_v9 = vsel %vm137_vm0, %v8770_v4, 0.0  ;;  %v13127_v4 = vperm.slane %v12997_v26, 3 }
0x16b6   :  { %v8838_v43 = vpop.xlane.xlu0 %8837 }
0x16b7   :  { %v8843_v53 = vmul.f32 %v8838_v43, %v10719_v14 }
0x16b9   :  { %v13033_v16 = vsub.f32 %v13006_v6, %v8843_v53 }
0x16bb   :  { %v8849_v30 = vmul.f32 %v13033_v16, %v13033_v16 }
0x16bd   :  { %8856 = vrot.lane.b32.xlu1 %v8849_v30, %s10657_s23 }
0x16be   :  { %v8760_v39 = vpop.xlane.xlu0 %8759 }
0x16bf   :  { %v8765_v45 = vmul.f32 %v8760_v39, %v10719_v14 }
0x16c1   :  { %v13040_v22 = vsub.f32 %v13006_v6, %v8765_v45 }
0x16c3   :  { %v8771_v21 = vmul.f32 %v13040_v22, %v13040_v22 }
0x16c5   :  { %v8841_v57 = vpop.xlane.xlu2 %8840  ;;  %v8776_v17 = vsel %vm137_vm0, %v8771_v21, 0.0 }
0x16c6   :  { %v8844_v7 = vmul.f32 %v8841_v57, %v10719_v14  ;;  %8777 = vadd.xlane.f32.xlu2 %v8776_v17 }
0x16c8   :  { %v13047_v37 = vsub.f32 %v13011_v10, %v8844_v7  ;;  %v13122_v7 = vperm.slane %v12997_v26, 2 }
0x16ca   :  { %v8850_v44 = vmul.f32 %v13047_v37, %v13047_v37 }
0x16cc   :  { %8858 = vrot.lane.b32.xlu0 %v8850_v44, %s10657_s23 }
0x16cd   :  { %v8763_v20 = vpop.xlane.xlu2 %8762 }
0x16ce   :  { %v8766_v55 = vmul.f32 %v8763_v20, %v10719_v14 }
0x16d0   :  { %v13061_v63 = vsub.f32 %v13011_v10, %v8766_v55 }
0x16d2   :  { %v8772_v32 = vmul.f32 %v13061_v63, %v13061_v63 }
0x16d4   :  { %v8779_v31 = vsel %vm137_vm0, %v8772_v32, 0.0 }
0x16e7   :  { %8774 = vadd.xlane.f32.xlu1 %v8773_v9 }
0x16fb   :  { %v8855_v27 = vpop.permute.xlu1 %8854 }
0x16fc   :  { %v8863_v13 = vsel %vm137_vm0, %v8855_v27, 0.0 }
0x16fd   :  { %8864 = vadd.xlane.f32.xlu2 %v8863_v13 }
0x1705   :  { %8780 = vadd.xlane.f32.xlu2 %v8779_v31 }
0x172f   :  { %v8857_v3 = vpop.permute.xlu1 %8856 }
0x1730   :  { %v8866_v38 = vsel %vm137_vm0, %v8857_v3, 0.0 }
0x1731   :  { %8867 = vadd.xlane.f32.xlu0 %v8866_v38 }
0x1739   :  { %v13070_v29 = vpop.xlane.xlu2 %8777 }
0x173a   :  { %v8783_v27 = vmul.f32 %v13070_v29, %v10719_v14 }
0x173c   :  { %v8786_v13 = vadd.f32 1e-05, %v8783_v27 }
0x173e   :  { %v8859_v59 = vpop.permute.xlu0 %8858  ;;  %vm8804_vm3 = vweird.f32 %v8786_v13 }
0x173f   :  { %v8869_v33 = vsel %vm137_vm0, %v8859_v59, 0.0 }
0x1740   :  { %8870 = vadd.xlane.f32.xlu2 %v8869_v33 }
0x175a   :  { %v8775_v0 = vpop.xlane.xlu1 %8774 }
0x175b   :  { %v8782_v42 = vmul.f32 %v8775_v0, %v10719_v14 }
0x175d   :  { %v8785_v8 = vadd.f32 1e-05, %v8782_v42 }
0x175f   :  { %10545 = vrsqrt.f32 %v8785_v8  ;;  %vm8794_vm15 = vweird.f32 %v8785_v8 }
0x1765   :  { %v10546_v24 = vpop.eup %10545 }
0x1766   :  { %v8789_v50 = vmul.f32 %v10546_v24, %v8785_v8  ;;  %vm8795_vm14 = vweird.f32 %v10546_v24 }
0x1767   :  { %vm8796_vm2 = vmor %vm8794_vm15, %vm8795_vm14 }
0x1768   :  { %v8790_v58 = vmul.f32 %v10546_v24, %v8789_v50 }
0x176a   :  { %v8791_v34 = vmul.f32 0.5, %v8790_v58 }
0x176c   :  { %v8792_v43 = vsub.f32 1.5, %v8791_v34 }
0x176e   :  { %v8793_v39 = vmul.f32 %v10546_v24, %v8792_v43 }
0x1770   :  { %v8865_v11 = vpop.xlane.xlu2 %8864  ;;  %v8797_v57 = vsel %vm8796_vm2, %v10546_v24, %v8793_v39 }
0x1771   :  { %v8872_v18 = vmul.f32 %v8865_v11, %v10719_v14  ;;  %v8818_v35 = vmul.f32 %v8797_v57, %v13054_v54 }
0x1773   :  { %v8875_v47 = vadd.f32 1e-05, %v8872_v18 }
0x1775   :  { %10547 = vrsqrt.f32 %v8875_v47  ;;  %vm8884_vm4 = vweird.f32 %v8875_v47 }
0x1776   :  { %10549 = vrsqrt.f32 %v8786_v13 }
0x1778   :  { %v8781_v54 = vpop.xlane.xlu2 %8780 }
0x1779   :  { %v8784_v32 = vmul.f32 %v8781_v54, %v10719_v14 }
0x177b   :  { %v10548_v60 = vpop.eup %10547  ;;  %v8787_v59 = vadd.f32 1e-05, %v8784_v32 }
0x177c   :  { %v8879_v53 = vmul.f32 %v10548_v60, %v8875_v47  ;;  %vm8885_vm1 = vweird.f32 %v10548_v60 }
0x177d   :  { %vm8886_vm5 = vmor %vm8884_vm4, %vm8885_vm1  ;;  %vm8814_vm14 = vweird.f32 %v8787_v59 }
0x177e   :  { %v8880_v30 = vmul.f32 %v10548_v60, %v8879_v53 }
0x1780   :  { %v8881_v45 = vmul.f32 0.5, %v8880_v30 }
0x1782   :  { %v8882_v21 = vsub.f32 1.5, %v8881_v45 }
0x1784   :  { %v8883_v17 = vmul.f32 %v10548_v60, %v8882_v21 }
0x1786   :  { %v8887_v44 = vsel %vm8886_vm5, %v10548_v60, %v8883_v17 }
0x1787   :  { %v8908_v15 = vmul.f32 %v8887_v44, %v13026_v46  ;;  %v10550_v46 = vpop.eup %10549  ;;  %v10629_v44 = vld [vmem:[%s13583_s4 + $0x18] sm:$0xff] }
0x1788   :  { %v8799_v31 = vmul.f32 %v10550_v46, %v8786_v13  ;;  %vm8805_vm9 = vweird.f32 %v10550_v46 }
0x1789   :  { %v8911_v9 = vsel %vm137_vm0, %v8818_v35, %v8908_v15  ;;  %vm8806_vm10 = vmor %vm8804_vm3, %vm8805_vm9  ;;  %v13156_v35 = vperm.slane %v10629_v44, 6 }
0x178a   :  { %v8915_v20 = vmul.f32 %v13122_v7, %v8911_v9  ;;  %v8800_v0 = vmul.f32 %v10550_v46, %v8799_v31  ;;  %v9985_v9 = vld [vmem:[%s13582_s3 + $0x1f0] sm:$0xff] }
0x178c   :  { %v8919_v55 = vadd.f32 %v13127_v4, %v8915_v20  ;;  %v8801_v42 = vmul.f32 0.5, %v8800_v0 }
0x178e   :  { %10068 = vmatmul.msk.f32.vlgmr.msra.gmra.mxu3 %vm314_vm8, %v8919_v55  ;;  %10071 = vmatmul.msk.f32.vlgmr.msrb.gmra.mxu0 %vm314_vm8, %v8919_v55  ;;  %v8802_v61 = vsub.f32 1.5, %v8801_v42  ;;  %v9984_v55 = vld [vmem:[%s13582_s3 + $0x1e8] sm:$0xff] }
0x1790   :  { %v8803_v48 = vmul.f32 %v10550_v46, %v8802_v61 }
0x1792   :  { %v8807_v11 = vsel %vm8806_vm10, %v10550_v46, %v8803_v48  ;;  %v9983_v46 = vld [vmem:[%s13582_s3 + $0x1e0] sm:$0xff] }
0x1793   :  { %v8819_v25 = vmul.f32 %v8807_v11, %v13040_v22 }
0x17a4   :  { %v8868_v3 = vpop.xlane.xlu0 %8867 }
0x17a5   :  { %v8873_v38 = vmul.f32 %v8868_v3, %v10719_v14 }
0x17a7   :  { %v8876_v33 = vadd.f32 1e-05, %v8873_v38  ;;  %v9969_v38 = vld [vmem:[%s13582_s3 + $0x170] sm:$0xff] }
0x17a9   :  { %10551 = vrsqrt.f32 %v8876_v33  ;;  %vm8894_vm11 = vweird.f32 %v8876_v33 }
0x17aa   :  { %10553 = vrsqrt.f32 %v8787_v59 }
0x17af   :  { %v10552_v8 = vpop.eup %10551 }
0x17b0   :  { %v10554_v28 = vpop.eup %10553  ;;  %v8889_v29 = vmul.f32 %v10552_v8, %v8876_v33  ;;  %vm8895_vm7 = vweird.f32 %v10552_v8 }
0x17b1   :  { %v8809_v40 = vmul.f32 %v10554_v28, %v8787_v59  ;;  %vm8896_vm12 = vmor %vm8894_vm11, %vm8895_vm7  ;;  %vm8815_vm13 = vweird.f32 %v10554_v28  ;;  %v9982_v59 = vld [vmem:[%s13582_s3 + $0x1d8] sm:$0xff] }
0x17b2   :  { %v8890_v36 = vmul.f32 %v10552_v8, %v8889_v29  ;;  %vm8816_vm1 = vmor %vm8814_vm14, %vm8815_vm13 }
0x17b3   :  { %v8871_v24 = vpop.xlane.xlu2 %8870  ;;  %v8810_v50 = vmul.f32 %v10554_v28, %v8809_v40  ;;  %v9967_v40 = vld [vmem:[%s13582_s3 + $0x160] sm:$0xff] }
0x17b4   :  { %v8891_v51 = vmul.f32 0.5, %v8890_v36  ;;  %v8874_v49 = vmul.f32 %v8871_v24, %v10719_v14  ;;  %v9980_v24 = vld [vmem:[%s13582_s3 + $0x1c8] sm:$0xff] }
0x17b5   :  { %v8811_v19 = vmul.f32 0.5, %v8810_v50  ;;  %v9979_v50 = vld [vmem:[%s13582_s3 + $0x1c0] sm:$0xff] }
0x17b6   :  { %v8892_v1 = vsub.f32 1.5, %v8891_v51  ;;  %v8877_v52 = vadd.f32 1e-05, %v8874_v49 }
0x17b7   :  { %v8812_v58 = vsub.f32 1.5, %v8811_v19 }
0x17b8   :  { %v8893_v41 = vmul.f32 %v10552_v8, %v8892_v1  ;;  %10555 = vrsqrt.f32 %v8877_v52  ;;  %vm8904_vm2 = vweird.f32 %v8877_v52 }
0x17b9   :  { %v8813_v60 = vmul.f32 %v10554_v28, %v8812_v58 }
0x17ba   :  { %v8897_v18 = vsel %vm8896_vm12, %v10552_v8, %v8893_v41  ;;  %v9968_v8 = vld [vmem:[%s13582_s3 + $0x168] sm:$0xff] }
0x17bb   :  { %v8909_v47 = vmul.f32 %v8897_v18, %v13033_v16  ;;  %v8817_v16 = vsel %vm8816_vm1, %v10554_v28, %v8813_v60  ;;  %v9981_v28 = vld [vmem:[%s13582_s3 + $0x1d0] sm:$0xff]  ;;  %v9976_v60 = vld [vmem:[%s13582_s3 + $0x1a8] sm:$0xff] }
0x17bc   :  { %v8820_v39 = vmul.f32 %v8817_v16, %v13061_v63  ;;  %v9965_v18 = vld [vmem:[%s13582_s3 + $0x150] sm:$0xff] }
0x17bd   :  { %v8912_v2 = vsel %vm137_vm0, %v8819_v25, %v8909_v47  ;;  %v9978_v25 = vld [vmem:[%s13582_s3 + $0x1b8] sm:$0xff] }
0x17be   :  { %v10556_v14 = vpop.eup %10555  ;;  %v8916_v12 = vmul.f32 %v13122_v7, %v8912_v2 }
0x17bf   :  { %v8899_v23 = vmul.f32 %v10556_v14, %v8877_v52  ;;  %vm8905_vm15 = vweird.f32 %v10556_v14  ;;  %v9966_v52 = vld [vmem:[%s13582_s3 + $0x158] sm:$0xff] }
0x17c0   :  { %v8920_v62 = vadd.f32 %v13127_v4, %v8916_v12  ;;  %vm8906_vm4 = vmor %vm8904_vm2, %vm8905_vm15  ;;  %v9977_v12 = vld [vmem:[%s13582_s3 + $0x1b0] sm:$0xff] }
0x17c1   :  { %v8900_v34 = vmul.f32 %v10556_v14, %v8899_v23 }
0x17c2   :  { %10069 = vmatmul.msk.f32.gmra.mxu3 %vm314_vm8, %v8920_v62  ;;  %10072 = vmatmul.msk.f32.gmra.mxu0 %vm314_vm8, %v8920_v62 }
0x17c3   :  { %v8901_v22 = vmul.f32 0.5, %v8900_v34  ;;  %v9963_v34 = vld [vmem:[%s13582_s3 + $0x140] sm:$0xff] }
0x17c5   :  { %v8902_v43 = vsub.f32 1.5, %v8901_v22 }
0x17c7   :  { %v8903_v53 = vmul.f32 %v10556_v14, %v8902_v43 }
0x17c9   :  { %v8907_v30 = vsel %vm8906_vm4, %v10556_v14, %v8903_v53  ;;  %v9964_v14 = vld [vmem:[%s13582_s3 + $0x148] sm:$0xff]  ;;  %v9962_v53 = vld [vmem:[%s13582_s3 + $0x138] sm:$0xff] }
0x17ca   :  { %v8910_v45 = vmul.f32 %v8907_v30, %v13047_v37  ;;  %v9986_v37 = vld [vmem:[%s13582_s3 + $0x1f8] sm:$0xff]  ;;  %v9975_v30 = vld [vmem:[%s13582_s3 + $0x1a0] sm:$0xff] }
0x17cb   :  { %9275 = vmatpush.msra.mxu2 %v9986_v37 }
0x17cc   :  { %v8913_v21 = vsel %vm137_vm0, %v8820_v39, %v8910_v45 }
0x17cd   :  { %v8917_v57 = vmul.f32 %v13122_v7, %v8913_v21  ;;  %9276 = vmatpush.msra.mxu2 %v9985_v9  ;;  %v9960_v9 = vld [vmem:[%s13582_s3 + $0x128] sm:$0xff] }
0x17cf   :  { %v8921_v17 = vadd.f32 %v13127_v4, %v8917_v57  ;;  %v13169_v4 = vperm.slane %v12997_v26, 6  ;;  %9277 = vmatpush.msra.mxu2 %v9984_v55  ;;  %v9970_v26 = vld [vmem:[%s13582_s3 + $0x178] sm:$0xff]  ;;  %v9961_v57 = vld [vmem:[%s13582_s3 + $0x130] sm:$0xff] }
0x17d0   :  { %9249 = vmatpush.msrb.mxu1 %v9970_v26  ;;  %v9959_v26 = vld [vmem:[%s13582_s3 + $0x120] sm:$0xff] }
0x17d1   :  { %10070 = vmatmul.msk.f32.gmra.mxu3 %vm314_vm8, %v8921_v17  ;;  %10073 = vmatmul.msk.f32.gmra.mxu0 %vm314_vm8, %v8921_v17  ;;  %v9974_v17 = vld [vmem:[%s13582_s3 + $0x198] sm:$0xff] }
0x17d2   :  { %9278 = vmatpush.msra.mxu2 %v9983_v46  ;;  %9250 = vmatpush.msrb.mxu1 %v9969_v38  ;;  %v9972_v46 = vld [vmem:[%s13582_s3 + $0x188] sm:$0xff]  ;;  %v9958_v38 = vld [vmem:[%s13582_s3 + $0x118] sm:$0xff] }
0x17d4   :  { %9279 = vmatpush.msra.mxu2 %v9982_v59  ;;  %9251 = vmatpush.msrb.mxu1 %v9968_v8  ;;  %v9971_v59 = vld [vmem:[%s13582_s3 + $0x180] sm:$0xff] }
0x17d6   :  { %9280 = vmatpush.msra.mxu2 %v9981_v28  ;;  %9252 = vmatpush.msrb.mxu1 %v9967_v40 }
0x17d8   :  { %9281 = vmatpush.msra.mxu2 %v9980_v24  ;;  %9253 = vmatpush.msrb.mxu1 %v9966_v52 }
0x17da   :  { %9282 = vmatpush.msra.mxu2 %v9979_v50  ;;  %9254 = vmatpush.msrb.mxu1 %v9965_v18 }
0x17dc   :  { %9283 = vmatpush.msra.mxu2 %v9978_v25  ;;  %9255 = vmatpush.msrb.mxu1 %v9964_v14 }
0x17de   :  { %9284 = vmatpush.msra.mxu2 %v9977_v12  ;;  %9256 = vmatpush.msrb.mxu1 %v9963_v34 }
0x17e0   :  { %9285 = vmatpush.msra.mxu2 %v9976_v60  ;;  %9257 = vmatpush.msrb.mxu1 %v9962_v53 }
0x17e2   :  { %9286 = vmatpush.msra.mxu2 %v9975_v30  ;;  %9258 = vmatpush.msrb.mxu1 %v9961_v57 }
0x17e4   :  { %9287 = vmatpush.msra.mxu2 %v9974_v17  ;;  %9259 = vmatpush.msrb.mxu1 %v9960_v9 }
0x17e6   :  { %9260 = vmatpush.msrb.mxu1 %v9959_v26 }
0x17e8   :  { %9261 = vmatpush.msrb.mxu1 %v9958_v38 }
0x180b   :  { %v8976_v15 = vpop.f32.mrf.mxu0 }
0x180c   :  { %v13159_v63 = vadd.f32 %v8976_v15, %v13156_v35 }
0x180e   :  { %v13166_v7 = vmul.f32 %v13159_v63, %v11643_v56 }
0x1810   :  { %v9037_v20 = vmul.f32 %v13166_v7, %v13166_v7 }
0x1811   :  { %v8950_v27 = vpop.f32.mrf.mxu3 }
0x1812   :  { %v13179_v13 = vmin.f32 %v9037_v20, 16.0  ;;  %v13182_v54 = vadd.f32 %v8950_v27, %v13169_v4  ;;  %v9973_v20 = vld [vmem:[%s13582_s3 + $0x190] sm:$0xff] }
0x1813   :  { %9288 = vmatpush.msra.mxu2 %v9973_v20 }
0x1814   :  { %v9039_v32 = vmul.f32 2.1237322e-06, %v13179_v13  ;;  %v9050_v31 = vmul.f32 3.8918573e-05, %v13179_v13  ;;  %v13194_v3 = vmul.f32 %v13182_v54, %v11643_v56 }
0x1815   :  { %9289 = vmatpush.msra.mxu2 %v9972_v46 }
0x1816   :  { %v9040_v33 = vadd.f32 0.00028619796, %v9039_v32  ;;  %v9051_v0 = vadd.f32 0.001143296, %v9050_v31  ;;  %v8997_v42 = vmul.f32 %v13194_v3, %v13194_v3 }
0x1817   :  { %9290 = vmatpush.msra.mxu2 %v9971_v59 }
0x1818   :  { %v9041_v61 = vmul.f32 %v9040_v33, %v13179_v13  ;;  %v9052_v29 = vmul.f32 %v9051_v0, %v13179_v13  ;;  %v13212_v36 = vmin.f32 %v8997_v42, 16.0  ;;  %v9957_v42 = vld [vmem:[%s13582_s3 + $0x110] sm:$0xff] }
0x1819   :  { %9262 = vmatpush.msrb.mxu1 %v9957_v42 }
0x181a   :  { %v9053_v48 = vadd.f32 0.014752088, %v9052_v29  ;;  %v8999_v51 = vmul.f32 2.1237322e-06, %v13212_v36  ;;  %v9042_v49 = vadd.f32 0.0036580483, %v9041_v61 }
0x181b   :  { %v9010_v1 = vmul.f32 3.8918573e-05, %v13212_v36  ;;  %v9956_v29 = vld [vmem:[%s13582_s3 + $0x108] sm:$0xff] }
0x181c   :  { %v9054_v11 = vmul.f32 %v9053_v48, %v13179_v13  ;;  %v9000_v41 = vadd.f32 0.00028619796, %v8999_v51  ;;  %v9043_v58 = vmul.f32 %v9042_v49, %v13179_v13  ;;  %9263 = vmatpush.msrb.mxu1 %v9956_v29  ;;  %v9955_v48 = vld [vmem:[%s13582_s3 + $0x100] sm:$0xff] }
0x181d   :  { %v9011_v19 = vadd.f32 0.001143296, %v9010_v1 }
0x181e   :  { %v9055_v47 = vadd.f32 0.112945676, %v9054_v11  ;;  %v9001_v2 = vmul.f32 %v9000_v41, %v13212_v36  ;;  %v9044_v39 = vadd.f32 0.05243302, %v9043_v58  ;;  %9264 = vmatpush.msrb.mxu1 %v9955_v48 }
0x181f   :  { %v9012_v23 = vmul.f32 %v9011_v19, %v13212_v36 }
0x1820   :  { %v9056_v62 = vmul.f32 %v9055_v47, %v13179_v13  ;;  %v9002_v16 = vadd.f32 0.0036580483, %v9001_v2  ;;  %v9045_v55 = vmul.f32 %v9044_v39, %v13179_v13 }
0x1821   :  { %v9013_v22 = vadd.f32 0.014752088, %v9012_v23 }
0x1822   :  { %v9057_v43 = vadd.f32 0.4994258, %v9056_v62  ;;  %v9003_v37 = vmul.f32 %v9002_v16, %v13212_v36  ;;  %v9046_v33 = vadd.f32 0.18741608, %v9045_v55  ;;  %v8986_v16 = vmul.f32 0.5, %v13159_v63 }
0x1823   :  { %v9014_v45 = vmul.f32 %v9013_v22, %v13212_v36  ;;  %v8985_v63 = vmul.f32 0.5, %v13182_v54 }
0x1824   :  { %v9058_v21 = vmul.f32 %v9057_v43, %v13179_v13  ;;  %v9004_v31 = vadd.f32 0.05243302, %v9003_v37  ;;  %v9047_v40 = vmul.f32 %v9046_v33, %v13179_v13 }
0x1825   :  { %v9015_v44 = vadd.f32 0.112945676, %v9014_v45 }
0x1826   :  { %v9059_v15 = vadd.f32 1.0, %v9058_v21  ;;  %v9005_v61 = vmul.f32 %v9004_v31, %v13212_v36  ;;  %v9048_v52 = vadd.f32 1.1283791, %v9047_v40 }
0x1827   :  { %v9016_v27 = vmul.f32 %v9015_v44, %v13212_v36 }
0x1828   :  { %10557 = vrcp.f32 %v9059_v15  ;;  %v9071_v49 = vand.u32 2147483648, %v9059_v15  ;;  %v9006_v1 = vadd.f32 0.18741608, %v9005_v61  ;;  %v9069_v11 = vand.u32 2147483647, %v9059_v15 }
0x1829   :  { %v9017_v32 = vadd.f32 0.4994258, %v9016_v27  ;;  %vm9065_vm9 = vweird.f32 %v9059_v15  ;;  %v9049_v47 = vmul.f32 %v9048_v52, %v13166_v7 }
0x182a   :  { %v9072_v13 = vor.u32 1.1754944e-38, %v9071_v49  ;;  %v9007_v25 = vmul.f32 %v9006_v1, %v13212_v36  ;;  %vm9070_vm7 = vcmp.eq.f32.partialorder %v9069_v11, 8.507059e+37 }
0x182b   :  { %v9018_v0 = vmul.f32 %v9017_v32, %v13212_v36 }
0x182c   :  { %v9008_v62 = vadd.f32 1.1283791, %v9007_v25 }
0x182d   :  { %v9019_v8 = vadd.f32 1.0, %v9018_v0 }
0x182e   :  { %v10558_v28 = vpop.eup %10557  ;;  %v9009_v7 = vmul.f32 %v9008_v62, %v13194_v3 }
0x182f   :  { %v9061_v24 = vmul.f32 %v10558_v28, %v9059_v15  ;;  %10559 = vrcp.f32 %v9019_v8  ;;  %vm9066_vm5 = vweird.f32 %v10558_v28  ;;  %v9031_v23 = vand.u32 2147483648, %v9019_v8 }
0x1830   :  { %vm9067_vm3 = vmor %vm9065_vm9, %vm9066_vm5  ;;  %v9029_v60 = vand.u32 2147483647, %v9019_v8  ;;  %vm9025_vm11 = vweird.f32 %v9019_v8 }
0x1831   :  { %v9062_v51 = vsub.f32 1.0, %v9061_v24  ;;  %v9032_v36 = vor.u32 1.1754944e-38, %v9031_v23 }
0x1832   :  { %vm9030_vm13 = vcmp.eq.f32.partialorder %v9029_v60, 8.507059e+37 }
0x1833   :  { %v9063_v50 = vmul.f32 %v10558_v28, %v9062_v51 }
0x1835   :  { %v10560_v41 = vpop.eup %10559  ;;  %v9064_v18 = vadd.f32 %v10558_v28, %v9063_v50 }
0x1836   :  { %v9021_v19 = vmul.f32 %v10560_v41, %v9019_v8  ;;  %vm9026_vm10 = vweird.f32 %v10560_v41 }
0x1837   :  { %v9068_v2 = vsel %vm9067_vm3, %v10558_v28, %v9064_v18  ;;  %vm9027_vm12 = vmor %vm9025_vm11, %vm9026_vm10 }
0x1838   :  { %v9073_v14 = vsel %vm9070_vm7, %v9072_v13, %v9068_v2  ;;  %v9022_v12 = vsub.f32 1.0, %v9021_v19 }
0x1839   :  { %v9074_v58 = vmul.f32 %v9073_v14, %v9049_v47 }
0x183a   :  { %v9023_v34 = vmul.f32 %v10560_v41, %v9022_v12 }
0x183b   :  { %v10075_v22 = vclamps-f32 %v9074_v58, 1.0 }
0x183c   :  { %v9024_v43 = vadd.f32 %v10560_v41, %v9023_v34 }
0x183d   :  { %v9238_v53 = vadd.f32 1.0, %v10075_v22 }
0x183e   :  { %v9028_v30 = vsel %vm9027_vm12, %v10560_v41, %v9024_v43 }
0x183f   :  { %v9244_v39 = vmul.f32 %v9238_v53, %v8986_v16  ;;  %v9033_v45 = vsel %vm9030_vm13, %v9032_v36, %v9028_v30  ;;  %v8979_v21 = vpop.f32.mrf.mxu0 }
0x1840   :  { %v9034_v57 = vmul.f32 %v9033_v45, %v9009_v7  ;;  %v13303_v17 = vadd.f32 %v8979_v21, %v13156_v35 }
0x1841   :  { %9291 = vmatmul.f32.vlgmr.msra.gmra.mxu2 %v9244_v39 }
0x1842   :  { %v10074_v44 = vclamps-f32 %v9034_v57, 1.0  ;;  %v13307_v15 = vmul.f32 %v13303_v17, %v11643_v56 }
0x1844   :  { %v9237_v37 = vadd.f32 1.0, %v10074_v44  ;;  %v9117_v3 = vmul.f32 %v13307_v15, %v13307_v15 }
0x1845   :  { %v8953_v9 = vpop.f32.mrf.mxu3 }
0x1846   :  { %v9243_v20 = vmul.f32 %v9237_v37, %v8985_v63  ;;  %v9118_v55 = vmin.f32 %v9117_v3, 16.0  ;;  %v13313_v27 = vadd.f32 %v8953_v9, %v13169_v4 }
0x1848   :  { %v9119_v26 = vmul.f32 2.1237322e-06, %v9118_v55  ;;  %v9130_v46 = vmul.f32 3.8918573e-05, %v9118_v55  ;;  %v13317_v32 = vmul.f32 %v13313_v27, %v11643_v56  ;;  %9265 = vmatmul.f32.vlgmr.msrb.gmra.mxu1 %v9243_v20 }
0x184a   :  { %v9120_v31 = vadd.f32 0.00028619796, %v9119_v26  ;;  %v9131_v38 = vadd.f32 0.001143296, %v9130_v46  ;;  %v9077_v54 = vmul.f32 %v13317_v32, %v13317_v32 }
0x184c   :  { %v9121_v59 = vmul.f32 %v9120_v31, %v9118_v55  ;;  %v9132_v33 = vmul.f32 %v9131_v38, %v9118_v55  ;;  %v13321_v0 = vmin.f32 %v9077_v54, 16.0 }
0x184e   :  { %v9122_v42 = vadd.f32 0.0036580483, %v9121_v59  ;;  %v9133_v8 = vadd.f32 0.014752088, %v9132_v33  ;;  %v9079_v28 = vmul.f32 2.1237322e-06, %v13321_v0  ;;  %v8982_v61 = vpop.f32.mrf.mxu0 }
0x184f   :  { %v9090_v29 = vmul.f32 3.8918573e-05, %v13321_v0  ;;  %v13326_v40 = vadd.f32 %v8982_v61, %v13156_v35 }
0x1850   :  { %v9123_v24 = vmul.f32 %v9122_v42, %v9118_v55  ;;  %v9134_v48 = vmul.f32 %v9133_v8, %v9118_v55  ;;  %v9080_v51 = vadd.f32 0.00028619796, %v9079_v28 }
0x1851   :  { %v9091_v49 = vadd.f32 0.001143296, %v9090_v29  ;;  %v13330_v1 = vmul.f32 %v13326_v40, %v11643_v56 }
0x1852   :  { %v9135_v52 = vadd.f32 0.112945676, %v9134_v48  ;;  %v9081_v50 = vmul.f32 %v9080_v51, %v13321_v0  ;;  %v9124_v18 = vadd.f32 0.05243302, %v9123_v24 }
0x1853   :  { %v9092_v11 = vmul.f32 %v9091_v49, %v13321_v0  ;;  %v9197_v41 = vmul.f32 %v13330_v1, %v13330_v1 }
0x1854   :  { %v9136_v13 = vmul.f32 %v9135_v52, %v9118_v55  ;;  %v9082_v35 = vadd.f32 0.0036580483, %v9081_v50  ;;  %v8956_v25 = vpop.f32.mrf.mxu3  ;;  %v9125_v62 = vmul.f32 %v9124_v18, %v9118_v55 }
0x1855   :  { %v9093_v19 = vadd.f32 0.014752088, %v9092_v11  ;;  %v13336_v47 = vmin.f32 %v9197_v41, 16.0  ;;  %v13339_v2 = vadd.f32 %v8956_v25, %v13169_v4 }
0x1856   :  { %v9137_v14 = vadd.f32 0.4994258, %v9136_v13  ;;  %v9083_v60 = vmul.f32 %v9082_v35, %v13321_v0  ;;  %v9126_v45 = vadd.f32 0.18741608, %v9125_v62 }
0x1857   :  { %v9094_v12 = vmul.f32 %v9093_v19, %v13321_v0  ;;  %v9199_v58 = vmul.f32 2.1237322e-06, %v13336_v47  ;;  %v9210_v23 = vmul.f32 3.8918573e-05, %v13336_v47  ;;  %v13347_v22 = vmul.f32 %v13339_v2, %v11643_v56 }
0x1858   :  { %v9138_v34 = vmul.f32 %v9137_v14, %v9118_v55  ;;  %v9084_v21 = vadd.f32 0.05243302, %v9083_v60  ;;  %v9127_v9 = vmul.f32 %v9126_v45, %v9118_v55 }
0x1859   :  { %v9095_v43 = vadd.f32 0.112945676, %v9094_v12  ;;  %v9200_v16 = vadd.f32 0.00028619796, %v9199_v58  ;;  %v9211_v53 = vadd.f32 0.001143296, %v9210_v23  ;;  %v9157_v36 = vmul.f32 %v13347_v22, %v13347_v22 }
0x185a   :  { %v9139_v4 = vadd.f32 1.0, %v9138_v34  ;;  %v9085_v20 = vmul.f32 %v9084_v21, %v13321_v0  ;;  %v9128_v28 = vadd.f32 1.1283791, %v9127_v9 }
0x185b   :  { %v9096_v7 = vmul.f32 %v9095_v43, %v13321_v0  ;;  %v9201_v30 = vmul.f32 %v9200_v16, %v13336_v47  ;;  %v9212_v39 = vmul.f32 %v9211_v53, %v13336_v47  ;;  %v13354_v44 = vmin.f32 %v9157_v36, 16.0 }
0x185c   :  { %10561 = vrcp.f32 %v9139_v4  ;;  %v9086_v61 = vadd.f32 0.18741608, %v9085_v20  ;;  %v9149_v51 = vand.u32 2147483647, %v9139_v4  ;;  %v9151_v49 = vand.u32 2147483648, %v9139_v4 }
0x185d   :  { %v9097_v57 = vadd.f32 0.4994258, %v9096_v7  ;;  %v9202_v56 = vadd.f32 0.0036580483, %v9201_v30  ;;  %v9213_v63 = vadd.f32 0.014752088, %v9212_v39  ;;  %vm9145_vm15 = vweird.f32 %v9139_v4 }
0x185e   :  { %v9159_v3 = vmul.f32 2.1237322e-06, %v13354_v44  ;;  %v9170_v46 = vmul.f32 3.8918573e-05, %v13354_v44  ;;  %v9087_v18 = vmul.f32 %v9086_v61, %v13321_v0  ;;  %v9129_v12 = vmul.f32 %v9128_v28, %v13307_v15 }
0x185f   :  { %v9098_v37 = vmul.f32 %v9097_v57, %v13321_v0  ;;  %v9214_v26 = vmul.f32 %v9213_v63, %v13336_v47  ;;  %v9203_v59 = vmul.f32 %v9202_v56, %v13336_v47  ;;  %vm9150_vm2 = vcmp.eq.f32.partialorder %v9149_v51, 8.507059e+37 }
0x1860   :  { %v9160_v38 = vadd.f32 0.00028619796, %v9159_v3  ;;  %v9171_v42 = vadd.f32 0.001143296, %v9170_v46  ;;  %v9152_v58 = vor.u32 1.1754944e-38, %v9151_v49  ;;  %v8988_v63 = vmul.f32 0.5, %v13303_v17 }
0x1861   :  { %v9099_v31 = vadd.f32 1.0, %v9098_v37  ;;  %v9215_v33 = vadd.f32 0.112945676, %v9214_v26  ;;  %v9204_v52 = vadd.f32 0.05243302, %v9203_v59 }
0x1862   :  { %v10562_v54 = vpop.eup %10561  ;;  %v9161_v24 = vmul.f32 %v9160_v38, %v13354_v44  ;;  %v9172_v48 = vmul.f32 %v9171_v42, %v13354_v44  ;;  %v9088_v0 = vadd.f32 1.1283791, %v9087_v18 }
0x1863   :  { %v9141_v8 = vmul.f32 %v10562_v54, %v9139_v4  ;;  %10563 = vrcp.f32 %v9099_v31  ;;  %v9216_v55 = vmul.f32 %v9215_v33, %v13336_v47  ;;  %vm9146_vm14 = vweird.f32 %v10562_v54 }
0x1864   :  { %v9173_v41 = vadd.f32 0.014752088, %v9172_v48  ;;  %v9162_v19 = vadd.f32 0.0036580483, %v9161_v24  ;;  %vm9147_vm1 = vmor %vm9145_vm15, %vm9146_vm14  ;;  %v9205_v34 = vmul.f32 %v9204_v52, %v13336_v47  ;;  %v9111_v36 = vand.u32 2147483648, %v9099_v31 }
0x1865   :  { %v9142_v29 = vsub.f32 1.0, %v9141_v8  ;;  %v9217_v11 = vadd.f32 0.4994258, %v9216_v55  ;;  %v9109_v15 = vand.u32 2147483647, %v9099_v31  ;;  %vm9105_vm5 = vweird.f32 %v9099_v31 }
0x1866   :  { %v9174_v14 = vmul.f32 %v9173_v41, %v13354_v44  ;;  %v9163_v7 = vmul.f32 %v9162_v19, %v13354_v44  ;;  %v9206_v45 = vadd.f32 0.18741608, %v9205_v34  ;;  %v9112_v37 = vor.u32 1.1754944e-38, %v9111_v36 }
0x1867   :  { %v9143_v50 = vmul.f32 %v10562_v54, %v9142_v29  ;;  %v9218_v25 = vmul.f32 %v9217_v11, %v13336_v47  ;;  %v9089_v20 = vmul.f32 %v9088_v0, %v13317_v32  ;;  %vm9110_vm3 = vcmp.eq.f32.partialorder %v9109_v15, 8.507059e+37 }
0x1868   :  { %v9175_v43 = vadd.f32 0.112945676, %v9174_v14  ;;  %v9164_v3 = vadd.f32 0.05243302, %v9163_v7  ;;  %v9207_v59 = vmul.f32 %v9206_v45, %v13336_v47  ;;  %v8987_v29 = vmul.f32 0.5, %v13313_v27 }
0x1869   :  { %v10564_v13 = vpop.eup %10563  ;;  %v9144_v35 = vadd.f32 %v10562_v54, %v9143_v50  ;;  %v9219_v60 = vadd.f32 1.0, %v9218_v25 }
0x186a   :  { %v9101_v23 = vmul.f32 %v10564_v13, %v9099_v31  ;;  %vm9106_vm4 = vweird.f32 %v10564_v13  ;;  %v9176_v39 = vmul.f32 %v9175_v43, %v13354_v44  ;;  %v9165_v8 = vmul.f32 %v9164_v3, %v13354_v44  ;;  %v10630_v3 = vld [vmem:[%s13583_s4 + $0x10] sm:$0xff] }
0x186b   :  { %v9148_v62 = vsel %vm9147_vm1, %v10562_v54, %v9144_v35  ;;  %10565 = vrcp.f32 %v9219_v60  ;;  %vm9107_vm9 = vmor %vm9105_vm5, %vm9106_vm4  ;;  %v9208_v32 = vadd.f32 1.1283791, %v9207_v59  ;;  %v9231_v55 = vand.u32 2147483648, %v9219_v60  ;;  %v13424_v59 = vld [vmem:[%s13584_s5 + $0x20] sm:$0xff] }
0x186c   :  { %v9153_v16 = vsel %vm9150_vm2, %v9152_v58, %v9148_v62  ;;  %v9102_v53 = vsub.f32 1.0, %v9101_v23  ;;  %v9177_v56 = vadd.f32 0.4994258, %v9176_v39  ;;  %v9229_v48 = vand.u32 2147483647, %v9219_v60 }
0x186d   :  { %v9154_v4 = vmul.f32 %v9153_v16, %v9129_v12  ;;  %v9166_v49 = vadd.f32 0.18741608, %v9165_v8  ;;  %vm9225_vm10 = vweird.f32 %v9219_v60  ;;  %v9232_v50 = vor.u32 1.1754944e-38, %v9231_v55 }
0x186e   :  { %v9103_v30 = vmul.f32 %v10564_v13, %v9102_v53  ;;  %v9178_v46 = vmul.f32 %v9177_v56, %v13354_v44  ;;  %v9209_v11 = vmul.f32 %v9208_v32, %v13330_v1  ;;  %vm9230_vm12 = vcmp.eq.f32.partialorder %v9229_v48, 8.507059e+37 }
0x186f   :  { %v10077_v21 = vclamps-f32 %v9154_v4, 1.0  ;;  %v8990_v12 = vmul.f32 0.5, %v13326_v40  ;;  %v8989_v40 = vmul.f32 0.5, %v13339_v2  ;;  %v13392_v2 = vld [vmem:[%s13584_s5 + $0x60] sm:$0xff]  ;;  %vm9342_vm4 = vcmask 1041409  }
0x1870   :  { %v9104_v57 = vadd.f32 %v10564_v13, %v9103_v30  ;;  %v9179_v17 = vadd.f32 1.0, %v9178_v46  ;;  %v13416_v46 = vld [vmem:[%s13584_s5 + $0x30] sm:$0xff]  ;;  %vm9344_vm5 = vcmask 1042434  }
0x1871   :  { %v9240_v9 = vadd.f32 1.0, %v10077_v21  ;;  %v10566_v38 = vpop.eup %10565 }
0x1872   :  { %v9108_v26 = vsel %vm9107_vm9, %v10564_v13, %v9104_v57  ;;  %v9221_v31 = vmul.f32 %v10566_v38, %v9219_v60  ;;  %10567 = vrcp.f32 %v9179_v17  ;;  %vm9226_vm7 = vweird.f32 %v10566_v38 }
0x1873   :  { %v9113_v54 = vsel %vm9110_vm3, %v9112_v37, %v9108_v26  ;;  %v9246_v33 = vmul.f32 %v9240_v9, %v8988_v63  ;;  %vm9227_vm11 = vmor %vm9225_vm10, %vm9226_vm7  ;;  %v9167_v13 = vmul.f32 %v9166_v49, %v13354_v44  ;;  %v9191_v23 = vand.u32 2147483648, %v9179_v17 }
0x1874   :  { %v9114_v42 = vmul.f32 %v9113_v54, %v9089_v20  ;;  %v9222_v28 = vsub.f32 1.0, %v9221_v31  ;;  %v9189_v34 = vand.u32 2147483647, %v9179_v17  ;;  %vm9185_vm14 = vweird.f32 %v9179_v17  ;;  %v13403_v20 = vld [vmem:[%s13584_s5 + $0x50] sm:$0xff]  ;;  %v13436_v31 = vld [vmem:[%s13584_s5 + $0x18] sm:$0xff] }
0x1875   :  { %9294 = vmatmul.f32.gmra.mxu2 %v9246_v33  ;;  %v9168_v58 = vadd.f32 1.1283791, %v9167_v13  ;;  %v9192_v16 = vor.u32 1.1754944e-38, %v9191_v23  ;;  %v9304_v9 = vperm.slane %v10630_v3, 7  ;;  %v10250_v33 = vpack.i.bf16 %v13424_v59, %v13416_v46 }
0x1876   :  { %v10076_v61 = vclamps-f32 %v9114_v42, 1.0  ;;  %v9223_v24 = vmul.f32 %v10566_v38, %v9222_v28  ;;  %vm9190_vm1 = vcmp.eq.f32.partialorder %v9189_v34, 8.507059e+37  ;;  %v13431_v42 = vld [vmem:[%s13584_s5 + $0x10] sm:$0xff]  ;;  %v13445_v28 = vld [vmem:[%s13584_s5 + $0x8] sm:$0xff]  ;;  %vm9393_vm9 = vcmask 124992  }
0x1877   :  { %v9169_v0 = vmul.f32 %v9168_v58, %v13347_v22  ;;  %v13386_v22 = vld [vmem:[%s13584_s5 + $0x70] sm:$0xff]  ;;  %vm9368_vm3 = vcmask 59392  }
0x1878   :  { %v9239_v51 = vadd.f32 1.0, %v10076_v61  ;;  %v9224_v47 = vadd.f32 %v10566_v38, %v9223_v24  ;;  %v10568_v18 = vpop.eup %10567  ;;  %9356 = vmatpush.msrb.mxu3 %v13386_v22  ;;  %v13450_v61 = vld [vmem:[%s13584_s5] sm:$0xff] }
0x1879   :  { %v9181_v25 = vmul.f32 %v10568_v18, %v9179_v17  ;;  %vm9186_vm13 = vweird.f32 %v10568_v18  ;;  %v10270_v17 = vpack.i.bf16 %v13436_v31, %v13431_v42  ;;  %v10275_v32 = vpack.i.bf16 %v13445_v28, %v13450_v61 }
0x187a   :  { %v9245_v52 = vmul.f32 %v9239_v51, %v8987_v29  ;;  %v9228_v41 = vsel %vm9227_vm11, %v10566_v38, %v9224_v47  ;;  %vm9187_vm15 = vmor %vm9185_vm14, %vm9186_vm13  ;;  %9357 = vmatpush.msrb.mxu3 %v13392_v2  ;;  %v10661_v29 = vmov 8.0   ;;  %v10255_v55 = vpack.i.bf16 %v13450_v61, %v13431_v42 }
0x187b   :  { %v9233_v27 = vsel %vm9230_vm12, %v9232_v50, %v9228_v41  ;;  %v9182_v19 = vsub.f32 1.0, %v9181_v25  ;;  %10569 = vrcp.f32 %v10661_v29 }
0x187c   :  { %9268 = vmatmul.f32.gmra.mxu1 %v9245_v52  ;;  %v9234_v35 = vmul.f32 %v9233_v27, %v9209_v11  ;;  %9358 = vmatpush.msrb.mxu3 %v13403_v20 }
0x187d   :  { %v9183_v62 = vmul.f32 %v10568_v18, %v9182_v19 }
0x187e   :  { %v10079_v14 = vclamps-f32 %v9234_v35, 1.0 }
0x187f   :  { %v9184_v1 = vadd.f32 %v10568_v18, %v9183_v62 }
0x1880   :  { %v9242_v60 = vadd.f32 1.0, %v10079_v14 }
0x1881   :  { %v9188_v44 = vsel %vm9187_vm15, %v10568_v18, %v9184_v1  ;;  %v10570_v49 = vpop.eup %10569 }
0x1882   :  { %v9248_v43 = vmul.f32 %v9242_v60, %v8990_v12  ;;  %v9193_v53 = vsel %vm9190_vm1, %v9192_v16, %v9188_v44  ;;  %v9330_v11 = vmul.f32 8.0, %v10570_v49  ;;  %vm9334_vm2 = vweird.f32 %v10570_v49 }
0x1883   :  { %v9194_v4 = vmul.f32 %v9193_v53, %v9169_v0 }
0x1884   :  { %9297 = vmatmul.f32.gmra.mxu2 %v9248_v43  ;;  %v9331_v25 = vsub.f32 1.0, %v9330_v11 }
0x1885   :  { %v10078_v36 = vclamps-f32 %v9194_v4, 1.0 }
0x1886   :  { %v9332_v23 = vmul.f32 %v10570_v49, %v9331_v25 }
0x1887   :  { %v9241_v7 = vadd.f32 1.0, %v10078_v36 }
0x1888   :  { %v9333_v43 = vadd.f32 %v10570_v49, %v9332_v23  ;;  %v64_v23 = vld [vmem:[%s13584_s5 + $0x38] sm:$0xff] }
0x1889   :  { %v9247_v30 = vmul.f32 %v9241_v7, %v8989_v40 }
0x188a   :  { %v9335_v4 = vsel %vm9334_vm2, %v10570_v49, %v9333_v43  ;;  %vm9431_vm2 = vcmask 130048  }
0x188b   :  { %9271 = vmatmul.f32.gmra.mxu1 %v9247_v30 }
0x18c4   :  { %v9292_v15 = vpop.f32.mrf.mxu2 }
0x18c5   :  { %v9266_v39 = vpop.f32.mrf.mxu1 }
0x18c6   :  { %v9293_v21 = vadd.f32 %v9292_v15, %v9266_v39 }
0x18c8   :  { %v9301_v37 = vadd.f32 %v9293_v21, %v13001_v5  ;;  %v13411_v5 = vld [vmem:[%s13584_s5 + $0x40] sm:$0xff] }
0x18c9   :  { %v10245_v54 = vpack.i.bf16 %v13411_v5, %v13403_v20  ;;  %9359 = vmatpush.msrb.mxu3 %v13411_v5 }
0x18ca   :  { %v9305_v38 = vadd.f32 %v9304_v9, %v9301_v37 }
0x18cb   :  { %9360 = vmatpush.msrb.mxu3 %v13416_v46 }
0x18cc   :  { %v9308_v24 = vsel %vm314_vm8, %v9305_v38, 0.0 }
0x18cd   :  { %9361 = vmatpush.msrb.mxu3 %v13424_v59  ;;  %v9309_v51 = vrot.slane %v9308_v24, 4 }
0x18cf   :  { %9362 = vmatpush.msrb.mxu3 %v13431_v42  ;;  %v9310_v50 = vadd.f32 %v9309_v51, %v9308_v24  ;;  %v10235_v24 = vpack.i.bf16 %v13445_v28, %v13436_v31 }
0x18d1   :  { %9363 = vmatpush.msrb.mxu3 %v13450_v61  ;;  %v9311_v13 = vrot.slane %v9310_v50, 2 }
0x18d3   :  { %v9312_v12 = vadd.f32 %v9311_v13, %v9310_v50 }
0x18d5   :  { %v9313_v1 = vrot.slane %v9312_v12, 1 }
0x18d7   :  { %v9314_v53 = vadd.f32 %v9313_v1, %v9312_v12 }
0x18d9   :  { %v9336_v7 = vmul.f32 %v9335_v4, %v9314_v53 }
0x18f8   :  { %v9295_v45 = vpop.f32.mrf.mxu2 }
0x18f9   :  { %v9269_v57 = vpop.f32.mrf.mxu1 }
0x18fa   :  { %v9296_v56 = vadd.f32 %v9295_v45, %v9269_v57 }
0x18fc   :  { %v9302_v63 = vadd.f32 %v9296_v56, %v13006_v6  ;;  %v10240_v6 = vpack.i.bf16 %v13392_v2, %v13386_v22 }
0x18fe   :  { %v9306_v26 = vadd.f32 %v9304_v9, %v9302_v63 }
0x1900   :  { %v9315_v8 = vsel %vm314_vm8, %v9306_v26, 0.0 }
0x1901   :  { %v9316_v48 = vrot.slane %v9315_v8, 4 }
0x1903   :  { %v9317_v47 = vadd.f32 %v9316_v48, %v9315_v8 }
0x1905   :  { %v9318_v18 = vrot.slane %v9317_v47, 2 }
0x1907   :  { %v9298_v52 = vpop.f32.mrf.mxu2  ;;  %v9319_v19 = vadd.f32 %v9318_v18, %v9317_v47 }
0x1908   :  { %v9272_v41 = vpop.f32.mrf.mxu1 }
0x1909   :  { %v9299_v27 = vadd.f32 %v9298_v52, %v9272_v41  ;;  %v9320_v34 = vrot.slane %v9319_v19, 1 }
0x190b   :  { %v9303_v35 = vadd.f32 %v9299_v27, %v13011_v10  ;;  %v9321_v0 = vadd.f32 %v9320_v34, %v9319_v19 }
0x190d   :  { %v9307_v14 = vadd.f32 %v9304_v9, %v9303_v35  ;;  %v9337_v10 = vmul.f32 %v9335_v4, %v9321_v0  ;;  %v10260_v0 = vpack.i.bf16 %v64_v23, %v13416_v46 }
0x190f   :  { %v9322_v58 = vsel %vm314_vm8, %v9307_v14, 0.0  ;;  %v9343_v15 = vsel %vm9342_vm4, %v9337_v10, %v9336_v7 }
0x1910   :  { %v9323_v62 = vrot.slane %v9322_v58, 4 }
0x1912   :  { %v9324_v60 = vadd.f32 %v9323_v62, %v9322_v58  ;;  %v62_v62 = vld [vmem:[%s13584_s5 + $0x28] sm:$0xff] }
0x1914   :  { %v9325_v16 = vrot.slane %v9324_v60, 2 }
0x1916   :  { %v9326_v44 = vadd.f32 %v9325_v16, %v9324_v60 }
0x1918   :  { %v9327_v36 = vrot.slane %v9326_v44, 1 }
0x191a   :  { %v9328_v40 = vadd.f32 %v9327_v36, %v9326_v44  ;;  %v10265_v44 = vpack.i.bf16 %v62_v62, %v13424_v59 }
0x191c   :  { %v9338_v30 = vmul.f32 %v9335_v4, %v9328_v40 }
0x191e   :  { %v13462_v39 = vsel %vm9344_vm5, %v9338_v30, %v9343_v15 }
0x191f   :  { %10080 = vmatmul.msk.f32.vlgmr.msrb.gmra.mxu3 %vm314_vm8, %v13462_v39 }
0x19a2   :  { %v9365_v45 = vpop.f32.mrf.mxu3 }
0x19a3   :  { %v9394_v21 = vsel %vm9393_vm9, %v9365_v45, -inf  ;;  %v9369_v57 = vsel %vm9368_vm3, %v9365_v45, -inf }
0x19a4   :  { %9395 = vmax.xlane.f32.xlu2 %v9394_v21 }
0x19ac   :  { %9370 = vmax.xlane.f32.xlu2 %v9369_v57 }
0x1a17   :  { %v9396_v56 = vpop.xlane.xlu2 %9395 }
0x1a18   :  { %v9397_v63 = vsub.f32 %v9365_v45, %v9396_v56 }
0x1a1a   :  { %v9398_v37 = vmul.f32 1.442695, %v9397_v63  ;;  %v70_v63 = vld [vmem:[%s13584_s5 + $0x68] sm:$0xff] }
0x1a1c   :  { %10571 = vpow2.f32 %v9398_v37  ;;  %v68_v37 = vld [vmem:[%s13584_s5 + $0x58] sm:$0xff] }
0x1a1d   :  { %v10290_v42 = vpack.i.bf16 %v68_v37, %v13403_v20 }
0x1a1f   :  { %v9371_v3 = vpop.xlane.xlu2 %9370 }
0x1a20   :  { %v9372_v9 = vsub.f32 %v9365_v45, %v9371_v3 }
0x1a22   :  { %v10572_v26 = vpop.eup %10571  ;;  %v9373_v38 = vmul.f32 1.442695, %v9372_v9  ;;  %v10285_v9 = vpack.i.bf16 %v70_v63, %v13392_v2 }
0x1a23   :  { %9401 = vrot.lane.b32.xlu1 %v10572_v26, %s10662_s29 }
0x1a24   :  { %10573 = vpow2.f32 %v9373_v38 }
0x1a2a   :  { %v10574_v8 = vpop.eup %10573 }
0x1a2b   :  { %v9375_v29 = vsel %vm9368_vm3, %v10574_v8, 0.0  ;;  %10246 = vrot.lane.b32.xlu1 %v10245_v54, %s10664_s0 }
0x1a2c   :  { %9376 = vadd.xlane.f32.xlu2 %v9375_v29 }
0x1a33   :  { %10251 = vrot.lane.b32.xlu1 %v10250_v33, %s10664_s0 }
0x1a3b   :  { %10261 = vrot.lane.b32.xlu1 %v10260_v0, %s10665_s10 }
0x1a43   :  { %10271 = vrot.lane.b32.xlu1 %v10270_v17, %s10665_s10 }
0x1a44   :  { %10236 = vrot.lane.b32.xlu2 %v10235_v24, %s10663_s30 }
0x1a4b   :  { %10286 = vrot.lane.b32.xlu1 %v10285_v9, %s10665_s10 }
0x1a4c   :  { %10256 = vrot.lane.b32.xlu2 %v10255_v55, %s10664_s0 }
0x1a95   :  { %v9402_v48 = vpop.permute.xlu1 %9401 }
0x1a96   :  { %v9404_v51 = vsel %vm9368_vm3, %v9402_v48, 0.0 }
0x1a97   :  { %9405 = vadd.xlane.f32.xlu0 %v9404_v51  ;;  %v72_v51 = vld [vmem:[%s13584_s5 + $0x78] sm:$0xff] }
0x1a9d   :  { %v10247_v60 = vpop.permute.xlu1 %10246 }
0x1a9e   :  { %v10248_v46 = vunpack.i.l.bf16 %v10247_v60  ;;  %v10249_v45 = vunpack.i.h.bf16 %v10247_v60 }
0x1a9f   :  { %v9377_v49 = vpop.xlane.xlu2 %9376 }
0x1aa0   :  { %10575 = vrcp.f32 %v9377_v49  ;;  %v9389_v35 = vand.u32 2147483648, %v9377_v49  ;;  %vm9383_vm10 = vweird.f32 %v9377_v49  ;;  %v9387_v25 = vand.u32 2147483647, %v9377_v49 }
0x1aa2   :  { %v9390_v34 = vor.u32 1.1754944e-38, %v9389_v35  ;;  %vm9388_vm13 = vcmp.eq.f32.partialorder %v9387_v25, 8.507059e+37 }
0x1aa5   :  { %v10252_v59 = vpop.permute.xlu1 %10251 }
0x1aa6   :  { %v10576_v54 = vpop.eup %10575  ;;  %v10253_v21 = vunpack.i.l.bf16 %v10252_v59  ;;  %v10254_v56 = vunpack.i.h.bf16 %v10252_v59 }
0x1aa7   :  { %v10237_v47 = vpop.permute.xlu2 %10236  ;;  %v9379_v11 = vmul.f32 %v10576_v54, %v9377_v49  ;;  %vm9384_vm7 = vweird.f32 %v10576_v54  ;;  %v10280_v49 = vpack.i.bf16 %v72_v51, %v13386_v22 }
0x1aa8   :  { %v10239_v52 = vunpack.i.h.bf16 %v10237_v47  ;;  %v10238_v50 = vunpack.i.l.bf16 %v10237_v47  ;;  %vm9385_vm11 = vmor %vm9383_vm10, %vm9384_vm7  ;;  %v66_v47 = vld [vmem:[%s13584_s5 + $0x48] sm:$0xff] }
0x1aa9   :  { %v9380_v41 = vsub.f32 1.0, %v9379_v11 }
0x1aaa   :  { %9449 = vmatpush.msra.mxu0 %v10238_v50 }
0x1aab   :  { %10241 = vrot.lane.b32.xlu0 %v10240_v6, %s10664_s0  ;;  %v9381_v55 = vmul.f32 %v10576_v54, %v9380_v41 }
0x1aac   :  { %9450 = vmatpush.msra.mxu0 %v10239_v52  ;;  %v10295_v52 = vpack.i.bf16 %v66_v47, %v13411_v5  ;;  %v56_v5 = vld [vmem:[%s13583_s4 + $0x28] sm:$0x1] }
0x1aad   :  { %v9382_v13 = vadd.f32 %v10576_v54, %v9381_v55  ;;  %v10262_v17 = vpop.permute.xlu1 %10261 }
0x1aae   :  { %v10264_v61 = vunpack.i.h.bf16 %v10262_v17 }
0x1aaf   :  { %v9386_v12 = vsel %vm9385_vm11, %v10576_v54, %v9382_v13  ;;  %v10257_v57 = vpop.permute.xlu2 %10256 }
0x1ab0   :  { %v9391_v43 = vsel %vm9388_vm13, %v9390_v34, %v9386_v12  ;;  %v10258_v3 = vunpack.i.l.bf16 %v10257_v57 }
0x1ab1   :  { %v9392_v36 = vmul.f32 %v10574_v8, %v9391_v43 }
0x1ab3   :  { %10266 = vrot.lane.b32.xlu0 %v10265_v44, %s10665_s10 }
0x1abb   :  { %10276 = vrot.lane.b32.xlu0 %v10275_v32, %s10665_s10  ;;  %v10263_v32 = vunpack.i.l.bf16 %v10262_v17 }
0x1ac3   :  { %10291 = vrot.lane.b32.xlu0 %v10290_v42, %s10665_s10 }
0x1acb   :  { %9601 = vrot.lane.b32.xlu0 %v56_v5, %s10666_s22 }
0x1b0a   :  { %v9406_v18 = vpop.xlane.xlu0 %9405 }
0x1b0b   :  { %10577 = vrcp.f32 %v9406_v18  ;;  %v9418_v14 = vand.u32 2147483648, %v9406_v18  ;;  %v9416_v58 = vand.u32 2147483647, %v9406_v18  ;;  %vm9412_vm14 = vweird.f32 %v9406_v18 }
0x1b0d   :  { %v9419_v16 = vor.u32 1.1754944e-38, %v9418_v14  ;;  %vm9417_vm1 = vcmp.eq.f32.partialorder %v9416_v58, 8.507059e+37 }
0x1b11   :  { %v10578_v27 = vpop.eup %10577 }
0x1b12   :  { %v9408_v33 = vmul.f32 %v10578_v27, %v9406_v18  ;;  %vm9413_vm12 = vweird.f32 %v10578_v27 }
0x1b13   :  { %vm9414_vm15 = vmor %vm9412_vm14, %vm9413_vm12 }
0x1b14   :  { %v9409_v19 = vsub.f32 1.0, %v9408_v33 }
0x1b16   :  { %v9410_v6 = vmul.f32 %v10578_v27, %v9409_v19 }
0x1b18   :  { %v9411_v1 = vadd.f32 %v10578_v27, %v9410_v6 }
0x1b1a   :  { %v9415_v53 = vsel %vm9414_vm15, %v10578_v27, %v9411_v1  ;;  %v55_v27 = vld [vmem:[%s13583_s4 + $0x20] sm:$0x1]  ;;  %vm9804_vm15 = vcmask 1040384  }
0x1b1b   :  { %v9420_v4 = vsel %vm9417_vm1, %v9419_v16, %v9415_v53  ;;  %9599 = vrot.lane.b32.xlu1 %v55_v27, %s10666_s22  ;;  %vm9806_vm1 = vcmask 1041408  }
0x1b1c   :  { %v9421_v10 = vmul.f32 %v10572_v26, %v9420_v4  ;;  %v10259_v26 = vunpack.i.h.bf16 %v10257_v57  ;;  %v10667_v4 = vmov 0.0  }
0x1b1d   :  { %v10242_v40 = vpop.permute.xlu0 %10241 }
0x1b1e   :  { %v9422_v7 = vsel %vm1447_vm6, %v9392_v36, %v9421_v10  ;;  %v10244_v30 = vunpack.i.h.bf16 %v10242_v40  ;;  %v10243_v15 = vunpack.i.l.bf16 %v10242_v40  ;;  %vm9537_vm6 = vcmask 392192  }
0x1b1f   :  { %10081 = vmatmul.msk.f32.vlgmr.msra.gmra.mxu0 %vm9431_vm2, %v9422_v7  ;;  %v9541_v8 = vsel %vm9537_vm6, %v10263_v32, %v10264_v61  ;;  %vm9812_vm2 = vcmask 256000  }
0x1b20   :  { %9499 = vmatpush.msra.mxu3 %v10243_v15  ;;  %9561 = vmatpush.msrb.mxu0 %v9541_v8 }
0x1b22   :  { %9500 = vmatpush.msra.mxu3 %v10244_v30 }
0x1b24   :  { %9501 = vmatpush.msra.mxu3 %v10248_v46  ;;  %v10300_v46 = vld [vmem:[%s13583_s4 + $0x20] ss:$0 sm:$0xff]  ;;  %s10668_s4 = smov [#allocation2]  }
0x1b25   :  { %v10267_v28 = vpop.permute.xlu0 %10266 }
0x1b26   :  { %9502 = vmatpush.msra.mxu3 %v10249_v45  ;;  %v10269_v38 = vunpack.i.h.bf16 %v10267_v28  ;;  %v10268_v2 = vunpack.i.l.bf16 %v10267_v28 }
0x1b28   :  { %9503 = vmatpush.msra.mxu3 %v10253_v21  ;;  %v9540_v20 = vsel %vm9537_vm6, %v10268_v2, %v10269_v38 }
0x1b29   :  { %9562 = vmatpush.msrb.mxu0 %v9540_v20 }
0x1b2a   :  { %9504 = vmatpush.msra.mxu3 %v10254_v56 }
0x1b2c   :  { %9505 = vmatpush.msra.mxu3 %v10258_v3 }
0x1b2d   :  { %v10277_v50 = vpop.permute.xlu0 %10276 }
0x1b2e   :  { %9506 = vmatpush.msra.mxu3 %v10259_v26  ;;  %v10279_v41 = vunpack.i.h.bf16 %v10277_v50  ;;  %v10278_v18 = vunpack.i.l.bf16 %v10277_v50 }
0x1b30   :  { %v9538_v22 = vsel %vm9537_vm6, %v10278_v18, %v10279_v41 }
0x1b35   :  { %v10292_v19 = vpop.permute.xlu0 %10291 }
0x1b36   :  { %v10294_v62 = vunpack.i.h.bf16 %v10292_v19  ;;  %v10293_v34 = vunpack.i.l.bf16 %v10292_v19 }
0x1b38   :  { %v9590_v43 = vsel %vm9537_vm6, %v10293_v34, %v10294_v62 }
0x1b3d   :  { %v9602_v10 = vpop.permute.xlu0 %9601 }
0x1b9c   :  { %v9452_v31 = vpop.f32.mrf.mxu0 }
0x1b9d   :  { %10082 = vmatmul.msk.f32.vlgmr.msra.gmra.mxu3 %vm314_vm8, %v9452_v31 }
0x1c20   :  { %v9508_v29 = vpop.f32.mrf.mxu3 }
0x1c21   :  { %v9509_v24 = vadd.f32 %v9508_v29, %v13462_v39  ;;  %v10272_v39 = vpop.permute.xlu1 %10271 }
0x1c22   :  { %v10274_v54 = vunpack.i.h.bf16 %v10272_v39  ;;  %v10273_v11 = vunpack.i.l.bf16 %v10272_v39 }
0x1c23   :  { %v9511_v48 = vmax.f32 %v9509_v24, 0.0 }
0x1c24   :  { %v9539_v55 = vsel %vm9537_vm6, %v10273_v11, %v10274_v54 }
0x1c25   :  { %9513 = vrot.lane.b32.xlu2 %v9511_v48, %s10657_s23  ;;  %9563 = vmatpush.msrb.mxu0 %v9539_v55 }
0x1c27   :  { %9564 = vmatpush.msrb.mxu0 %v9538_v22 }
0x1c29   :  { %v10287_v25 = vpop.permute.xlu1 %10286 }
0x1c2a   :  { %v10289_v14 = vunpack.i.h.bf16 %v10287_v25  ;;  %v10288_v12 = vunpack.i.l.bf16 %v10287_v25 }
0x1c2c   :  { %v9591_v1 = vsel %vm9537_vm6, %v10288_v12, %v10289_v14 }
0x1c2d   :  { %10281 = vrot.lane.b32.xlu2 %v10280_v49, %s10665_s10 }
0x1c31   :  { %v9600_v40 = vpop.permute.xlu1 %9599 }
0x1c32   :  { %v13541_v7 = vsel %vm137_vm0, %v9600_v40, %v9602_v10 }
0x1c35   :  { %10296 = vrot.lane.b32.xlu2 %v10295_v52, %s10665_s10 }
0x1c7f   :  { %v9514_v13 = vpop.permute.xlu2 %9513 }
0x1c80   :  { %v9516_v33 = vadd.f32 %v9514_v13, %v9511_v48 }
0x1c82   :  { %v9517_v35 = vmul.f32 0.5, %v9516_v33 }
0x1c84   :  { %10083 = vmatmul.msk.f32.vlgmr.msrb.gmra.mxu0 %vm137_vm0, %v9517_v35 }
0x1c87   :  { %v10282_v6 = vpop.permute.xlu2 %10281 }
0x1c88   :  { %v10284_v58 = vunpack.i.h.bf16 %v10282_v6  ;;  %v10283_v23 = vunpack.i.l.bf16 %v10282_v6 }
0x1c8a   :  { %v9592_v60 = vsel %vm9537_vm6, %v10283_v23, %v10284_v58 }
0x1c8b   :  { %9620 = vmatpush.msra.mxu0 %v9592_v60  ;;  %9684 = vmatpush.msra.mxu1 %v9592_v60 }
0x1c8c   :  { %9753 = vmatpush.msrb.mxu3 %v9592_v60 }
0x1c8d   :  { %9621 = vmatpush.msra.mxu0 %v9591_v1  ;;  %9685 = vmatpush.msra.mxu1 %v9591_v1 }
0x1c8e   :  { %9754 = vmatpush.msrb.mxu3 %v9591_v1 }
0x1c8f   :  { %v10297_v16 = vpop.permute.xlu2 %10296  ;;  %9622 = vmatpush.msra.mxu0 %v9590_v43  ;;  %9686 = vmatpush.msra.mxu1 %v9590_v43 }
0x1c90   :  { %v10299_v0 = vunpack.i.h.bf16 %v10297_v16  ;;  %v10298_v44 = vunpack.i.l.bf16 %v10297_v16  ;;  %9755 = vmatpush.msrb.mxu3 %v9590_v43 }
0x1c92   :  { %v9589_v53 = vsel %vm9537_vm6, %v10298_v44, %v10299_v0 }
0x1c93   :  { %9623 = vmatpush.msra.mxu0 %v9589_v53  ;;  %9687 = vmatpush.msra.mxu1 %v9589_v53 }
0x1c94   :  { %9624 = vmatmul.f32.vlgmr.msra.gmra.mxu0 %v10667_v4  ;;  %9756 = vmatpush.msrb.mxu3 %v9589_v53 }
0x1d01   :  { %v9566_v36 = vpop.f32.mrf.mxu0 }
0x1d02   :  { %v13548_v59 = vadd.f32 %v10300_v46, %v9566_v36 }
0x1d11   :  { %v9625_v30 = vpop.f32.mrf.mxu0 }
0x1d12   :  { %v9626_v15 = vadd.f32 %v9625_v30, %v13541_v7 }
0x1d14   :  { %9649 = vrot.lane.b32.xlu2 %v9626_v15, %s10659_s17  ;;  %v9628_v45 = vadd.f32 %v9626_v15, %v13548_v59 }
0x1d16   :  { %v10084_v21 = vmul.f32 -1.442695, %v9628_v45 }
0x1d18   :  { %10579 = vpow2.f32 %v10084_v21 }
0x1d1e   :  { %v10580_v57 = vpop.eup %10579 }
0x1d1f   :  { %v9632_v56 = vadd.f32 1.0, %v10580_v57 }
0x1d21   :  { %10581 = vrcp.f32 %v9632_v56  ;;  %v9644_v42 = vand.u32 2147483648, %v9632_v56  ;;  %vm9638_vm4 = vweird.f32 %v9632_v56  ;;  %v9642_v31 = vand.u32 2147483647, %v9632_v56 }
0x1d23   :  { %v9645_v28 = vor.u32 1.1754944e-38, %v9644_v42  ;;  %vm9643_vm9 = vcmp.eq.f32.partialorder %v9642_v31, 8.507059e+37 }
0x1d27   :  { %v10582_v63 = vpop.eup %10581 }
0x1d28   :  { %v9634_v37 = vmul.f32 %v10582_v63, %v9632_v56  ;;  %vm9639_vm8 = vweird.f32 %v10582_v63 }
0x1d29   :  { %vm9640_vm5 = vmor %vm9638_vm4, %vm9639_vm8 }
0x1d2a   :  { %v9635_v3 = vsub.f32 1.0, %v9634_v37 }
0x1d2c   :  { %v9636_v9 = vmul.f32 %v10582_v63, %v9635_v3 }
0x1d2e   :  { %v9637_v26 = vadd.f32 %v10582_v63, %v9636_v9 }
0x1d30   :  { %v9641_v17 = vsel %vm9640_vm5, %v10582_v63, %v9637_v26 }
0x1d31   :  { %v9646_v32 = vsel %vm9643_vm9, %v9645_v28, %v9641_v17 }
0x1d32   :  { %v9659_v29 = vsub.f32 1.0, %v9646_v32  ;;  %v9665_v48 = vmul.f32 0.0, %v9646_v32 }
0x1d6e   :  { %v9650_v61 = vpop.permute.xlu2 %9649 }
0x1d6f   :  { %v9652_v38 = vmul.f32 %v9650_v61, %v9646_v32 }
0x1d71   :  { %9654 = vrot.lane.b32.xlu1 %v9652_v38, %s10659_s17 }
0x1de3   :  { %v9655_v2 = vpop.permute.xlu1 %9654 }
0x1de4   :  { %v9657_v8 = vadd.f32 %v9655_v2, %v13548_v59 }
0x1de6   :  { %10583 = vtanh.f32 %v9657_v8 }
0x1dec   :  { %v10584_v20 = vpop.eup %10583 }
0x1ded   :  { %9661 = vrot.lane.b32.xlu0 %v10584_v20, %s10657_s23 }
0x1e5f   :  { %v9662_v24 = vpop.permute.xlu0 %9661 }
0x1e60   :  { %v9664_v51 = vmul.f32 %v9662_v24, %v9659_v29 }
0x1e62   :  { %v13554_v49 = vadd.f32 %v9665_v48, %v9664_v51 }
0x1e64   :  { %9668 = vrot.lane.b32.xlu2 %v13554_v49, %s10657_s23  ;;  %v9731_v60 = vrot.slane %v13554_v49, 7 }
0x1ebe   :  { %v9669_v47 = vpop.permute.xlu2 %9668 }
0x1ebf   :  { %10085 = vmatmul.msk.f32.vlgmr.msra.gmra.mxu1 %vm137_vm0, %v9669_v47 }
0x1f3c   :  { %v9689_v52 = vpop.f32.mrf.mxu1 }
0x1f3d   :  { %v9690_v39 = vadd.f32 %v9689_v52, %v13541_v7 }
0x1f3f   :  { %v9693_v50 = vrot.slane %v9690_v39, 7 }
0x1f41   :  { %9715 = vrot.lane.b32.xlu1 %v9693_v50, %s10659_s17  ;;  %v9695_v54 = vadd.f32 %v9693_v50, %v13548_v59 }
0x1f43   :  { %v10086_v11 = vmul.f32 -1.442695, %v9695_v54 }
0x1f45   :  { %10585 = vpow2.f32 %v10086_v11 }
0x1f4b   :  { %v10586_v41 = vpop.eup %10585 }
0x1f4c   :  { %v9699_v18 = vadd.f32 1.0, %v10586_v41 }
0x1f4e   :  { %10587 = vrcp.f32 %v9699_v18  ;;  %v9711_v33 = vand.u32 2147483648, %v9699_v18  ;;  %vm9705_vm7 = vweird.f32 %v9699_v18  ;;  %v9709_v35 = vand.u32 2147483647, %v9699_v18 }
0x1f50   :  { %v9712_v19 = vor.u32 1.1754944e-38, %v9711_v33  ;;  %vm9710_vm11 = vcmp.eq.f32.partialorder %v9709_v35, 8.507059e+37 }
0x1f54   :  { %v10588_v55 = vpop.eup %10587 }
0x1f55   :  { %v9701_v22 = vmul.f32 %v10588_v55, %v9699_v18  ;;  %vm9706_vm3 = vweird.f32 %v10588_v55 }
0x1f56   :  { %vm9707_vm10 = vmor %vm9705_vm7, %vm9706_vm3 }
0x1f57   :  { %v9702_v27 = vsub.f32 1.0, %v9701_v22 }
0x1f59   :  { %v9703_v5 = vmul.f32 %v10588_v55, %v9702_v27 }
0x1f5b   :  { %v9704_v13 = vadd.f32 %v10588_v55, %v9703_v5 }
0x1f5d   :  { %v9708_v25 = vsel %vm9707_vm10, %v10588_v55, %v9704_v13 }
0x1f5e   :  { %v9713_v12 = vsel %vm9710_vm11, %v9712_v19, %v9708_v25 }
0x1f5f   :  { %v9725_v34 = vsub.f32 1.0, %v9713_v12  ;;  %v9733_v16 = vmul.f32 %v9731_v60, %v9713_v12 }
0x1fb3   :  { %v9716_v14 = vpop.permute.xlu1 %9715 }
0x1fb4   :  { %v9718_v6 = vmul.f32 %v9716_v14, %v9713_v12 }
0x1fb6   :  { %9720 = vrot.lane.b32.xlu0 %v9718_v6, %s10659_s17 }
0x2028   :  { %v9721_v58 = vpop.permute.xlu0 %9720 }
0x2029   :  { %v9723_v23 = vadd.f32 %v9721_v58, %v13548_v59 }
0x202b   :  { %10589 = vtanh.f32 %v9723_v23 }
0x2031   :  { %v10590_v62 = vpop.eup %10589 }
0x2032   :  { %9727 = vrot.lane.b32.xlu2 %v10590_v62, %s10657_s23 }
0x208c   :  { %v9728_v1 = vpop.permute.xlu2 %9727 }
0x208d   :  { %v9730_v43 = vmul.f32 %v9728_v1, %v9725_v34 }
0x208f   :  { %v9734_v0 = vadd.f32 %v9733_v16, %v9730_v43 }
0x2091   :  { %v9736_v44 = vrot.slane %v9734_v0, 1  ;;  %v9800_v38 = vrot.slane %v9734_v0, 7  ;;  %v9805_v24 = vsel %vm9804_vm15, %v13554_v49, %v9734_v0 }
0x2093   :  { %9737 = vrot.lane.b32.xlu1 %v9736_v44, %s10657_s23 }
0x2105   :  { %v9738_v53 = vpop.permute.xlu1 %9737 }
0x2106   :  { %10087 = vmatmul.msk.f32.vlgmr.msrb.gmra.mxu3 %vm137_vm0, %v9738_v53 }
0x2189   :  { %v9758_v4 = vpop.f32.mrf.mxu3 }
0x218a   :  { %v9759_v36 = vadd.f32 %v9758_v4, %v13541_v7 }
0x218c   :  { %v9762_v10 = vrot.slane %v9759_v36, 6 }
0x218e   :  { %9784 = vrot.lane.b32.xlu0 %v9762_v10, %s10659_s17  ;;  %v9764_v40 = vadd.f32 %v9762_v10, %v13548_v59 }
0x2190   :  { %v10088_v30 = vmul.f32 -1.442695, %v9764_v40 }
0x2192   :  { %10591 = vpow2.f32 %v10088_v30 }
0x2198   :  { %v10592_v15 = vpop.eup %10591 }
0x2199   :  { %v9768_v46 = vadd.f32 1.0, %v10592_v15 }
0x219b   :  { %10593 = vrcp.f32 %v9768_v46  ;;  %v9780_v37 = vand.u32 2147483648, %v9768_v46  ;;  %vm9774_vm0 = vweird.f32 %v9768_v46  ;;  %v9778_v3 = vand.u32 2147483647, %v9768_v46 }
0x219d   :  { %v9781_v9 = vor.u32 1.1754944e-38, %v9780_v37  ;;  %vm9779_vm14 = vcmp.eq.f32.partialorder %v9778_v3, 8.507059e+37 }
0x21a1   :  { %v10594_v45 = vpop.eup %10593 }
0x21a2   :  { %v9770_v21 = vmul.f32 %v10594_v45, %v9768_v46  ;;  %vm9775_vm12 = vweird.f32 %v10594_v45 }
0x21a3   :  { %vm9776_vm13 = vmor %vm9774_vm0, %vm9775_vm12 }
0x21a4   :  { %v9771_v57 = vsub.f32 1.0, %v9770_v21 }
0x21a6   :  { %v9772_v56 = vmul.f32 %v10594_v45, %v9771_v57 }
0x21a8   :  { %v9773_v63 = vadd.f32 %v10594_v45, %v9772_v56 }
0x21aa   :  { %v9777_v7 = vsel %vm9776_vm13, %v10594_v45, %v9773_v63 }
0x21ab   :  { %v9782_v42 = vsel %vm9779_vm14, %v9781_v9, %v9777_v7 }
0x21ac   :  { %v9794_v32 = vsub.f32 1.0, %v9782_v42  ;;  %v9802_v8 = vmul.f32 %v9800_v38, %v9782_v42 }
0x2200   :  { %v9785_v26 = vpop.permute.xlu0 %9784 }
0x2201   :  { %v9787_v31 = vmul.f32 %v9785_v26, %v9782_v42 }
0x2203   :  { %9789 = vrot.lane.b32.xlu2 %v9787_v31, %s10659_s17  ;;  %s9819_s17 = sshll.u32 %s10668_s4, 4  ;;  %s9820_s17 = int_to_ptr.vmem [resolvable:$true] %s9819_s17 }
0x225d   :  { %v9790_v17 = vpop.permute.xlu2 %9789 }
0x225e   :  { %v9792_v28 = vadd.f32 %v9790_v17, %v13548_v59 }
0x2260   :  { %10595 = vtanh.f32 %v9792_v28 }
0x2266   :  { %v10596_v61 = vpop.eup %10595 }
0x2267   :  { %9796 = vrot.lane.b32.xlu1 %v10596_v61, %s10657_s23 }
0x22d9   :  { %v9797_v2 = vpop.permute.xlu1 %9796 }
0x22da   :  { %v9799_v20 = vmul.f32 %v9797_v2, %v9794_v32 }
0x22dc   :  { %v9803_v29 = vadd.f32 %v9802_v8, %v9799_v20 }
0x22de   :  { %v9807_v48 = vsel %vm9806_vm1, %v9805_v24, %v9803_v29 }
0x22df   :  { %9809 = vrot.lane.b32.xlu0 %v9807_v48, %s10657_s23 }
0x2351   :  { %v9810_v59 = vpop.permute.xlu0 %9809 }
0x2352   :  { %9813 = vst.msk [vmem:[#allocation2] sm:$0x7] %vm9812_vm2, %v9810_v59 }
0x2353   :  { %9824 = dma.vmem_to_hbm [thread:$0]  %s9820_s17, 64, %s9822_s28, [#allocation3]  }
0x2354   :  { %10655 = dma.done.wait [#allocation3], 64  }
0x2355   :  { %10656 = vsyncadd [#allocation3], 4294967232 }
0x2356   :  { %9829 = vsyncpa [#allocation3], 1 }

</bundles_post_ra>
